<compile_context>
chip_gen: v7x
topology: tpu7x:2x2x1
jax: 0.10.0
libtpu: 0.0.40
codegen_flags: <defaults>
</compile_context>

<pallas_src>
import functools

import numpy as np
import jax
import jax.numpy as jnp
from jax.experimental import pallas as pl
from jax.experimental.pallas import tpu as pltpu

FEAT_SIZE = 8  # feat_size = 8 in the module


# ---------------------------------------------------------------------------
# Fused whole-model kernel (one grid step = one batch element)
# ---------------------------------------------------------------------------
def _fused_model_kernel(img_ref, spatial_ref,
                        conv_w_ref, conv_b_ref, dense_w_ref, dense_b_ref,
                        gcn_w_ref, gcn_b_ref, hyp_w_ref, hyp_b_ref, w2s_ref,
                        curr_ref, next_ref,
                        *, H, W, G0, G, D, C, n_gcn_layers):
    N = H * W
    x_img = img_ref[0]                      # (3, N)
    spatial = spatial_ref[...]              # (12, N) packed statics
    coords = spatial[0:2, :]                # (2, N)  [-1,1] grid
    mask_rows = [spatial[2 + k:3 + k, :] for k in range(9)]   # 9 x (1, N)
    inv_deg = spatial[11:12, :]             # (1, N)  1 / (#valid neighbours)

    conv_b = conv_b_ref[...]                # (G0, n_conv)
    dense_b = dense_b_ref[...]              # (G0, n_dense)
    gcn_b = gcn_b_ref[...]                  # (feat, n_gcn)

    taps = [(dy, dx) for dy in (-1, 0, 1) for dx in (-1, 0, 1)]

    def tap_shift(x, k, dy, dx):
        """Neighbour value at offset (dy,dx) per pixel, zeroed at image edges."""
        off = dy * W + dx
        if off == 0:
            return x
        return pltpu.roll(x, (-off) % N, axis=1) * mask_rows[k]

    def conv3x3(x, idx, relu):
        """3x3 'same' conv in (C, N) layout: lane rolls + masks + one matmul."""
        cin = x.shape[0]
        pieces = [tap_shift(x, k, dy, dx) for k, (dy, dx) in enumerate(taps)]
        patch = jnp.concatenate(pieces, axis=0)                 # (9*cin, N)
        wmat = conv_w_ref[idx][:, :9 * cin]                     # (G0, 9*cin)
        out = jnp.dot(wmat, patch, preferred_element_type=jnp.float32)
        out = out + conv_b[:, idx:idx + 1]
        if relu:
            out = jnp.maximum(out, 0.0)
        return out                                              # (G0, N)

    def dense(x, idx):
        """1x1 conv / linear fusion in (C, N) layout."""
        h = jnp.dot(dense_w_ref[idx], x, preferred_element_type=jnp.float32)
        return h + dense_b[:, idx:idx + 1]

    def neighbor_agg(x):
        """Degree-normalised 8-neighbour(+self) aggregation == A @ x."""
        acc = x                                                  # self-loop tap
        for k, (dy, dx) in enumerate(taps):
            if dy == 0 and dx == 0:
                continue
            acc = acc + tap_shift(x, k, dy, dx)
        return acc * inv_deg

    # ---------------- RDN feature extractor (stand-in topology) -------------
    sfe1 = conv3x3(x_img, 0, relu=False)
    sfe2 = conv3x3(sfe1, 1, relu=False)
    feat = sfe2
    local_feats = []
    ci = 2
    for d in range(D):
        inp = feat
        dns = inp
        for _ in range(C):
            out = conv3x3(dns, ci, relu=True)
            ci += 1
            dns = jnp.concatenate([dns, out], axis=0)           # dense growth
        feat = inp + dense(dns, d)                              # LFF + local residual
        local_feats.append(feat)
    gf = dense(jnp.concatenate(local_feats, axis=0), D)         # GFF 1x1
    gf = conv3x3(gf, ci, relu=False)                            # GFF 3x3
    feats = gf + sfe1                                           # global residual (G0, N)

    # ------------- graph encoder over spatial adjacency (stand-in) ----------
    # cat(coords, feats) along channels; flatten(2,3).permute equivalent is the
    # (F, N) layout with row-major pixel order.
    h = jnp.concatenate([coords, feats], axis=0)                # (8, N)
    for l in range(n_gcn_layers):
        agg = neighbor_agg(h)
        h = jnp.dot(gcn_w_ref[l], agg, preferred_element_type=jnp.float32)
        h = jnp.maximum(h + gcn_b[:, l:l + 1], 0.0)
    ah = neighbor_agg(h)                                        # shared by both heads
    curr_nodes = (jnp.dot(gcn_w_ref[n_gcn_layers], ah,
                          preferred_element_type=jnp.float32)
                  + gcn_b[:, n_gcn_layers:n_gcn_layers + 1])
    next_nodes = (jnp.dot(gcn_w_ref[n_gcn_layers + 1], ah,
                          preferred_element_type=jnp.float32)
                  + gcn_b[:, n_gcn_layers + 1:n_gcn_layers + 2])

    # ------------- hypernet image generator (stand-in) ----------------------
    hyp_w = hyp_w_ref[...]          # (5*hid, 8)
    hyp_b = hyp_b_ref[...]          # (5*hid, 1)
    w2s = w2s_ref[...]              # (3, hid) shared output projection
    cy = coords[0:1, :]
    cx = coords[1:2, :]
    hid = hyp_w.shape[0] // 5

    def img_gen(nodes):
        # mean-pool readout folded into the hypernet matmul (linear ops commute)
        gen = jnp.mean(jnp.dot(hyp_w, nodes, preferred_element_type=jnp.float32),
                       axis=1, keepdims=True) + hyp_b            # (5*hid, 1)
        w1y = gen[0:hid]
        w1x = gen[hid:2 * hid]
        b1 = gen[2 * hid:3 * hid]
        gate = gen[3 * hid:4 * hid]
        outb = gen[4 * hid:5 * hid]
        hidden = jnp.maximum(w1y * cy + w1x * cx + b1, 0.0)      # (hid, N)
        out = jnp.dot(w2s, gate * hidden,
                      preferred_element_type=jnp.float32) + outb[0:3]
        return out                                               # (3, N) lane-dense

    curr_ref[0] = img_gen(curr_nodes)
    next_ref[0] = img_gen(next_nodes)


# ---------------------------------------------------------------------------
# Deterministic parameter init (synthetic; no checkpoint load), packed into a
# handful of arrays so the fused kernel has few operands.
# ---------------------------------------------------------------------------
def _uniform(key, shape, fan_in):
    s = 1.0 / np.sqrt(fan_in)
    return jax.random.uniform(key, shape, jnp.float32, -s, s)


def init_model_params(key, *, num_channels=3, G0=FEAT_SIZE - 2, G=FEAT_SIZE - 2,
                      D=4, C=3, n_gcn_layers=3, feat=FEAT_SIZE):
    keys = iter(jax.random.split(key, 128))

    # 3x3 convs: sfe1, sfe2, D*C dense-block convs, GFF 3x3  (all Cout = G0)
    conv_cins = ([num_channels, G0]
                 + [G0 + c * G for _ in range(D) for c in range(C)]
                 + [G0])
    n_conv = len(conv_cins)
    kmax = 9 * max(conv_cins)
    conv_w = jnp.zeros((n_conv, G0, kmax), jnp.float32)
    conv_b = jnp.zeros((G0, n_conv), jnp.float32)
    for i, cin in enumerate(conv_cins):
        fan = 9 * cin
        conv_w = conv_w.at[i, :, :fan].set(_uniform(next(keys), (G0, fan), fan))
        conv_b = conv_b.at[:, i:i + 1].set(_uniform(next(keys), (G0, 1), fan))

    # 1x1 fusions: D local-feature-fusion convs + global feature fusion
    # (for these hyperparameters G0 + C*G == D*G0 == 24, so one packed shape).
    n_dense = D + 1
    dfan = G0 + C * G
    dense_w = jnp.stack([_uniform(next(keys), (G0, dfan), dfan)
                         for _ in range(n_dense)])
    dense_b = jnp.concatenate([_uniform(next(keys), (G0, 1), dfan)
                               for _ in range(n_dense)], axis=1)

    # GCN layers + curr/next heads (weights stored (Fout, Fin))
    n_gcn = n_gcn_layers + 2
    gcn_w = jnp.stack([_uniform(next(keys), (feat, feat), feat)
                       for _ in range(n_gcn)])
    gcn_b = jnp.concatenate([_uniform(next(keys), (feat, 1), feat)
                             for _ in range(n_gcn)], axis=1)

    # Hypernet: z (feat) -> [w1y, w1x, b1, gate, out-bias] each (hid,)
    hid = feat
    hyp_w = _uniform(next(keys), (5 * hid, feat), feat)
    hyp_b = _uniform(next(keys), (5 * hid, 1), feat)
    w2s = _uniform(next(keys), (3, hid), hid)

    return dict(conv_w=conv_w, conv_b=conv_b,
                dense_w=dense_w, dense_b=dense_b,
                gcn_w=gcn_w, gcn_b=gcn_b,
                hyp_w=hyp_w, hyp_b=hyp_b, w2s=w2s,
                G0=G0, G=G, D=D, C=C, n_gcn_layers=n_gcn_layers)


# ---------------------------------------------------------------------------
# Static (non-learned) inputs, packed lane-dense: rows 0-1 coords, rows 2-10
# per-tap conv/edge validity masks, row 11 inverse neighbour degree.
# ---------------------------------------------------------------------------
def build_static_inputs(imsize):
    N = imsize * imsize

    # [-1, 1] coordinate grid, channel 0 varies along dim0, channel 1 along dim1
    lin = np.linspace(-1.0, 1.0, imsize, dtype=np.float32)
    ys, xs = np.meshgrid(lin, lin, indexing="ij")
    coords = np.stack([ys, xs], axis=0).reshape(2, N).astype(np.float32)

    # Per-tap validity masks for roll-based 3x3 'same' conv and graph agg.
    n_idx = np.arange(N)
    hh, ww = n_idx // imsize, n_idx % imsize
    masks = np.zeros((9, N), np.float32)
    k = 0
    for dy in (-1, 0, 1):
        for dx in (-1, 0, 1):
            valid = ((hh + dy >= 0) & (hh + dy < imsize)
                     & (ww + dx >= 0) & (ww + dx < imsize))
            masks[k] = valid.astype(np.float32)
            k += 1

    # Inverse degree of the 8-neighbour(+self) spatial adjacency: combining the
    # masks with this row reproduces the row-normalised dense adjacency exactly,
    # without ever materialising the (N, N) matrix.
    inv_deg = 1.0 / masks.sum(axis=0, keepdims=True)

    spatial = np.concatenate([coords, masks, inv_deg], axis=0).astype(np.float32)
    return jnp.asarray(spatial)                                  # (12, N)


# ---------------------------------------------------------------------------
# Forward wrapper: single fused pallas_call, free NCHW <-> (C, H*W) reshapes
# ---------------------------------------------------------------------------
def model_forward(params, spatial, img_nchw):
    B, Ci, Himg, Wimg = img_nchw.shape
    N = Himg * Wimg
    img_cn = img_nchw.reshape(B, Ci, N)          # free metadata reshape

    kern = functools.partial(
        _fused_model_kernel, H=Himg, W=Wimg,
        G0=params["G0"], G=params["G"], D=params["D"], C=params["C"],
        n_gcn_layers=params["n_gcn_layers"])

    def full_spec(arr):
        nd = arr.ndim
        return pl.BlockSpec(arr.shape, lambda b, _nd=nd: (0,) * _nd)

    weight_arrays = [params[k] for k in
                     ("conv_w", "conv_b", "dense_w", "dense_b",
                      "gcn_w", "gcn_b", "hyp_w", "hyp_b", "w2s")]

    in_specs = ([pl.BlockSpec((1, Ci, N), lambda b: (b, 0, 0)),
                 full_spec(spatial)]
                + [full_spec(a) for a in weight_arrays])

    out_specs = (pl.BlockSpec((1, 3, N), lambda b: (b, 0, 0)),
                 pl.BlockSpec((1, 3, N), lambda b: (b, 0, 0)))
    out_shape = (jax.ShapeDtypeStruct((B, 3, N), jnp.float32),
                 jax.ShapeDtypeStruct((B, 3, N), jnp.float32))

    curr, nxt = pl.pallas_call(
        kern,
        grid=(B,),
        in_specs=in_specs,
        out_specs=out_specs,
        out_shape=out_shape,
        compiler_params=pltpu.CompilerParams(
            dimension_semantics=("parallel",),      # one image per TC on megacore
            vmem_limit_bytes=32 * 1024 * 1024),
    )(img_cn, spatial, *weight_arrays)

    return (curr.reshape(B, 3, Himg, Wimg),          # free reshape to NCHW
            nxt.reshape(B, 3, Himg, Wimg))


# ---------------------------------------------------------------------------
if __name__ == "__main__":
    imsize, batch_size = 16, 2
    key = jax.random.PRNGKey(0)
    k_img, k_params = jax.random.split(key)

    img = jax.random.normal(k_img, (batch_size, 3, imsize, imsize), jnp.float32)
    params = init_model_params(k_params)
    spatial = build_static_inputs(imsize)

    fwd = jax.jit(lambda im: model_forward(params, spatial, im))
    curr_recon, next_recon = fwd(img)
    jax.block_until_ready((curr_recon, next_recon))

    assert curr_recon.shape == (batch_size, 3, imsize, imsize)
    assert next_recon.shape == (batch_size, 3, imsize, imsize)
    assert bool(jnp.all(jnp.isfinite(curr_recon))) and bool(jnp.all(jnp.isfinite(next_recon)))
    print("KERNEL_OK")
</pallas_src>

<mosaic_0001>
module attributes {stable_mosaic.version = 11 : i64} {
  func.func @_fused_model_kernel(%arg0: i32, %arg1: memref<1x3x256xf32, #tpu.memory_space<vmem>>, %arg2: memref<12x256xf32, #tpu.memory_space<vmem>>, %arg3: memref<15x6x162xf32, #tpu.memory_space<vmem>>, %arg4: memref<6x15xf32, #tpu.memory_space<vmem>>, %arg5: memref<5x6x24xf32, #tpu.memory_space<vmem>>, %arg6: memref<6x5xf32, #tpu.memory_space<vmem>>, %arg7: memref<5x8x8xf32, #tpu.memory_space<vmem>>, %arg8: memref<8x5xf32, #tpu.memory_space<vmem>>, %arg9: memref<40x8xf32, #tpu.memory_space<vmem>>, %arg10: memref<40x1xf32, #tpu.memory_space<vmem>>, %arg11: memref<3x8xf32, #tpu.memory_space<vmem>>, %arg12: memref<1x3x256xf32, #tpu.memory_space<vmem>>, %arg13: memref<1x3x256xf32, #tpu.memory_space<vmem>>) attributes {dimension_semantics = [#tpu.dimension_semantics<parallel>], iteration_bounds = array<i64: 2>, scalar_prefetch = 0 : i64, scratch_operands = 0 : i64, tpu.core_type = #tpu.core_type<tc>, window_params = [{transform_indices = @transform_0, window_bounds = array<i64: 1, 3, 256>}, {pipeline_mode = #tpu.pipeline_mode<synchronous>, transform_indices = @transform_1, window_bounds = array<i64: 12, 256>}, {pipeline_mode = #tpu.pipeline_mode<synchronous>, transform_indices = @transform_2, window_bounds = array<i64: 15, 6, 162>}, {pipeline_mode = #tpu.pipeline_mode<synchronous>, transform_indices = @transform_3, window_bounds = array<i64: 6, 15>}, {pipeline_mode = #tpu.pipeline_mode<synchronous>, transform_indices = @transform_4, window_bounds = array<i64: 5, 6, 24>}, {pipeline_mode = #tpu.pipeline_mode<synchronous>, transform_indices = @transform_5, window_bounds = array<i64: 6, 5>}, {pipeline_mode = #tpu.pipeline_mode<synchronous>, transform_indices = @transform_6, window_bounds = array<i64: 5, 8, 8>}, {pipeline_mode = #tpu.pipeline_mode<synchronous>, transform_indices = @transform_7, window_bounds = array<i64: 8, 5>}, {pipeline_mode = #tpu.pipeline_mode<synchronous>, transform_indices = @transform_8, window_bounds = array<i64: 40, 8>}, {pipeline_mode = #tpu.pipeline_mode<synchronous>, transform_indices = @transform_9, window_bounds = array<i64: 40, 1>}, {pipeline_mode = #tpu.pipeline_mode<synchronous>, transform_indices = @transform_10, window_bounds = array<i64: 3, 8>}, {transform_indices = @transform_11, window_bounds = array<i64: 1, 3, 256>}, {transform_indices = @transform_12, window_bounds = array<i64: 1, 3, 256>}]} {
    %c0 = arith.constant 0 : index
    %c0_0 = arith.constant 0 : index
    %c0_1 = arith.constant 0 : index
    %0 = vector.load %arg1[%c0, %c0_0, %c0_1] : memref<1x3x256xf32, #tpu.memory_space<vmem>>, vector<1x3x256xf32>
    %1 = vector.shape_cast %0 : vector<1x3x256xf32> to vector<3x256xf32>
    %c0_2 = arith.constant 0 : index
    %c0_3 = arith.constant 0 : index
    %2 = vector.load %arg2[%c0_2, %c0_3] : memref<12x256xf32, #tpu.memory_space<vmem>>, vector<12x256xf32>
    %3 = vector.extract_strided_slice %2 {offsets = [0, 0], sizes = [2, 256], strides = [1, 1]} : vector<12x256xf32> to vector<2x256xf32>
    %4 = vector.extract_strided_slice %2 {offsets = [2, 0], sizes = [1, 256], strides = [1, 1]} : vector<12x256xf32> to vector<1x256xf32>
    %5 = vector.extract_strided_slice %2 {offsets = [3, 0], sizes = [1, 256], strides = [1, 1]} : vector<12x256xf32> to vector<1x256xf32>
    %6 = vector.extract_strided_slice %2 {offsets = [4, 0], sizes = [1, 256], strides = [1, 1]} : vector<12x256xf32> to vector<1x256xf32>
    %7 = vector.extract_strided_slice %2 {offsets = [5, 0], sizes = [1, 256], strides = [1, 1]} : vector<12x256xf32> to vector<1x256xf32>
    %8 = vector.extract_strided_slice %2 {offsets = [7, 0], sizes = [1, 256], strides = [1, 1]} : vector<12x256xf32> to vector<1x256xf32>
    %9 = vector.extract_strided_slice %2 {offsets = [8, 0], sizes = [1, 256], strides = [1, 1]} : vector<12x256xf32> to vector<1x256xf32>
    %10 = vector.extract_strided_slice %2 {offsets = [9, 0], sizes = [1, 256], strides = [1, 1]} : vector<12x256xf32> to vector<1x256xf32>
    %11 = vector.extract_strided_slice %2 {offsets = [10, 0], sizes = [1, 256], strides = [1, 1]} : vector<12x256xf32> to vector<1x256xf32>
    %12 = vector.extract_strided_slice %2 {offsets = [11, 0], sizes = [1, 256], strides = [1, 1]} : vector<12x256xf32> to vector<1x256xf32>
    %c0_4 = arith.constant 0 : index
    %c0_5 = arith.constant 0 : index
    %13 = vector.load %arg4[%c0_4, %c0_5] : memref<6x15xf32, #tpu.memory_space<vmem>>, vector<6x15xf32>
    %c0_6 = arith.constant 0 : index
    %c0_7 = arith.constant 0 : index
    %14 = vector.load %arg6[%c0_6, %c0_7] : memref<6x5xf32, #tpu.memory_space<vmem>>, vector<6x5xf32>
    %c0_8 = arith.constant 0 : index
    %c0_9 = arith.constant 0 : index
    %15 = vector.load %arg8[%c0_8, %c0_9] : memref<8x5xf32, #tpu.memory_space<vmem>>, vector<8x5xf32>
    %c17_i32 = arith.constant 17 : i32
    %16 = tpu.dynamic_rotate %1 by %c17_i32 dim 1 : vector<3x256xf32>, i32 -> vector<3x256xf32>
    %17 = vector.broadcast %4 : vector<1x256xf32> to vector<3x256xf32>
    %18 = arith.mulf %16, %17 : vector<3x256xf32>
    %c16_i32 = arith.constant 16 : i32
    %19 = tpu.dynamic_rotate %1 by %c16_i32 dim 1 : vector<3x256xf32>, i32 -> vector<3x256xf32>
    %20 = vector.broadcast %5 : vector<1x256xf32> to vector<3x256xf32>
    %21 = arith.mulf %19, %20 : vector<3x256xf32>
    %c15_i32 = arith.constant 15 : i32
    %22 = tpu.dynamic_rotate %1 by %c15_i32 dim 1 : vector<3x256xf32>, i32 -> vector<3x256xf32>
    %23 = vector.broadcast %6 : vector<1x256xf32> to vector<3x256xf32>
    %24 = arith.mulf %22, %23 : vector<3x256xf32>
    %c1_i32 = arith.constant 1 : i32
    %25 = tpu.dynamic_rotate %1 by %c1_i32 dim 1 : vector<3x256xf32>, i32 -> vector<3x256xf32>
    %26 = vector.broadcast %7 : vector<1x256xf32> to vector<3x256xf32>
    %27 = arith.mulf %25, %26 : vector<3x256xf32>
    %c255_i32 = arith.constant 255 : i32
    %28 = tpu.dynamic_rotate %1 by %c255_i32 dim 1 : vector<3x256xf32>, i32 -> vector<3x256xf32>
    %29 = vector.broadcast %8 : vector<1x256xf32> to vector<3x256xf32>
    %30 = arith.mulf %28, %29 : vector<3x256xf32>
    %c241_i32 = arith.constant 241 : i32
    %31 = tpu.dynamic_rotate %1 by %c241_i32 dim 1 : vector<3x256xf32>, i32 -> vector<3x256xf32>
    %32 = vector.broadcast %9 : vector<1x256xf32> to vector<3x256xf32>
    %33 = arith.mulf %31, %32 : vector<3x256xf32>
    %c240_i32 = arith.constant 240 : i32
    %34 = tpu.dynamic_rotate %1 by %c240_i32 dim 1 : vector<3x256xf32>, i32 -> vector<3x256xf32>
    %35 = vector.broadcast %10 : vector<1x256xf32> to vector<3x256xf32>
    %36 = arith.mulf %34, %35 : vector<3x256xf32>
    %c239_i32 = arith.constant 239 : i32
    %37 = tpu.dynamic_rotate %1 by %c239_i32 dim 1 : vector<3x256xf32>, i32 -> vector<3x256xf32>
    %38 = vector.broadcast %11 : vector<1x256xf32> to vector<3x256xf32>
    %39 = arith.mulf %37, %38 : vector<3x256xf32>
    %40 = tpu.concatenate %18, %21, %24, %27, %1, %30, %33, %36, %39 in 0 : vector<3x256xf32>, vector<3x256xf32>, vector<3x256xf32>, vector<3x256xf32>, vector<3x256xf32>, vector<3x256xf32>, vector<3x256xf32>, vector<3x256xf32>, vector<3x256xf32> -> vector<27x256xf32>
    %c0_10 = arith.constant 0 : index
    %c0_11 = arith.constant 0 : index
    %c0_12 = arith.constant 0 : index
    %41 = vector.load %arg3[%c0_10, %c0_11, %c0_12] : memref<15x6x162xf32, #tpu.memory_space<vmem>>, vector<1x6x162xf32>
    %42 = vector.shape_cast %41 : vector<1x6x162xf32> to vector<6x162xf32>
    %43 = vector.extract_strided_slice %42 {offsets = [0, 0], sizes = [6, 27], strides = [1, 1]} : vector<6x162xf32> to vector<6x27xf32>
    %cst = arith.constant dense<0.000000e+00> : vector<6x256xf32>
    %44 = tpu.matmul %43, %40, %cst {dimension_numbers = #tpu.dot_dimension_numbers<[1], [0], [0], [1], [0, 0, 1, 1], [], []>} : vector<6x27xf32>, vector<27x256xf32>, vector<6x256xf32> -> vector<6x256xf32>
    %45 = vector.extract_strided_slice %13 {offsets = [0, 0], sizes = [6, 1], strides = [1, 1]} : vector<6x15xf32> to vector<6x1xf32>
    %46 = vector.broadcast %45 : vector<6x1xf32> to vector<6x256xf32>
    %47 = arith.addf %44, %46 : vector<6x256xf32>
    %c17_i32_13 = arith.constant 17 : i32
    %48 = tpu.dynamic_rotate %47 by %c17_i32_13 dim 1 : vector<6x256xf32>, i32 -> vector<6x256xf32>
    %49 = vector.broadcast %4 : vector<1x256xf32> to vector<6x256xf32>
    %50 = arith.mulf %48, %49 : vector<6x256xf32>
    %c16_i32_14 = arith.constant 16 : i32
    %51 = tpu.dynamic_rotate %47 by %c16_i32_14 dim 1 : vector<6x256xf32>, i32 -> vector<6x256xf32>
    %52 = vector.broadcast %5 : vector<1x256xf32> to vector<6x256xf32>
    %53 = arith.mulf %51, %52 : vector<6x256xf32>
    %c15_i32_15 = arith.constant 15 : i32
    %54 = tpu.dynamic_rotate %47 by %c15_i32_15 dim 1 : vector<6x256xf32>, i32 -> vector<6x256xf32>
    %55 = vector.broadcast %6 : vector<1x256xf32> to vector<6x256xf32>
    %56 = arith.mulf %54, %55 : vector<6x256xf32>
    %c1_i32_16 = arith.constant 1 : i32
    %57 = tpu.dynamic_rotate %47 by %c1_i32_16 dim 1 : vector<6x256xf32>, i32 -> vector<6x256xf32>
    %58 = vector.broadcast %7 : vector<1x256xf32> to vector<6x256xf32>
    %59 = arith.mulf %57, %58 : vector<6x256xf32>
    %c255_i32_17 = arith.constant 255 : i32
    %60 = tpu.dynamic_rotate %47 by %c255_i32_17 dim 1 : vector<6x256xf32>, i32 -> vector<6x256xf32>
    %61 = vector.broadcast %8 : vector<1x256xf32> to vector<6x256xf32>
    %62 = arith.mulf %60, %61 : vector<6x256xf32>
    %c241_i32_18 = arith.constant 241 : i32
    %63 = tpu.dynamic_rotate %47 by %c241_i32_18 dim 1 : vector<6x256xf32>, i32 -> vector<6x256xf32>
    %64 = vector.broadcast %9 : vector<1x256xf32> to vector<6x256xf32>
    %65 = arith.mulf %63, %64 : vector<6x256xf32>
    %c240_i32_19 = arith.constant 240 : i32
    %66 = tpu.dynamic_rotate %47 by %c240_i32_19 dim 1 : vector<6x256xf32>, i32 -> vector<6x256xf32>
    %67 = vector.broadcast %10 : vector<1x256xf32> to vector<6x256xf32>
    %68 = arith.mulf %66, %67 : vector<6x256xf32>
    %c239_i32_20 = arith.constant 239 : i32
    %69 = tpu.dynamic_rotate %47 by %c239_i32_20 dim 1 : vector<6x256xf32>, i32 -> vector<6x256xf32>
    %70 = vector.broadcast %11 : vector<1x256xf32> to vector<6x256xf32>
    %71 = arith.mulf %69, %70 : vector<6x256xf32>
    %72 = tpu.concatenate %50, %53, %56, %59, %47, %62, %65, %68, %71 in 0 : vector<6x256xf32>, vector<6x256xf32>, vector<6x256xf32>, vector<6x256xf32>, vector<6x256xf32>, vector<6x256xf32>, vector<6x256xf32>, vector<6x256xf32>, vector<6x256xf32> -> vector<54x256xf32>
    %c1 = arith.constant 1 : index
    %c0_21 = arith.constant 0 : index
    %c0_22 = arith.constant 0 : index
    %73 = vector.load %arg3[%c1, %c0_21, %c0_22] : memref<15x6x162xf32, #tpu.memory_space<vmem>>, vector<1x6x162xf32>
    %74 = vector.shape_cast %73 : vector<1x6x162xf32> to vector<6x162xf32>
    %75 = vector.extract_strided_slice %74 {offsets = [0, 0], sizes = [6, 54], strides = [1, 1]} : vector<6x162xf32> to vector<6x54xf32>
    %cst_23 = arith.constant dense<0.000000e+00> : vector<6x256xf32>
    %76 = tpu.matmul %75, %72, %cst_23 {dimension_numbers = #tpu.dot_dimension_numbers<[1], [0], [0], [1], [0, 0, 1, 1], [], []>} : vector<6x54xf32>, vector<54x256xf32>, vector<6x256xf32> -> vector<6x256xf32>
    %77 = vector.extract_strided_slice %13 {offsets = [0, 1], sizes = [6, 1], strides = [1, 1]} : vector<6x15xf32> to vector<6x1xf32>
    %78 = vector.broadcast %77 : vector<6x1xf32> to vector<6x256xf32>
    %79 = arith.addf %76, %78 : vector<6x256xf32>
    %c17_i32_24 = arith.constant 17 : i32
    %80 = tpu.dynamic_rotate %79 by %c17_i32_24 dim 1 : vector<6x256xf32>, i32 -> vector<6x256xf32>
    %81 = vector.broadcast %4 : vector<1x256xf32> to vector<6x256xf32>
    %82 = arith.mulf %80, %81 : vector<6x256xf32>
    %c16_i32_25 = arith.constant 16 : i32
    %83 = tpu.dynamic_rotate %79 by %c16_i32_25 dim 1 : vector<6x256xf32>, i32 -> vector<6x256xf32>
    %84 = vector.broadcast %5 : vector<1x256xf32> to vector<6x256xf32>
    %85 = arith.mulf %83, %84 : vector<6x256xf32>
    %c15_i32_26 = arith.constant 15 : i32
    %86 = tpu.dynamic_rotate %79 by %c15_i32_26 dim 1 : vector<6x256xf32>, i32 -> vector<6x256xf32>
    %87 = vector.broadcast %6 : vector<1x256xf32> to vector<6x256xf32>
    %88 = arith.mulf %86, %87 : vector<6x256xf32>
    %c1_i32_27 = arith.constant 1 : i32
    %89 = tpu.dynamic_rotate %79 by %c1_i32_27 dim 1 : vector<6x256xf32>, i32 -> vector<6x256xf32>
    %90 = vector.broadcast %7 : vector<1x256xf32> to vector<6x256xf32>
    %91 = arith.mulf %89, %90 : vector<6x256xf32>
    %c255_i32_28 = arith.constant 255 : i32
    %92 = tpu.dynamic_rotate %79 by %c255_i32_28 dim 1 : vector<6x256xf32>, i32 -> vector<6x256xf32>
    %93 = vector.broadcast %8 : vector<1x256xf32> to vector<6x256xf32>
    %94 = arith.mulf %92, %93 : vector<6x256xf32>
    %c241_i32_29 = arith.constant 241 : i32
    %95 = tpu.dynamic_rotate %79 by %c241_i32_29 dim 1 : vector<6x256xf32>, i32 -> vector<6x256xf32>
    %96 = vector.broadcast %9 : vector<1x256xf32> to vector<6x256xf32>
    %97 = arith.mulf %95, %96 : vector<6x256xf32>
    %c240_i32_30 = arith.constant 240 : i32
    %98 = tpu.dynamic_rotate %79 by %c240_i32_30 dim 1 : vector<6x256xf32>, i32 -> vector<6x256xf32>
    %99 = vector.broadcast %10 : vector<1x256xf32> to vector<6x256xf32>
    %100 = arith.mulf %98, %99 : vector<6x256xf32>
    %c239_i32_31 = arith.constant 239 : i32
    %101 = tpu.dynamic_rotate %79 by %c239_i32_31 dim 1 : vector<6x256xf32>, i32 -> vector<6x256xf32>
    %102 = vector.broadcast %11 : vector<1x256xf32> to vector<6x256xf32>
    %103 = arith.mulf %101, %102 : vector<6x256xf32>
    %104 = tpu.concatenate %82, %85, %88, %91, %79, %94, %97, %100, %103 in 0 : vector<6x256xf32>, vector<6x256xf32>, vector<6x256xf32>, vector<6x256xf32>, vector<6x256xf32>, vector<6x256xf32>, vector<6x256xf32>, vector<6x256xf32>, vector<6x256xf32> -> vector<54x256xf32>
    %c2 = arith.constant 2 : index
    %c0_32 = arith.constant 0 : index
    %c0_33 = arith.constant 0 : index
    %105 = vector.load %arg3[%c2, %c0_32, %c0_33] : memref<15x6x162xf32, #tpu.memory_space<vmem>>, vector<1x6x162xf32>
    %106 = vector.shape_cast %105 : vector<1x6x162xf32> to vector<6x162xf32>
    %107 = vector.extract_strided_slice %106 {offsets = [0, 0], sizes = [6, 54], strides = [1, 1]} : vector<6x162xf32> to vector<6x54xf32>
    %cst_34 = arith.constant dense<0.000000e+00> : vector<6x256xf32>
    %108 = tpu.matmul %107, %104, %cst_34 {dimension_numbers = #tpu.dot_dimension_numbers<[1], [0], [0], [1], [0, 0, 1, 1], [], []>} : vector<6x54xf32>, vector<54x256xf32>, vector<6x256xf32> -> vector<6x256xf32>
    %109 = vector.extract_strided_slice %13 {offsets = [0, 2], sizes = [6, 1], strides = [1, 1]} : vector<6x15xf32> to vector<6x1xf32>
    %110 = vector.broadcast %109 : vector<6x1xf32> to vector<6x256xf32>
    %111 = arith.addf %108, %110 : vector<6x256xf32>
    %cst_35 = arith.constant 0.000000e+00 : f32
    %112 = vector.broadcast %cst_35 : f32 to vector<6x256xf32>
    %113 = arith.maximumf %111, %112 : vector<6x256xf32>
    %114 = tpu.concatenate %79, %113 in 0 : vector<6x256xf32>, vector<6x256xf32> -> vector<12x256xf32>
    %c17_i32_36 = arith.constant 17 : i32
    %115 = tpu.dynamic_rotate %114 by %c17_i32_36 dim 1 : vector<12x256xf32>, i32 -> vector<12x256xf32>
    %116 = vector.broadcast %4 : vector<1x256xf32> to vector<12x256xf32>
    %117 = arith.mulf %115, %116 : vector<12x256xf32>
    %c16_i32_37 = arith.constant 16 : i32
    %118 = tpu.dynamic_rotate %114 by %c16_i32_37 dim 1 : vector<12x256xf32>, i32 -> vector<12x256xf32>
    %119 = vector.broadcast %5 : vector<1x256xf32> to vector<12x256xf32>
    %120 = arith.mulf %118, %119 : vector<12x256xf32>
    %c15_i32_38 = arith.constant 15 : i32
    %121 = tpu.dynamic_rotate %114 by %c15_i32_38 dim 1 : vector<12x256xf32>, i32 -> vector<12x256xf32>
    %122 = vector.broadcast %6 : vector<1x256xf32> to vector<12x256xf32>
    %123 = arith.mulf %121, %122 : vector<12x256xf32>
    %c1_i32_39 = arith.constant 1 : i32
    %124 = tpu.dynamic_rotate %114 by %c1_i32_39 dim 1 : vector<12x256xf32>, i32 -> vector<12x256xf32>
    %125 = vector.broadcast %7 : vector<1x256xf32> to vector<12x256xf32>
    %126 = arith.mulf %124, %125 : vector<12x256xf32>
    %c255_i32_40 = arith.constant 255 : i32
    %127 = tpu.dynamic_rotate %114 by %c255_i32_40 dim 1 : vector<12x256xf32>, i32 -> vector<12x256xf32>
    %128 = vector.broadcast %8 : vector<1x256xf32> to vector<12x256xf32>
    %129 = arith.mulf %127, %128 : vector<12x256xf32>
    %c241_i32_41 = arith.constant 241 : i32
    %130 = tpu.dynamic_rotate %114 by %c241_i32_41 dim 1 : vector<12x256xf32>, i32 -> vector<12x256xf32>
    %131 = vector.broadcast %9 : vector<1x256xf32> to vector<12x256xf32>
    %132 = arith.mulf %130, %131 : vector<12x256xf32>
    %c240_i32_42 = arith.constant 240 : i32
    %133 = tpu.dynamic_rotate %114 by %c240_i32_42 dim 1 : vector<12x256xf32>, i32 -> vector<12x256xf32>
    %134 = vector.broadcast %10 : vector<1x256xf32> to vector<12x256xf32>
    %135 = arith.mulf %133, %134 : vector<12x256xf32>
    %c239_i32_43 = arith.constant 239 : i32
    %136 = tpu.dynamic_rotate %114 by %c239_i32_43 dim 1 : vector<12x256xf32>, i32 -> vector<12x256xf32>
    %137 = vector.broadcast %11 : vector<1x256xf32> to vector<12x256xf32>
    %138 = arith.mulf %136, %137 : vector<12x256xf32>
    %139 = tpu.concatenate %117, %120, %123, %126, %114, %129, %132, %135, %138 in 0 : vector<12x256xf32>, vector<12x256xf32>, vector<12x256xf32>, vector<12x256xf32>, vector<12x256xf32>, vector<12x256xf32>, vector<12x256xf32>, vector<12x256xf32>, vector<12x256xf32> -> vector<108x256xf32>
    %c3 = arith.constant 3 : index
    %c0_44 = arith.constant 0 : index
    %c0_45 = arith.constant 0 : index
    %140 = vector.load %arg3[%c3, %c0_44, %c0_45] : memref<15x6x162xf32, #tpu.memory_space<vmem>>, vector<1x6x162xf32>
    %141 = vector.shape_cast %140 : vector<1x6x162xf32> to vector<6x162xf32>
    %142 = vector.extract_strided_slice %141 {offsets = [0, 0], sizes = [6, 108], strides = [1, 1]} : vector<6x162xf32> to vector<6x108xf32>
    %cst_46 = arith.constant dense<0.000000e+00> : vector<6x256xf32>
    %143 = tpu.matmul %142, %139, %cst_46 {dimension_numbers = #tpu.dot_dimension_numbers<[1], [0], [0], [1], [0, 0, 1, 1], [], []>} : vector<6x108xf32>, vector<108x256xf32>, vector<6x256xf32> -> vector<6x256xf32>
    %144 = vector.extract_strided_slice %13 {offsets = [0, 3], sizes = [6, 1], strides = [1, 1]} : vector<6x15xf32> to vector<6x1xf32>
    %145 = vector.broadcast %144 : vector<6x1xf32> to vector<6x256xf32>
    %146 = arith.addf %143, %145 : vector<6x256xf32>
    %cst_47 = arith.constant 0.000000e+00 : f32
    %147 = vector.broadcast %cst_47 : f32 to vector<6x256xf32>
    %148 = arith.maximumf %146, %147 : vector<6x256xf32>
    %149 = tpu.concatenate %114, %148 in 0 : vector<12x256xf32>, vector<6x256xf32> -> vector<18x256xf32>
    %c17_i32_48 = arith.constant 17 : i32
    %150 = tpu.dynamic_rotate %149 by %c17_i32_48 dim 1 : vector<18x256xf32>, i32 -> vector<18x256xf32>
    %151 = vector.broadcast %4 : vector<1x256xf32> to vector<18x256xf32>
    %152 = arith.mulf %150, %151 : vector<18x256xf32>
    %c16_i32_49 = arith.constant 16 : i32
    %153 = tpu.dynamic_rotate %149 by %c16_i32_49 dim 1 : vector<18x256xf32>, i32 -> vector<18x256xf32>
    %154 = vector.broadcast %5 : vector<1x256xf32> to vector<18x256xf32>
    %155 = arith.mulf %153, %154 : vector<18x256xf32>
    %c15_i32_50 = arith.constant 15 : i32
    %156 = tpu.dynamic_rotate %149 by %c15_i32_50 dim 1 : vector<18x256xf32>, i32 -> vector<18x256xf32>
    %157 = vector.broadcast %6 : vector<1x256xf32> to vector<18x256xf32>
    %158 = arith.mulf %156, %157 : vector<18x256xf32>
    %c1_i32_51 = arith.constant 1 : i32
    %159 = tpu.dynamic_rotate %149 by %c1_i32_51 dim 1 : vector<18x256xf32>, i32 -> vector<18x256xf32>
    %160 = vector.broadcast %7 : vector<1x256xf32> to vector<18x256xf32>
    %161 = arith.mulf %159, %160 : vector<18x256xf32>
    %c255_i32_52 = arith.constant 255 : i32
    %162 = tpu.dynamic_rotate %149 by %c255_i32_52 dim 1 : vector<18x256xf32>, i32 -> vector<18x256xf32>
    %163 = vector.broadcast %8 : vector<1x256xf32> to vector<18x256xf32>
    %164 = arith.mulf %162, %163 : vector<18x256xf32>
    %c241_i32_53 = arith.constant 241 : i32
    %165 = tpu.dynamic_rotate %149 by %c241_i32_53 dim 1 : vector<18x256xf32>, i32 -> vector<18x256xf32>
    %166 = vector.broadcast %9 : vector<1x256xf32> to vector<18x256xf32>
    %167 = arith.mulf %165, %166 : vector<18x256xf32>
    %c240_i32_54 = arith.constant 240 : i32
    %168 = tpu.dynamic_rotate %149 by %c240_i32_54 dim 1 : vector<18x256xf32>, i32 -> vector<18x256xf32>
    %169 = vector.broadcast %10 : vector<1x256xf32> to vector<18x256xf32>
    %170 = arith.mulf %168, %169 : vector<18x256xf32>
    %c239_i32_55 = arith.constant 239 : i32
    %171 = tpu.dynamic_rotate %149 by %c239_i32_55 dim 1 : vector<18x256xf32>, i32 -> vector<18x256xf32>
    %172 = vector.broadcast %11 : vector<1x256xf32> to vector<18x256xf32>
    %173 = arith.mulf %171, %172 : vector<18x256xf32>
    %174 = tpu.concatenate %152, %155, %158, %161, %149, %164, %167, %170, %173 in 0 : vector<18x256xf32>, vector<18x256xf32>, vector<18x256xf32>, vector<18x256xf32>, vector<18x256xf32>, vector<18x256xf32>, vector<18x256xf32>, vector<18x256xf32>, vector<18x256xf32> -> vector<162x256xf32>
    %c4 = arith.constant 4 : index
    %c0_56 = arith.constant 0 : index
    %c0_57 = arith.constant 0 : index
    %175 = vector.load %arg3[%c4, %c0_56, %c0_57] : memref<15x6x162xf32, #tpu.memory_space<vmem>>, vector<1x6x162xf32>
    %176 = vector.shape_cast %175 : vector<1x6x162xf32> to vector<6x162xf32>
    %cst_58 = arith.constant dense<0.000000e+00> : vector<6x256xf32>
    %177 = tpu.matmul %176, %174, %cst_58 {dimension_numbers = #tpu.dot_dimension_numbers<[1], [0], [0], [1], [0, 0, 1, 1], [], []>} : vector<6x162xf32>, vector<162x256xf32>, vector<6x256xf32> -> vector<6x256xf32>
    %178 = vector.extract_strided_slice %13 {offsets = [0, 4], sizes = [6, 1], strides = [1, 1]} : vector<6x15xf32> to vector<6x1xf32>
    %179 = vector.broadcast %178 : vector<6x1xf32> to vector<6x256xf32>
    %180 = arith.addf %177, %179 : vector<6x256xf32>
    %cst_59 = arith.constant 0.000000e+00 : f32
    %181 = vector.broadcast %cst_59 : f32 to vector<6x256xf32>
    %182 = arith.maximumf %180, %181 : vector<6x256xf32>
    %183 = tpu.concatenate %149, %182 in 0 : vector<18x256xf32>, vector<6x256xf32> -> vector<24x256xf32>
    %c0_60 = arith.constant 0 : index
    %c0_61 = arith.constant 0 : index
    %c0_62 = arith.constant 0 : index
    %184 = vector.load %arg5[%c0_60, %c0_61, %c0_62] : memref<5x6x24xf32, #tpu.memory_space<vmem>>, vector<1x6x24xf32>
    %185 = vector.shape_cast %184 : vector<1x6x24xf32> to vector<6x24xf32>
    %cst_63 = arith.constant dense<0.000000e+00> : vector<6x256xf32>
    %186 = tpu.matmul %185, %183, %cst_63 {dimension_numbers = #tpu.dot_dimension_numbers<[1], [0], [0], [1], [0, 0, 1, 1], [], []>} : vector<6x24xf32>, vector<24x256xf32>, vector<6x256xf32> -> vector<6x256xf32>
    %187 = vector.extract_strided_slice %14 {offsets = [0, 0], sizes = [6, 1], strides = [1, 1]} : vector<6x5xf32> to vector<6x1xf32>
    %188 = vector.broadcast %187 : vector<6x1xf32> to vector<6x256xf32>
    %189 = arith.addf %186, %188 : vector<6x256xf32>
    %190 = arith.addf %79, %189 : vector<6x256xf32>
    %c17_i32_64 = arith.constant 17 : i32
    %191 = tpu.dynamic_rotate %190 by %c17_i32_64 dim 1 : vector<6x256xf32>, i32 -> vector<6x256xf32>
    %192 = vector.broadcast %4 : vector<1x256xf32> to vector<6x256xf32>
    %193 = arith.mulf %191, %192 : vector<6x256xf32>
    %c16_i32_65 = arith.constant 16 : i32
    %194 = tpu.dynamic_rotate %190 by %c16_i32_65 dim 1 : vector<6x256xf32>, i32 -> vector<6x256xf32>
    %195 = vector.broadcast %5 : vector<1x256xf32> to vector<6x256xf32>
    %196 = arith.mulf %194, %195 : vector<6x256xf32>
    %c15_i32_66 = arith.constant 15 : i32
    %197 = tpu.dynamic_rotate %190 by %c15_i32_66 dim 1 : vector<6x256xf32>, i32 -> vector<6x256xf32>
    %198 = vector.broadcast %6 : vector<1x256xf32> to vector<6x256xf32>
    %199 = arith.mulf %197, %198 : vector<6x256xf32>
    %c1_i32_67 = arith.constant 1 : i32
    %200 = tpu.dynamic_rotate %190 by %c1_i32_67 dim 1 : vector<6x256xf32>, i32 -> vector<6x256xf32>
    %201 = vector.broadcast %7 : vector<1x256xf32> to vector<6x256xf32>
    %202 = arith.mulf %200, %201 : vector<6x256xf32>
    %c255_i32_68 = arith.constant 255 : i32
    %203 = tpu.dynamic_rotate %190 by %c255_i32_68 dim 1 : vector<6x256xf32>, i32 -> vector<6x256xf32>
    %204 = vector.broadcast %8 : vector<1x256xf32> to vector<6x256xf32>
    %205 = arith.mulf %203, %204 : vector<6x256xf32>
    %c241_i32_69 = arith.constant 241 : i32
    %206 = tpu.dynamic_rotate %190 by %c241_i32_69 dim 1 : vector<6x256xf32>, i32 -> vector<6x256xf32>
    %207 = vector.broadcast %9 : vector<1x256xf32> to vector<6x256xf32>
    %208 = arith.mulf %206, %207 : vector<6x256xf32>
    %c240_i32_70 = arith.constant 240 : i32
    %209 = tpu.dynamic_rotate %190 by %c240_i32_70 dim 1 : vector<6x256xf32>, i32 -> vector<6x256xf32>
    %210 = vector.broadcast %10 : vector<1x256xf32> to vector<6x256xf32>
    %211 = arith.mulf %209, %210 : vector<6x256xf32>
    %c239_i32_71 = arith.constant 239 : i32
    %212 = tpu.dynamic_rotate %190 by %c239_i32_71 dim 1 : vector<6x256xf32>, i32 -> vector<6x256xf32>
    %213 = vector.broadcast %11 : vector<1x256xf32> to vector<6x256xf32>
    %214 = arith.mulf %212, %213 : vector<6x256xf32>
    %215 = tpu.concatenate %193, %196, %199, %202, %190, %205, %208, %211, %214 in 0 : vector<6x256xf32>, vector<6x256xf32>, vector<6x256xf32>, vector<6x256xf32>, vector<6x256xf32>, vector<6x256xf32>, vector<6x256xf32>, vector<6x256xf32>, vector<6x256xf32> -> vector<54x256xf32>
    %c5 = arith.constant 5 : index
    %c0_72 = arith.constant 0 : index
    %c0_73 = arith.constant 0 : index
    %216 = vector.load %arg3[%c5, %c0_72, %c0_73] : memref<15x6x162xf32, #tpu.memory_space<vmem>>, vector<1x6x162xf32>
    %217 = vector.shape_cast %216 : vector<1x6x162xf32> to vector<6x162xf32>
    %218 = vector.extract_strided_slice %217 {offsets = [0, 0], sizes = [6, 54], strides = [1, 1]} : vector<6x162xf32> to vector<6x54xf32>
    %cst_74 = arith.constant dense<0.000000e+00> : vector<6x256xf32>
    %219 = tpu.matmul %218, %215, %cst_74 {dimension_numbers = #tpu.dot_dimension_numbers<[1], [0], [0], [1], [0, 0, 1, 1], [], []>} : vector<6x54xf32>, vector<54x256xf32>, vector<6x256xf32> -> vector<6x256xf32>
    %220 = vector.extract_strided_slice %13 {offsets = [0, 5], sizes = [6, 1], strides = [1, 1]} : vector<6x15xf32> to vector<6x1xf32>
    %221 = vector.broadcast %220 : vector<6x1xf32> to vector<6x256xf32>
    %222 = arith.addf %219, %221 : vector<6x256xf32>
    %cst_75 = arith.constant 0.000000e+00 : f32
    %223 = vector.broadcast %cst_75 : f32 to vector<6x256xf32>
    %224 = arith.maximumf %222, %223 : vector<6x256xf32>
    %225 = tpu.concatenate %190, %224 in 0 : vector<6x256xf32>, vector<6x256xf32> -> vector<12x256xf32>
    %c17_i32_76 = arith.constant 17 : i32
    %226 = tpu.dynamic_rotate %225 by %c17_i32_76 dim 1 : vector<12x256xf32>, i32 -> vector<12x256xf32>
    %227 = vector.broadcast %4 : vector<1x256xf32> to vector<12x256xf32>
    %228 = arith.mulf %226, %227 : vector<12x256xf32>
    %c16_i32_77 = arith.constant 16 : i32
    %229 = tpu.dynamic_rotate %225 by %c16_i32_77 dim 1 : vector<12x256xf32>, i32 -> vector<12x256xf32>
    %230 = vector.broadcast %5 : vector<1x256xf32> to vector<12x256xf32>
    %231 = arith.mulf %229, %230 : vector<12x256xf32>
    %c15_i32_78 = arith.constant 15 : i32
    %232 = tpu.dynamic_rotate %225 by %c15_i32_78 dim 1 : vector<12x256xf32>, i32 -> vector<12x256xf32>
    %233 = vector.broadcast %6 : vector<1x256xf32> to vector<12x256xf32>
    %234 = arith.mulf %232, %233 : vector<12x256xf32>
    %c1_i32_79 = arith.constant 1 : i32
    %235 = tpu.dynamic_rotate %225 by %c1_i32_79 dim 1 : vector<12x256xf32>, i32 -> vector<12x256xf32>
    %236 = vector.broadcast %7 : vector<1x256xf32> to vector<12x256xf32>
    %237 = arith.mulf %235, %236 : vector<12x256xf32>
    %c255_i32_80 = arith.constant 255 : i32
    %238 = tpu.dynamic_rotate %225 by %c255_i32_80 dim 1 : vector<12x256xf32>, i32 -> vector<12x256xf32>
    %239 = vector.broadcast %8 : vector<1x256xf32> to vector<12x256xf32>
    %240 = arith.mulf %238, %239 : vector<12x256xf32>
    %c241_i32_81 = arith.constant 241 : i32
    %241 = tpu.dynamic_rotate %225 by %c241_i32_81 dim 1 : vector<12x256xf32>, i32 -> vector<12x256xf32>
    %242 = vector.broadcast %9 : vector<1x256xf32> to vector<12x256xf32>
    %243 = arith.mulf %241, %242 : vector<12x256xf32>
    %c240_i32_82 = arith.constant 240 : i32
    %244 = tpu.dynamic_rotate %225 by %c240_i32_82 dim 1 : vector<12x256xf32>, i32 -> vector<12x256xf32>
    %245 = vector.broadcast %10 : vector<1x256xf32> to vector<12x256xf32>
    %246 = arith.mulf %244, %245 : vector<12x256xf32>
    %c239_i32_83 = arith.constant 239 : i32
    %247 = tpu.dynamic_rotate %225 by %c239_i32_83 dim 1 : vector<12x256xf32>, i32 -> vector<12x256xf32>
    %248 = vector.broadcast %11 : vector<1x256xf32> to vector<12x256xf32>
    %249 = arith.mulf %247, %248 : vector<12x256xf32>
    %250 = tpu.concatenate %228, %231, %234, %237, %225, %240, %243, %246, %249 in 0 : vector<12x256xf32>, vector<12x256xf32>, vector<12x256xf32>, vector<12x256xf32>, vector<12x256xf32>, vector<12x256xf32>, vector<12x256xf32>, vector<12x256xf32>, vector<12x256xf32> -> vector<108x256xf32>
    %c6 = arith.constant 6 : index
    %c0_84 = arith.constant 0 : index
    %c0_85 = arith.constant 0 : index
    %251 = vector.load %arg3[%c6, %c0_84, %c0_85] : memref<15x6x162xf32, #tpu.memory_space<vmem>>, vector<1x6x162xf32>
    %252 = vector.shape_cast %251 : vector<1x6x162xf32> to vector<6x162xf32>
    %253 = vector.extract_strided_slice %252 {offsets = [0, 0], sizes = [6, 108], strides = [1, 1]} : vector<6x162xf32> to vector<6x108xf32>
    %cst_86 = arith.constant dense<0.000000e+00> : vector<6x256xf32>
    %254 = tpu.matmul %253, %250, %cst_86 {dimension_numbers = #tpu.dot_dimension_numbers<[1], [0], [0], [1], [0, 0, 1, 1], [], []>} : vector<6x108xf32>, vector<108x256xf32>, vector<6x256xf32> -> vector<6x256xf32>
    %255 = vector.extract_strided_slice %13 {offsets = [0, 6], sizes = [6, 1], strides = [1, 1]} : vector<6x15xf32> to vector<6x1xf32>
    %256 = vector.broadcast %255 : vector<6x1xf32> to vector<6x256xf32>
    %257 = arith.addf %254, %256 : vector<6x256xf32>
    %cst_87 = arith.constant 0.000000e+00 : f32
    %258 = vector.broadcast %cst_87 : f32 to vector<6x256xf32>
    %259 = arith.maximumf %257, %258 : vector<6x256xf32>
    %260 = tpu.concatenate %225, %259 in 0 : vector<12x256xf32>, vector<6x256xf32> -> vector<18x256xf32>
    %c17_i32_88 = arith.constant 17 : i32
    %261 = tpu.dynamic_rotate %260 by %c17_i32_88 dim 1 : vector<18x256xf32>, i32 -> vector<18x256xf32>
    %262 = vector.broadcast %4 : vector<1x256xf32> to vector<18x256xf32>
    %263 = arith.mulf %261, %262 : vector<18x256xf32>
    %c16_i32_89 = arith.constant 16 : i32
    %264 = tpu.dynamic_rotate %260 by %c16_i32_89 dim 1 : vector<18x256xf32>, i32 -> vector<18x256xf32>
    %265 = vector.broadcast %5 : vector<1x256xf32> to vector<18x256xf32>
    %266 = arith.mulf %264, %265 : vector<18x256xf32>
    %c15_i32_90 = arith.constant 15 : i32
    %267 = tpu.dynamic_rotate %260 by %c15_i32_90 dim 1 : vector<18x256xf32>, i32 -> vector<18x256xf32>
    %268 = vector.broadcast %6 : vector<1x256xf32> to vector<18x256xf32>
    %269 = arith.mulf %267, %268 : vector<18x256xf32>
    %c1_i32_91 = arith.constant 1 : i32
    %270 = tpu.dynamic_rotate %260 by %c1_i32_91 dim 1 : vector<18x256xf32>, i32 -> vector<18x256xf32>
    %271 = vector.broadcast %7 : vector<1x256xf32> to vector<18x256xf32>
    %272 = arith.mulf %270, %271 : vector<18x256xf32>
    %c255_i32_92 = arith.constant 255 : i32
    %273 = tpu.dynamic_rotate %260 by %c255_i32_92 dim 1 : vector<18x256xf32>, i32 -> vector<18x256xf32>
    %274 = vector.broadcast %8 : vector<1x256xf32> to vector<18x256xf32>
    %275 = arith.mulf %273, %274 : vector<18x256xf32>
    %c241_i32_93 = arith.constant 241 : i32
    %276 = tpu.dynamic_rotate %260 by %c241_i32_93 dim 1 : vector<18x256xf32>, i32 -> vector<18x256xf32>
    %277 = vector.broadcast %9 : vector<1x256xf32> to vector<18x256xf32>
    %278 = arith.mulf %276, %277 : vector<18x256xf32>
    %c240_i32_94 = arith.constant 240 : i32
    %279 = tpu.dynamic_rotate %260 by %c240_i32_94 dim 1 : vector<18x256xf32>, i32 -> vector<18x256xf32>
    %280 = vector.broadcast %10 : vector<1x256xf32> to vector<18x256xf32>
    %281 = arith.mulf %279, %280 : vector<18x256xf32>
    %c239_i32_95 = arith.constant 239 : i32
    %282 = tpu.dynamic_rotate %260 by %c239_i32_95 dim 1 : vector<18x256xf32>, i32 -> vector<18x256xf32>
    %283 = vector.broadcast %11 : vector<1x256xf32> to vector<18x256xf32>
    %284 = arith.mulf %282, %283 : vector<18x256xf32>
    %285 = tpu.concatenate %263, %266, %269, %272, %260, %275, %278, %281, %284 in 0 : vector<18x256xf32>, vector<18x256xf32>, vector<18x256xf32>, vector<18x256xf32>, vector<18x256xf32>, vector<18x256xf32>, vector<18x256xf32>, vector<18x256xf32>, vector<18x256xf32> -> vector<162x256xf32>
    %c7 = arith.constant 7 : index
    %c0_96 = arith.constant 0 : index
    %c0_97 = arith.constant 0 : index
    %286 = vector.load %arg3[%c7, %c0_96, %c0_97] : memref<15x6x162xf32, #tpu.memory_space<vmem>>, vector<1x6x162xf32>
    %287 = vector.shape_cast %286 : vector<1x6x162xf32> to vector<6x162xf32>
    %cst_98 = arith.constant dense<0.000000e+00> : vector<6x256xf32>
    %288 = tpu.matmul %287, %285, %cst_98 {dimension_numbers = #tpu.dot_dimension_numbers<[1], [0], [0], [1], [0, 0, 1, 1], [], []>} : vector<6x162xf32>, vector<162x256xf32>, vector<6x256xf32> -> vector<6x256xf32>
    %289 = vector.extract_strided_slice %13 {offsets = [0, 7], sizes = [6, 1], strides = [1, 1]} : vector<6x15xf32> to vector<6x1xf32>
    %290 = vector.broadcast %289 : vector<6x1xf32> to vector<6x256xf32>
    %291 = arith.addf %288, %290 : vector<6x256xf32>
    %cst_99 = arith.constant 0.000000e+00 : f32
    %292 = vector.broadcast %cst_99 : f32 to vector<6x256xf32>
    %293 = arith.maximumf %291, %292 : vector<6x256xf32>
    %294 = tpu.concatenate %260, %293 in 0 : vector<18x256xf32>, vector<6x256xf32> -> vector<24x256xf32>
    %c1_100 = arith.constant 1 : index
    %c0_101 = arith.constant 0 : index
    %c0_102 = arith.constant 0 : index
    %295 = vector.load %arg5[%c1_100, %c0_101, %c0_102] : memref<5x6x24xf32, #tpu.memory_space<vmem>>, vector<1x6x24xf32>
    %296 = vector.shape_cast %295 : vector<1x6x24xf32> to vector<6x24xf32>
    %cst_103 = arith.constant dense<0.000000e+00> : vector<6x256xf32>
    %297 = tpu.matmul %296, %294, %cst_103 {dimension_numbers = #tpu.dot_dimension_numbers<[1], [0], [0], [1], [0, 0, 1, 1], [], []>} : vector<6x24xf32>, vector<24x256xf32>, vector<6x256xf32> -> vector<6x256xf32>
    %298 = vector.extract_strided_slice %14 {offsets = [0, 1], sizes = [6, 1], strides = [1, 1]} : vector<6x5xf32> to vector<6x1xf32>
    %299 = vector.broadcast %298 : vector<6x1xf32> to vector<6x256xf32>
    %300 = arith.addf %297, %299 : vector<6x256xf32>
    %301 = arith.addf %190, %300 : vector<6x256xf32>
    %c17_i32_104 = arith.constant 17 : i32
    %302 = tpu.dynamic_rotate %301 by %c17_i32_104 dim 1 : vector<6x256xf32>, i32 -> vector<6x256xf32>
    %303 = vector.broadcast %4 : vector<1x256xf32> to vector<6x256xf32>
    %304 = arith.mulf %302, %303 : vector<6x256xf32>
    %c16_i32_105 = arith.constant 16 : i32
    %305 = tpu.dynamic_rotate %301 by %c16_i32_105 dim 1 : vector<6x256xf32>, i32 -> vector<6x256xf32>
    %306 = vector.broadcast %5 : vector<1x256xf32> to vector<6x256xf32>
    %307 = arith.mulf %305, %306 : vector<6x256xf32>
    %c15_i32_106 = arith.constant 15 : i32
    %308 = tpu.dynamic_rotate %301 by %c15_i32_106 dim 1 : vector<6x256xf32>, i32 -> vector<6x256xf32>
    %309 = vector.broadcast %6 : vector<1x256xf32> to vector<6x256xf32>
    %310 = arith.mulf %308, %309 : vector<6x256xf32>
    %c1_i32_107 = arith.constant 1 : i32
    %311 = tpu.dynamic_rotate %301 by %c1_i32_107 dim 1 : vector<6x256xf32>, i32 -> vector<6x256xf32>
    %312 = vector.broadcast %7 : vector<1x256xf32> to vector<6x256xf32>
    %313 = arith.mulf %311, %312 : vector<6x256xf32>
    %c255_i32_108 = arith.constant 255 : i32
    %314 = tpu.dynamic_rotate %301 by %c255_i32_108 dim 1 : vector<6x256xf32>, i32 -> vector<6x256xf32>
    %315 = vector.broadcast %8 : vector<1x256xf32> to vector<6x256xf32>
    %316 = arith.mulf %314, %315 : vector<6x256xf32>
    %c241_i32_109 = arith.constant 241 : i32
    %317 = tpu.dynamic_rotate %301 by %c241_i32_109 dim 1 : vector<6x256xf32>, i32 -> vector<6x256xf32>
    %318 = vector.broadcast %9 : vector<1x256xf32> to vector<6x256xf32>
    %319 = arith.mulf %317, %318 : vector<6x256xf32>
    %c240_i32_110 = arith.constant 240 : i32
    %320 = tpu.dynamic_rotate %301 by %c240_i32_110 dim 1 : vector<6x256xf32>, i32 -> vector<6x256xf32>
    %321 = vector.broadcast %10 : vector<1x256xf32> to vector<6x256xf32>
    %322 = arith.mulf %320, %321 : vector<6x256xf32>
    %c239_i32_111 = arith.constant 239 : i32
    %323 = tpu.dynamic_rotate %301 by %c239_i32_111 dim 1 : vector<6x256xf32>, i32 -> vector<6x256xf32>
    %324 = vector.broadcast %11 : vector<1x256xf32> to vector<6x256xf32>
    %325 = arith.mulf %323, %324 : vector<6x256xf32>
    %326 = tpu.concatenate %304, %307, %310, %313, %301, %316, %319, %322, %325 in 0 : vector<6x256xf32>, vector<6x256xf32>, vector<6x256xf32>, vector<6x256xf32>, vector<6x256xf32>, vector<6x256xf32>, vector<6x256xf32>, vector<6x256xf32>, vector<6x256xf32> -> vector<54x256xf32>
    %c8 = arith.constant 8 : index
    %c0_112 = arith.constant 0 : index
    %c0_113 = arith.constant 0 : index
    %327 = vector.load %arg3[%c8, %c0_112, %c0_113] : memref<15x6x162xf32, #tpu.memory_space<vmem>>, vector<1x6x162xf32>
    %328 = vector.shape_cast %327 : vector<1x6x162xf32> to vector<6x162xf32>
    %329 = vector.extract_strided_slice %328 {offsets = [0, 0], sizes = [6, 54], strides = [1, 1]} : vector<6x162xf32> to vector<6x54xf32>
    %cst_114 = arith.constant dense<0.000000e+00> : vector<6x256xf32>
    %330 = tpu.matmul %329, %326, %cst_114 {dimension_numbers = #tpu.dot_dimension_numbers<[1], [0], [0], [1], [0, 0, 1, 1], [], []>} : vector<6x54xf32>, vector<54x256xf32>, vector<6x256xf32> -> vector<6x256xf32>
    %331 = vector.extract_strided_slice %13 {offsets = [0, 8], sizes = [6, 1], strides = [1, 1]} : vector<6x15xf32> to vector<6x1xf32>
    %332 = vector.broadcast %331 : vector<6x1xf32> to vector<6x256xf32>
    %333 = arith.addf %330, %332 : vector<6x256xf32>
    %cst_115 = arith.constant 0.000000e+00 : f32
    %334 = vector.broadcast %cst_115 : f32 to vector<6x256xf32>
    %335 = arith.maximumf %333, %334 : vector<6x256xf32>
    %336 = tpu.concatenate %301, %335 in 0 : vector<6x256xf32>, vector<6x256xf32> -> vector<12x256xf32>
    %c17_i32_116 = arith.constant 17 : i32
    %337 = tpu.dynamic_rotate %336 by %c17_i32_116 dim 1 : vector<12x256xf32>, i32 -> vector<12x256xf32>
    %338 = vector.broadcast %4 : vector<1x256xf32> to vector<12x256xf32>
    %339 = arith.mulf %337, %338 : vector<12x256xf32>
    %c16_i32_117 = arith.constant 16 : i32
    %340 = tpu.dynamic_rotate %336 by %c16_i32_117 dim 1 : vector<12x256xf32>, i32 -> vector<12x256xf32>
    %341 = vector.broadcast %5 : vector<1x256xf32> to vector<12x256xf32>
    %342 = arith.mulf %340, %341 : vector<12x256xf32>
    %c15_i32_118 = arith.constant 15 : i32
    %343 = tpu.dynamic_rotate %336 by %c15_i32_118 dim 1 : vector<12x256xf32>, i32 -> vector<12x256xf32>
    %344 = vector.broadcast %6 : vector<1x256xf32> to vector<12x256xf32>
    %345 = arith.mulf %343, %344 : vector<12x256xf32>
    %c1_i32_119 = arith.constant 1 : i32
    %346 = tpu.dynamic_rotate %336 by %c1_i32_119 dim 1 : vector<12x256xf32>, i32 -> vector<12x256xf32>
    %347 = vector.broadcast %7 : vector<1x256xf32> to vector<12x256xf32>
    %348 = arith.mulf %346, %347 : vector<12x256xf32>
    %c255_i32_120 = arith.constant 255 : i32
    %349 = tpu.dynamic_rotate %336 by %c255_i32_120 dim 1 : vector<12x256xf32>, i32 -> vector<12x256xf32>
    %350 = vector.broadcast %8 : vector<1x256xf32> to vector<12x256xf32>
    %351 = arith.mulf %349, %350 : vector<12x256xf32>
    %c241_i32_121 = arith.constant 241 : i32
    %352 = tpu.dynamic_rotate %336 by %c241_i32_121 dim 1 : vector<12x256xf32>, i32 -> vector<12x256xf32>
    %353 = vector.broadcast %9 : vector<1x256xf32> to vector<12x256xf32>
    %354 = arith.mulf %352, %353 : vector<12x256xf32>
    %c240_i32_122 = arith.constant 240 : i32
    %355 = tpu.dynamic_rotate %336 by %c240_i32_122 dim 1 : vector<12x256xf32>, i32 -> vector<12x256xf32>
    %356 = vector.broadcast %10 : vector<1x256xf32> to vector<12x256xf32>
    %357 = arith.mulf %355, %356 : vector<12x256xf32>
    %c239_i32_123 = arith.constant 239 : i32
    %358 = tpu.dynamic_rotate %336 by %c239_i32_123 dim 1 : vector<12x256xf32>, i32 -> vector<12x256xf32>
    %359 = vector.broadcast %11 : vector<1x256xf32> to vector<12x256xf32>
    %360 = arith.mulf %358, %359 : vector<12x256xf32>
    %361 = tpu.concatenate %339, %342, %345, %348, %336, %351, %354, %357, %360 in 0 : vector<12x256xf32>, vector<12x256xf32>, vector<12x256xf32>, vector<12x256xf32>, vector<12x256xf32>, vector<12x256xf32>, vector<12x256xf32>, vector<12x256xf32>, vector<12x256xf32> -> vector<108x256xf32>
    %c9 = arith.constant 9 : index
    %c0_124 = arith.constant 0 : index
    %c0_125 = arith.constant 0 : index
    %362 = vector.load %arg3[%c9, %c0_124, %c0_125] : memref<15x6x162xf32, #tpu.memory_space<vmem>>, vector<1x6x162xf32>
    %363 = vector.shape_cast %362 : vector<1x6x162xf32> to vector<6x162xf32>
    %364 = vector.extract_strided_slice %363 {offsets = [0, 0], sizes = [6, 108], strides = [1, 1]} : vector<6x162xf32> to vector<6x108xf32>
    %cst_126 = arith.constant dense<0.000000e+00> : vector<6x256xf32>
    %365 = tpu.matmul %364, %361, %cst_126 {dimension_numbers = #tpu.dot_dimension_numbers<[1], [0], [0], [1], [0, 0, 1, 1], [], []>} : vector<6x108xf32>, vector<108x256xf32>, vector<6x256xf32> -> vector<6x256xf32>
    %366 = vector.extract_strided_slice %13 {offsets = [0, 9], sizes = [6, 1], strides = [1, 1]} : vector<6x15xf32> to vector<6x1xf32>
    %367 = vector.broadcast %366 : vector<6x1xf32> to vector<6x256xf32>
    %368 = arith.addf %365, %367 : vector<6x256xf32>
    %cst_127 = arith.constant 0.000000e+00 : f32
    %369 = vector.broadcast %cst_127 : f32 to vector<6x256xf32>
    %370 = arith.maximumf %368, %369 : vector<6x256xf32>
    %371 = tpu.concatenate %336, %370 in 0 : vector<12x256xf32>, vector<6x256xf32> -> vector<18x256xf32>
    %c17_i32_128 = arith.constant 17 : i32
    %372 = tpu.dynamic_rotate %371 by %c17_i32_128 dim 1 : vector<18x256xf32>, i32 -> vector<18x256xf32>
    %373 = vector.broadcast %4 : vector<1x256xf32> to vector<18x256xf32>
    %374 = arith.mulf %372, %373 : vector<18x256xf32>
    %c16_i32_129 = arith.constant 16 : i32
    %375 = tpu.dynamic_rotate %371 by %c16_i32_129 dim 1 : vector<18x256xf32>, i32 -> vector<18x256xf32>
    %376 = vector.broadcast %5 : vector<1x256xf32> to vector<18x256xf32>
    %377 = arith.mulf %375, %376 : vector<18x256xf32>
    %c15_i32_130 = arith.constant 15 : i32
    %378 = tpu.dynamic_rotate %371 by %c15_i32_130 dim 1 : vector<18x256xf32>, i32 -> vector<18x256xf32>
    %379 = vector.broadcast %6 : vector<1x256xf32> to vector<18x256xf32>
    %380 = arith.mulf %378, %379 : vector<18x256xf32>
    %c1_i32_131 = arith.constant 1 : i32
    %381 = tpu.dynamic_rotate %371 by %c1_i32_131 dim 1 : vector<18x256xf32>, i32 -> vector<18x256xf32>
    %382 = vector.broadcast %7 : vector<1x256xf32> to vector<18x256xf32>
    %383 = arith.mulf %381, %382 : vector<18x256xf32>
    %c255_i32_132 = arith.constant 255 : i32
    %384 = tpu.dynamic_rotate %371 by %c255_i32_132 dim 1 : vector<18x256xf32>, i32 -> vector<18x256xf32>
    %385 = vector.broadcast %8 : vector<1x256xf32> to vector<18x256xf32>
    %386 = arith.mulf %384, %385 : vector<18x256xf32>
    %c241_i32_133 = arith.constant 241 : i32
    %387 = tpu.dynamic_rotate %371 by %c241_i32_133 dim 1 : vector<18x256xf32>, i32 -> vector<18x256xf32>
    %388 = vector.broadcast %9 : vector<1x256xf32> to vector<18x256xf32>
    %389 = arith.mulf %387, %388 : vector<18x256xf32>
    %c240_i32_134 = arith.constant 240 : i32
    %390 = tpu.dynamic_rotate %371 by %c240_i32_134 dim 1 : vector<18x256xf32>, i32 -> vector<18x256xf32>
    %391 = vector.broadcast %10 : vector<1x256xf32> to vector<18x256xf32>
    %392 = arith.mulf %390, %391 : vector<18x256xf32>
    %c239_i32_135 = arith.constant 239 : i32
    %393 = tpu.dynamic_rotate %371 by %c239_i32_135 dim 1 : vector<18x256xf32>, i32 -> vector<18x256xf32>
    %394 = vector.broadcast %11 : vector<1x256xf32> to vector<18x256xf32>
    %395 = arith.mulf %393, %394 : vector<18x256xf32>
    %396 = tpu.concatenate %374, %377, %380, %383, %371, %386, %389, %392, %395 in 0 : vector<18x256xf32>, vector<18x256xf32>, vector<18x256xf32>, vector<18x256xf32>, vector<18x256xf32>, vector<18x256xf32>, vector<18x256xf32>, vector<18x256xf32>, vector<18x256xf32> -> vector<162x256xf32>
    %c10 = arith.constant 10 : index
    %c0_136 = arith.constant 0 : index
    %c0_137 = arith.constant 0 : index
    %397 = vector.load %arg3[%c10, %c0_136, %c0_137] : memref<15x6x162xf32, #tpu.memory_space<vmem>>, vector<1x6x162xf32>
    %398 = vector.shape_cast %397 : vector<1x6x162xf32> to vector<6x162xf32>
    %cst_138 = arith.constant dense<0.000000e+00> : vector<6x256xf32>
    %399 = tpu.matmul %398, %396, %cst_138 {dimension_numbers = #tpu.dot_dimension_numbers<[1], [0], [0], [1], [0, 0, 1, 1], [], []>} : vector<6x162xf32>, vector<162x256xf32>, vector<6x256xf32> -> vector<6x256xf32>
    %400 = vector.extract_strided_slice %13 {offsets = [0, 10], sizes = [6, 1], strides = [1, 1]} : vector<6x15xf32> to vector<6x1xf32>
    %401 = vector.broadcast %400 : vector<6x1xf32> to vector<6x256xf32>
    %402 = arith.addf %399, %401 : vector<6x256xf32>
    %cst_139 = arith.constant 0.000000e+00 : f32
    %403 = vector.broadcast %cst_139 : f32 to vector<6x256xf32>
    %404 = arith.maximumf %402, %403 : vector<6x256xf32>
    %405 = tpu.concatenate %371, %404 in 0 : vector<18x256xf32>, vector<6x256xf32> -> vector<24x256xf32>
    %c2_140 = arith.constant 2 : index
    %c0_141 = arith.constant 0 : index
    %c0_142 = arith.constant 0 : index
    %406 = vector.load %arg5[%c2_140, %c0_141, %c0_142] : memref<5x6x24xf32, #tpu.memory_space<vmem>>, vector<1x6x24xf32>
    %407 = vector.shape_cast %406 : vector<1x6x24xf32> to vector<6x24xf32>
    %cst_143 = arith.constant dense<0.000000e+00> : vector<6x256xf32>
    %408 = tpu.matmul %407, %405, %cst_143 {dimension_numbers = #tpu.dot_dimension_numbers<[1], [0], [0], [1], [0, 0, 1, 1], [], []>} : vector<6x24xf32>, vector<24x256xf32>, vector<6x256xf32> -> vector<6x256xf32>
    %409 = vector.extract_strided_slice %14 {offsets = [0, 2], sizes = [6, 1], strides = [1, 1]} : vector<6x5xf32> to vector<6x1xf32>
    %410 = vector.broadcast %409 : vector<6x1xf32> to vector<6x256xf32>
    %411 = arith.addf %408, %410 : vector<6x256xf32>
    %412 = arith.addf %301, %411 : vector<6x256xf32>
    %c17_i32_144 = arith.constant 17 : i32
    %413 = tpu.dynamic_rotate %412 by %c17_i32_144 dim 1 : vector<6x256xf32>, i32 -> vector<6x256xf32>
    %414 = vector.broadcast %4 : vector<1x256xf32> to vector<6x256xf32>
    %415 = arith.mulf %413, %414 : vector<6x256xf32>
    %c16_i32_145 = arith.constant 16 : i32
    %416 = tpu.dynamic_rotate %412 by %c16_i32_145 dim 1 : vector<6x256xf32>, i32 -> vector<6x256xf32>
    %417 = vector.broadcast %5 : vector<1x256xf32> to vector<6x256xf32>
    %418 = arith.mulf %416, %417 : vector<6x256xf32>
    %c15_i32_146 = arith.constant 15 : i32
    %419 = tpu.dynamic_rotate %412 by %c15_i32_146 dim 1 : vector<6x256xf32>, i32 -> vector<6x256xf32>
    %420 = vector.broadcast %6 : vector<1x256xf32> to vector<6x256xf32>
    %421 = arith.mulf %419, %420 : vector<6x256xf32>
    %c1_i32_147 = arith.constant 1 : i32
    %422 = tpu.dynamic_rotate %412 by %c1_i32_147 dim 1 : vector<6x256xf32>, i32 -> vector<6x256xf32>
    %423 = vector.broadcast %7 : vector<1x256xf32> to vector<6x256xf32>
    %424 = arith.mulf %422, %423 : vector<6x256xf32>
    %c255_i32_148 = arith.constant 255 : i32
    %425 = tpu.dynamic_rotate %412 by %c255_i32_148 dim 1 : vector<6x256xf32>, i32 -> vector<6x256xf32>
    %426 = vector.broadcast %8 : vector<1x256xf32> to vector<6x256xf32>
    %427 = arith.mulf %425, %426 : vector<6x256xf32>
    %c241_i32_149 = arith.constant 241 : i32
    %428 = tpu.dynamic_rotate %412 by %c241_i32_149 dim 1 : vector<6x256xf32>, i32 -> vector<6x256xf32>
    %429 = vector.broadcast %9 : vector<1x256xf32> to vector<6x256xf32>
    %430 = arith.mulf %428, %429 : vector<6x256xf32>
    %c240_i32_150 = arith.constant 240 : i32
    %431 = tpu.dynamic_rotate %412 by %c240_i32_150 dim 1 : vector<6x256xf32>, i32 -> vector<6x256xf32>
    %432 = vector.broadcast %10 : vector<1x256xf32> to vector<6x256xf32>
    %433 = arith.mulf %431, %432 : vector<6x256xf32>
    %c239_i32_151 = arith.constant 239 : i32
    %434 = tpu.dynamic_rotate %412 by %c239_i32_151 dim 1 : vector<6x256xf32>, i32 -> vector<6x256xf32>
    %435 = vector.broadcast %11 : vector<1x256xf32> to vector<6x256xf32>
    %436 = arith.mulf %434, %435 : vector<6x256xf32>
    %437 = tpu.concatenate %415, %418, %421, %424, %412, %427, %430, %433, %436 in 0 : vector<6x256xf32>, vector<6x256xf32>, vector<6x256xf32>, vector<6x256xf32>, vector<6x256xf32>, vector<6x256xf32>, vector<6x256xf32>, vector<6x256xf32>, vector<6x256xf32> -> vector<54x256xf32>
    %c11 = arith.constant 11 : index
    %c0_152 = arith.constant 0 : index
    %c0_153 = arith.constant 0 : index
    %438 = vector.load %arg3[%c11, %c0_152, %c0_153] : memref<15x6x162xf32, #tpu.memory_space<vmem>>, vector<1x6x162xf32>
    %439 = vector.shape_cast %438 : vector<1x6x162xf32> to vector<6x162xf32>
    %440 = vector.extract_strided_slice %439 {offsets = [0, 0], sizes = [6, 54], strides = [1, 1]} : vector<6x162xf32> to vector<6x54xf32>
    %cst_154 = arith.constant dense<0.000000e+00> : vector<6x256xf32>
    %441 = tpu.matmul %440, %437, %cst_154 {dimension_numbers = #tpu.dot_dimension_numbers<[1], [0], [0], [1], [0, 0, 1, 1], [], []>} : vector<6x54xf32>, vector<54x256xf32>, vector<6x256xf32> -> vector<6x256xf32>
    %442 = vector.extract_strided_slice %13 {offsets = [0, 11], sizes = [6, 1], strides = [1, 1]} : vector<6x15xf32> to vector<6x1xf32>
    %443 = vector.broadcast %442 : vector<6x1xf32> to vector<6x256xf32>
    %444 = arith.addf %441, %443 : vector<6x256xf32>
    %cst_155 = arith.constant 0.000000e+00 : f32
    %445 = vector.broadcast %cst_155 : f32 to vector<6x256xf32>
    %446 = arith.maximumf %444, %445 : vector<6x256xf32>
    %447 = tpu.concatenate %412, %446 in 0 : vector<6x256xf32>, vector<6x256xf32> -> vector<12x256xf32>
    %c17_i32_156 = arith.constant 17 : i32
    %448 = tpu.dynamic_rotate %447 by %c17_i32_156 dim 1 : vector<12x256xf32>, i32 -> vector<12x256xf32>
    %449 = vector.broadcast %4 : vector<1x256xf32> to vector<12x256xf32>
    %450 = arith.mulf %448, %449 : vector<12x256xf32>
    %c16_i32_157 = arith.constant 16 : i32
    %451 = tpu.dynamic_rotate %447 by %c16_i32_157 dim 1 : vector<12x256xf32>, i32 -> vector<12x256xf32>
    %452 = vector.broadcast %5 : vector<1x256xf32> to vector<12x256xf32>
    %453 = arith.mulf %451, %452 : vector<12x256xf32>
    %c15_i32_158 = arith.constant 15 : i32
    %454 = tpu.dynamic_rotate %447 by %c15_i32_158 dim 1 : vector<12x256xf32>, i32 -> vector<12x256xf32>
    %455 = vector.broadcast %6 : vector<1x256xf32> to vector<12x256xf32>
    %456 = arith.mulf %454, %455 : vector<12x256xf32>
    %c1_i32_159 = arith.constant 1 : i32
    %457 = tpu.dynamic_rotate %447 by %c1_i32_159 dim 1 : vector<12x256xf32>, i32 -> vector<12x256xf32>
    %458 = vector.broadcast %7 : vector<1x256xf32> to vector<12x256xf32>
    %459 = arith.mulf %457, %458 : vector<12x256xf32>
    %c255_i32_160 = arith.constant 255 : i32
    %460 = tpu.dynamic_rotate %447 by %c255_i32_160 dim 1 : vector<12x256xf32>, i32 -> vector<12x256xf32>
    %461 = vector.broadcast %8 : vector<1x256xf32> to vector<12x256xf32>
    %462 = arith.mulf %460, %461 : vector<12x256xf32>
    %c241_i32_161 = arith.constant 241 : i32
    %463 = tpu.dynamic_rotate %447 by %c241_i32_161 dim 1 : vector<12x256xf32>, i32 -> vector<12x256xf32>
    %464 = vector.broadcast %9 : vector<1x256xf32> to vector<12x256xf32>
    %465 = arith.mulf %463, %464 : vector<12x256xf32>
    %c240_i32_162 = arith.constant 240 : i32
    %466 = tpu.dynamic_rotate %447 by %c240_i32_162 dim 1 : vector<12x256xf32>, i32 -> vector<12x256xf32>
    %467 = vector.broadcast %10 : vector<1x256xf32> to vector<12x256xf32>
    %468 = arith.mulf %466, %467 : vector<12x256xf32>
    %c239_i32_163 = arith.constant 239 : i32
    %469 = tpu.dynamic_rotate %447 by %c239_i32_163 dim 1 : vector<12x256xf32>, i32 -> vector<12x256xf32>
    %470 = vector.broadcast %11 : vector<1x256xf32> to vector<12x256xf32>
    %471 = arith.mulf %469, %470 : vector<12x256xf32>
    %472 = tpu.concatenate %450, %453, %456, %459, %447, %462, %465, %468, %471 in 0 : vector<12x256xf32>, vector<12x256xf32>, vector<12x256xf32>, vector<12x256xf32>, vector<12x256xf32>, vector<12x256xf32>, vector<12x256xf32>, vector<12x256xf32>, vector<12x256xf32> -> vector<108x256xf32>
    %c12 = arith.constant 12 : index
    %c0_164 = arith.constant 0 : index
    %c0_165 = arith.constant 0 : index
    %473 = vector.load %arg3[%c12, %c0_164, %c0_165] : memref<15x6x162xf32, #tpu.memory_space<vmem>>, vector<1x6x162xf32>
    %474 = vector.shape_cast %473 : vector<1x6x162xf32> to vector<6x162xf32>
    %475 = vector.extract_strided_slice %474 {offsets = [0, 0], sizes = [6, 108], strides = [1, 1]} : vector<6x162xf32> to vector<6x108xf32>
    %cst_166 = arith.constant dense<0.000000e+00> : vector<6x256xf32>
    %476 = tpu.matmul %475, %472, %cst_166 {dimension_numbers = #tpu.dot_dimension_numbers<[1], [0], [0], [1], [0, 0, 1, 1], [], []>} : vector<6x108xf32>, vector<108x256xf32>, vector<6x256xf32> -> vector<6x256xf32>
    %477 = vector.extract_strided_slice %13 {offsets = [0, 12], sizes = [6, 1], strides = [1, 1]} : vector<6x15xf32> to vector<6x1xf32>
    %478 = vector.broadcast %477 : vector<6x1xf32> to vector<6x256xf32>
    %479 = arith.addf %476, %478 : vector<6x256xf32>
    %cst_167 = arith.constant 0.000000e+00 : f32
    %480 = vector.broadcast %cst_167 : f32 to vector<6x256xf32>
    %481 = arith.maximumf %479, %480 : vector<6x256xf32>
    %482 = tpu.concatenate %447, %481 in 0 : vector<12x256xf32>, vector<6x256xf32> -> vector<18x256xf32>
    %c17_i32_168 = arith.constant 17 : i32
    %483 = tpu.dynamic_rotate %482 by %c17_i32_168 dim 1 : vector<18x256xf32>, i32 -> vector<18x256xf32>
    %484 = vector.broadcast %4 : vector<1x256xf32> to vector<18x256xf32>
    %485 = arith.mulf %483, %484 : vector<18x256xf32>
    %c16_i32_169 = arith.constant 16 : i32
    %486 = tpu.dynamic_rotate %482 by %c16_i32_169 dim 1 : vector<18x256xf32>, i32 -> vector<18x256xf32>
    %487 = vector.broadcast %5 : vector<1x256xf32> to vector<18x256xf32>
    %488 = arith.mulf %486, %487 : vector<18x256xf32>
    %c15_i32_170 = arith.constant 15 : i32
    %489 = tpu.dynamic_rotate %482 by %c15_i32_170 dim 1 : vector<18x256xf32>, i32 -> vector<18x256xf32>
    %490 = vector.broadcast %6 : vector<1x256xf32> to vector<18x256xf32>
    %491 = arith.mulf %489, %490 : vector<18x256xf32>
    %c1_i32_171 = arith.constant 1 : i32
    %492 = tpu.dynamic_rotate %482 by %c1_i32_171 dim 1 : vector<18x256xf32>, i32 -> vector<18x256xf32>
    %493 = vector.broadcast %7 : vector<1x256xf32> to vector<18x256xf32>
    %494 = arith.mulf %492, %493 : vector<18x256xf32>
    %c255_i32_172 = arith.constant 255 : i32
    %495 = tpu.dynamic_rotate %482 by %c255_i32_172 dim 1 : vector<18x256xf32>, i32 -> vector<18x256xf32>
    %496 = vector.broadcast %8 : vector<1x256xf32> to vector<18x256xf32>
    %497 = arith.mulf %495, %496 : vector<18x256xf32>
    %c241_i32_173 = arith.constant 241 : i32
    %498 = tpu.dynamic_rotate %482 by %c241_i32_173 dim 1 : vector<18x256xf32>, i32 -> vector<18x256xf32>
    %499 = vector.broadcast %9 : vector<1x256xf32> to vector<18x256xf32>
    %500 = arith.mulf %498, %499 : vector<18x256xf32>
    %c240_i32_174 = arith.constant 240 : i32
    %501 = tpu.dynamic_rotate %482 by %c240_i32_174 dim 1 : vector<18x256xf32>, i32 -> vector<18x256xf32>
    %502 = vector.broadcast %10 : vector<1x256xf32> to vector<18x256xf32>
    %503 = arith.mulf %501, %502 : vector<18x256xf32>
    %c239_i32_175 = arith.constant 239 : i32
    %504 = tpu.dynamic_rotate %482 by %c239_i32_175 dim 1 : vector<18x256xf32>, i32 -> vector<18x256xf32>
    %505 = vector.broadcast %11 : vector<1x256xf32> to vector<18x256xf32>
    %506 = arith.mulf %504, %505 : vector<18x256xf32>
    %507 = tpu.concatenate %485, %488, %491, %494, %482, %497, %500, %503, %506 in 0 : vector<18x256xf32>, vector<18x256xf32>, vector<18x256xf32>, vector<18x256xf32>, vector<18x256xf32>, vector<18x256xf32>, vector<18x256xf32>, vector<18x256xf32>, vector<18x256xf32> -> vector<162x256xf32>
    %c13 = arith.constant 13 : index
    %c0_176 = arith.constant 0 : index
    %c0_177 = arith.constant 0 : index
    %508 = vector.load %arg3[%c13, %c0_176, %c0_177] : memref<15x6x162xf32, #tpu.memory_space<vmem>>, vector<1x6x162xf32>
    %509 = vector.shape_cast %508 : vector<1x6x162xf32> to vector<6x162xf32>
    %cst_178 = arith.constant dense<0.000000e+00> : vector<6x256xf32>
    %510 = tpu.matmul %509, %507, %cst_178 {dimension_numbers = #tpu.dot_dimension_numbers<[1], [0], [0], [1], [0, 0, 1, 1], [], []>} : vector<6x162xf32>, vector<162x256xf32>, vector<6x256xf32> -> vector<6x256xf32>
    %511 = vector.extract_strided_slice %13 {offsets = [0, 13], sizes = [6, 1], strides = [1, 1]} : vector<6x15xf32> to vector<6x1xf32>
    %512 = vector.broadcast %511 : vector<6x1xf32> to vector<6x256xf32>
    %513 = arith.addf %510, %512 : vector<6x256xf32>
    %cst_179 = arith.constant 0.000000e+00 : f32
    %514 = vector.broadcast %cst_179 : f32 to vector<6x256xf32>
    %515 = arith.maximumf %513, %514 : vector<6x256xf32>
    %516 = tpu.concatenate %482, %515 in 0 : vector<18x256xf32>, vector<6x256xf32> -> vector<24x256xf32>
    %c3_180 = arith.constant 3 : index
    %c0_181 = arith.constant 0 : index
    %c0_182 = arith.constant 0 : index
    %517 = vector.load %arg5[%c3_180, %c0_181, %c0_182] : memref<5x6x24xf32, #tpu.memory_space<vmem>>, vector<1x6x24xf32>
    %518 = vector.shape_cast %517 : vector<1x6x24xf32> to vector<6x24xf32>
    %cst_183 = arith.constant dense<0.000000e+00> : vector<6x256xf32>
    %519 = tpu.matmul %518, %516, %cst_183 {dimension_numbers = #tpu.dot_dimension_numbers<[1], [0], [0], [1], [0, 0, 1, 1], [], []>} : vector<6x24xf32>, vector<24x256xf32>, vector<6x256xf32> -> vector<6x256xf32>
    %520 = vector.extract_strided_slice %14 {offsets = [0, 3], sizes = [6, 1], strides = [1, 1]} : vector<6x5xf32> to vector<6x1xf32>
    %521 = vector.broadcast %520 : vector<6x1xf32> to vector<6x256xf32>
    %522 = arith.addf %519, %521 : vector<6x256xf32>
    %523 = arith.addf %412, %522 : vector<6x256xf32>
    %524 = tpu.concatenate %190, %301, %412, %523 in 0 : vector<6x256xf32>, vector<6x256xf32>, vector<6x256xf32>, vector<6x256xf32> -> vector<24x256xf32>
    %c4_184 = arith.constant 4 : index
    %c0_185 = arith.constant 0 : index
    %c0_186 = arith.constant 0 : index
    %525 = vector.load %arg5[%c4_184, %c0_185, %c0_186] : memref<5x6x24xf32, #tpu.memory_space<vmem>>, vector<1x6x24xf32>
    %526 = vector.shape_cast %525 : vector<1x6x24xf32> to vector<6x24xf32>
    %cst_187 = arith.constant dense<0.000000e+00> : vector<6x256xf32>
    %527 = tpu.matmul %526, %524, %cst_187 {dimension_numbers = #tpu.dot_dimension_numbers<[1], [0], [0], [1], [0, 0, 1, 1], [], []>} : vector<6x24xf32>, vector<24x256xf32>, vector<6x256xf32> -> vector<6x256xf32>
    %528 = vector.extract_strided_slice %14 {offsets = [0, 4], sizes = [6, 1], strides = [1, 1]} : vector<6x5xf32> to vector<6x1xf32>
    %529 = vector.broadcast %528 : vector<6x1xf32> to vector<6x256xf32>
    %530 = arith.addf %527, %529 : vector<6x256xf32>
    %c17_i32_188 = arith.constant 17 : i32
    %531 = tpu.dynamic_rotate %530 by %c17_i32_188 dim 1 : vector<6x256xf32>, i32 -> vector<6x256xf32>
    %532 = vector.broadcast %4 : vector<1x256xf32> to vector<6x256xf32>
    %533 = arith.mulf %531, %532 : vector<6x256xf32>
    %c16_i32_189 = arith.constant 16 : i32
    %534 = tpu.dynamic_rotate %530 by %c16_i32_189 dim 1 : vector<6x256xf32>, i32 -> vector<6x256xf32>
    %535 = vector.broadcast %5 : vector<1x256xf32> to vector<6x256xf32>
    %536 = arith.mulf %534, %535 : vector<6x256xf32>
    %c15_i32_190 = arith.constant 15 : i32
    %537 = tpu.dynamic_rotate %530 by %c15_i32_190 dim 1 : vector<6x256xf32>, i32 -> vector<6x256xf32>
    %538 = vector.broadcast %6 : vector<1x256xf32> to vector<6x256xf32>
    %539 = arith.mulf %537, %538 : vector<6x256xf32>
    %c1_i32_191 = arith.constant 1 : i32
    %540 = tpu.dynamic_rotate %530 by %c1_i32_191 dim 1 : vector<6x256xf32>, i32 -> vector<6x256xf32>
    %541 = vector.broadcast %7 : vector<1x256xf32> to vector<6x256xf32>
    %542 = arith.mulf %540, %541 : vector<6x256xf32>
    %c255_i32_192 = arith.constant 255 : i32
    %543 = tpu.dynamic_rotate %530 by %c255_i32_192 dim 1 : vector<6x256xf32>, i32 -> vector<6x256xf32>
    %544 = vector.broadcast %8 : vector<1x256xf32> to vector<6x256xf32>
    %545 = arith.mulf %543, %544 : vector<6x256xf32>
    %c241_i32_193 = arith.constant 241 : i32
    %546 = tpu.dynamic_rotate %530 by %c241_i32_193 dim 1 : vector<6x256xf32>, i32 -> vector<6x256xf32>
    %547 = vector.broadcast %9 : vector<1x256xf32> to vector<6x256xf32>
    %548 = arith.mulf %546, %547 : vector<6x256xf32>
    %c240_i32_194 = arith.constant 240 : i32
    %549 = tpu.dynamic_rotate %530 by %c240_i32_194 dim 1 : vector<6x256xf32>, i32 -> vector<6x256xf32>
    %550 = vector.broadcast %10 : vector<1x256xf32> to vector<6x256xf32>
    %551 = arith.mulf %549, %550 : vector<6x256xf32>
    %c239_i32_195 = arith.constant 239 : i32
    %552 = tpu.dynamic_rotate %530 by %c239_i32_195 dim 1 : vector<6x256xf32>, i32 -> vector<6x256xf32>
    %553 = vector.broadcast %11 : vector<1x256xf32> to vector<6x256xf32>
    %554 = arith.mulf %552, %553 : vector<6x256xf32>
    %555 = tpu.concatenate %533, %536, %539, %542, %530, %545, %548, %551, %554 in 0 : vector<6x256xf32>, vector<6x256xf32>, vector<6x256xf32>, vector<6x256xf32>, vector<6x256xf32>, vector<6x256xf32>, vector<6x256xf32>, vector<6x256xf32>, vector<6x256xf32> -> vector<54x256xf32>
    %c14 = arith.constant 14 : index
    %c0_196 = arith.constant 0 : index
    %c0_197 = arith.constant 0 : index
    %556 = vector.load %arg3[%c14, %c0_196, %c0_197] : memref<15x6x162xf32, #tpu.memory_space<vmem>>, vector<1x6x162xf32>
    %557 = vector.shape_cast %556 : vector<1x6x162xf32> to vector<6x162xf32>
    %558 = vector.extract_strided_slice %557 {offsets = [0, 0], sizes = [6, 54], strides = [1, 1]} : vector<6x162xf32> to vector<6x54xf32>
    %cst_198 = arith.constant dense<0.000000e+00> : vector<6x256xf32>
    %559 = tpu.matmul %558, %555, %cst_198 {dimension_numbers = #tpu.dot_dimension_numbers<[1], [0], [0], [1], [0, 0, 1, 1], [], []>} : vector<6x54xf32>, vector<54x256xf32>, vector<6x256xf32> -> vector<6x256xf32>
    %560 = vector.extract_strided_slice %13 {offsets = [0, 14], sizes = [6, 1], strides = [1, 1]} : vector<6x15xf32> to vector<6x1xf32>
    %561 = vector.broadcast %560 : vector<6x1xf32> to vector<6x256xf32>
    %562 = arith.addf %559, %561 : vector<6x256xf32>
    %563 = arith.addf %562, %47 : vector<6x256xf32>
    %564 = tpu.concatenate %3, %563 in 0 : vector<2x256xf32>, vector<6x256xf32> -> vector<8x256xf32>
    %c17_i32_199 = arith.constant 17 : i32
    %565 = tpu.dynamic_rotate %564 by %c17_i32_199 dim 1 : vector<8x256xf32>, i32 -> vector<8x256xf32>
    %566 = vector.broadcast %4 : vector<1x256xf32> to vector<8x256xf32>
    %567 = arith.mulf %565, %566 : vector<8x256xf32>
    %568 = arith.addf %564, %567 : vector<8x256xf32>
    %c16_i32_200 = arith.constant 16 : i32
    %569 = tpu.dynamic_rotate %564 by %c16_i32_200 dim 1 : vector<8x256xf32>, i32 -> vector<8x256xf32>
    %570 = vector.broadcast %5 : vector<1x256xf32> to vector<8x256xf32>
    %571 = arith.mulf %569, %570 : vector<8x256xf32>
    %572 = arith.addf %568, %571 : vector<8x256xf32>
    %c15_i32_201 = arith.constant 15 : i32
    %573 = tpu.dynamic_rotate %564 by %c15_i32_201 dim 1 : vector<8x256xf32>, i32 -> vector<8x256xf32>
    %574 = vector.broadcast %6 : vector<1x256xf32> to vector<8x256xf32>
    %575 = arith.mulf %573, %574 : vector<8x256xf32>
    %576 = arith.addf %572, %575 : vector<8x256xf32>
    %c1_i32_202 = arith.constant 1 : i32
    %577 = tpu.dynamic_rotate %564 by %c1_i32_202 dim 1 : vector<8x256xf32>, i32 -> vector<8x256xf32>
    %578 = vector.broadcast %7 : vector<1x256xf32> to vector<8x256xf32>
    %579 = arith.mulf %577, %578 : vector<8x256xf32>
    %580 = arith.addf %576, %579 : vector<8x256xf32>
    %c255_i32_203 = arith.constant 255 : i32
    %581 = tpu.dynamic_rotate %564 by %c255_i32_203 dim 1 : vector<8x256xf32>, i32 -> vector<8x256xf32>
    %582 = vector.broadcast %8 : vector<1x256xf32> to vector<8x256xf32>
    %583 = arith.mulf %581, %582 : vector<8x256xf32>
    %584 = arith.addf %580, %583 : vector<8x256xf32>
    %c241_i32_204 = arith.constant 241 : i32
    %585 = tpu.dynamic_rotate %564 by %c241_i32_204 dim 1 : vector<8x256xf32>, i32 -> vector<8x256xf32>
    %586 = vector.broadcast %9 : vector<1x256xf32> to vector<8x256xf32>
    %587 = arith.mulf %585, %586 : vector<8x256xf32>
    %588 = arith.addf %584, %587 : vector<8x256xf32>
    %c240_i32_205 = arith.constant 240 : i32
    %589 = tpu.dynamic_rotate %564 by %c240_i32_205 dim 1 : vector<8x256xf32>, i32 -> vector<8x256xf32>
    %590 = vector.broadcast %10 : vector<1x256xf32> to vector<8x256xf32>
    %591 = arith.mulf %589, %590 : vector<8x256xf32>
    %592 = arith.addf %588, %591 : vector<8x256xf32>
    %c239_i32_206 = arith.constant 239 : i32
    %593 = tpu.dynamic_rotate %564 by %c239_i32_206 dim 1 : vector<8x256xf32>, i32 -> vector<8x256xf32>
    %594 = vector.broadcast %11 : vector<1x256xf32> to vector<8x256xf32>
    %595 = arith.mulf %593, %594 : vector<8x256xf32>
    %596 = arith.addf %592, %595 : vector<8x256xf32>
    %597 = vector.broadcast %12 : vector<1x256xf32> to vector<8x256xf32>
    %598 = arith.mulf %596, %597 : vector<8x256xf32>
    %c0_207 = arith.constant 0 : index
    %c0_208 = arith.constant 0 : index
    %c0_209 = arith.constant 0 : index
    %599 = vector.load %arg7[%c0_207, %c0_208, %c0_209] : memref<5x8x8xf32, #tpu.memory_space<vmem>>, vector<1x8x8xf32>
    %600 = vector.shape_cast %599 : vector<1x8x8xf32> to vector<8x8xf32>
    %cst_210 = arith.constant dense<0.000000e+00> : vector<8x256xf32>
    %601 = tpu.matmul %600, %598, %cst_210 {dimension_numbers = #tpu.dot_dimension_numbers<[1], [0], [0], [1], [0, 0, 1, 1], [], []>} : vector<8x8xf32>, vector<8x256xf32>, vector<8x256xf32> -> vector<8x256xf32>
    %602 = vector.extract_strided_slice %15 {offsets = [0, 0], sizes = [8, 1], strides = [1, 1]} : vector<8x5xf32> to vector<8x1xf32>
    %603 = vector.broadcast %602 : vector<8x1xf32> to vector<8x256xf32>
    %604 = arith.addf %601, %603 : vector<8x256xf32>
    %cst_211 = arith.constant 0.000000e+00 : f32
    %605 = vector.broadcast %cst_211 : f32 to vector<8x256xf32>
    %606 = arith.maximumf %604, %605 : vector<8x256xf32>
    %c17_i32_212 = arith.constant 17 : i32
    %607 = tpu.dynamic_rotate %606 by %c17_i32_212 dim 1 : vector<8x256xf32>, i32 -> vector<8x256xf32>
    %608 = vector.broadcast %4 : vector<1x256xf32> to vector<8x256xf32>
    %609 = arith.mulf %607, %608 : vector<8x256xf32>
    %610 = arith.addf %606, %609 : vector<8x256xf32>
    %c16_i32_213 = arith.constant 16 : i32
    %611 = tpu.dynamic_rotate %606 by %c16_i32_213 dim 1 : vector<8x256xf32>, i32 -> vector<8x256xf32>
    %612 = vector.broadcast %5 : vector<1x256xf32> to vector<8x256xf32>
    %613 = arith.mulf %611, %612 : vector<8x256xf32>
    %614 = arith.addf %610, %613 : vector<8x256xf32>
    %c15_i32_214 = arith.constant 15 : i32
    %615 = tpu.dynamic_rotate %606 by %c15_i32_214 dim 1 : vector<8x256xf32>, i32 -> vector<8x256xf32>
    %616 = vector.broadcast %6 : vector<1x256xf32> to vector<8x256xf32>
    %617 = arith.mulf %615, %616 : vector<8x256xf32>
    %618 = arith.addf %614, %617 : vector<8x256xf32>
    %c1_i32_215 = arith.constant 1 : i32
    %619 = tpu.dynamic_rotate %606 by %c1_i32_215 dim 1 : vector<8x256xf32>, i32 -> vector<8x256xf32>
    %620 = vector.broadcast %7 : vector<1x256xf32> to vector<8x256xf32>
    %621 = arith.mulf %619, %620 : vector<8x256xf32>
    %622 = arith.addf %618, %621 : vector<8x256xf32>
    %c255_i32_216 = arith.constant 255 : i32
    %623 = tpu.dynamic_rotate %606 by %c255_i32_216 dim 1 : vector<8x256xf32>, i32 -> vector<8x256xf32>
    %624 = vector.broadcast %8 : vector<1x256xf32> to vector<8x256xf32>
    %625 = arith.mulf %623, %624 : vector<8x256xf32>
    %626 = arith.addf %622, %625 : vector<8x256xf32>
    %c241_i32_217 = arith.constant 241 : i32
    %627 = tpu.dynamic_rotate %606 by %c241_i32_217 dim 1 : vector<8x256xf32>, i32 -> vector<8x256xf32>
    %628 = vector.broadcast %9 : vector<1x256xf32> to vector<8x256xf32>
    %629 = arith.mulf %627, %628 : vector<8x256xf32>
    %630 = arith.addf %626, %629 : vector<8x256xf32>
    %c240_i32_218 = arith.constant 240 : i32
    %631 = tpu.dynamic_rotate %606 by %c240_i32_218 dim 1 : vector<8x256xf32>, i32 -> vector<8x256xf32>
    %632 = vector.broadcast %10 : vector<1x256xf32> to vector<8x256xf32>
    %633 = arith.mulf %631, %632 : vector<8x256xf32>
    %634 = arith.addf %630, %633 : vector<8x256xf32>
    %c239_i32_219 = arith.constant 239 : i32
    %635 = tpu.dynamic_rotate %606 by %c239_i32_219 dim 1 : vector<8x256xf32>, i32 -> vector<8x256xf32>
    %636 = vector.broadcast %11 : vector<1x256xf32> to vector<8x256xf32>
    %637 = arith.mulf %635, %636 : vector<8x256xf32>
    %638 = arith.addf %634, %637 : vector<8x256xf32>
    %639 = vector.broadcast %12 : vector<1x256xf32> to vector<8x256xf32>
    %640 = arith.mulf %638, %639 : vector<8x256xf32>
    %c1_220 = arith.constant 1 : index
    %c0_221 = arith.constant 0 : index
    %c0_222 = arith.constant 0 : index
    %641 = vector.load %arg7[%c1_220, %c0_221, %c0_222] : memref<5x8x8xf32, #tpu.memory_space<vmem>>, vector<1x8x8xf32>
    %642 = vector.shape_cast %641 : vector<1x8x8xf32> to vector<8x8xf32>
    %cst_223 = arith.constant dense<0.000000e+00> : vector<8x256xf32>
    %643 = tpu.matmul %642, %640, %cst_223 {dimension_numbers = #tpu.dot_dimension_numbers<[1], [0], [0], [1], [0, 0, 1, 1], [], []>} : vector<8x8xf32>, vector<8x256xf32>, vector<8x256xf32> -> vector<8x256xf32>
    %644 = vector.extract_strided_slice %15 {offsets = [0, 1], sizes = [8, 1], strides = [1, 1]} : vector<8x5xf32> to vector<8x1xf32>
    %645 = vector.broadcast %644 : vector<8x1xf32> to vector<8x256xf32>
    %646 = arith.addf %643, %645 : vector<8x256xf32>
    %cst_224 = arith.constant 0.000000e+00 : f32
    %647 = vector.broadcast %cst_224 : f32 to vector<8x256xf32>
    %648 = arith.maximumf %646, %647 : vector<8x256xf32>
    %c17_i32_225 = arith.constant 17 : i32
    %649 = tpu.dynamic_rotate %648 by %c17_i32_225 dim 1 : vector<8x256xf32>, i32 -> vector<8x256xf32>
    %650 = vector.broadcast %4 : vector<1x256xf32> to vector<8x256xf32>
    %651 = arith.mulf %649, %650 : vector<8x256xf32>
    %652 = arith.addf %648, %651 : vector<8x256xf32>
    %c16_i32_226 = arith.constant 16 : i32
    %653 = tpu.dynamic_rotate %648 by %c16_i32_226 dim 1 : vector<8x256xf32>, i32 -> vector<8x256xf32>
    %654 = vector.broadcast %5 : vector<1x256xf32> to vector<8x256xf32>
    %655 = arith.mulf %653, %654 : vector<8x256xf32>
    %656 = arith.addf %652, %655 : vector<8x256xf32>
    %c15_i32_227 = arith.constant 15 : i32
    %657 = tpu.dynamic_rotate %648 by %c15_i32_227 dim 1 : vector<8x256xf32>, i32 -> vector<8x256xf32>
    %658 = vector.broadcast %6 : vector<1x256xf32> to vector<8x256xf32>
    %659 = arith.mulf %657, %658 : vector<8x256xf32>
    %660 = arith.addf %656, %659 : vector<8x256xf32>
    %c1_i32_228 = arith.constant 1 : i32
    %661 = tpu.dynamic_rotate %648 by %c1_i32_228 dim 1 : vector<8x256xf32>, i32 -> vector<8x256xf32>
    %662 = vector.broadcast %7 : vector<1x256xf32> to vector<8x256xf32>
    %663 = arith.mulf %661, %662 : vector<8x256xf32>
    %664 = arith.addf %660, %663 : vector<8x256xf32>
    %c255_i32_229 = arith.constant 255 : i32
    %665 = tpu.dynamic_rotate %648 by %c255_i32_229 dim 1 : vector<8x256xf32>, i32 -> vector<8x256xf32>
    %666 = vector.broadcast %8 : vector<1x256xf32> to vector<8x256xf32>
    %667 = arith.mulf %665, %666 : vector<8x256xf32>
    %668 = arith.addf %664, %667 : vector<8x256xf32>
    %c241_i32_230 = arith.constant 241 : i32
    %669 = tpu.dynamic_rotate %648 by %c241_i32_230 dim 1 : vector<8x256xf32>, i32 -> vector<8x256xf32>
    %670 = vector.broadcast %9 : vector<1x256xf32> to vector<8x256xf32>
    %671 = arith.mulf %669, %670 : vector<8x256xf32>
    %672 = arith.addf %668, %671 : vector<8x256xf32>
    %c240_i32_231 = arith.constant 240 : i32
    %673 = tpu.dynamic_rotate %648 by %c240_i32_231 dim 1 : vector<8x256xf32>, i32 -> vector<8x256xf32>
    %674 = vector.broadcast %10 : vector<1x256xf32> to vector<8x256xf32>
    %675 = arith.mulf %673, %674 : vector<8x256xf32>
    %676 = arith.addf %672, %675 : vector<8x256xf32>
    %c239_i32_232 = arith.constant 239 : i32
    %677 = tpu.dynamic_rotate %648 by %c239_i32_232 dim 1 : vector<8x256xf32>, i32 -> vector<8x256xf32>
    %678 = vector.broadcast %11 : vector<1x256xf32> to vector<8x256xf32>
    %679 = arith.mulf %677, %678 : vector<8x256xf32>
    %680 = arith.addf %676, %679 : vector<8x256xf32>
    %681 = vector.broadcast %12 : vector<1x256xf32> to vector<8x256xf32>
    %682 = arith.mulf %680, %681 : vector<8x256xf32>
    %c2_233 = arith.constant 2 : index
    %c0_234 = arith.constant 0 : index
    %c0_235 = arith.constant 0 : index
    %683 = vector.load %arg7[%c2_233, %c0_234, %c0_235] : memref<5x8x8xf32, #tpu.memory_space<vmem>>, vector<1x8x8xf32>
    %684 = vector.shape_cast %683 : vector<1x8x8xf32> to vector<8x8xf32>
    %cst_236 = arith.constant dense<0.000000e+00> : vector<8x256xf32>
    %685 = tpu.matmul %684, %682, %cst_236 {dimension_numbers = #tpu.dot_dimension_numbers<[1], [0], [0], [1], [0, 0, 1, 1], [], []>} : vector<8x8xf32>, vector<8x256xf32>, vector<8x256xf32> -> vector<8x256xf32>
    %686 = vector.extract_strided_slice %15 {offsets = [0, 2], sizes = [8, 1], strides = [1, 1]} : vector<8x5xf32> to vector<8x1xf32>
    %687 = vector.broadcast %686 : vector<8x1xf32> to vector<8x256xf32>
    %688 = arith.addf %685, %687 : vector<8x256xf32>
    %cst_237 = arith.constant 0.000000e+00 : f32
    %689 = vector.broadcast %cst_237 : f32 to vector<8x256xf32>
    %690 = arith.maximumf %688, %689 : vector<8x256xf32>
    %c17_i32_238 = arith.constant 17 : i32
    %691 = tpu.dynamic_rotate %690 by %c17_i32_238 dim 1 : vector<8x256xf32>, i32 -> vector<8x256xf32>
    %692 = vector.broadcast %4 : vector<1x256xf32> to vector<8x256xf32>
    %693 = arith.mulf %691, %692 : vector<8x256xf32>
    %694 = arith.addf %690, %693 : vector<8x256xf32>
    %c16_i32_239 = arith.constant 16 : i32
    %695 = tpu.dynamic_rotate %690 by %c16_i32_239 dim 1 : vector<8x256xf32>, i32 -> vector<8x256xf32>
    %696 = vector.broadcast %5 : vector<1x256xf32> to vector<8x256xf32>
    %697 = arith.mulf %695, %696 : vector<8x256xf32>
    %698 = arith.addf %694, %697 : vector<8x256xf32>
    %c15_i32_240 = arith.constant 15 : i32
    %699 = tpu.dynamic_rotate %690 by %c15_i32_240 dim 1 : vector<8x256xf32>, i32 -> vector<8x256xf32>
    %700 = vector.broadcast %6 : vector<1x256xf32> to vector<8x256xf32>
    %701 = arith.mulf %699, %700 : vector<8x256xf32>
    %702 = arith.addf %698, %701 : vector<8x256xf32>
    %c1_i32_241 = arith.constant 1 : i32
    %703 = tpu.dynamic_rotate %690 by %c1_i32_241 dim 1 : vector<8x256xf32>, i32 -> vector<8x256xf32>
    %704 = vector.broadcast %7 : vector<1x256xf32> to vector<8x256xf32>
    %705 = arith.mulf %703, %704 : vector<8x256xf32>
    %706 = arith.addf %702, %705 : vector<8x256xf32>
    %c255_i32_242 = arith.constant 255 : i32
    %707 = tpu.dynamic_rotate %690 by %c255_i32_242 dim 1 : vector<8x256xf32>, i32 -> vector<8x256xf32>
    %708 = vector.broadcast %8 : vector<1x256xf32> to vector<8x256xf32>
    %709 = arith.mulf %707, %708 : vector<8x256xf32>
    %710 = arith.addf %706, %709 : vector<8x256xf32>
    %c241_i32_243 = arith.constant 241 : i32
    %711 = tpu.dynamic_rotate %690 by %c241_i32_243 dim 1 : vector<8x256xf32>, i32 -> vector<8x256xf32>
    %712 = vector.broadcast %9 : vector<1x256xf32> to vector<8x256xf32>
    %713 = arith.mulf %711, %712 : vector<8x256xf32>
    %714 = arith.addf %710, %713 : vector<8x256xf32>
    %c240_i32_244 = arith.constant 240 : i32
    %715 = tpu.dynamic_rotate %690 by %c240_i32_244 dim 1 : vector<8x256xf32>, i32 -> vector<8x256xf32>
    %716 = vector.broadcast %10 : vector<1x256xf32> to vector<8x256xf32>
    %717 = arith.mulf %715, %716 : vector<8x256xf32>
    %718 = arith.addf %714, %717 : vector<8x256xf32>
    %c239_i32_245 = arith.constant 239 : i32
    %719 = tpu.dynamic_rotate %690 by %c239_i32_245 dim 1 : vector<8x256xf32>, i32 -> vector<8x256xf32>
    %720 = vector.broadcast %11 : vector<1x256xf32> to vector<8x256xf32>
    %721 = arith.mulf %719, %720 : vector<8x256xf32>
    %722 = arith.addf %718, %721 : vector<8x256xf32>
    %723 = vector.broadcast %12 : vector<1x256xf32> to vector<8x256xf32>
    %724 = arith.mulf %722, %723 : vector<8x256xf32>
    %c3_246 = arith.constant 3 : index
    %c0_247 = arith.constant 0 : index
    %c0_248 = arith.constant 0 : index
    %725 = vector.load %arg7[%c3_246, %c0_247, %c0_248] : memref<5x8x8xf32, #tpu.memory_space<vmem>>, vector<1x8x8xf32>
    %726 = vector.shape_cast %725 : vector<1x8x8xf32> to vector<8x8xf32>
    %cst_249 = arith.constant dense<0.000000e+00> : vector<8x256xf32>
    %727 = tpu.matmul %726, %724, %cst_249 {dimension_numbers = #tpu.dot_dimension_numbers<[1], [0], [0], [1], [0, 0, 1, 1], [], []>} : vector<8x8xf32>, vector<8x256xf32>, vector<8x256xf32> -> vector<8x256xf32>
    %728 = vector.extract_strided_slice %15 {offsets = [0, 3], sizes = [8, 1], strides = [1, 1]} : vector<8x5xf32> to vector<8x1xf32>
    %729 = vector.broadcast %728 : vector<8x1xf32> to vector<8x256xf32>
    %730 = arith.addf %727, %729 : vector<8x256xf32>
    %c4_250 = arith.constant 4 : index
    %c0_251 = arith.constant 0 : index
    %c0_252 = arith.constant 0 : index
    %731 = vector.load %arg7[%c4_250, %c0_251, %c0_252] : memref<5x8x8xf32, #tpu.memory_space<vmem>>, vector<1x8x8xf32>
    %732 = vector.shape_cast %731 : vector<1x8x8xf32> to vector<8x8xf32>
    %cst_253 = arith.constant dense<0.000000e+00> : vector<8x256xf32>
    %733 = tpu.matmul %732, %724, %cst_253 {dimension_numbers = #tpu.dot_dimension_numbers<[1], [0], [0], [1], [0, 0, 1, 1], [], []>} : vector<8x8xf32>, vector<8x256xf32>, vector<8x256xf32> -> vector<8x256xf32>
    %734 = vector.extract_strided_slice %15 {offsets = [0, 4], sizes = [8, 1], strides = [1, 1]} : vector<8x5xf32> to vector<8x1xf32>
    %735 = vector.broadcast %734 : vector<8x1xf32> to vector<8x256xf32>
    %736 = arith.addf %733, %735 : vector<8x256xf32>
    %c0_254 = arith.constant 0 : index
    %c0_255 = arith.constant 0 : index
    %737 = vector.load %arg9[%c0_254, %c0_255] : memref<40x8xf32, #tpu.memory_space<vmem>>, vector<40x8xf32>
    %c0_256 = arith.constant 0 : index
    %c0_257 = arith.constant 0 : index
    %738 = vector.load %arg10[%c0_256, %c0_257] : memref<40x1xf32, #tpu.memory_space<vmem>>, vector<40x1xf32>
    %c0_258 = arith.constant 0 : index
    %c0_259 = arith.constant 0 : index
    %739 = vector.load %arg11[%c0_258, %c0_259] : memref<3x8xf32, #tpu.memory_space<vmem>>, vector<3x8xf32>
    %740 = vector.extract_strided_slice %3 {offsets = [0, 0], sizes = [1, 256], strides = [1, 1]} : vector<2x256xf32> to vector<1x256xf32>
    %741 = vector.extract_strided_slice %3 {offsets = [1, 0], sizes = [1, 256], strides = [1, 1]} : vector<2x256xf32> to vector<1x256xf32>
    %cst_260 = arith.constant dense<0.000000e+00> : vector<40x256xf32>
    %742 = tpu.matmul %737, %730, %cst_260 {dimension_numbers = #tpu.dot_dimension_numbers<[1], [0], [0], [1], [0, 0, 1, 1], [], []>} : vector<40x8xf32>, vector<8x256xf32>, vector<40x256xf32> -> vector<40x256xf32>
    %cst_261 = arith.constant dense<0.000000e+00> : vector<40xf32>
    %743 = vector.multi_reduction <add>, %742, %cst_261 [1] : vector<40x256xf32> to vector<40xf32>
    %744 = vector.shape_cast %743 : vector<40xf32> to vector<40x1xf32>
    %cst_262 = arith.constant 2.560000e+02 : f32
    %745 = vector.broadcast %cst_262 : f32 to vector<40x1xf32>
    %746 = arith.divf %744, %745 : vector<40x1xf32>
    %747 = arith.addf %746, %738 : vector<40x1xf32>
    %748 = vector.extract_strided_slice %747 {offsets = [0, 0], sizes = [8, 1], strides = [1, 1]} : vector<40x1xf32> to vector<8x1xf32>
    %749 = vector.extract_strided_slice %747 {offsets = [8, 0], sizes = [8, 1], strides = [1, 1]} : vector<40x1xf32> to vector<8x1xf32>
    %750 = vector.extract_strided_slice %747 {offsets = [16, 0], sizes = [8, 1], strides = [1, 1]} : vector<40x1xf32> to vector<8x1xf32>
    %751 = vector.extract_strided_slice %747 {offsets = [24, 0], sizes = [8, 1], strides = [1, 1]} : vector<40x1xf32> to vector<8x1xf32>
    %752 = vector.extract_strided_slice %747 {offsets = [32, 0], sizes = [8, 1], strides = [1, 1]} : vector<40x1xf32> to vector<8x1xf32>
    %753 = vector.broadcast %748 : vector<8x1xf32> to vector<8x256xf32>
    %754 = vector.broadcast %740 : vector<1x256xf32> to vector<8x256xf32>
    %755 = arith.mulf %753, %754 : vector<8x256xf32>
    %756 = vector.broadcast %749 : vector<8x1xf32> to vector<8x256xf32>
    %757 = vector.broadcast %741 : vector<1x256xf32> to vector<8x256xf32>
    %758 = arith.mulf %756, %757 : vector<8x256xf32>
    %759 = arith.addf %755, %758 : vector<8x256xf32>
    %760 = vector.broadcast %750 : vector<8x1xf32> to vector<8x256xf32>
    %761 = arith.addf %759, %760 : vector<8x256xf32>
    %cst_263 = arith.constant 0.000000e+00 : f32
    %762 = vector.broadcast %cst_263 : f32 to vector<8x256xf32>
    %763 = arith.maximumf %761, %762 : vector<8x256xf32>
    %764 = vector.broadcast %751 : vector<8x1xf32> to vector<8x256xf32>
    %765 = arith.mulf %764, %763 : vector<8x256xf32>
    %cst_264 = arith.constant dense<0.000000e+00> : vector<3x256xf32>
    %766 = tpu.matmul %739, %765, %cst_264 {dimension_numbers = #tpu.dot_dimension_numbers<[1], [0], [0], [1], [0, 0, 1, 1], [], []>} : vector<3x8xf32>, vector<8x256xf32>, vector<3x256xf32> -> vector<3x256xf32>
    %767 = vector.extract_strided_slice %752 {offsets = [0, 0], sizes = [3, 1], strides = [1, 1]} : vector<8x1xf32> to vector<3x1xf32>
    %768 = vector.broadcast %767 : vector<3x1xf32> to vector<3x256xf32>
    %769 = arith.addf %766, %768 : vector<3x256xf32>
    %c0_265 = arith.constant 0 : index
    %c0_266 = arith.constant 0 : index
    %c0_267 = arith.constant 0 : index
    %770 = vector.load %arg12[%c0_265, %c0_266, %c0_267] : memref<1x3x256xf32, #tpu.memory_space<vmem>>, vector<1x3x256xf32>
    %771 = vector.shape_cast %770 : vector<1x3x256xf32> to vector<3x256xf32>
    %772 = vector.shape_cast %769 : vector<3x256xf32> to vector<1x3x256xf32>
    tpu.vector_store %arg12[%c0_265, %c0_266, %c0_267], %772 {strides = array<i32>} : memref<1x3x256xf32, #tpu.memory_space<vmem>>, vector<1x3x256xf32>,
    %cst_268 = arith.constant dense<0.000000e+00> : vector<40x256xf32>
    %773 = tpu.matmul %737, %736, %cst_268 {dimension_numbers = #tpu.dot_dimension_numbers<[1], [0], [0], [1], [0, 0, 1, 1], [], []>} : vector<40x8xf32>, vector<8x256xf32>, vector<40x256xf32> -> vector<40x256xf32>
    %cst_269 = arith.constant dense<0.000000e+00> : vector<40xf32>
    %774 = vector.multi_reduction <add>, %773, %cst_269 [1] : vector<40x256xf32> to vector<40xf32>
    %775 = vector.shape_cast %774 : vector<40xf32> to vector<40x1xf32>
    %cst_270 = arith.constant 2.560000e+02 : f32
    %776 = vector.broadcast %cst_270 : f32 to vector<40x1xf32>
    %777 = arith.divf %775, %776 : vector<40x1xf32>
    %778 = arith.addf %777, %738 : vector<40x1xf32>
    %779 = vector.extract_strided_slice %778 {offsets = [0, 0], sizes = [8, 1], strides = [1, 1]} : vector<40x1xf32> to vector<8x1xf32>
    %780 = vector.extract_strided_slice %778 {offsets = [8, 0], sizes = [8, 1], strides = [1, 1]} : vector<40x1xf32> to vector<8x1xf32>
    %781 = vector.extract_strided_slice %778 {offsets = [16, 0], sizes = [8, 1], strides = [1, 1]} : vector<40x1xf32> to vector<8x1xf32>
    %782 = vector.extract_strided_slice %778 {offsets = [24, 0], sizes = [8, 1], strides = [1, 1]} : vector<40x1xf32> to vector<8x1xf32>
    %783 = vector.extract_strided_slice %778 {offsets = [32, 0], sizes = [8, 1], strides = [1, 1]} : vector<40x1xf32> to vector<8x1xf32>
    %784 = vector.broadcast %779 : vector<8x1xf32> to vector<8x256xf32>
    %785 = vector.broadcast %740 : vector<1x256xf32> to vector<8x256xf32>
    %786 = arith.mulf %784, %785 : vector<8x256xf32>
    %787 = vector.broadcast %780 : vector<8x1xf32> to vector<8x256xf32>
    %788 = vector.broadcast %741 : vector<1x256xf32> to vector<8x256xf32>
    %789 = arith.mulf %787, %788 : vector<8x256xf32>
    %790 = arith.addf %786, %789 : vector<8x256xf32>
    %791 = vector.broadcast %781 : vector<8x1xf32> to vector<8x256xf32>
    %792 = arith.addf %790, %791 : vector<8x256xf32>
    %cst_271 = arith.constant 0.000000e+00 : f32
    %793 = vector.broadcast %cst_271 : f32 to vector<8x256xf32>
    %794 = arith.maximumf %792, %793 : vector<8x256xf32>
    %795 = vector.broadcast %782 : vector<8x1xf32> to vector<8x256xf32>
    %796 = arith.mulf %795, %794 : vector<8x256xf32>
    %cst_272 = arith.constant dense<0.000000e+00> : vector<3x256xf32>
    %797 = tpu.matmul %739, %796, %cst_272 {dimension_numbers = #tpu.dot_dimension_numbers<[1], [0], [0], [1], [0, 0, 1, 1], [], []>} : vector<3x8xf32>, vector<8x256xf32>, vector<3x256xf32> -> vector<3x256xf32>
    %798 = vector.extract_strided_slice %783 {offsets = [0, 0], sizes = [3, 1], strides = [1, 1]} : vector<8x1xf32> to vector<3x1xf32>
    %799 = vector.broadcast %798 : vector<3x1xf32> to vector<3x256xf32>
    %800 = arith.addf %797, %799 : vector<3x256xf32>
    %c0_273 = arith.constant 0 : index
    %c0_274 = arith.constant 0 : index
    %c0_275 = arith.constant 0 : index
    %801 = vector.load %arg13[%c0_273, %c0_274, %c0_275] : memref<1x3x256xf32, #tpu.memory_space<vmem>>, vector<1x3x256xf32>
    %802 = vector.shape_cast %801 : vector<1x3x256xf32> to vector<3x256xf32>
    %803 = vector.shape_cast %800 : vector<3x256xf32> to vector<1x3x256xf32>
    tpu.vector_store %arg13[%c0_273, %c0_274, %c0_275], %803 {strides = array<i32>} : memref<1x3x256xf32, #tpu.memory_space<vmem>>, vector<1x3x256xf32>,
    return
  }
  func.func @transform_0(%arg0: i32) -> (i32, i32, i32) {
    %c0_i32 = arith.constant 0 : i32
    %c0_i32_0 = arith.constant 0 : i32
    %c0_i32_1 = arith.constant 0 : i32
    return %arg0, %c0_i32, %c0_i32_0 : i32, i32, i32
  }
  func.func @transform_1(%arg0: i32) -> (i32, i32) {
    %c0_i32 = arith.constant 0 : i32
    %c0_i32_0 = arith.constant 0 : i32
    %c0_i32_1 = arith.constant 0 : i32
    return %c0_i32, %c0_i32_0 : i32, i32
  }
  func.func @transform_2(%arg0: i32) -> (i32, i32, i32) {
    %c0_i32 = arith.constant 0 : i32
    %c0_i32_0 = arith.constant 0 : i32
    %c0_i32_1 = arith.constant 0 : i32
    %c0_i32_2 = arith.constant 0 : i32
    return %c0_i32, %c0_i32_0, %c0_i32_1 : i32, i32, i32
  }
  func.func @transform_3(%arg0: i32) -> (i32, i32) {
    %c0_i32 = arith.constant 0 : i32
    %c0_i32_0 = arith.constant 0 : i32
    %c0_i32_1 = arith.constant 0 : i32
    return %c0_i32, %c0_i32_0 : i32, i32
  }
  func.func @transform_4(%arg0: i32) -> (i32, i32, i32) {
    %c0_i32 = arith.constant 0 : i32
    %c0_i32_0 = arith.constant 0 : i32
    %c0_i32_1 = arith.constant 0 : i32
    %c0_i32_2 = arith.constant 0 : i32
    return %c0_i32, %c0_i32_0, %c0_i32_1 : i32, i32, i32
  }
  func.func @transform_5(%arg0: i32) -> (i32, i32) {
    %c0_i32 = arith.constant 0 : i32
    %c0_i32_0 = arith.constant 0 : i32
    %c0_i32_1 = arith.constant 0 : i32
    return %c0_i32, %c0_i32_0 : i32, i32
  }
  func.func @transform_6(%arg0: i32) -> (i32, i32, i32) {
    %c0_i32 = arith.constant 0 : i32
    %c0_i32_0 = arith.constant 0 : i32
    %c0_i32_1 = arith.constant 0 : i32
    %c0_i32_2 = arith.constant 0 : i32
    return %c0_i32, %c0_i32_0, %c0_i32_1 : i32, i32, i32
  }
  func.func @transform_7(%arg0: i32) -> (i32, i32) {
    %c0_i32 = arith.constant 0 : i32
    %c0_i32_0 = arith.constant 0 : i32
    %c0_i32_1 = arith.constant 0 : i32
    return %c0_i32, %c0_i32_0 : i32, i32
  }
  func.func @transform_8(%arg0: i32) -> (i32, i32) {
    %c0_i32 = arith.constant 0 : i32
    %c0_i32_0 = arith.constant 0 : i32
    %c0_i32_1 = arith.constant 0 : i32
    return %c0_i32, %c0_i32_0 : i32, i32
  }
  func.func @transform_9(%arg0: i32) -> (i32, i32) {
    %c0_i32 = arith.constant 0 : i32
    %c0_i32_0 = arith.constant 0 : i32
    %c0_i32_1 = arith.constant 0 : i32
    return %c0_i32, %c0_i32_0 : i32, i32
  }
  func.func @transform_10(%arg0: i32) -> (i32, i32) {
    %c0_i32 = arith.constant 0 : i32
    %c0_i32_0 = arith.constant 0 : i32
    %c0_i32_1 = arith.constant 0 : i32
    return %c0_i32, %c0_i32_0 : i32, i32
  }
  func.func @transform_11(%arg0: i32) -> (i32, i32, i32) {
    %c0_i32 = arith.constant 0 : i32
    %c0_i32_0 = arith.constant 0 : i32
    %c0_i32_1 = arith.constant 0 : i32
    return %arg0, %c0_i32, %c0_i32_0 : i32, i32, i32
  }
  func.func @transform_12(%arg0: i32) -> (i32, i32, i32) {
    %c0_i32 = arith.constant 0 : i32
    %c0_i32_0 = arith.constant 0 : i32
    %c0_i32_1 = arith.constant 0 : i32
    return %arg0, %c0_i32, %c0_i32_0 : i32, i32, i32
  }
}

</mosaic_0001>

<bundles_post_ra>
// kernel: _lambda_.1
= control target key start
LH: loop header
LB: loop body
LE: loop exit
PB: predicated region body
PF: predicated region fallthrough
CT: control target
= control target key end

     0   :  { %s11008_s0 = inlined_call_operand.vmem [shape: f32[2,3,256], index: 0, kind: input, shape index: {}]   ;;  %s11009_s1 = inlined_call_operand.hbm [shape: f32[12,256], index: 1, kind: input, shape index: {}]   ;;  %s11010_s2 = inlined_call_operand.hbm [shape: f32[15,6,162], index: 2, kind: input, shape index: {}]   ;;  %s11011_s3 = inlined_call_operand.hbm [shape: f32[6,15], index: 3, kind: input, shape index: {}]   ;;  %s11012_s4 = inlined_call_operand.hbm [shape: f32[5,6,24], index: 4, kind: input, shape index: {}]   ;;  %s11013_s5 = inlined_call_operand.hbm [shape: f32[6,5], index: 5, kind: input, shape index: {}]   ;;  %s11014_s6 = inlined_call_operand.vmem [shape: f32[5,8,8], index: 6, kind: input, shape index: {}]   ;;  %s11015_s7 = inlined_call_operand.vmem [shape: f32[8,5], index: 7, kind: input, shape index: {}]   ;;  %s11016_s8 = inlined_call_operand.vmem [shape: f32[40,8], index: 8, kind: input, shape index: {}]   ;;  %s11017_s9 = inlined_call_operand.vmem [shape: f32[40,1], index: 9, kind: input, shape index: {}]   ;;  %s11018_s10 = inlined_call_operand.vmem [shape: f32[3,8], index: 10, kind: input, shape index: {}]   ;;  %s11019_s11 = inlined_call_operand.vmem [shape: f32[2,3,256], index: 11, kind: output, shape index: {0}]   ;;  %s11020_s12 = inlined_call_operand.vmem [shape: f32[2,3,256], index: 12, kind: output, shape index: {1}]  }
   0x1   :  { %11104 = sst [smem:[#allocation31_spill]] %s11010_s2 }
   0x2   :  { %18 = vsyncpa [#allocation3], 0 }
   0x3   :  { %19 = vsyncpa [#allocation5], 0 }
   0x4   :  { %20 = vsyncpa [#allocation8], 0  ;;  %s7320_s21 = smov 0  }
   0x5 LB: > { %11105 = sst [smem:[#allocation13_spill]] %s7219_s21  ;;  %s7326_s22 = sadd.s32 4294967295, %s7219_s21   ;;  %s7219_s21 = sphi %s7320_s21, %s26_s21  }
   0x6   : > { %p6456_p0 = scmp.ge.s32.totalorder %s7219_s21, 1  ;;  %p319_p1 = scmp.lt.s32.totalorder %s7219_s21, 3 }
   0x7   : > { %p11024_p2 = scmp.eq.s32.totalorder %s7326_s22, 0  ;;  %s7221_s24 = smov [#allocation4]  }
   0x8   : > { %p7331_p3 = pnand %p6456_p0, %p319_p1  ;;  %s344_s25 = sshll.u32 %s7221_s24, 4  ;;  %s7335_s25 = int_to_ptr.vmem [resolvable:$true] %s344_s25 }
   0x9   : > { %s7222_s26 = smov [#allocation7]   ;;  %s7223_s29 = smov [#allocation2]  }
   0xa   : > { %s11106_s23 = scalar_select %p7331_p3, 1, 0 }
   0xb   : > { %p6953_p4 = pneg %p7331_p3  ;;  %s368_s27 = sshll.u32 %s7222_s26, 4  ;;  %s7339_s27 = int_to_ptr.vmem [resolvable:$true] %s368_s27 }
   0xc   : > { %s7347_s30 = sshll.u32 %s7223_s29, 4  ;;  %s11108_s2 = sld [smem:[#allocation31_spill]]  ;;  %s332_s30 = int_to_ptr.vmem [resolvable:$true] %s7347_s30 }
   0xd   : > { %p7343_p5 = pnand %p11024_p2, %p6953_p4 }
   0xf   : > { %p7357_p7 = pneg %p7343_p5 }
  0x12   : > { %s7061_s15 = scalar_lea.hbm %s11108_s2, 3840 }
  0x13   : > { %p7062_p6 = scmp.ne.s32.totalorder %s11108_s2, %s7061_s15  ;;  %p7068_p10 = scmp.lt.u32.totalorder %s7061_s15, %s11108_s2 }
  0x15   : > { %p7064_p8 = pnand %p7357_p7, %p7062_p6 }
  0x17   : > { %p7065_p9 = pneg %p7064_p8 }
  0x19   : > { %p7070_p11 = pnand %p7068_p10, %p7065_p9 }
  0x1b   : > { %7073 = shalt.err (!%p7070_p11)
}
  0x1c   : > { %s7074_s24 = scalar_lea.vmem %s7335_s25, 3840  ;;  %p7082_p1 = scmp.lt.s32.totalorder %s7335_s25, %s7335_s25 }
  0x1d   : > { %p7075_p12 = scmp.ne.s32.totalorder %s7335_s25, %s7074_s24  ;;  %p7083_p4 = scmp.lt.s32.totalorder %s7074_s24, %s7074_s24 }
  0x1f   : > { %p7077_p13 = pnand %p7075_p12, %p7357_p7  ;;  %p7084_p6 = por %p7083_p4, %p7082_p1 }
  0x21   : > { %p7078_p0 = pneg %p7077_p13 }
  0x23   : > { %p7085_p8 = pnand %p7084_p6, %p7078_p0 }
  0x25   : > { %7088 = shalt.err (!%p7085_p8)
}
  0x26   : > { %s11022_s26 = smov 256   ;;  %s11023_s29 = smov 16  }
  0x27   : > { %6959 = dma.hbm_to_vmem [thread:$0]  (!%p7343_p5), %s11108_s2, 3840, %s7335_s25, [#allocation5], %s11022_s26, %s11022_s26, %s11023_s29  }
  0x28   : > { %s7089_s17 = scalar_lea.hbm %s11012_s4, 640 }
  0x29   : > { %p7090_p9 = scmp.ne.s32.totalorder %s11012_s4, %s7089_s17  ;;  %p7096_p12 = scmp.lt.u32.totalorder %s7089_s17, %s11012_s4 }
  0x2b   : > { %p7092_p10 = pnand %p7090_p9, %p7357_p7 }
  0x2d   : > { %p7093_p11 = pneg %p7092_p10 }
  0x2f   : > { %p7098_p13 = pnand %p7096_p12, %p7093_p11 }
  0x31   : > { %7101 = shalt.err (!%p7098_p13)
}
  0x32   : > { %s7102_s25 = scalar_lea.vmem %s7339_s27, 640  ;;  %p7110_p6 = scmp.lt.s32.totalorder %s7339_s27, %s7339_s27 }
  0x33   : > { %p7103_p0 = scmp.ne.s32.totalorder %s7339_s27, %s7102_s25  ;;  %p7111_p8 = scmp.lt.s32.totalorder %s7102_s25, %s7102_s25 }
  0x35   : > { %p7105_p1 = pnand %p7103_p0, %p7357_p7  ;;  %p7112_p9 = por %p7111_p8, %p7110_p6 }
  0x37   : > { %p7106_p4 = pneg %p7105_p1 }
  0x39   : > { %p7113_p10 = pnand %p7112_p9, %p7106_p4 }
  0x3b   : > { %7116 = shalt.err (!%p7113_p10)
}
  0x3c   : > { %s7226_s13 = smov 128   ;;  %s7227_s21 = smov 8  }
  0x3d   : > { %6965 = dma.hbm_to_vmem [thread:$0]  (!%p7343_p5), %s11012_s4, 640, %s7339_s27, [#allocation8], %s7226_s13, %s7226_s13, %s7227_s21  }
  0x3e   : > { %s7228_s16 = smov [#allocation6]   ;;  %s7117_s24 = scalar_lea.hbm %s11009_s1, 512 }
  0x3f   : > { %s358_s17 = sshll.u32 %s7228_s16, 4  ;;  %p7118_p11 = scmp.ne.s32.totalorder %s11009_s1, %s7117_s24  ;;  %s359_s17 = int_to_ptr.vmem [resolvable:$true] %s358_s17 }
  0x40   : > { %p7124_p0 = scmp.lt.u32.totalorder %s7117_s24, %s11009_s1 }
  0x41   : > { %p7120_p12 = pnand %p7118_p11, %p7357_p7 }
  0x43   : > { %p7121_p13 = pneg %p7120_p12 }
  0x45   : > { %p7126_p1 = pnand %p7124_p0, %p7121_p13 }
  0x47   : > { %7129 = shalt.err (!%p7126_p1)
}
  0x48   : > { %s7130_s27 = scalar_lea.vmem %s332_s30, 512  ;;  %p7138_p9 = scmp.lt.s32.totalorder %s332_s30, %s332_s30 }
  0x49   : > { %p7131_p4 = scmp.ne.s32.totalorder %s332_s30, %s7130_s27  ;;  %p7139_p10 = scmp.lt.s32.totalorder %s7130_s27, %s7130_s27 }
  0x4b   : > { %p7133_p6 = pnand %p7131_p4, %p7357_p7  ;;  %p7140_p2 = por %p7139_p10, %p7138_p9 }
  0x4d   : > { %p7134_p8 = pneg %p7133_p6 }
  0x4f   : > { %p7141_p3 = pnand %p7140_p2, %p7134_p8 }
  0x51   : > { %7144 = shalt.err (!%p7141_p3)
}
  0x52   : > { %s11110_s26 = smov 16   ;;  %s11111_s13 = smov 256  }
  0x53   : > { %6956 = dma.hbm_to_vmem [thread:$0]  (!%p7343_p5), %s11009_s1, 512, %s332_s30, [#allocation3], %s11111_s13, %s11111_s13, %s11110_s26  }
  0x54   : > { %s7145_s15 = scalar_lea.hbm %s11011_s3, 128 }
  0x55   : > { %p7146_p2 = scmp.ne.s32.totalorder %s11011_s3, %s7145_s15  ;;  %p7152_p12 = scmp.lt.u32.totalorder %s7145_s15, %s11011_s3 }
  0x57   : > { %p7148_p3 = pnand %p7146_p2, %p7357_p7 }
  0x59   : > { %p7149_p11 = pneg %p7148_p3 }
  0x5b   : > { %p7154_p13 = pnand %p7152_p12, %p7149_p11 }
  0x5d   : > { %7157 = shalt.err (!%p7154_p13)
}
  0x5e   : > { %s7158_s25 = scalar_lea.vmem %s359_s17, 128  ;;  %p7166_p6 = scmp.lt.s32.totalorder %s359_s17, %s359_s17 }
  0x5f   : > { %p7159_p0 = scmp.ne.s32.totalorder %s359_s17, %s7158_s25  ;;  %p7167_p8 = scmp.lt.s32.totalorder %s7158_s25, %s7158_s25 }
  0x61   : > { %p7161_p1 = pnand %p7159_p0, %p7357_p7  ;;  %p7168_p9 = por %p7167_p8, %p7166_p6 }
  0x63   : > { %p7162_p4 = pneg %p7161_p1 }
  0x65   : > { %p7169_p10 = pnand %p7168_p9, %p7162_p4 }
  0x67   : > { %7172 = shalt.err (!%p7169_p10)
}
  0x68   : > { %6962 = dma.hbm_to_vmem [thread:$0]  (!%p7343_p5), %s11011_s3, 128, %s359_s17, [#allocation5]  }
  0x69   : > { %s7229_s26 = smov [#allocation9]   ;;  %s7173_s21 = scalar_lea.hbm %s11013_s5, 128 }
  0x6a   : > { %s382_s13 = sshll.u32 %s7229_s26, 4  ;;  %p7174_p2 = scmp.ne.s32.totalorder %s11013_s5, %s7173_s21  ;;  %s383_s13 = int_to_ptr.vmem [resolvable:$true] %s382_s13 }
  0x6b   : > { %p7180_p12 = scmp.lt.u32.totalorder %s7173_s21, %s11013_s5 }
  0x6c   : > { %p7176_p3 = pnand %p7174_p2, %p7357_p7 }
  0x6e   : > { %p7177_p11 = pneg %p7176_p3 }
  0x70   : > { %p7182_p13 = pnand %p7180_p12, %p7177_p11 }
  0x72   : > { %7185 = shalt.err (!%p7182_p13)
}
  0x73   : > { %s7186_s17 = scalar_lea.vmem %s383_s13, 128  ;;  %p7194_p6 = scmp.lt.s32.totalorder %s383_s13, %s383_s13 }
  0x74   : > { %p7187_p0 = scmp.ne.s32.totalorder %s383_s13, %s7186_s17  ;;  %p7195_p8 = scmp.lt.s32.totalorder %s7186_s17, %s7186_s17 }
  0x76   : > { %p7189_p1 = pnand %p7187_p0, %p7357_p7  ;;  %p7196_p9 = por %p7195_p8, %p7194_p6 }
  0x78   : > { %p7190_p4 = pneg %p7189_p1 }
  0x7a   : > { %p7197_p10 = pnand %p7196_p9, %p7190_p4 }
  0x7c   : > { %7200 = shalt.err (!%p7197_p10)
}
  0x7d   : > { %6968 = dma.hbm_to_vmem [thread:$0]  (!%p7343_p5), %s11013_s5, 128, %s383_s13, [#allocation8]  }
  0x7e   : > { %p11112_p2 = scmp.ne.s32.totalorder %s11106_s23, 0 }
  0x80   : > { %418 = sbr.rel (%p11112_p2) target bundleno = 9839 (0x266f), region = 64 }
  0x87   : > { %p11113_p3 = scmp.eq.s32.totalorder %s7326_s22, 0 }
  0x89   : > { %7206 = dma.done.wait (%p11113_p3), [#allocation3], 512   ;;  %p11114_p7 = pmov %p11113_p3 }
  0x8a   : > { %p11115_p11 = pmov %p11113_p3 }
  0x8b   : > { %7208 = vsyncadd (%p11114_p7), [#allocation3], 4294966784 }
  0x8c   : > { %7210 = dma.done.wait (%p11115_p11), [#allocation5], 3968   ;;  %p11116_p12 = pmov %p11113_p3 }
  0x8d   : > { %p11117_p13 = pmov %p11113_p3 }
  0x8e   : > { %7212 = vsyncadd (%p11116_p12), [#allocation5], 4294963328 }
  0x8f   : > { %7214 = dma.done.wait (%p11117_p13), [#allocation8], 768   ;;  %p11118_p5 = pmov %p11113_p3 }
  0x90   : > { %p481_p0 = scmp.lt.s32.totalorder %s7326_s22, 1  ;;  %s7230_s30 = smov 1   ;;  %v11034_v2 = vmov 0.0   ;;  %v11026_v3 = vmov 0   ;;  %v7516_v4 = vld [vmem:[#allocation6] sm:$0x3f]  ;;  %v511_v5 = vlaneseq }
  0x91   : > { %7216 = vsyncadd (%p11118_p5), [#allocation8], 4294966528  ;;  %s7231_s27 = smov 15   ;;  %s7233_s26 = smov 127   ;;  %784 = vmatprep.mubr.f32.mxu0 %v11034_v2  ;;  %983 = vmatprep.mubr.f32.mxu1 %v11034_v2  ;;  %v497_v11 = vld [vmem:[#allocation2] sm:$0xff]  ;;  %v498_v12 = vld [vmem:[#allocation2 + $0x8] sm:$0xff] }
  0x92   : > { %s11266_s22 = smov (!%p481_p0, %s7326_s22), 1  ;;  %s7234_s13 = smov 17   ;;  %7021 = vset.pattern.permute.xlu0 %v11026_v3  ;;  %7026 = vset.pattern.permute.xlu1 %v11026_v3  ;;  %v7519_v6 = vshrl.u32 %v511_v5, 7  ;;  %v7521_v7 = vand.u32 127, %v511_v5  ;;  %vm689_vm4 = vcmask 1040384   ;;  %vm692_vm6 = vcmask 1043456  }
  0x93   : > { %s7478_s23 = sshll.u32 %s11266_s22, 3  ;;  %s7232_s22 = smov 16   ;;  %v7577_v41 = vld [vmem:[#allocation2 + $0x10] sm:$0xf]  ;;  %vm695_vm7 = vcmask 1046528   ;;  %vm683_vm8 = vcmask 1042432  }
  0x94   : > { %s485_s25 = scalar_lea.vmem %s11008_s0, %s7478_s23  ;;  %s7235_s2 = smov 113   ;;  %v569_v10 = vsub.s32 5, %v7519_v6  ;;  %v552_v13 = vsub.s32 4, %v7519_v6  ;;  %vm564_vm0 = vcmp.lt.s32.totalorder %v7521_v7, 1  ;;  %v7527_v14 = vsub.s32 3, %v7519_v6 }
  0x95   : > { %v7484_v0 = vld [vmem:[%s485_s25] sm:$0x77]  ;;  %s7237_s29 = smov 112   ;;  %s7239_s21 = smov 111   ;;  %v586_v17 = vsub.s32 7, %v7519_v6  ;;  %v7531_v18 = vsub.s32 2, %v7519_v6 }
  0x96   : > { %560 = vrot.lane.b32.xlu1 %v7484_v0, %s7230_s30  ;;  %543 = vrot.lane.b32.xlu0 %v7484_v0, %s7231_s27  ;;  %v505_v1 = vcombine.high %v7484_v0, %v7484_v0  ;;  %11119 = vst [vmem:[#allocation14_spill] sm:$0xff] %v7527_v14  ;;  %v7533_v19 = vrot.slane %v497_v11, %v569_v10  ;;  %vm530_vm1 = vcmp.lt.s32.totalorder %v7521_v7, 16  ;;  %vm547_vm2 = vcmp.lt.s32.totalorder %v7521_v7, 15  ;;  %v500_v47 = vld [vmem:[#allocation2 + $0x18] sm:$0xf]  ;;  %s490_s14 = scalar_lea.vmem %s11019_s11, %s7478_s23  ;;  %s495_s19 = scalar_lea.vmem %s11020_s12, %s7478_s23 }
  0x97   : > { %v7535_v20 = vrot.slane %v498_v12, %v569_v10  ;;  %v7543_v23 = vrot.slane %v497_v11, %v552_v13  ;;  %v7545_v24 = vrot.slane %v498_v12, %v552_v13  ;;  %v7548_v25 = vrot.slane %v497_v11, %v7527_v14 }
  0x98   : > { %v7551_v26 = vrot.slane %v498_v12, %v7527_v14  ;;  %vm581_vm3 = vcmp.lt.s32.totalorder %v7521_v7, 127  ;;  %v7554_v29 = vrot.slane %v497_v11, %v586_v17  ;;  %v7556_v30 = vrot.slane %v498_v12, %v586_v17 }
  0x99   : > { %vm513_vm5 = vcmp.lt.s32.totalorder %v7521_v7, 17  ;;  %v7560_v31 = vrot.slane %v497_v11, %v7531_v18  ;;  %v7571_v38 = vrot.slane %v498_v12, %v7531_v18  ;;  %v7580_v42 = vsub.s32 0, %v7519_v6 }
  0x9a   : > { %526 = vrot.lane.b32.xlu0 %v7484_v0, %s7232_s22  ;;  %562 = vrot.lane.b32.xlu1 %v505_v1, %s7230_s30  ;;  %v663_v48 = vcombine.low %v7484_v0, %v7484_v0  ;;  %vm598_vm9 = vcmp.lt.s32.totalorder %v7521_v7, 113  ;;  %v7601_v59 = vsub.s32 1, %v7519_v6  ;;  %vm615_vm10 = vcmp.lt.s32.totalorder %v7521_v7, 112 }
  0x9b   : > { %11120 = vst [vmem:[#allocation15_spill] sm:$0xff] %v7560_v31  ;;  %11121 = vst [vmem:[#allocation16_spill] sm:$0xff] %v7571_v38  ;;  %v7595_v57 = vrot.slane %v7577_v41, %v7580_v42  ;;  %v7598_v58 = vrot.slane %v500_v47, %v7580_v42  ;;  %vm686_vm11 = vcmask 1045504   ;;  %vm698_vm12 = vcmask 1041408  }
  0x9c   : > { %11122 = vst [vmem:[#allocation17_spill] sm:$0xff] %v7580_v42  ;;  %11123 = vst [vmem:[#allocation18_spill] sm:$0xff] %v7601_v59  ;;  %vm632_vm13 = vcmp.lt.s32.totalorder %v7521_v7, 111  ;;  %vm701_vm14 = vcmask 1044480   ;;  %vm7240_vm15 = vmmov 1  }
  0x9e   : > { %528 = vrot.lane.b32.xlu1 %v505_v1, %s7232_s22  ;;  %545 = vrot.lane.b32.xlu0 %v505_v1, %s7231_s27 }
  0xa2   : > { %579 = vrot.lane.b32.xlu1 %v505_v1, %s7233_s26  ;;  %577 = vrot.lane.b32.xlu0 %v7484_v0, %s7233_s26 }
  0xa6   : > { %509 = vrot.lane.b32.xlu1 %v505_v1, %s7234_s13  ;;  %507 = vrot.lane.b32.xlu0 %v7484_v0, %s7234_s13 }
  0xaa   : > { %596 = vrot.lane.b32.xlu1 %v505_v1, %s7235_s2  ;;  %594 = vrot.lane.b32.xlu0 %v7484_v0, %s7235_s2 }
  0xae   : > { %613 = vrot.lane.b32.xlu1 %v505_v1, %s7237_s29  ;;  %611 = vrot.lane.b32.xlu0 %v7484_v0, %s7237_s29 }
  0xb2   : > { %630 = vrot.lane.b32.xlu1 %v505_v1, %s7239_s21  ;;  %628 = vrot.lane.b32.xlu0 %v7484_v0, %s7239_s21 }
  0xb6   : > { %707 = vperm.xlu0 %7021, %v7516_v4  }
 0x108   : > { %v561_v8 = vpop.permute.xlu1 %560  ;;  %v544_v9 = vpop.permute.xlu0 %543 }
 0x10c   : > { %v527_v15 = vpop.permute.xlu0 %526  ;;  %v563_v16 = vpop.permute.xlu1 %562 }
 0x10d   : > { %v565_v21 = vsel %vm564_vm0, %v561_v8, %v563_v16  ;;  %v566_v22 = vsel %vm564_vm0, %v563_v16, %v561_v8  ;;  %v7619_v16 = vrot.slane %v500_v47, %v7601_v59 }
 0x10e   : > { %v575_v32 = vmul.f32 %v7533_v19, %v566_v22  ;;  %v576_v33 = vmul.f32 %v7535_v20, %v565_v21 }
 0x110   : > { %v529_v27 = vpop.permute.xlu1 %528  ;;  %v546_v28 = vpop.permute.xlu0 %545  ;;  %v659_v49 = vrot.slane %v575_v32, 7  ;;  %v660_v50 = vrot.slane %v576_v33, 7 }
 0x111   : > { %v548_v34 = vsel %vm547_vm2, %v544_v9, %v546_v28  ;;  %v549_v35 = vsel %vm547_vm2, %v546_v28, %v544_v9  ;;  %v531_v39 = vsel %vm530_vm1, %v527_v15, %v529_v27  ;;  %v532_v40 = vsel %vm530_vm1, %v529_v27, %v527_v15 }
 0x112   : > { %v558_v36 = vmul.f32 %v7543_v23, %v549_v35  ;;  %v559_v37 = vmul.f32 %v7545_v24, %v548_v34  ;;  %v541_v53 = vmul.f32 %v7548_v25, %v532_v40  ;;  %v542_v54 = vmul.f32 %v7551_v26, %v531_v39 }
 0x113   : > { %v7616_v15 = vrot.slane %v7577_v41, %v7601_v59 }
 0x114   : > { %v653_v43 = vrot.slane %v558_v36, 2  ;;  %v654_v44 = vrot.slane %v559_v37, 2  ;;  %v580_v45 = vpop.permute.xlu1 %579  ;;  %v578_v46 = vpop.permute.xlu0 %577  ;;  %v647_v10 = vrot.slane %v541_v53, 5  ;;  %v648_v6 = vrot.slane %v542_v54, 5 }
 0x115   : > { %v582_v51 = vsel %vm581_vm3, %v578_v46, %v580_v45  ;;  %v583_v52 = vsel %vm581_vm3, %v580_v45, %v578_v46  ;;  %v7643_v53 = vrot.slane %v7577_v41, %v7531_v18  ;;  %v7646_v54 = vrot.slane %v500_v47, %v7531_v18 }
 0x116   : > { %v592_v55 = vmul.f32 %v7554_v29, %v582_v51  ;;  %v593_v56 = vmul.f32 %v7556_v30, %v583_v52  ;;  %v691_v1 = vsel %vm689_vm4, %v654_v44, %v660_v50  ;;  %v690_v5 = vsel %vm689_vm4, %v653_v43, %v659_v49  ;;  %vm6556_vm4 = vmpackc.low %vm683_vm8, %vm7240_vm15 }
 0x117   : > { %v694_v13 = vsel %vm692_vm6, %v691_v1, %v7484_v0  ;;  %v693_v17 = vsel %vm692_vm6, %v690_v5, %v663_v48 }
 0x118   : > { %v667_v60 = vrot.slane %v592_v55, 1  ;;  %v668_v61 = vrot.slane %v593_v56, 1  ;;  %v510_v62 = vpop.permute.xlu1 %509  ;;  %v508_v63 = vpop.permute.xlu0 %507 }
 0x119   : > { %v514_v8 = vsel %vm513_vm5, %v508_v63, %v510_v62  ;;  %v515_v9 = vsel %vm513_vm5, %v510_v62, %v508_v63 }
 0x11a   : > { %v524_v11 = vmul.f32 %v7560_v31, %v515_v9  ;;  %v525_v12 = vmul.f32 %v7571_v38, %v514_v8  ;;  %v697_v28 = vsel %vm695_vm7, %v694_v13, %v668_v61  ;;  %v696_v33 = vsel %vm695_vm7, %v693_v17, %v667_v60 }
 0x11b   : > { %vm710_vm7 = vcmask 220160  }
 0x11c   : > { %v597_v21 = vpop.permute.xlu1 %596  ;;  %v595_v22 = vpop.permute.xlu0 %594  ;;  %v685_v27 = vsel %vm683_vm8, %v525_v12, %v648_v6  ;;  %v684_v32 = vsel %vm683_vm8, %v524_v11, %v647_v10  ;;  %vm909_vm8 = vcmask 441344  }
 0x11d   : > { %v599_v0 = vsel %vm598_vm9, %v595_v22, %v597_v21  ;;  %v600_v34 = vsel %vm598_vm9, %v597_v21, %v595_v22  ;;  %v688_v35 = vsel %vm686_vm11, %v685_v27, %v654_v44  ;;  %v687_v36 = vsel %vm686_vm11, %v684_v32, %v653_v43 }
 0x11e   : > { %v609_v37 = vmul.f32 %v7595_v57, %v599_v0  ;;  %v610_v39 = vmul.f32 %v7598_v58, %v600_v34  ;;  %v6551_v40 = vpack.c.bf16 %v697_v28, %v688_v35  ;;  %v6553_v45 = vpack.c.bf16 %v696_v33, %v687_v36 }
 0x11f   : > { %v11032_v22 = vmov 1  }
 0x120   : > { %v614_v46 = vpop.permute.xlu1 %613  ;;  %6552 = vmatprep.subr.bf16.mxu0 %v6551_v40  ;;  %v612_v48 = vpop.permute.xlu0 %611  ;;  %v673_v49 = vrot.slane %v609_v37, 6  ;;  %v674_v50 = vrot.slane %v610_v39, 6  ;;  %7022 = vset.pattern.permute.xlu0 %v11032_v22 }
 0x121   : > { %v616_v51 = vsel %vm615_vm10, %v612_v48, %v614_v46  ;;  %v617_v43 = vsel %vm615_vm10, %v614_v46, %v612_v48  ;;  %6554 = vmatpush1.bf16.msra.mxu0 %v6553_v45 }
 0x122   : > { %v626_v44 = vmul.f32 %v7616_v15, %v616_v51  ;;  %v627_v52 = vmul.f32 %v7619_v16, %v617_v43  ;;  %v699_v1 = vsel %vm698_vm12, %v667_v60, %v673_v49  ;;  %v700_v5 = vsel %vm698_vm12, %v668_v61, %v674_v50  ;;  %v704_v61 = vld [vmem:[#allocation4] sm:$0x3f] }
 0x124   : > { %v679_v55 = vrot.slane %v626_v44, 3  ;;  %v680_v56 = vrot.slane %v627_v52, 3  ;;  %v631_v62 = vpop.permute.xlu1 %630  ;;  %v629_v63 = vpop.permute.xlu0 %628 }
 0x125   : > { %v633_v8 = vsel %vm632_vm13, %v629_v63, %v631_v62  ;;  %v634_v9 = vsel %vm632_vm13, %v631_v62, %v629_v63 }
 0x126   : > { %v702_v41 = vsel %vm701_vm14, %v699_v1, %v679_v55  ;;  %v703_v10 = vsel %vm701_vm14, %v700_v5, %v680_v56  ;;  %v643_v18 = vmul.f32 %v7643_v53, %v633_v8  ;;  %v644_v47 = vmul.f32 %v7646_v54, %v634_v9  ;;  %vm8123_vm14 = vmpackc.low %vm692_vm6, %vm7240_vm15 }
 0x127   : > { %vm1396_vm15 = vcmask 883712  }
 0x128   : > { %v6555_v6 = vpack.c.bf16 %v644_v47, %v703_v10  ;;  %v6558_v60 = vpack.c.bf16 %v643_v18, %v702_v41 }
 0x12a   : > { %6557 = vmatprep.subr.msk.bf16.mxu0 %vm6556_vm4, %v6555_v6 }
 0x12b   : > { %6560 = vmatpush1.bf16.msk.msra.mxu0 %vm6556_vm4, %v6558_v60  ;;  %vm1758_vm4 = vcmask 277504  }
 0x12e   : > { %6477 = vmatmul.mubr.msk.f32.vlgmr.msra.gmra.mrb[0].mxu0 %vm710_vm7, %v704_v61  ;;  %vm1855_vm7 = vcmask 195584  }
 0x12f   : > { %1181 = vmatprep.mubr.f32.mxu0 %v11034_v2 }
 0x135   : > { %v708_v11 = vpop.permute.xlu0 %707 }
 0x201   : > { %v786_v12 = vpop.f32.mrb[0].mxu0 }
 0x202   : > { %v7659_v13 = vadd.f32 %v786_v12, %v708_v11  ;;  %v788_v17 = vpop.f32.mrb[1].mxu0 }
 0x203   : > { %v7665_v21 = vadd.f32 %v788_v17, %v708_v11 }
 0x204   : > { %11124 = vst [vmem:[#allocation19_spill] sm:$0xff] %v7659_v13  ;;  %807 = vrot.lane.b32.xlu0 %v7659_v13, %s7231_s27  ;;  %799 = vrot.lane.b32.xlu1 %v7659_v13, %s7232_s22 }
 0x205   : > { %11125 = vst [vmem:[#allocation20_spill] sm:$0xff] %v7665_v21 }
 0x208   : > { %791 = vrot.lane.b32.xlu0 %v7659_v13, %s7234_s13  ;;  %801 = vrot.lane.b32.xlu1 %v7665_v21, %s7232_s22 }
 0x20c   : > { %815 = vrot.lane.b32.xlu0 %v7659_v13, %s7230_s30  ;;  %809 = vrot.lane.b32.xlu1 %v7665_v21, %s7231_s27 }
 0x210   : > { %823 = vrot.lane.b32.xlu0 %v7659_v13, %s7233_s26  ;;  %793 = vrot.lane.b32.xlu1 %v7665_v21, %s7234_s13 }
 0x214   : > { %831 = vrot.lane.b32.xlu0 %v7659_v13, %s7235_s2  ;;  %817 = vrot.lane.b32.xlu1 %v7665_v21, %s7230_s30 }
 0x218   : > { %839 = vrot.lane.b32.xlu0 %v7659_v13, %s7237_s29  ;;  %825 = vrot.lane.b32.xlu1 %v7665_v21, %s7233_s26 }
 0x21c   : > { %847 = vrot.lane.b32.xlu0 %v7659_v13, %s7239_s21  ;;  %833 = vrot.lane.b32.xlu1 %v7665_v21, %s7235_s2 }
 0x220   : > { %841 = vrot.lane.b32.xlu1 %v7665_v21, %s7237_s29  ;;  %906 = vperm.xlu0 %7022, %v7516_v4  }
 0x224   : > { %849 = vrot.lane.b32.xlu1 %v7665_v21, %s7239_s21 }
 0x276   : > { %v808_v27 = vpop.permute.xlu0 %807  ;;  %v800_v28 = vpop.permute.xlu1 %799 }
 0x27a   : > { %v792_v32 = vpop.permute.xlu0 %791  ;;  %v802_v33 = vpop.permute.xlu1 %801 }
 0x27b   : > { %v803_v0 = vsel %vm530_vm1, %v800_v28, %v802_v33  ;;  %v804_v34 = vsel %vm530_vm1, %v802_v33, %v800_v28 }
 0x27c   : > { %v805_v40 = vmul.f32 %v804_v34, %v7548_v25  ;;  %v806_v45 = vmul.f32 %v803_v0, %v7551_v26 }
 0x27e   : > { %v810_v35 = vpop.permute.xlu1 %809  ;;  %v816_v36 = vpop.permute.xlu0 %815  ;;  %v857_v52 = vrot.slane %v805_v40, 2  ;;  %v858_v55 = vrot.slane %v806_v45, 2 }
 0x27f   : > { %v811_v37 = vsel %vm547_vm2, %v808_v27, %v810_v35  ;;  %v812_v39 = vsel %vm547_vm2, %v810_v35, %v808_v27 }
 0x280   : > { %v813_v46 = vmul.f32 %v812_v39, %v7543_v23  ;;  %v814_v48 = vmul.f32 %v811_v37, %v7545_v24 }
 0x282   : > { %v863_v49 = vrot.slane %v813_v46, 4  ;;  %v864_v50 = vrot.slane %v814_v48, 4  ;;  %v794_v51 = vpop.permute.xlu1 %793  ;;  %v824_v63 = vpop.permute.xlu0 %823 }
 0x283   : > { %v795_v43 = vsel %vm513_vm5, %v792_v32, %v794_v51  ;;  %v796_v44 = vsel %vm513_vm5, %v794_v51, %v792_v32 }
 0x284   : > { %v797_v56 = vmul.f32 %v796_v44, %v7560_v31  ;;  %v798_v62 = vmul.f32 %v795_v43, %v7571_v38  ;;  %v894_v8 = vsel %vm692_vm6, %v858_v55, %v864_v50  ;;  %v893_v41 = vsel %vm692_vm6, %v857_v52, %v863_v49 }
 0x286   : > { %v818_v1 = vpop.permute.xlu1 %817  ;;  %v892_v5 = vsel %vm686_vm11, %v798_v62, %v858_v55  ;;  %v891_v9 = vsel %vm686_vm11, %v797_v56, %v857_v52  ;;  %v832_v12 = vpop.permute.xlu0 %831 }
 0x287   : > { %v819_v10 = vsel %vm564_vm0, %v816_v36, %v818_v1  ;;  %v820_v18 = vsel %vm564_vm0, %v818_v1, %v816_v36  ;;  %v6561_v47 = vpack.c.bf16 %v894_v8, %v892_v5  ;;  %v6563_v6 = vpack.c.bf16 %v893_v41, %v891_v9 }
 0x288   : > { %v821_v60 = vmul.f32 %v820_v18, %v7533_v19  ;;  %v822_v61 = vmul.f32 %v819_v10, %v7535_v20 }
 0x289   : > { %6562 = vmatprep.subr.bf16.mxu1 %v6561_v47 }
 0x28a   : > { %6564 = vmatpush1.bf16.msra.mxu1 %v6563_v6  ;;  %v826_v11 = vpop.permute.xlu1 %825  ;;  %v869_v17 = vrot.slane %v821_v60, 6  ;;  %v870_v27 = vrot.slane %v822_v61, 6  ;;  %v840_v44 = vpop.permute.xlu0 %839 }
 0x28b   : > { %v827_v28 = vsel %vm581_vm3, %v824_v63, %v826_v11  ;;  %v828_v32 = vsel %vm581_vm3, %v826_v11, %v824_v63 }
 0x28c   : > { %v829_v33 = vmul.f32 %v827_v28, %v7554_v29  ;;  %v830_v0 = vmul.f32 %v828_v32, %v7556_v30  ;;  %v896_v40 = vsel %vm698_vm12, %v864_v50, %v870_v27  ;;  %v895_v45 = vsel %vm698_vm12, %v863_v49, %v869_v17  ;;  %v904_v32 = vld [vmem:[#allocation4 + $0x10] sm:$0x3f] }
 0x28e   : > { %v875_v34 = vrot.slane %v829_v33, 2  ;;  %v876_v35 = vrot.slane %v830_v0, 2  ;;  %v834_v36 = vpop.permute.xlu1 %833  ;;  %v848_v10 = vpop.permute.xlu0 %847 }
 0x28f   : > { %v835_v37 = vsel %vm598_vm9, %v832_v12, %v834_v36  ;;  %v836_v39 = vsel %vm598_vm9, %v834_v36, %v832_v12 }
 0x290   : > { %v837_v46 = vmul.f32 %v835_v37, %v7595_v57  ;;  %v838_v48 = vmul.f32 %v836_v39, %v7598_v58  ;;  %v898_v51 = vsel %vm686_vm11, %v7665_v21, %v876_v35  ;;  %v897_v43 = vsel %vm686_vm11, %v7659_v13, %v875_v34 }
 0x291   : > { %v6565_v52 = vpack.c.bf16 %v898_v51, %v896_v40  ;;  %v6567_v55 = vpack.c.bf16 %v897_v43, %v895_v45  ;;  %v11030_v37 = vmov 2  }
 0x292   : > { %v842_v56 = vpop.permute.xlu1 %841  ;;  %v882_v62 = vrot.slane %v838_v48, 4  ;;  %v881_v63 = vrot.slane %v837_v46, 4  ;;  %7023 = vset.pattern.permute.xlu0 %v11030_v37 }
 0x293   : > { %v843_v50 = vsel %vm615_vm10, %v840_v44, %v842_v56  ;;  %v844_v49 = vsel %vm615_vm10, %v842_v56, %v840_v44  ;;  %6566 = vmatprep.subr.bf16.mxu1 %v6565_v52 }
 0x294   : > { %v845_v1 = vmul.f32 %v843_v50, %v7616_v15  ;;  %v846_v5 = vmul.f32 %v844_v49, %v7619_v16  ;;  %6568 = vmatpush1.bf16.msra.mxu1 %v6567_v55  ;;  %v900_v18 = vsel %vm692_vm6, %v876_v35, %v882_v62  ;;  %v899_v60 = vsel %vm692_vm6, %v875_v34, %v881_v63 }
 0x296   : > { %v887_v8 = vrot.slane %v845_v1, 6  ;;  %v888_v9 = vrot.slane %v846_v5, 6  ;;  %v850_v41 = vpop.permute.xlu1 %849 }
 0x297   : > { %v852_v47 = vsel %vm632_vm13, %v850_v41, %v848_v10  ;;  %v851_v17 = vsel %vm632_vm13, %v848_v10, %v850_v41 }
 0x298   : > { %v902_v6 = vsel %vm698_vm12, %v882_v62, %v888_v9  ;;  %v901_v61 = vsel %vm698_vm12, %v881_v63, %v887_v8  ;;  %v854_v27 = vmul.f32 %v852_v47, %v7646_v54  ;;  %v853_v28 = vmul.f32 %v851_v17, %v7643_v53 }
 0x299   : > { %v6569_v11 = vpack.c.bf16 %v902_v6, %v900_v18  ;;  %v6571_v12 = vpack.c.bf16 %v901_v61, %v899_v60 }
 0x29b   : > { %6570 = vmatprep.subr.bf16.mxu1 %v6569_v11 }
 0x29c   : > { %6572 = vmatpush1.bf16.msra.mxu1 %v6571_v12 }
 0x29d   : > { %6478 = vmatprep.subr.msk.mxu1 %vm686_vm11, %v854_v27 }
 0x29f   : > { %v907_v33 = vpop.permute.xlu0 %906 }
 0x2a0   : > { %6479 = vmatpush1.msk.msra.mxu1 %vm686_vm11, %v853_v28 }
 0x2a1   : > { %6480 = vmatmul.mubr.msk.f32.vlgmr.msra.gmra.mrb[0].mxu1 %vm909_vm8, %v904_v32 }
 0x2a2   : > { %1470 = vmatprep.mubr.f32.mxu1 %v11034_v2 }
 0x374   : > { %v985_v0 = vpop.f32.mrb[0].mxu1 }
 0x375   : > { %v7763_v34 = vadd.f32 %v985_v0, %v907_v33  ;;  %v987_v35 = vpop.f32.mrb[1].mxu1 }
 0x376   : > { %v7769_v36 = vadd.f32 %v987_v35, %v907_v33 }
 0x377   : > { %11126 = vst [vmem:[#allocation21_spill] sm:$0xff] %v7763_v34  ;;  %1006 = vrot.lane.b32.xlu0 %v7763_v34, %s7231_s27  ;;  %998 = vrot.lane.b32.xlu1 %v7763_v34, %s7232_s22 }
 0x378   : > { %11127 = vst [vmem:[#allocation22_spill] sm:$0xff] %v7769_v36 }
 0x37b   : > { %990 = vrot.lane.b32.xlu0 %v7763_v34, %s7234_s13  ;;  %1000 = vrot.lane.b32.xlu1 %v7769_v36, %s7232_s22 }
 0x37f   : > { %1014 = vrot.lane.b32.xlu0 %v7763_v34, %s7230_s30  ;;  %1008 = vrot.lane.b32.xlu1 %v7769_v36, %s7231_s27 }
 0x383   : > { %1022 = vrot.lane.b32.xlu0 %v7763_v34, %s7233_s26  ;;  %992 = vrot.lane.b32.xlu1 %v7769_v36, %s7234_s13 }
 0x387   : > { %1030 = vrot.lane.b32.xlu0 %v7763_v34, %s7235_s2  ;;  %1016 = vrot.lane.b32.xlu1 %v7769_v36, %s7230_s30 }
 0x38b   : > { %1038 = vrot.lane.b32.xlu0 %v7763_v34, %s7237_s29  ;;  %1024 = vrot.lane.b32.xlu1 %v7769_v36, %s7233_s26 }
 0x38f   : > { %1046 = vrot.lane.b32.xlu0 %v7763_v34, %s7239_s21  ;;  %1032 = vrot.lane.b32.xlu1 %v7769_v36, %s7235_s2 }
 0x393   : > { %1040 = vrot.lane.b32.xlu1 %v7769_v36, %s7237_s29  ;;  %1105 = vperm.xlu0 %7023, %v7516_v4  }
 0x397   : > { %1048 = vrot.lane.b32.xlu1 %v7769_v36, %s7239_s21 }
 0x3e9   : > { %v1007_v39 = vpop.permute.xlu0 %1006  ;;  %v999_v40 = vpop.permute.xlu1 %998 }
 0x3ed   : > { %v991_v45 = vpop.permute.xlu0 %990  ;;  %v1001_v46 = vpop.permute.xlu1 %1000 }
 0x3ee   : > { %v1002_v48 = vsel %vm530_vm1, %v999_v40, %v1001_v46  ;;  %v1003_v51 = vsel %vm530_vm1, %v1001_v46, %v999_v40 }
 0x3ef   : > { %v1004_v56 = vmul.f32 %v1003_v51, %v7548_v25  ;;  %v1005_v62 = vmul.f32 %v1002_v48, %v7551_v26 }
 0x3f1   : > { %v1009_v43 = vpop.permute.xlu1 %1008  ;;  %v1015_v44 = vpop.permute.xlu0 %1014  ;;  %v1056_v41 = vrot.slane %v1004_v56, 2  ;;  %v1057_v10 = vrot.slane %v1005_v62, 2 }
 0x3f2   : > { %v1010_v52 = vsel %vm547_vm2, %v1007_v39, %v1009_v43  ;;  %v1011_v55 = vsel %vm547_vm2, %v1009_v43, %v1007_v39 }
 0x3f3   : > { %v1012_v50 = vmul.f32 %v1011_v55, %v7543_v23  ;;  %v1013_v49 = vmul.f32 %v1010_v52, %v7545_v24 }
 0x3f5   : > { %v1062_v63 = vrot.slane %v1012_v50, 4  ;;  %v1063_v1 = vrot.slane %v1013_v49, 4  ;;  %v993_v5 = vpop.permute.xlu1 %992  ;;  %v1023_v6 = vpop.permute.xlu0 %1022 }
 0x3f6   : > { %v994_v8 = vsel %vm513_vm5, %v991_v45, %v993_v5  ;;  %v995_v9 = vsel %vm513_vm5, %v993_v5, %v991_v45 }
 0x3f7   : > { %v996_v18 = vmul.f32 %v995_v9, %v7560_v31  ;;  %v997_v47 = vmul.f32 %v994_v8, %v7571_v38  ;;  %v1093_v11 = vsel %vm692_vm6, %v1057_v10, %v1063_v1  ;;  %v1092_v17 = vsel %vm692_vm6, %v1056_v41, %v1062_v63 }
 0x3f9   : > { %v1017_v60 = vpop.permute.xlu1 %1016  ;;  %v1091_v61 = vsel %vm686_vm11, %v997_v47, %v1057_v10  ;;  %v1090_v12 = vsel %vm686_vm11, %v996_v18, %v1056_v41  ;;  %v1031_v40 = vpop.permute.xlu0 %1030 }
 0x3fa   : > { %v1018_v27 = vsel %vm564_vm0, %v1015_v44, %v1017_v60  ;;  %v1019_v28 = vsel %vm564_vm0, %v1017_v60, %v1015_v44  ;;  %v6573_v32 = vpack.c.bf16 %v1093_v11, %v1091_v61  ;;  %v6575_v33 = vpack.c.bf16 %v1092_v17, %v1090_v12 }
 0x3fb   : > { %v1020_v0 = vmul.f32 %v1019_v28, %v7533_v19  ;;  %v1021_v35 = vmul.f32 %v1018_v27, %v7535_v20 }
 0x3fc   : > { %6574 = vmatprep.subr.bf16.mxu0 %v6573_v32 }
 0x3fd   : > { %6576 = vmatpush1.bf16.msra.mxu0 %v6575_v33  ;;  %v1025_v39 = vpop.permute.xlu1 %1024  ;;  %v1068_v45 = vrot.slane %v1020_v0, 6  ;;  %v1069_v46 = vrot.slane %v1021_v35, 6  ;;  %v1039_v18 = vpop.permute.xlu0 %1038 }
 0x3fe   : > { %v1026_v48 = vsel %vm581_vm3, %v1023_v6, %v1025_v39  ;;  %v1027_v51 = vsel %vm581_vm3, %v1025_v39, %v1023_v6 }
 0x3ff   : > { %v1028_v43 = vmul.f32 %v1026_v48, %v7554_v29  ;;  %v1029_v44 = vmul.f32 %v1027_v51, %v7556_v30  ;;  %v1095_v49 = vsel %vm698_vm12, %v1063_v1, %v1069_v46  ;;  %v1094_v5 = vsel %vm698_vm12, %v1062_v63, %v1068_v45 }
 0x401   : > { %v1074_v52 = vrot.slane %v1028_v43, 2  ;;  %v1075_v55 = vrot.slane %v1029_v44, 2  ;;  %v1033_v56 = vpop.permute.xlu1 %1032  ;;  %v1047_v33 = vpop.permute.xlu0 %1046 }
 0x402   : > { %v1034_v62 = vsel %vm598_vm9, %v1031_v40, %v1033_v56  ;;  %v1035_v50 = vsel %vm598_vm9, %v1033_v56, %v1031_v40 }
 0x403   : > { %v1036_v8 = vmul.f32 %v1034_v62, %v7595_v57  ;;  %v1037_v9 = vmul.f32 %v1035_v50, %v7598_v58  ;;  %v1097_v41 = vsel %vm686_vm11, %v7769_v36, %v1075_v55  ;;  %v1096_v10 = vsel %vm686_vm11, %v7763_v34, %v1074_v52 }
 0x404   : > { %v6577_v47 = vpack.c.bf16 %v1097_v41, %v1095_v49  ;;  %v6579_v6 = vpack.c.bf16 %v1096_v10, %v1094_v5 }
 0x405   : > { %v1041_v60 = vpop.permute.xlu1 %1040  ;;  %v1081_v61 = vrot.slane %v1037_v9, 4  ;;  %v1080_v11 = vrot.slane %v1036_v8, 4 }
 0x406   : > { %v1042_v1 = vsel %vm615_vm10, %v1039_v18, %v1041_v60  ;;  %v1043_v63 = vsel %vm615_vm10, %v1041_v60, %v1039_v18  ;;  %6578 = vmatprep.subr.bf16.mxu0 %v6577_v47  ;;  %v11028_v47 = vmov 3  }
 0x407   : > { %v1044_v12 = vmul.f32 %v1042_v1, %v7616_v15  ;;  %v1045_v17 = vmul.f32 %v1043_v63, %v7619_v16  ;;  %6580 = vmatpush1.bf16.msra.mxu0 %v6579_v6  ;;  %v1099_v0 = vsel %vm692_vm6, %v1075_v55, %v1081_v61  ;;  %v1098_v40 = vsel %vm692_vm6, %v1074_v52, %v1080_v11  ;;  %v1103_v55 = vld [vmem:[#allocation4 + $0x20] sm:$0x3f] }
 0x408   : > { %7024 = vset.pattern.permute.xlu0 %v11028_v47 }
 0x409   : > { %v1086_v27 = vrot.slane %v1044_v12, 6  ;;  %v1087_v28 = vrot.slane %v1045_v17, 6  ;;  %v1049_v32 = vpop.permute.xlu1 %1048 }
 0x40a   : > { %v1051_v35 = vsel %vm632_vm13, %v1049_v32, %v1047_v33  ;;  %v1050_v51 = vsel %vm632_vm13, %v1047_v33, %v1049_v32 }
 0x40b   : > { %v1101_v39 = vsel %vm698_vm12, %v1081_v61, %v1087_v28  ;;  %v1100_v45 = vsel %vm698_vm12, %v1080_v11, %v1086_v27  ;;  %v1053_v43 = vmul.f32 %v1051_v35, %v7646_v54  ;;  %v1052_v44 = vmul.f32 %v1050_v51, %v7643_v53 }
 0x40c   : > { %v6581_v46 = vpack.c.bf16 %v1101_v39, %v1099_v0  ;;  %v6583_v48 = vpack.c.bf16 %v1100_v45, %v1098_v40 }
 0x40e   : > { %6582 = vmatprep.subr.bf16.mxu0 %v6581_v46 }
 0x40f   : > { %6584 = vmatpush1.bf16.msra.mxu0 %v6583_v48 }
 0x410   : > { %6481 = vmatprep.subr.msk.mxu0 %vm686_vm11, %v1053_v43 }
 0x412   : > { %v1106_v52 = vpop.permute.xlu0 %1105 }
 0x413   : > { %6482 = vmatpush1.msk.msra.mxu0 %vm686_vm11, %v1052_v44 }
 0x414   : > { %6483 = vmatmul.mubr.msk.f32.vlgmr.msra.gmra.mrb[2].mxu0 %vm909_vm8, %v1103_v55 }
 0x4e7   : > { %v1183_v56 = vpop.f32.mrb[2].mxu0 }
 0x4e8   : > { %v1184_v62 = vadd.f32 %v1183_v56, %v1106_v52  ;;  %v1185_v50 = vpop.f32.mrb[3].mxu0 }
 0x4e9   : > { %v1186_v8 = vadd.f32 %v1185_v50, %v1106_v52 }
 0x4ea   : > { %v1188_v49 = vmax.f32 %v1184_v62, 0.0 }
 0x4eb   : > { %v1189_v9 = vmax.f32 %v1186_v8, 0.0 }
 0x4ec   : > { %v7866_v5 = vrot.slane %v1188_v49, 2 }
 0x4ed   : > { %v7881_v10 = vrot.slane %v1189_v9, 2 }
 0x4ee   : > { %1248 = vrot.lane.b32.xlu1 %v7866_v5, %s7230_s30  ;;  %1200 = vrot.lane.b32.xlu0 %v7866_v5, %s7234_s13  ;;  %v7875_v41 = vsel %vm686_vm11, %v7763_v34, %v7866_v5 }
 0x4ef   : > { %v7906_v18 = vsel %vm686_vm11, %v7769_v36, %v7881_v10 }
 0x4f2   : > { %1216 = vrot.lane.b32.xlu0 %v7866_v5, %s7232_s22  ;;  %1214 = vrot.lane.b32.xlu1 %v7875_v41, %s7232_s22 }
 0x4f6   : > { %1232 = vrot.lane.b32.xlu0 %v7866_v5, %s7231_s27  ;;  %1204 = vrot.lane.b32.xlu1 %v7881_v10, %s7234_s13 }
 0x4fa   : > { %1264 = vrot.lane.b32.xlu0 %v7866_v5, %s7233_s26  ;;  %1220 = vrot.lane.b32.xlu1 %v7881_v10, %s7232_s22 }
 0x4fe   : > { %1198 = vrot.lane.b32.xlu0 %v7875_v41, %s7234_s13  ;;  %1252 = vrot.lane.b32.xlu1 %v7881_v10, %s7230_s30 }
 0x502   : > { %1230 = vrot.lane.b32.xlu0 %v7875_v41, %s7231_s27  ;;  %1236 = vrot.lane.b32.xlu1 %v7881_v10, %s7231_s27 }
 0x506   : > { %1246 = vrot.lane.b32.xlu0 %v7875_v41, %s7230_s30  ;;  %1268 = vrot.lane.b32.xlu1 %v7881_v10, %s7233_s26 }
 0x50a   : > { %1262 = vrot.lane.b32.xlu0 %v7875_v41, %s7233_s26  ;;  %1218 = vrot.lane.b32.xlu1 %v7906_v18, %s7232_s22 }
 0x50e   : > { %1278 = vrot.lane.b32.xlu0 %v7875_v41, %s7235_s2  ;;  %1202 = vrot.lane.b32.xlu1 %v7906_v18, %s7234_s13 }
 0x512   : > { %1250 = vrot.lane.b32.xlu0 %v7906_v18, %s7230_s30  ;;  %1234 = vrot.lane.b32.xlu1 %v7906_v18, %s7231_s27 }
 0x516   : > { %1294 = vrot.lane.b32.xlu0 %v7875_v41, %s7237_s29  ;;  %1296 = vrot.lane.b32.xlu1 %v7866_v5, %s7237_s29 }
 0x51a   : > { %1280 = vrot.lane.b32.xlu0 %v7866_v5, %s7235_s2  ;;  %1300 = vrot.lane.b32.xlu1 %v7881_v10, %s7237_s29 }
 0x51e   : > { %1298 = vrot.lane.b32.xlu0 %v7906_v18, %s7237_s29  ;;  %1266 = vrot.lane.b32.xlu1 %v7906_v18, %s7233_s26 }
 0x522   : > { %1310 = vrot.lane.b32.xlu0 %v7875_v41, %s7239_s21  ;;  %1284 = vrot.lane.b32.xlu1 %v7881_v10, %s7235_s2 }
 0x526   : > { %1314 = vrot.lane.b32.xlu0 %v7906_v18, %s7239_s21  ;;  %1282 = vrot.lane.b32.xlu1 %v7906_v18, %s7235_s2 }
 0x52a   : > { %1312 = vrot.lane.b32.xlu1 %v7866_v5, %s7239_s21  ;;  %1393 = vperm.xlu0 %7024, %v7516_v4  }
 0x52e   : > { %1316 = vrot.lane.b32.xlu1 %v7881_v10, %s7239_s21 }
 0x560   : > { %v1249_v6 = vpop.permute.xlu1 %1248  ;;  %v1201_v60 = vpop.permute.xlu0 %1200 }
 0x564   : > { %v1217_v61 = vpop.permute.xlu0 %1216  ;;  %v1215_v1 = vpop.permute.xlu1 %1214 }
 0x568   : > { %v1233_v63 = vpop.permute.xlu0 %1232  ;;  %v1205_v11 = vpop.permute.xlu1 %1204 }
 0x569   : > { %v1209_v4 = vsel %vm513_vm5, %v1205_v11, %v1201_v60  ;;  %v1207_v43 = vsel %vm513_vm5, %v1201_v60, %v1205_v11 }
 0x56a   : > { %v1212_v56 = vmul.f32 %v1209_v4, %v7560_v31 }
 0x56c   : > { %v7946_v12 = vpop.permute.xlu0 %1264  ;;  %v1221_v17 = vpop.permute.xlu1 %1220 }
 0x56d   : > { %v1225_v39 = vsel %vm530_vm1, %v1221_v17, %v1217_v61  ;;  %v1223_v40 = vsel %vm530_vm1, %v1217_v61, %v1221_v17 }
 0x56e   : > { %v1228_v44 = vmul.f32 %v1225_v39, %v7548_v25  ;;  %v1229_v62 = vmul.f32 %v1223_v40, %v7551_v26 }
 0x570   : > { %v1199_v27 = vpop.permute.xlu0 %1198  ;;  %v1253_v28 = vpop.permute.xlu1 %1252  ;;  %v1332_v39 = vrot.slane %v1228_v44, 4  ;;  %v1334_v40 = vrot.slane %v1229_v62, 4 }
 0x571   : > { %v1255_v50 = vsel %vm564_vm0, %v1249_v6, %v1253_v28  ;;  %v1257_v49 = vsel %vm564_vm0, %v1253_v28, %v1249_v6 }
 0x574   : > { %v1231_v32 = vpop.permute.xlu0 %1230  ;;  %v1237_v33 = vpop.permute.xlu1 %1236 }
 0x578   : > { %v1247_v0 = vpop.permute.xlu0 %1246  ;;  %v7948_v35 = vpop.permute.xlu1 %1268 }
 0x57c   : > { %v7956_v45 = vpop.permute.xlu0 %1262  ;;  %v1219_v46 = vpop.permute.xlu1 %1218 }
 0x57d   : > { %v1222_v48 = vsel %vm530_vm1, %v1215_v1, %v1219_v46  ;;  %v1224_v51 = vsel %vm530_vm1, %v1219_v46, %v1215_v1  ;;  %v1213_v1 = vmul.f32 %v1207_v43, %v7571_v38  ;;  %v1260_v46 = vmul.f32 %v1257_v49, %v7533_v19 }
 0x57e   : > { %v7966_v55 = vmul.f32 %v1224_v51, %v7548_v25  ;;  %v7969_v52 = vmul.f32 %v1222_v48, %v7551_v26  ;;  %v1261_v48 = vmul.f32 %v1255_v50, %v7535_v20  ;;  %v1239_v43 = vsel %vm547_vm2, %v1233_v63, %v1237_v33 }
 0x580   : > { %v1330_v8 = vrot.slane %v7966_v55, 4  ;;  %v1331_v9 = vrot.slane %v7969_v52, 4  ;;  %v7979_v60 = vpop.permute.xlu0 %1278  ;;  %v1203_v61 = vpop.permute.xlu1 %1202 }
 0x581   : > { %v1206_v11 = vsel %vm513_vm5, %v1199_v27, %v1203_v61  ;;  %v1208_v17 = vsel %vm513_vm5, %v1203_v61, %v1199_v27  ;;  %v1241_v27 = vsel %vm547_vm2, %v1237_v33, %v1233_v63 }
 0x582   : > { %v1382_v4 = vsel %vm692_vm6, %v1212_v56, %v1330_v8  ;;  %v7988_v6 = vmul.f32 %v1208_v17, %v7560_v31  ;;  %v7991_v28 = vmul.f32 %v1206_v11, %v7571_v38  ;;  %v1383_v51 = vsel %vm692_vm6, %v1213_v1, %v1331_v9 }
 0x583   : > { %v1335_v3 = vsel %vm692_vm6, %v1331_v9, %v1334_v40  ;;  %v1244_v47 = vmul.f32 %v1241_v27, %v7543_v23 }
 0x584   : > { %v6587_v44 = vpack.c.bf16 %v1382_v4, %v7988_v6  ;;  %v1251_v56 = vpop.permute.xlu0 %1250  ;;  %v1235_v61 = vpop.permute.xlu1 %1234  ;;  %v6585_v11 = vpack.c.bf16 %v1383_v51, %v7991_v28  ;;  %v1245_v51 = vmul.f32 %v1239_v43, %v7545_v24 }
 0x585   : > { %v1254_v62 = vsel %vm564_vm0, %v1247_v0, %v1251_v56  ;;  %v1256_v50 = vsel %vm564_vm0, %v1251_v56, %v1247_v0  ;;  %v1238_v49 = vsel %vm547_vm2, %v1231_v32, %v1235_v61  ;;  %v1240_v1 = vsel %vm547_vm2, %v1235_v61, %v1231_v32 }
 0x586   : > { %v8011_v63 = vmul.f32 %v1256_v50, %v7533_v19  ;;  %v8014_v33 = vmul.f32 %v1254_v62, %v7535_v20  ;;  %v8017_v17 = vmul.f32 %v1240_v1, %v7543_v23  ;;  %v8020_v4 = vmul.f32 %v1238_v49, %v7545_v24  ;;  %6586 = vmatprep.subr.bf16.mxu1 %v6585_v11 }
 0x587   : > { %v1348_v0 = vrot.slane %v1261_v48, 4  ;;  %6588 = vmatpush1.bf16.msra.mxu1 %v6587_v44  ;;  %v1333_v61 = vsel %vm692_vm6, %v1330_v8, %v1332_v39  ;;  %v1346_v1 = vrot.slane %v1260_v46, 4 }
 0x588   : > { %v1344_v56 = vrot.slane %v8011_v63, 4  ;;  %v1345_v32 = vrot.slane %v8014_v33, 4  ;;  %v1295_v50 = vpop.permute.xlu0 %1294  ;;  %v1297_v62 = vpop.permute.xlu1 %1296  ;;  %v6591_v49 = vpack.c.bf16 %v8017_v17, %v1333_v61  ;;  %v6589_v48 = vpack.c.bf16 %v8020_v4, %v1335_v3 }
 0x589   : > { %v1273_v3 = vsel %vm581_vm3, %v7948_v35, %v7946_v12 }
 0x58a   : > { %v1349_v43 = vsel %vm692_vm6, %v1345_v32, %v1348_v0  ;;  %v1385_v44 = vsel %vm692_vm6, %v1245_v51, %v1345_v32  ;;  %6590 = vmatprep.subr.bf16.mxu1 %v6589_v48  ;;  %v1347_v37 = vsel %vm692_vm6, %v1344_v56, %v1346_v1  ;;  %v1384_v8 = vsel %vm692_vm6, %v1244_v47, %v1344_v56 }
 0x58b   : > { %v6593_v11 = vpack.c.bf16 %v1349_v43, %v1385_v44  ;;  %6592 = vmatpush1.bf16.msra.mxu1 %v6591_v49  ;;  %v6595_v40 = vpack.c.bf16 %v1347_v37, %v1384_v8  ;;  %v1271_v56 = vsel %vm581_vm3, %v7946_v12, %v7948_v35  ;;  %v1277_v32 = vmul.f32 %v1273_v3, %v7556_v30 }
 0x58c   : > { %v1281_v39 = vpop.permute.xlu0 %1280  ;;  %v1301_v9 = vpop.permute.xlu1 %1300  ;;  %v1276_v43 = vmul.f32 %v1271_v56, %v7554_v29 }
 0x58d   : > { %6594 = vmatprep.subr.bf16.mxu1 %v6593_v11  ;;  %v1362_v12 = vrot.slane %v1277_v32, 4  ;;  %v1303_v3 = vsel %vm615_vm10, %v1297_v62, %v1301_v9 }
 0x58e   : > { %v1308_v22 = vmul.f32 %v1303_v3, %v7616_v15 }
 0x58f   : > { %6596 = vmatpush1.bf16.msra.mxu1 %v6595_v40 }
 0x590   : > { %v1299_v46 = vpop.permute.xlu0 %1298  ;;  %v1267_v27 = vpop.permute.xlu1 %1266  ;;  %v1374_v3 = vrot.slane %v1308_v22, 4 }
 0x591   : > { %v1270_v0 = vsel %vm581_vm3, %v7956_v45, %v1267_v27  ;;  %v1272_v47 = vsel %vm581_vm3, %v1267_v27, %v7956_v45  ;;  %v1304_v61 = vsel %vm615_vm10, %v1299_v46, %v1295_v50  ;;  %v1305_v45 = vsel %vm615_vm10, %v1301_v9, %v1297_v62 }
 0x592   : > { %v8045_v51 = vmul.f32 %v1270_v0, %v7554_v29  ;;  %v8048_v37 = vmul.f32 %v1272_v47, %v7556_v30  ;;  %v1302_v35 = vsel %vm615_vm10, %v1295_v50, %v1299_v46  ;;  %v8067_v8 = vmul.f32 %v1304_v61, %v7619_v16 }
 0x593   : > { %v1309_v27 = vmul.f32 %v1305_v45, %v7619_v16  ;;  %v1360_v9 = vrot.slane %v1276_v43, 4  ;;  %v8087_v61 = vmul.f32 %v1302_v35, %v7616_v15 }
 0x594   : > { %v1285_v1 = vpop.permute.xlu1 %1284  ;;  %v1358_v49 = vrot.slane %v8045_v51, 4  ;;  %v1359_v48 = vrot.slane %v8048_v37, 4  ;;  %v1311_v44 = vpop.permute.xlu0 %1310 }
 0x595   : > { %v1289_v11 = vsel %vm598_vm9, %v1285_v1, %v1281_v39  ;;  %v1287_v50 = vsel %vm598_vm9, %v1281_v39, %v1285_v1  ;;  %v1373_v39 = vrot.slane %v8067_v8, 4  ;;  %v1376_v2 = vrot.slane %v1309_v27, 4 }
 0x596   : > { %v1387_v40 = vsel %vm692_vm6, %v7881_v10, %v1359_v48  ;;  %v1386_v56 = vsel %vm692_vm6, %v7866_v5, %v1358_v49  ;;  %v1293_v46 = vmul.f32 %v1289_v11, %v7598_v58  ;;  %v1363_v11 = vsel %vm692_vm6, %v1359_v48, %v1362_v12 }
 0x597   : > { %v6597_v47 = vpack.c.bf16 %v1387_v40, %v7906_v18  ;;  %v6599_v1 = vpack.c.bf16 %v1386_v56, %v7875_v41  ;;  %v1361_v35 = vsel %vm692_vm6, %v1358_v49, %v1360_v9  ;;  %v1372_v56 = vrot.slane %v8087_v61, 4 }
 0x598   : > { %v1283_v0 = vpop.permute.xlu1 %1282  ;;  %v1315_v43 = vpop.permute.xlu0 %1314  ;;  %v1377_v12 = vsel %vm692_vm6, %v1373_v39, %v1376_v2 }
 0x599   : > { %v1286_v32 = vsel %vm598_vm9, %v7979_v60, %v1283_v0  ;;  %v1288_v62 = vsel %vm598_vm9, %v1283_v0, %v7979_v60  ;;  %6598 = vmatprep.subr.bf16.mxu1 %v6597_v47  ;;  %v1292_v60 = vmul.f32 %v1287_v50, %v7595_v57  ;;  %v1389_v47 = vsel %vm692_vm6, %v1293_v46, %v1373_v39 }
 0x59a   : > { %v8090_v45 = vmul.f32 %v1286_v32, %v7595_v57  ;;  %v8093_v40 = vmul.f32 %v1288_v62, %v7598_v58  ;;  %6600 = vmatpush1.bf16.msra.mxu1 %v6599_v1  ;;  %v1320_v48 = vsel %vm632_vm13, %v1315_v43, %v1311_v44  ;;  %v1318_v49 = vsel %vm632_vm13, %v1311_v44, %v1315_v43 }
 0x59b   : > { %v6605_v50 = vpack.c.bf16 %v1377_v12, %v1389_v47  ;;  %v1388_v27 = vsel %vm692_vm6, %v1292_v60, %v1372_v56  ;;  %v1375_v44 = vsel %vm692_vm6, %v1372_v56, %v1374_v3  ;;  %v11128_v39 = vmov 0 }
 0x59c   : > { %v1313_v0 = vpop.permute.xlu1 %1312  ;;  %v6601_v32 = vpack.c.bf16 %v8093_v40, %v1363_v11  ;;  %v6603_v62 = vpack.c.bf16 %v8090_v45, %v1361_v35  ;;  %v8116_v11 = vmul.f32 %v1320_v48, %v7646_v54  ;;  %v11129_v39 = vsel %vm8123_vm14, 4294967295, %v11128_v39 }
 0x59d   : > { %11130 = vst [vmem:[#allocation23_spill] sm:$0xff] %v11129_v39  ;;  %v8128_v60 = vmul.f32 %v1318_v49, %v7643_v53  ;;  %v6607_v43 = vpack.c.bf16 %v1375_v44, %v1388_v27  ;;  %v1620_v39 = vrot.slane %v7969_v52, 6 }
 0x59e   : > { %6602 = vmatprep.subr.bf16.mxu1 %v6601_v32  ;;  %v1391_v32 = vld [vmem:[#allocation4 + $0x30] sm:$0x3f] }
 0x59f   : > { %6604 = vmatpush1.bf16.msra.mxu1 %v6603_v62  ;;  %11131 = vst [vmem:[#allocation24_spill] sm:$0xff] %v8128_v60  ;;  %v11132_v62 = vmov 0.0  }
 0x5a0   : > { %v1317_v9 = vpop.permute.xlu1 %1316  ;;  %6606 = vmatprep.subr.bf16.mxu1 %v6605_v50 }
 0x5a1   : > { %v1319_v46 = vsel %vm632_vm13, %v1313_v0, %v1317_v9  ;;  %v1321_v1 = vsel %vm632_vm13, %v1317_v9, %v1313_v0  ;;  %v11036_v9 = vrot.slane %v8045_v51, 6 }
 0x5a2   : > { %v1324_v2 = vmul.f32 %v1319_v46, %v7643_v53  ;;  %v1325_v22 = vmul.f32 %v1321_v1, %v7646_v54  ;;  %v11037_v46 = vrot.slane %v8048_v37, 6 }
 0x5a3   : > { %6608 = vmatpush1.bf16.msra.mxu1 %v6607_v43 }
 0x5a4   : > { %v6609_v35 = vpack.c.bf16 %v1325_v22, %v8116_v11  ;;  %v6612_v0 = vpack.c.bf16 %v1324_v2, %v8128_v60 }
 0x5a6   : > { %6611 = vmatprep.subr.msk.bf16.mxu1 %vm8123_vm14, %v6609_v35 }
 0x5a7   : > { %6614 = vmatpush1.bf16.msk.msra.mxu1 %vm8123_vm14, %v6612_v0 }
 0x5a9   : > { %v1394_v47 = vpop.permute.xlu0 %1393 }
 0x5aa   : > { %6486 = vmatmul.mubr.msk.f32.vlgmr.msra.gmra.mrb[2].mxu1 %vm1396_vm15, %v1391_v32 }
 0x5ab   : > { %1923 = vmatprep.mubr.f32.mxu1 %v11132_v62 }
 0x67d   : > { %v1472_v56 = vpop.f32.mrb[2].mxu1 }
 0x67e   : > { %v1473_v48 = vadd.f32 %v1472_v56, %v1394_v47  ;;  %v1474_v12 = vpop.f32.mrb[3].mxu1  ;;  %v8240_v56 = vld [vmem:[#allocation6] sm:$0x3f] }
 0x67f   : > { %v1475_v3 = vadd.f32 %v1474_v12, %v1394_v47  ;;  %v11040_v47 = vmov 4   ;;  %11135 = vst [vmem:[#allocation27_spill] sm:$0xff] %v8240_v56 }
 0x680   : > { %v1477_v49 = vmax.f32 %v1473_v48, 0.0  ;;  %7025 = vset.pattern.permute.xlu0 %v11040_v47  ;;  %v1619_v47 = vrot.slane %v7966_v55, 6 }
 0x681   : > { %v1478_v50 = vmax.f32 %v1475_v3, 0.0 }
 0x682   : > { %v8139_v27 = vrot.slane %v1477_v49, 4 }
 0x683   : > { %v8142_v1 = vrot.slane %v1478_v50, 4 }
 0x684   : > { %11133 = vst [vmem:[#allocation25_spill] sm:$0xff] %v8139_v27  ;;  %1553 = vrot.lane.b32.xlu1 %v8139_v27, %s7233_s26  ;;  %1489 = vrot.lane.b32.xlu0 %v8139_v27, %s7234_s13  ;;  %v8151_v2 = vsel %vm692_vm6, %v7866_v5, %v8139_v27  ;;  %v8157_v22 = vsel %vm698_vm12, %v8139_v27, %v11036_v9 }
 0x685   : > { %11134 = vst [vmem:[#allocation26_spill] sm:$0xff] %v8142_v1  ;;  %v8162_v44 = vsel %vm692_vm6, %v7881_v10, %v8142_v1  ;;  %v8168_v43 = vsel %vm698_vm12, %v8142_v1, %v11037_v46  ;;  %v6657_v32 = vpack.c.bf16 %v8151_v2, %v7875_v41  ;;  %v1753_v10 = vld [vmem:[#allocation4 + $0x48] sm:$0x3f] }
 0x686   : > { %v6655_v35 = vpack.c.bf16 %v8162_v44, %v7906_v18  ;;  %6489 = vmatprep.mubr.msk.f32.mxu0 %vm1758_vm4, %v1753_v10 }
 0x688   : > { %6656 = vmatprep.subr.bf16.mxu1 %v6655_v35  ;;  %1505 = vrot.lane.b32.xlu0 %v8139_v27, %s7232_s22 }
 0x689   : > { %1487 = vrot.lane.b32.xlu1 %v8151_v2, %s7234_s13  ;;  %6658 = vmatpush1.bf16.msra.mxu1 %v6657_v32 }
 0x68c   : > { %1521 = vrot.lane.b32.xlu0 %v8139_v27, %s7231_s27 }
 0x68d   : > { %1493 = vrot.lane.b32.xlu1 %v8142_v1, %s7234_s13 }
 0x690   : > { %1537 = vrot.lane.b32.xlu0 %v8139_v27, %s7230_s30 }
 0x691   : > { %1509 = vrot.lane.b32.xlu1 %v8142_v1, %s7232_s22 }
 0x694   : > { %1503 = vrot.lane.b32.xlu0 %v8151_v2, %s7232_s22 }
 0x695   : > { %1525 = vrot.lane.b32.xlu1 %v8142_v1, %s7231_s27 }
 0x698   : > { %1519 = vrot.lane.b32.xlu0 %v8151_v2, %s7231_s27 }
 0x699   : > { %1541 = vrot.lane.b32.xlu1 %v8142_v1, %s7230_s30 }
 0x69c   : > { %1535 = vrot.lane.b32.xlu0 %v8151_v2, %s7230_s30 }
 0x69d   : > { %1491 = vrot.lane.b32.xlu1 %v8162_v44, %s7234_s13 }
 0x6a0   : > { %1551 = vrot.lane.b32.xlu0 %v8151_v2, %s7233_s26 }
 0x6a1   : > { %1507 = vrot.lane.b32.xlu1 %v8162_v44, %s7232_s22 }
 0x6a4   : > { %1567 = vrot.lane.b32.xlu0 %v8151_v2, %s7235_s2 }
 0x6a5   : > { %1523 = vrot.lane.b32.xlu1 %v8162_v44, %s7231_s27 }
 0x6a8   : > { %1555 = vrot.lane.b32.xlu0 %v8162_v44, %s7233_s26 }
 0x6a9   : > { %1539 = vrot.lane.b32.xlu1 %v8162_v44, %s7230_s30 }
 0x6ac   : > { %1571 = vrot.lane.b32.xlu0 %v8162_v44, %s7235_s2 }
 0x6ad   : > { %1557 = vrot.lane.b32.xlu1 %v8142_v1, %s7233_s26 }
 0x6b0   : > { %1583 = vrot.lane.b32.xlu0 %v8151_v2, %s7237_s29 }
 0x6b1   : > { %1569 = vrot.lane.b32.xlu1 %v8139_v27, %s7235_s2 }
 0x6b4   : > { %1587 = vrot.lane.b32.xlu0 %v8162_v44, %s7237_s29 }
 0x6b5   : > { %1573 = vrot.lane.b32.xlu1 %v8142_v1, %s7235_s2 }
 0x6b8   : > { %1599 = vrot.lane.b32.xlu0 %v8151_v2, %s7239_s21 }
 0x6b9   : > { %1585 = vrot.lane.b32.xlu1 %v8139_v27, %s7237_s29 }
 0x6bc   : > { %1601 = vrot.lane.b32.xlu0 %v8139_v27, %s7239_s21 }
 0x6bd   : > { %1589 = vrot.lane.b32.xlu1 %v8142_v1, %s7237_s29 }
 0x6c0   : > { %1755 = vperm.xlu0 %7025, %v8240_v56  }
 0x6c1   : > { %1603 = vrot.lane.b32.xlu1 %v8162_v44, %s7239_s21 }
 0x6c5   : > { %1605 = vrot.lane.b32.xlu1 %v8142_v1, %s7239_s21 }
 0x6f6   : > { %v8243_v48 = vpop.permute.xlu1 %1553  ;;  %v1490_v12 = vpop.permute.xlu0 %1489 }
 0x6fa   : > { %v1506_v3 = vpop.permute.xlu0 %1505 }
 0x6fb   : > { %v1488_v49 = vpop.permute.xlu1 %1487 }
 0x6fe   : > { %v1522_v50 = vpop.permute.xlu0 %1521 }
 0x6ff   : > { %v1494_v35 = vpop.permute.xlu1 %1493 }
 0x700   : > { %v1496_v42 = vsel %vm513_vm5, %v1490_v12, %v1494_v35  ;;  %v1498_v14 = vsel %vm513_vm5, %v1494_v35, %v1490_v12 }
 0x702   : > { %v1538_v32 = vpop.permute.xlu0 %1537 }
 0x703   : > { %v1510_v5 = vpop.permute.xlu1 %1509 }
 0x704   : > { %v1514_v21 = vsel %vm530_vm1, %v1510_v5, %v1506_v3  ;;  %v1512_v56 = vsel %vm530_vm1, %v1506_v3, %v1510_v5  ;;  %v1501_v5 = vmul.f32 %v1498_v14, %v7560_v31  ;;  %v1502_v3 = vmul.f32 %v1496_v42, %v7571_v38 }
 0x705   : > { %v1517_v27 = vmul.f32 %v1514_v21, %v7548_v25  ;;  %v1641_v21 = vrot.slane %v8017_v17, 4 }
 0x706   : > { %v1504_v0 = vpop.permute.xlu0 %1503  ;;  %v1739_v52 = vsel %vm698_vm12, %v1501_v5, %v1619_v47 }
 0x707   : > { %v1526_v9 = vpop.permute.xlu1 %1525 }
 0x708   : > { %v1528_v34 = vsel %vm547_vm2, %v1522_v50, %v1526_v9  ;;  %v1530_v12 = vsel %vm547_vm2, %v1526_v9, %v1522_v50 }
 0x70a   : > { %v1520_v46 = vpop.permute.xlu0 %1519 }
 0x70b   : > { %v1542_v10 = vpop.permute.xlu1 %1541 }
 0x70c   : > { %v1544_v17 = vsel %vm564_vm0, %v1538_v32, %v1542_v10 }
 0x70e   : > { %v8245_v59 = vpop.permute.xlu0 %1535 }
 0x70f   : > { %v1492_v13 = vpop.permute.xlu1 %1491 }
 0x710   : > { %v1495_v36 = vsel %vm513_vm5, %v1488_v49, %v1492_v13  ;;  %v1497_v55 = vsel %vm513_vm5, %v1492_v13, %v1488_v49  ;;  %v1518_v49 = vmul.f32 %v1512_v56, %v7551_v26  ;;  %v1642_v56 = vrot.slane %v8020_v4, 4 }
 0x711   : > { %v1499_v35 = vmul.f32 %v1497_v55, %v7560_v31  ;;  %v1500_v62 = vmul.f32 %v1495_v36, %v7571_v38  ;;  %v1533_v36 = vmul.f32 %v1530_v12, %v7543_v23  ;;  %v8277_v55 = vmul.f32 %v1528_v34, %v7545_v24 }
 0x712   : > { %v1552_v1 = vpop.permute.xlu0 %1551  ;;  %v1740_v12 = vsel %vm698_vm12, %v1502_v3, %v1620_v39  ;;  %v1627_v13 = vrot.slane %v1518_v49, 6 }
 0x713   : > { %v6617_v60 = vpack.c.bf16 %v1499_v35, %v7988_v6  ;;  %v1508_v9 = vpop.permute.xlu1 %1507  ;;  %v6615_v50 = vpack.c.bf16 %v1500_v62, %v7991_v28  ;;  %v1625_v62 = vrot.slane %v1517_v27, 6  ;;  %v1546_v27 = vsel %vm564_vm0, %v1542_v10, %v1538_v32 }
 0x714   : > { %v1511_v14 = vsel %vm530_vm1, %v1504_v0, %v1508_v9  ;;  %v1513_v42 = vsel %vm530_vm1, %v1508_v9, %v1504_v0 }
 0x715   : > { %v1515_v6 = vmul.f32 %v1513_v42, %v7548_v25  ;;  %v1516_v35 = vmul.f32 %v1511_v14, %v7551_v26  ;;  %6616 = vmatprep.subr.bf16.mxu0 %v6615_v50  ;;  %v1647_v42 = vrot.slane %v1533_v36, 4  ;;  %v1649_v14 = vrot.slane %v8277_v55, 4 }
 0x716   : > { %6618 = vmatpush1.bf16.msra.mxu0 %v6617_v60  ;;  %v1568_v34 = vpop.permute.xlu0 %1567 }
 0x717   : > { %v1621_v0 = vrot.slane %v1515_v6, 6  ;;  %v1623_v4 = vrot.slane %v1516_v35, 6  ;;  %v1524_v9 = vpop.permute.xlu1 %1523  ;;  %v1550_v6 = vmul.f32 %v1544_v17, %v7535_v20 }
 0x718   : > { %v1527_v50 = vsel %vm547_vm2, %v1520_v46, %v1524_v9  ;;  %v1529_v60 = vsel %vm547_vm2, %v1524_v9, %v1520_v46 }
 0x719   : > { %v1531_v5 = vmul.f32 %v1529_v60, %v7543_v23  ;;  %v1532_v3 = vmul.f32 %v1527_v50, %v7545_v24  ;;  %v1624_v49 = vsel %vm698_vm12, %v1620_v39, %v1623_v4  ;;  %v1626_v36 = vsel %vm698_vm12, %v1621_v0, %v1625_v62 }
 0x71a   : > { %v1556_v55 = vpop.permute.xlu0 %1555  ;;  %v6619_v35 = vpack.c.bf16 %v1624_v49, %v1740_v12  ;;  %v1622_v28 = vsel %vm698_vm12, %v1619_v47, %v1621_v0  ;;  %v1628_v0 = vsel %vm698_vm12, %v1623_v4, %v1627_v13  ;;  %v1549_v50 = vmul.f32 %v1546_v27, %v7533_v19 }
 0x71b   : > { %v1643_v38 = vrot.slane %v1531_v5, 4  ;;  %v1645_v31 = vrot.slane %v1532_v3, 4  ;;  %v1559_v46 = vsel %vm581_vm3, %v1552_v1, %v1556_v55  ;;  %v1561_v32 = vsel %vm581_vm3, %v1556_v55, %v1552_v1  ;;  %v1540_v10 = vpop.permute.xlu1 %1539 }
 0x71c   : > { %v8310_v9 = vmul.f32 %v1559_v46, %v7554_v29  ;;  %v1564_v39 = vmul.f32 %v1561_v32, %v7556_v30  ;;  %v1543_v62 = vsel %vm564_vm0, %v8245_v59, %v1540_v10  ;;  %v1545_v47 = vsel %vm564_vm0, %v1540_v10, %v8245_v59  ;;  %6620 = vmatprep.subr.bf16.mxu0 %v6619_v35 }
 0x71d   : > { %v1547_v12 = vmul.f32 %v1545_v47, %v7533_v19  ;;  %v1548_v17 = vmul.f32 %v1543_v62, %v7535_v20  ;;  %v6621_v1 = vpack.c.bf16 %v1622_v28, %v1739_v52  ;;  %v1669_v60 = vrot.slane %v1550_v6, 2 }
 0x71e   : > { %v1572_v5 = vpop.permute.xlu0 %1571  ;;  %v1646_v3 = vsel %vm692_vm6, %v1642_v56, %v1645_v31  ;;  %v1741_v49 = vsel %vm692_vm6, %v1626_v36, %v1641_v21  ;;  %v1648_v55 = vsel %vm692_vm6, %v1643_v38, %v1647_v42  ;;  %v1683_v59 = vrot.slane %v8310_v9, 6 }
 0x71f   : > { %v1685_v35 = vrot.slane %v1564_v39, 6  ;;  %v1665_v46 = vrot.slane %v1548_v17, 2  ;;  %6622 = vmatpush1.bf16.msra.mxu0 %v6621_v1  ;;  %v1558_v32 = vpop.permute.xlu1 %1557  ;;  %v1663_v10 = vrot.slane %v1547_v12, 2  ;;  %v1742_v28 = vsel %vm692_vm6, %v1628_v0, %v1642_v56 }
 0x720   : > { %v1560_v52 = vsel %vm581_vm3, %v8243_v48, %v1558_v32  ;;  %v1562_v13 = vsel %vm581_vm3, %v1558_v32, %v8243_v48  ;;  %v6623_v27 = vpack.c.bf16 %v1646_v3, %v1742_v28  ;;  %v1644_v6 = vsel %vm692_vm6, %v1641_v21, %v1643_v38 }
 0x721   : > { %v1565_v4 = vmul.f32 %v1560_v52, %v7554_v29  ;;  %v1566_v42 = vmul.f32 %v1562_v13, %v7556_v30  ;;  %v1575_v36 = vsel %vm598_vm9, %v1568_v34, %v1572_v5  ;;  %v1577_v9 = vsel %vm598_vm9, %v1572_v5, %v1568_v34 }
 0x722   : > { %v6625_v39 = vpack.c.bf16 %v1644_v6, %v1741_v49  ;;  %v1584_v62 = vpop.permute.xlu0 %1583  ;;  %v1650_v47 = vsel %vm692_vm6, %v1645_v31, %v1649_v14  ;;  %6624 = vmatprep.subr.bf16.mxu0 %v6623_v27  ;;  %v11136_v17 = vrot.slane %v8014_v33, 2  ;;  %v11138_v34 = vrot.slane %v8011_v63, 2 }
 0x723   : > { %v1687_v48 = vrot.slane %v1565_v4, 6  ;;  %v1689_v12 = vrot.slane %v1566_v42, 6  ;;  %v1570_v56 = vpop.permute.xlu1 %1569  ;;  %v1670_v3 = vsel %vm686_vm11, %v1665_v46, %v1669_v60  ;;  %v1704_v49 = vrot.slane %v8093_v40, 4 }
 0x724   : > { %v1666_v1 = vsel %vm686_vm11, %v11136_v17, %v1665_v46  ;;  %v11137_v38 = vmov %v11136_v17  ;;  %6626 = vmatpush1.bf16.msra.mxu0 %v6625_v39  ;;  %v1664_v5 = vsel %vm686_vm11, %v11138_v34, %v1663_v10  ;;  %v11139_v31 = vmov %v11138_v34 }
 0x725   : > { %v1744_v21 = vsel %vm686_vm11, %v1650_v47, %v11137_v38  ;;  %v1743_v14 = vsel %vm686_vm11, %v1648_v55, %v11139_v31  ;;  %v1667_v32 = vrot.slane %v1549_v50, 2  ;;  %v1688_v52 = vsel %vm698_vm12, %v1683_v59, %v1687_v48 }
 0x726   : > { %v6627_v0 = vpack.c.bf16 %v1666_v1, %v1744_v21  ;;  %v6629_v33 = vpack.c.bf16 %v1664_v5, %v1743_v14  ;;  %v1579_v13 = vmul.f32 %v1575_v36, %v7595_v57  ;;  %v1580_v28 = vmul.f32 %v1577_v9, %v7598_v58  ;;  %v1588_v63 = vpop.permute.xlu0 %1587 }
 0x727   : > { %v1690_v4 = vsel %vm698_vm12, %v1685_v35, %v1689_v12  ;;  %v6631_v42 = vpack.c.bf16 %v7906_v18, %v1670_v3  ;;  %v1574_v27 = vpop.permute.xlu1 %1573  ;;  %v1668_v55 = vsel %vm686_vm11, %v1663_v10, %v1667_v32  ;;  %v11140_v40 = vrot.slane %v8090_v45, 4 }
 0x728   : > { %6628 = vmatprep.subr.bf16.mxu0 %v6627_v0  ;;  %v1748_v60 = vsel %vm692_vm6, %v1690_v4, %v1704_v49  ;;  %v1576_v46 = vsel %vm598_vm9, %v1570_v56, %v1574_v27  ;;  %v1578_v6 = vsel %vm598_vm9, %v1574_v27, %v1570_v56  ;;  %v11141_v36 = vrot.slane %v8048_v37, 6 }
 0x729   : > { %v1747_v50 = vsel %vm692_vm6, %v1688_v52, %v11140_v40  ;;  %6630 = vmatpush1.bf16.msra.mxu0 %v6629_v33  ;;  %v11142_v9 = vrot.slane %v8045_v51, 6  ;;  %v1581_v39 = vmul.f32 %v1576_v46, %v7595_v57  ;;  %v1582_v47 = vmul.f32 %v1578_v6, %v7598_v58 }
 0x72a   : > { %v1686_v18 = vsel %vm698_vm12, %v11141_v36, %v1685_v35  ;;  %6632 = vmatprep.subr.bf16.mxu0 %v6631_v42  ;;  %v1705_v17 = vrot.slane %v1579_v13, 4  ;;  %v1707_v1 = vrot.slane %v1580_v28, 4  ;;  %v1593_v56 = vsel %vm615_vm10, %v1588_v63, %v1584_v62 }
 0x72b   : > { %v1684_v10 = vsel %vm698_vm12, %v11142_v9, %v1683_v59  ;;  %v6639_v48 = vpack.c.bf16 %v1748_v60, %v1686_v18  ;;  %v6633_v37 = vpack.c.bf16 %v7875_v41, %v1668_v55  ;;  %v1709_v38 = vrot.slane %v1581_v39, 4  ;;  %v1586_v21 = vpop.permute.xlu1 %1585 }
 0x72c   : > { %v6641_v12 = vpack.c.bf16 %v1747_v50, %v1684_v10  ;;  %v1711_v35 = vrot.slane %v1582_v47, 4  ;;  %v1723_v51 = vrot.slane %v8087_v61, 2  ;;  %v1724_v59 = vrot.slane %v8067_v8, 2 }
 0x72d   : > { %v1591_v0 = vsel %vm615_vm10, %v1584_v62, %v1588_v63  ;;  %6634 = vmatpush1.bf16.msra.mxu0 %v6633_v37  ;;  %v1596_v34 = vmul.f32 %v1593_v56, %v7619_v16  ;;  %v1710_v5 = vsel %vm692_vm6, %v1705_v17, %v1709_v38  ;;  %v11143_v31 = vpack.c.bf16 %v8168_v43, %v8162_v44  ;;  %v1600_v63 = vpop.permute.xlu0 %1599  ;;  %v1752_v38 = vld [vmem:[#allocation4 + $0x40] sm:$0x3f] }
 0x72e   : > { %v1712_v41 = vsel %vm692_vm6, %v1707_v1, %v1711_v35  ;;  %v1708_v14 = vsel %vm692_vm6, %v1704_v49, %v1707_v1  ;;  %v11144_v8 = vmov %v11140_v40  ;;  %v1749_v62 = vsel %vm686_vm11, %v1710_v5, %v1723_v51  ;;  %v8427_v35 = vld [vmem:[#allocation9] sm:$0x3f] }
 0x72f   : > { %6636 = vmatprep.subr.bf16.mxu0 %v11143_v31  ;;  %v1750_v61 = vsel %vm686_vm11, %v1712_v41, %v1724_v59  ;;  %v1706_v3 = vsel %vm692_vm6, %v11144_v8, %v1705_v17  ;;  %v1595_v32 = vmul.f32 %v1591_v0, %v7616_v15  ;;  %v1590_v52 = vpop.permute.xlu1 %1589  ;;  %v11145_v44 = vpack.c.bf16 %v8157_v22, %v8151_v2  ;;  %v11146_v17 = vld [vmem:[#allocation24_spill] sm:$0xff] }
 0x730   : > { %v6643_v33 = vpack.c.bf16 %v1750_v61, %v1708_v14  ;;  %v6645_v13 = vpack.c.bf16 %v1749_v62, %v1706_v3  ;;  %v1592_v43 = vsel %vm615_vm10, %v1586_v21, %v1590_v52  ;;  %v1594_v49 = vsel %vm615_vm10, %v1590_v52, %v1586_v21  ;;  %1852 = vperm.xlu1 %7026, %v8427_v35   ;;  %v11147_v61 = vld [vmem:[#allocation26_spill] sm:$0xff]  ;;  %v1849_v3 = vld [vmem:[#allocation7] sm:$0x3f]  ;;  %v11148_v62 = vld [vmem:[#allocation25_spill] sm:$0xff] }
 0x731   : > { %6638 = vmatpush1.bf16.msra.mxu0 %v11145_v44  ;;  %v1727_v45 = vrot.slane %v1596_v34, 2  ;;  %v1597_v28 = vmul.f32 %v1592_v43, %v7616_v15  ;;  %v1598_v4 = vmul.f32 %v1594_v49, %v7619_v16  ;;  %v1725_v42 = vrot.slane %v1595_v32, 2 }
 0x732   : > { %6640 = vmatprep.subr.bf16.mxu0 %v6639_v48  ;;  %v1602_v48 = vpop.permute.xlu0 %1601  ;;  %v11149_v52 = vmov 0.0  }
 0x733   : > { %v1729_v27 = vrot.slane %v1597_v28, 2  ;;  %v1731_v55 = vrot.slane %v1598_v4, 2  ;;  %v1604_v60 = vpop.permute.xlu1 %1603  ;;  %v1728_v40 = vsel %vm686_vm11, %v1724_v59, %v1727_v45  ;;  %v1726_v18 = vsel %vm686_vm11, %v1723_v51, %v1725_v42  ;;  %v11152_v4 = vld [vmem:[#allocation22_spill] sm:$0xff] }
 0x734   : > { %v1609_v2 = vsel %vm632_vm13, %v1604_v60, %v1600_v63  ;;  %v1607_v36 = vsel %vm632_vm13, %v1600_v63, %v1604_v60  ;;  %v7245_v63 = vmov 5  }
 0x735   : > { %6642 = vmatpush1.bf16.msra.mxu0 %v6641_v12  ;;  %v1612_v22 = vmul.f32 %v1609_v2, %v7646_v54  ;;  %v1732_v50 = vsel %vm686_vm11, %v1727_v45, %v1731_v55  ;;  %v1730_v46 = vsel %vm686_vm11, %v1725_v42, %v1729_v27  ;;  %v1611_v47 = vmul.f32 %v1607_v36, %v7643_v53  ;;  %v11150_v45 = vld [vmem:[#allocation21_spill] sm:$0xff]  ;;  %v11154_v27 = vld [vmem:[#allocation27_spill] sm:$0xff] }
 0x736   : > { %6644 = vmatprep.subr.bf16.mxu0 %v6643_v33  ;;  %v6647_v6 = vpack.c.bf16 %v1732_v50, %v1728_v40  ;;  %v6649_v9 = vpack.c.bf16 %v1730_v46, %v1726_v18  ;;  %7027 = vset.pattern.permute.xlu1 %v7245_v63  ;;  %v11155_v55 = vmov 1  }
 0x737   : > { %v1606_v10 = vpop.permute.xlu1 %1605  ;;  %v6651_v39 = vpack.c.bf16 %v1612_v22, %v8116_v11  ;;  %v6653_v1 = vpack.c.bf16 %v1611_v47, %v11146_v17 }
 0x738   : > { %v1610_v12 = vsel %vm632_vm13, %v1606_v10, %v1602_v48  ;;  %v1608_v56 = vsel %vm632_vm13, %v1602_v48, %v1606_v10 }
 0x739   : > { %6646 = vmatpush1.bf16.msra.mxu0 %v6645_v13  ;;  %v1614_v37 = vmul.f32 %v1610_v12, %v7646_v54  ;;  %v1613_v11 = vmul.f32 %v1608_v56, %v7643_v53 }
 0x73a   : > { %6648 = vmatprep.subr.bf16.mxu0 %v6647_v6 }
 0x73d   : > { %6650 = vmatpush1.bf16.msra.mxu0 %v6649_v9 }
 0x73e   : > { %6652 = vmatprep.subr.bf16.mxu0 %v6651_v39 }
 0x73f   : > { %v1756_v21 = vpop.permute.xlu0 %1755 }
 0x741   : > { %6654 = vmatpush1.bf16.msra.mxu0 %v6653_v1 }
 0x742   : > { %6487 = vmatprep.subr.msk.mxu0 %vm698_vm12, %v1614_v37 }
 0x745   : > { %6488 = vmatpush1.msk.msra.mxu0 %vm698_vm12, %v1613_v11 }
 0x746   : > { %1833 = vmatmul.mubr.f32.vlgmr.msra.gmra.mrb[4].mxu0 %v1752_v38  ;;  %v11156_v38 = vld [vmem:[#allocation15_spill] sm:$0xff] }
 0x7af   : > { %v1853_v33 = vpop.permute.xlu1 %1852 }
 0x819   : > { %v1834_v51 = vpop.f32.mrb[4].mxu0 }
 0x81a   : > { %v1835_v59 = vadd.f32 %v1834_v51, %v1756_v21  ;;  %v1836_v0 = vpop.f32.mrb[5].mxu0  ;;  %v11157_v51 = vld [vmem:[#allocation16_spill] sm:$0xff] }
 0x81b   : > { %v1837_v34 = vadd.f32 %v1836_v0, %v1756_v21 }
 0x81c   : > { %v1839_v5 = vmax.f32 %v1835_v59, 0.0 }
 0x81d   : > { %v1840_v31 = vmax.f32 %v1837_v34, 0.0 }
 0x81e   : > { %v1843_v41 = vrot.slane %v1839_v5, 6 }
 0x81f   : > { %v1844_v14 = vrot.slane %v1840_v31, 6 }
 0x820   : > { %v1847_v32 = vsel %vm698_vm12, %v11148_v62, %v1843_v41 }
 0x821   : > { %v1848_v8 = vsel %vm698_vm12, %v11147_v61, %v1844_v14 }
 0x822   : > { %1863 = vmatprep.subr.mxu1 %v1848_v8 }
 0x823   : > { %1864 = vmatpush1.msra.mxu1 %v1847_v32 }
 0x824   : > { %6490 = vmatmul.mubr.msk.f32.vlgmr.msra.gmra.mrb[4].mxu1 %vm1855_vm7, %v1849_v3 }
 0x825   : > { %2123 = vmatprep.mubr.f32.mxu1 %v11149_v52 }
 0x8f7   : > { %v1925_v13 = vpop.f32.mrb[4].mxu1 }
 0x8f8   : > { %v1926_v44 = vadd.f32 %v1925_v13, %v1853_v33  ;;  %v1927_v43 = vpop.f32.mrb[5].mxu1 }
 0x8f9   : > { %v1928_v49 = vadd.f32 %v1927_v43, %v1853_v33 }
 0x8fa   : > { %v8437_v28 = vadd.f32 %v1926_v44, %v11150_v45 }
 0x8fb   : > { %v8440_v42 = vadd.f32 %v1928_v49, %v11152_v4 }
 0x8fc   : > { %11151 = vst [vmem:[#allocation24_spill] sm:$0xff] %v8437_v28  ;;  %1940 = vrot.lane.b32.xlu1 %v8437_v28, %s7232_s22 }
 0x8fd   : > { %11153 = vst [vmem:[#allocation26_spill] sm:$0xff] %v8440_v42  ;;  %1942 = vrot.lane.b32.xlu0 %v8440_v42, %s7232_s22 }
 0x900   : > { %1948 = vrot.lane.b32.xlu1 %v8437_v28, %s7231_s27 }
 0x901   : > { %1950 = vrot.lane.b32.xlu0 %v8440_v42, %s7231_s27 }
 0x904   : > { %1932 = vrot.lane.b32.xlu1 %v8437_v28, %s7234_s13 }
 0x905   : > { %1934 = vrot.lane.b32.xlu0 %v8440_v42, %s7234_s13 }
 0x908   : > { %1956 = vrot.lane.b32.xlu1 %v8437_v28, %s7230_s30 }
 0x909   : > { %1958 = vrot.lane.b32.xlu0 %v8440_v42, %s7230_s30 }
 0x90c   : > { %1964 = vrot.lane.b32.xlu1 %v8437_v28, %s7233_s26 }
 0x90d   : > { %1966 = vrot.lane.b32.xlu0 %v8440_v42, %s7233_s26 }
 0x910   : > { %1972 = vrot.lane.b32.xlu1 %v8437_v28, %s7235_s2 }
 0x911   : > { %1974 = vrot.lane.b32.xlu0 %v8440_v42, %s7235_s2 }
 0x914   : > { %1980 = vrot.lane.b32.xlu1 %v8437_v28, %s7237_s29 }
 0x915   : > { %1982 = vrot.lane.b32.xlu0 %v8440_v42, %s7237_s29 }
 0x918   : > { %1988 = vrot.lane.b32.xlu1 %v8437_v28, %s7239_s21 }
 0x919   : > { %1990 = vrot.lane.b32.xlu0 %v8440_v42, %s7239_s21 }
 0x91c   : > { %2047 = vperm.xlu1 %7027, %v11154_v27  }
 0x920   : > { %7030 = vset.pattern.permute.xlu1 %v11155_v55 }
 0x96e   : > { %v1941_v60 = vpop.permute.xlu1 %1940 }
 0x96f   : > { %v1943_v2 = vpop.permute.xlu0 %1942 }
 0x970   : > { %v1944_v22 = vsel %vm530_vm1, %v1941_v60, %v1943_v2  ;;  %v1945_v40 = vsel %vm530_vm1, %v1943_v2, %v1941_v60 }
 0x971   : > { %v1946_v18 = vmul.f32 %v1945_v40, %v7548_v25  ;;  %v1947_v9 = vmul.f32 %v1944_v22, %v7551_v26 }
 0x972   : > { %v1949_v50 = vpop.permute.xlu1 %1948 }
 0x973   : > { %v1951_v46 = vpop.permute.xlu0 %1950  ;;  %v1998_v37 = vrot.slane %v1946_v18, 2  ;;  %v1999_v11 = vrot.slane %v1947_v9, 2 }
 0x974   : > { %v1952_v6 = vsel %vm547_vm2, %v1949_v50, %v1951_v46  ;;  %v1953_v36 = vsel %vm547_vm2, %v1951_v46, %v1949_v50 }
 0x975   : > { %v1954_v10 = vmul.f32 %v1953_v36, %v7543_v23  ;;  %v1955_v39 = vmul.f32 %v1952_v6, %v7545_v24 }
 0x976   : > { %v1933_v47 = vpop.permute.xlu1 %1932 }
 0x977   : > { %v2004_v48 = vrot.slane %v1954_v10, 4  ;;  %v2005_v12 = vrot.slane %v1955_v39, 4  ;;  %v1935_v17 = vpop.permute.xlu0 %1934 }
 0x978   : > { %v1936_v1 = vsel %vm513_vm5, %v1933_v47, %v1935_v17  ;;  %v1937_v56 = vsel %vm513_vm5, %v1935_v17, %v1933_v47 }
 0x979   : > { %v1938_v21 = vmul.f32 %v1937_v56, %v11156_v38  ;;  %v1939_v59 = vmul.f32 %v1936_v1, %v11157_v51  ;;  %v2035_v31 = vsel %vm692_vm6, %v1999_v11, %v2005_v12  ;;  %v2034_v14 = vsel %vm692_vm6, %v1998_v37, %v2004_v48 }
 0x97a   : > { %v1957_v0 = vpop.permute.xlu1 %1956 }
 0x97b   : > { %v1959_v34 = vpop.permute.xlu0 %1958  ;;  %v2033_v5 = vsel %vm686_vm11, %v1939_v59, %v1999_v11  ;;  %v2032_v41 = vsel %vm686_vm11, %v1938_v21, %v1998_v37 }
 0x97c   : > { %v1960_v61 = vsel %vm564_vm0, %v1957_v0, %v1959_v34  ;;  %v1961_v8 = vsel %vm564_vm0, %v1959_v34, %v1957_v0  ;;  %v6659_v3 = vpack.c.bf16 %v2035_v31, %v2033_v5  ;;  %v6661_v62 = vpack.c.bf16 %v2034_v14, %v2032_v41 }
 0x97d   : > { %v1962_v32 = vmul.f32 %v1961_v8, %v7533_v19  ;;  %v1963_v33 = vmul.f32 %v1960_v61, %v7535_v20 }
 0x97e   : > { %6660 = vmatprep.subr.bf16.mxu1 %v6659_v3  ;;  %v1965_v13 = vpop.permute.xlu1 %1964 }
 0x97f   : > { %v1967_v44 = vpop.permute.xlu0 %1966  ;;  %6662 = vmatpush1.bf16.msra.mxu1 %v6661_v62  ;;  %v2010_v43 = vrot.slane %v1962_v32, 6  ;;  %v2011_v49 = vrot.slane %v1963_v33, 6 }
 0x980   : > { %v1968_v45 = vsel %vm581_vm3, %v1965_v13, %v1967_v44  ;;  %v1969_v4 = vsel %vm581_vm3, %v1967_v44, %v1965_v13 }
 0x981   : > { %v1970_v63 = vmul.f32 %v1968_v45, %v7554_v29  ;;  %v1971_v60 = vmul.f32 %v1969_v4, %v7556_v30  ;;  %v2037_v36 = vsel %vm698_vm12, %v2005_v12, %v2011_v49  ;;  %v2036_v18 = vsel %vm698_vm12, %v2004_v48, %v2010_v43  ;;  %v2045_v49 = vld [vmem:[#allocation4 + $0x50] sm:$0x3f] }
 0x982   : > { %v1973_v2 = vpop.permute.xlu1 %1972 }
 0x983   : > { %v2016_v22 = vrot.slane %v1970_v63, 2  ;;  %v2017_v40 = vrot.slane %v1971_v60, 2  ;;  %v1975_v50 = vpop.permute.xlu0 %1974 }
 0x984   : > { %v1976_v46 = vsel %vm598_vm9, %v1973_v2, %v1975_v50  ;;  %v1977_v6 = vsel %vm598_vm9, %v1975_v50, %v1973_v2 }
 0x985   : > { %v1978_v9 = vmul.f32 %v1976_v46, %v7595_v57  ;;  %v1979_v10 = vmul.f32 %v1977_v6, %v7598_v58  ;;  %v2039_v39 = vsel %vm686_vm11, %v8440_v42, %v2017_v40  ;;  %v2038_v47 = vsel %vm686_vm11, %v8437_v28, %v2016_v22 }
 0x986   : > { %v1981_v17 = vpop.permute.xlu1 %1980  ;;  %v6663_v1 = vpack.c.bf16 %v2039_v39, %v2037_v36  ;;  %v6665_v56 = vpack.c.bf16 %v2038_v47, %v2036_v18  ;;  %v7246_v18 = vmov 6  }
 0x987   : > { %v1983_v37 = vpop.permute.xlu0 %1982  ;;  %v2023_v11 = vrot.slane %v1979_v10, 4  ;;  %v2022_v21 = vrot.slane %v1978_v9, 4  ;;  %7028 = vset.pattern.permute.xlu0 %v7246_v18 }
 0x988   : > { %v1984_v12 = vsel %vm615_vm10, %v1981_v17, %v1983_v37  ;;  %v1985_v48 = vsel %vm615_vm10, %v1983_v37, %v1981_v17  ;;  %6664 = vmatprep.subr.bf16.mxu1 %v6663_v1 }
 0x989   : > { %v1986_v59 = vmul.f32 %v1984_v12, %v7616_v15  ;;  %v1987_v0 = vmul.f32 %v1985_v48, %v7619_v16  ;;  %6666 = vmatpush1.bf16.msra.mxu1 %v6665_v56  ;;  %v2041_v14 = vsel %vm692_vm6, %v2017_v40, %v2023_v11  ;;  %v2040_v3 = vsel %vm692_vm6, %v2016_v22, %v2022_v21 }
 0x98a   : > { %v1989_v34 = vpop.permute.xlu1 %1988 }
 0x98b   : > { %v2028_v5 = vrot.slane %v1986_v59, 6  ;;  %v2029_v31 = vrot.slane %v1987_v0, 6  ;;  %v1991_v41 = vpop.permute.xlu0 %1990 }
 0x98c   : > { %v1993_v61 = vsel %vm632_vm13, %v1991_v41, %v1989_v34  ;;  %v1992_v13 = vsel %vm632_vm13, %v1989_v34, %v1991_v41 }
 0x98d   : > { %v2043_v8 = vsel %vm698_vm12, %v2023_v11, %v2029_v31  ;;  %v2042_v62 = vsel %vm698_vm12, %v2022_v21, %v2028_v5  ;;  %v1995_v44 = vmul.f32 %v1993_v61, %v7646_v54  ;;  %v1994_v43 = vmul.f32 %v1992_v13, %v7643_v53 }
 0x98e   : > { %v6667_v32 = vpack.c.bf16 %v2043_v8, %v2041_v14  ;;  %v6669_v33 = vpack.c.bf16 %v2042_v62, %v2040_v3 }
 0x990   : > { %6668 = vmatprep.subr.bf16.mxu1 %v6667_v32 }
 0x991   : > { %6670 = vmatpush1.bf16.msra.mxu1 %v6669_v33 }
 0x992   : > { %6491 = vmatprep.subr.msk.mxu1 %vm686_vm11, %v1995_v44 }
 0x995   : > { %6492 = vmatpush1.msk.msra.mxu1 %vm686_vm11, %v1994_v43 }
 0x996   : > { %6493 = vmatmul.mubr.msk.f32.vlgmr.msra.gmra.mrb[6].mxu1 %vm909_vm8, %v2045_v49 }
 0x997   : > { %2411 = vmatprep.mubr.f32.mxu1 %v11149_v52 }
 0x99b   : > { %v2048_v45 = vpop.permute.xlu1 %2047 }
 0xa69   : > { %v2125_v4 = vpop.f32.mrb[6].mxu1 }
 0xa6a   : > { %v2126_v63 = vadd.f32 %v2125_v4, %v2048_v45  ;;  %v2127_v60 = vpop.f32.mrb[7].mxu1 }
 0xa6b   : > { %v2128_v2 = vadd.f32 %v2127_v60, %v2048_v45 }
 0xa6c   : > { %v2130_v22 = vmax.f32 %v2126_v63, 0.0 }
 0xa6d   : > { %v2131_v50 = vmax.f32 %v2128_v2, 0.0 }
 0xa6e   : > { %v8542_v40 = vrot.slane %v2130_v22, 2 }
 0xa6f   : > { %v8548_v46 = vrot.slane %v2131_v50, 2 }
 0xa70   : > { %2190 = vrot.lane.b32.xlu1 %v8542_v40, %s7230_s30  ;;  %2142 = vrot.lane.b32.xlu0 %v8542_v40, %s7234_s13  ;;  %v8565_v6 = vsel %vm686_vm11, %v8437_v28, %v8542_v40 }
 0xa71   : > { %v8578_v36 = vsel %vm686_vm11, %v8440_v42, %v8548_v46 }
 0xa74   : > { %2146 = vrot.lane.b32.xlu1 %v8548_v46, %s7234_s13  ;;  %2158 = vrot.lane.b32.xlu0 %v8542_v40, %s7232_s22 }
 0xa78   : > { %2162 = vrot.lane.b32.xlu1 %v8548_v46, %s7232_s22  ;;  %2174 = vrot.lane.b32.xlu0 %v8542_v40, %s7231_s27 }
 0xa7c   : > { %2194 = vrot.lane.b32.xlu1 %v8548_v46, %s7230_s30  ;;  %2206 = vrot.lane.b32.xlu0 %v8542_v40, %s7233_s26 }
 0xa80   : > { %2178 = vrot.lane.b32.xlu1 %v8548_v46, %s7231_s27  ;;  %2156 = vrot.lane.b32.xlu0 %v8565_v6, %s7232_s22 }
 0xa84   : > { %2210 = vrot.lane.b32.xlu1 %v8548_v46, %s7233_s26  ;;  %2140 = vrot.lane.b32.xlu0 %v8565_v6, %s7234_s13 }
 0xa88   : > { %2160 = vrot.lane.b32.xlu1 %v8578_v36, %s7232_s22  ;;  %2172 = vrot.lane.b32.xlu0 %v8565_v6, %s7231_s27 }
 0xa8c   : > { %2144 = vrot.lane.b32.xlu1 %v8578_v36, %s7234_s13  ;;  %2188 = vrot.lane.b32.xlu0 %v8565_v6, %s7230_s30 }
 0xa90   : > { %2176 = vrot.lane.b32.xlu1 %v8578_v36, %s7231_s27  ;;  %2204 = vrot.lane.b32.xlu0 %v8565_v6, %s7233_s26 }
 0xa94   : > { %2238 = vrot.lane.b32.xlu1 %v8542_v40, %s7237_s29  ;;  %2220 = vrot.lane.b32.xlu0 %v8565_v6, %s7235_s2 }
 0xa98   : > { %2242 = vrot.lane.b32.xlu1 %v8548_v46, %s7237_s29  ;;  %2192 = vrot.lane.b32.xlu0 %v8578_v36, %s7230_s30 }
 0xa9c   : > { %2208 = vrot.lane.b32.xlu1 %v8578_v36, %s7233_s26  ;;  %2236 = vrot.lane.b32.xlu0 %v8565_v6, %s7237_s29 }
 0xaa0   : > { %2226 = vrot.lane.b32.xlu1 %v8548_v46, %s7235_s2  ;;  %2222 = vrot.lane.b32.xlu0 %v8542_v40, %s7235_s2 }
 0xaa4   : > { %2224 = vrot.lane.b32.xlu1 %v8578_v36, %s7235_s2  ;;  %2240 = vrot.lane.b32.xlu0 %v8578_v36, %s7237_s29 }
 0xaa8   : > { %2254 = vrot.lane.b32.xlu1 %v8542_v40, %s7239_s21  ;;  %2252 = vrot.lane.b32.xlu0 %v8565_v6, %s7239_s21 }
 0xaac   : > { %2258 = vrot.lane.b32.xlu1 %v8548_v46, %s7239_s21  ;;  %2256 = vrot.lane.b32.xlu0 %v8578_v36, %s7239_s21 }
 0xab0   : > { %2335 = vperm.xlu0 %7028, %v11154_v27  }
 0xae2   : > { %v2191_v9 = vpop.permute.xlu1 %2190  ;;  %v2143_v10 = vpop.permute.xlu0 %2142 }
 0xae6   : > { %v2147_v39 = vpop.permute.xlu1 %2146  ;;  %v2159_v47 = vpop.permute.xlu0 %2158 }
 0xae7   : > { %v2149_v34 = vsel %vm513_vm5, %v2143_v10, %v2147_v39  ;;  %v2151_v27 = vsel %vm513_vm5, %v2147_v39, %v2143_v10 }
 0xae8   : > { %v2154_v3 = vmul.f32 %v2151_v27, %v11156_v38  ;;  %v2155_v62 = vmul.f32 %v2149_v34, %v11157_v51 }
 0xaea   : > { %v2163_v17 = vpop.permute.xlu1 %2162  ;;  %v2175_v1 = vpop.permute.xlu0 %2174 }
 0xaeb   : > { %v2165_v41 = vsel %vm530_vm1, %v2159_v47, %v2163_v17  ;;  %v2167_v14 = vsel %vm530_vm1, %v2163_v17, %v2159_v47 }
 0xaec   : > { %v2170_v43 = vmul.f32 %v2167_v14, %v7548_v25  ;;  %v2171_v49 = vmul.f32 %v2165_v41, %v7551_v26 }
 0xaee   : > { %v2195_v56 = vpop.permute.xlu1 %2194  ;;  %v8621_v37 = vpop.permute.xlu0 %2206  ;;  %v2274_v47 = vrot.slane %v2170_v43, 4  ;;  %v2276_v17 = vrot.slane %v2171_v49, 4 }
 0xaef   : > { %v2199_v41 = vsel %vm564_vm0, %v2195_v56, %v2191_v9 }
 0xaf2   : > { %v2179_v11 = vpop.permute.xlu1 %2178  ;;  %v2157_v12 = vpop.permute.xlu0 %2156 }
 0xaf3   : > { %v2181_v49 = vsel %vm547_vm2, %v2175_v1, %v2179_v11 }
 0xaf6   : > { %v8623_v48 = vpop.permute.xlu1 %2210  ;;  %v2141_v21 = vpop.permute.xlu0 %2140 }
 0xafa   : > { %v2161_v59 = vpop.permute.xlu1 %2160  ;;  %v2173_v0 = vpop.permute.xlu0 %2172 }
 0xafb   : > { %v2164_v5 = vsel %vm530_vm1, %v2157_v12, %v2161_v59  ;;  %v2166_v31 = vsel %vm530_vm1, %v2161_v59, %v2157_v12 }
 0xafc   : > { %v8638_v61 = vmul.f32 %v2166_v31, %v7548_v25  ;;  %v8641_v8 = vmul.f32 %v2164_v5, %v7551_v26  ;;  %v2197_v31 = vsel %vm564_vm0, %v2191_v9, %v2195_v56 }
 0xafe   : > { %v2272_v32 = vrot.slane %v8638_v61, 4  ;;  %v2273_v33 = vrot.slane %v8641_v8, 4  ;;  %v2145_v13 = vpop.permute.xlu1 %2144  ;;  %v2189_v44 = vpop.permute.xlu0 %2188 }
 0xaff   : > { %v2148_v45 = vsel %vm513_vm5, %v2141_v21, %v2145_v13  ;;  %v2150_v4 = vsel %vm513_vm5, %v2145_v13, %v2141_v21  ;;  %v2202_v13 = vmul.f32 %v2199_v41, %v7533_v19 }
 0xb00   : > { %v8654_v63 = vmul.f32 %v2150_v4, %v11156_v38  ;;  %v8657_v60 = vmul.f32 %v2148_v45, %v11157_v51  ;;  %v2324_v2 = vsel %vm692_vm6, %v2154_v3, %v2272_v32  ;;  %v2325_v22 = vsel %vm692_vm6, %v2155_v62, %v2273_v33 }
 0xb01   : > { %v2275_v27 = vsel %vm692_vm6, %v2272_v32, %v2274_v47  ;;  %v2277_v5 = vsel %vm692_vm6, %v2273_v33, %v2276_v17  ;;  %v2203_v32 = vmul.f32 %v2197_v31, %v7535_v20  ;;  %v2183_v45 = vsel %vm547_vm2, %v2179_v11, %v2175_v1 }
 0xb02   : > { %v6673_v50 = vpack.c.bf16 %v2324_v2, %v8654_v63  ;;  %v2177_v18 = vpop.permute.xlu1 %2176  ;;  %v2205_v10 = vpop.permute.xlu0 %2204  ;;  %v6671_v39 = vpack.c.bf16 %v2325_v22, %v8657_v60  ;;  %v2213_v4 = vsel %vm581_vm3, %v8621_v37, %v8623_v48  ;;  %v2215_v1 = vsel %vm581_vm3, %v8623_v48, %v8621_v37 }
 0xb03   : > { %v2180_v12 = vsel %vm547_vm2, %v2173_v0, %v2177_v18  ;;  %v2182_v21 = vsel %vm547_vm2, %v2177_v18, %v2173_v0  ;;  %v2290_v18 = vrot.slane %v2203_v32, 4 }
 0xb04   : > { %v8668_v59 = vmul.f32 %v2182_v21, %v7543_v23  ;;  %v8671_v34 = vmul.f32 %v2180_v12, %v7545_v24  ;;  %6672 = vmatprep.subr.bf16.mxu1 %v6671_v39  ;;  %v2187_v39 = vmul.f32 %v2181_v49, %v7545_v24  ;;  %v2186_v12 = vmul.f32 %v2183_v45, %v7543_v23 }
 0xb05   : > { %6674 = vmatpush1.bf16.msra.mxu1 %v6673_v50  ;;  %v2288_v50 = vrot.slane %v2202_v13, 4  ;;  %v2218_v21 = vmul.f32 %v2213_v4, %v7554_v29 }
 0xb06   : > { %v6677_v0 = vpack.c.bf16 %v8668_v59, %v2275_v27  ;;  %v2239_v14 = vpop.permute.xlu1 %2238  ;;  %v2221_v3 = vpop.permute.xlu0 %2220  ;;  %v6675_v62 = vpack.c.bf16 %v8671_v34, %v2277_v5 }
 0xb08   : > { %6676 = vmatprep.subr.bf16.mxu1 %v6675_v62 }
 0xb09   : > { %6678 = vmatpush1.bf16.msra.mxu1 %v6677_v0  ;;  %v2219_v0 = vmul.f32 %v2215_v1, %v7556_v30 }
 0xb0a   : > { %v2243_v43 = vpop.permute.xlu1 %2242  ;;  %v2193_v33 = vpop.permute.xlu0 %2192 }
 0xb0b   : > { %v2196_v9 = vsel %vm564_vm0, %v2189_v44, %v2193_v33  ;;  %v2198_v56 = vsel %vm564_vm0, %v2193_v33, %v2189_v44  ;;  %v2247_v45 = vsel %vm615_vm10, %v2243_v43, %v2239_v14 }
 0xb0c   : > { %v8696_v2 = vmul.f32 %v2198_v56, %v7533_v19  ;;  %v8699_v22 = vmul.f32 %v2196_v9, %v7535_v20 }
 0xb0e   : > { %v2286_v11 = vrot.slane %v8696_v2, 4  ;;  %v2287_v44 = vrot.slane %v8699_v22, 4  ;;  %v2209_v47 = vpop.permute.xlu1 %2208  ;;  %v2237_v17 = vpop.permute.xlu0 %2236 }
 0xb0f   : > { %v2212_v27 = vsel %vm581_vm3, %v2205_v10, %v2209_v47  ;;  %v2214_v5 = vsel %vm581_vm3, %v2209_v47, %v2205_v10  ;;  %v2245_v10 = vsel %vm615_vm10, %v2239_v14, %v2243_v43  ;;  %v2251_v47 = vmul.f32 %v2247_v45, %v7619_v16 }
 0xb10   : > { %v8715_v31 = vmul.f32 %v2212_v27, %v7554_v29  ;;  %v8718_v37 = vmul.f32 %v2214_v5, %v7556_v30  ;;  %v2291_v48 = vsel %vm692_vm6, %v2287_v44, %v2290_v18  ;;  %v2327_v41 = vsel %vm692_vm6, %v2187_v39, %v2287_v44 }
 0xb11   : > { %v6679_v62 = vpack.c.bf16 %v2291_v48, %v2327_v41  ;;  %v2289_v13 = vsel %vm692_vm6, %v2286_v11, %v2288_v50  ;;  %v2326_v32 = vsel %vm692_vm6, %v2186_v12, %v2286_v11  ;;  %v2302_v18 = vrot.slane %v2218_v21, 4 }
 0xb12   : > { %v2300_v33 = vrot.slane %v8715_v31, 4  ;;  %v2301_v49 = vrot.slane %v8718_v37, 4  ;;  %v2227_v9 = vpop.permute.xlu1 %2226  ;;  %v2223_v56 = vpop.permute.xlu0 %2222  ;;  %v6681_v4 = vpack.c.bf16 %v2289_v13, %v2326_v32  ;;  %v2304_v39 = vrot.slane %v2219_v0, 4 }
 0xb13   : > { %6680 = vmatprep.subr.bf16.mxu1 %v6679_v62  ;;  %v2250_v1 = vmul.f32 %v2245_v10, %v7616_v15  ;;  %v2229_v14 = vsel %vm598_vm9, %v2223_v56, %v2227_v9  ;;  %v2231_v43 = vsel %vm598_vm9, %v2227_v9, %v2223_v56 }
 0xb14   : > { %v2329_v50 = vsel %vm692_vm6, %v8548_v46, %v2301_v49  ;;  %6682 = vmatpush1.bf16.msra.mxu1 %v6681_v4  ;;  %v2328_v44 = vsel %vm692_vm6, %v8542_v40, %v2300_v33  ;;  %v2303_v9 = vsel %vm692_vm6, %v2300_v33, %v2302_v18  ;;  %v2234_v56 = vmul.f32 %v2229_v14, %v7595_v57 }
 0xb15   : > { %v6683_v11 = vpack.c.bf16 %v2329_v50, %v8578_v36  ;;  %v6685_v27 = vpack.c.bf16 %v2328_v44, %v8565_v6  ;;  %v2318_v44 = vrot.slane %v2251_v47, 4 }
 0xb16   : > { %v2225_v12 = vpop.permute.xlu1 %2224  ;;  %v2241_v21 = vpop.permute.xlu0 %2240 }
 0xb17   : > { %v2228_v5 = vsel %vm598_vm9, %v2221_v3, %v2225_v12  ;;  %v2230_v48 = vsel %vm598_vm9, %v2225_v12, %v2221_v3  ;;  %v2244_v41 = vsel %vm615_vm10, %v2237_v17, %v2241_v21  ;;  %v2246_v0 = vsel %vm615_vm10, %v2241_v21, %v2237_v17  ;;  %6684 = vmatprep.subr.bf16.mxu1 %v6683_v11 }
 0xb18   : > { %v8752_v62 = vmul.f32 %v2228_v5, %v7595_v57  ;;  %v8755_v13 = vmul.f32 %v2230_v48, %v7598_v58  ;;  %v8758_v32 = vmul.f32 %v2244_v41, %v7616_v15  ;;  %v8761_v10 = vmul.f32 %v2246_v0, %v7619_v16  ;;  %6686 = vmatpush1.bf16.msra.mxu1 %v6685_v27 }
 0xb19   : > { %v2316_v3 = vrot.slane %v2250_v1, 4  ;;  %v2305_v11 = vsel %vm692_vm6, %v2301_v49, %v2304_v39  ;;  %v2235_v12 = vmul.f32 %v2231_v43, %v7598_v58 }
 0xb1a   : > { %v6689_v17 = vpack.c.bf16 %v8752_v62, %v2303_v9  ;;  %v2314_v45 = vrot.slane %v8758_v32, 4  ;;  %v2255_v4 = vpop.permute.xlu1 %2254  ;;  %v2253_v50 = vpop.permute.xlu0 %2252  ;;  %v2315_v21 = vrot.slane %v8761_v10, 4  ;;  %v6687_v1 = vpack.c.bf16 %v8755_v13, %v2305_v11 }
 0xb1b   : > { %v2561_v11 = vrot.slane %v8641_v8, 6 }
 0xb1c   : > { %v2317_v33 = vsel %vm692_vm6, %v2314_v45, %v2316_v3  ;;  %v2330_v18 = vsel %vm692_vm6, %v2234_v56, %v2314_v45  ;;  %6688 = vmatprep.subr.bf16.mxu1 %v6687_v1  ;;  %v2319_v14 = vsel %vm692_vm6, %v2315_v21, %v2318_v44  ;;  %v2331_v27 = vsel %vm692_vm6, %v2235_v12, %v2315_v21 }
 0xb1d   : > { %6690 = vmatpush1.bf16.msra.mxu1 %v6689_v17  ;;  %v6691_v49 = vpack.c.bf16 %v2319_v14, %v2331_v27  ;;  %v6693_v39 = vpack.c.bf16 %v2317_v33, %v2330_v18  ;;  %v11061_v27 = vrot.slane %v8715_v31, 6 }
 0xb1e   : > { %v2259_v5 = vpop.permute.xlu1 %2258  ;;  %v2257_v48 = vpop.permute.xlu0 %2256 }
 0xb1f   : > { %v2261_v47 = vsel %vm632_vm13, %v2255_v4, %v2259_v5  ;;  %v2263_v43 = vsel %vm632_vm13, %v2259_v5, %v2255_v4  ;;  %v2260_v41 = vsel %vm632_vm13, %v2253_v50, %v2257_v48  ;;  %v2262_v0 = vsel %vm632_vm13, %v2257_v48, %v2253_v50  ;;  %6692 = vmatprep.subr.bf16.mxu1 %v6691_v49  ;;  %v2333_v50 = vld [vmem:[#allocation4 + $0x60] sm:$0x3f] }
 0xb20   : > { %v2266_v3 = vmul.f32 %v2261_v47, %v7643_v53  ;;  %v2267_v9 = vmul.f32 %v2263_v43, %v7646_v54  ;;  %v8786_v56 = vmul.f32 %v2260_v41, %v7643_v53  ;;  %v8789_v17 = vmul.f32 %v2262_v0, %v7646_v54 }
 0xb21   : > { %6694 = vmatpush1.bf16.msra.mxu1 %v6693_v39  ;;  %v11062_v48 = vrot.slane %v8718_v37, 6 }
 0xb22   : > { %11158 = vst [vmem:[#allocation25_spill] sm:$0xff] %v8786_v56  ;;  %v6695_v45 = vpack.c.bf16 %v2267_v9, %v8789_v17  ;;  %v6698_v4 = vpack.c.bf16 %v2266_v3, %v8786_v56  ;;  %v2560_v3 = vrot.slane %v8638_v61, 6 }
 0xb24   : > { %6697 = vmatprep.subr.msk.bf16.mxu1 %vm8123_vm14, %v6695_v45  ;;  %v7247_v45 = vmov 7  }
 0xb25   : > { %6700 = vmatpush1.bf16.msk.msra.mxu1 %vm8123_vm14, %v6698_v4  ;;  %7029 = vset.pattern.permute.xlu0 %v7247_v45  ;;  %v8900_v4 = vld [vmem:[#allocation6] sm:$0x3f] }
 0xb26   : > { %11162 = vst [vmem:[#allocation27_spill] sm:$0xff] %v8900_v4 }
 0xb28   : > { %6496 = vmatmul.mubr.msk.f32.vlgmr.msra.gmra.mrb[8].mxu1 %vm1396_vm15, %v2333_v50 }
 0xb29   : > { %2862 = vmatprep.mubr.f32.mxu1 %v11149_v52 }
 0xb2f   : > { %v2336_v44 = vpop.permute.xlu0 %2335 }
 0xbfb   : > { %v2413_v12 = vpop.f32.mrb[8].mxu1 }
 0xbfc   : > { %v2414_v21 = vadd.f32 %v2413_v12, %v2336_v44  ;;  %v2415_v1 = vpop.f32.mrb[9].mxu1 }
 0xbfd   : > { %v2416_v33 = vadd.f32 %v2415_v1, %v2336_v44 }
 0xbfe   : > { %v2418_v18 = vmax.f32 %v2414_v21, 0.0 }
 0xbff   : > { %v2419_v14 = vmax.f32 %v2416_v33, 0.0 }
 0xc00   : > { %v8800_v5 = vrot.slane %v2418_v18, 4 }
 0xc01   : > { %v8803_v49 = vrot.slane %v2419_v14, 4 }
 0xc02   : > { %11160 = vst [vmem:[#allocation21_spill] sm:$0xff] %v8800_v5  ;;  %2494 = vrot.lane.b32.xlu1 %v8800_v5, %s7233_s26  ;;  %2430 = vrot.lane.b32.xlu0 %v8800_v5, %s7234_s13  ;;  %v8812_v39 = vsel %vm692_vm6, %v8542_v40, %v8800_v5  ;;  %v8818_v47 = vsel %vm698_vm12, %v8800_v5, %v11061_v27 }
 0xc03   : > { %11161 = vst [vmem:[#allocation22_spill] sm:$0xff] %v8803_v49  ;;  %v8823_v43 = vsel %vm692_vm6, %v8548_v46, %v8803_v49  ;;  %v8829_v41 = vsel %vm698_vm12, %v8803_v49, %v11062_v48  ;;  %v6743_v9 = vpack.c.bf16 %v8812_v39, %v8565_v6  ;;  %v2694_v46 = vld [vmem:[#allocation4 + $0x78] sm:$0x3f] }
 0xc04   : > { %v6741_v0 = vpack.c.bf16 %v8823_v43, %v8578_v36  ;;  %6499 = vmatprep.mubr.msk.f32.mxu0 %vm1758_vm4, %v2694_v46 }
 0xc06   : > { %6742 = vmatprep.subr.bf16.mxu1 %v6741_v0  ;;  %2446 = vrot.lane.b32.xlu0 %v8800_v5, %s7232_s22 }
 0xc07   : > { %2428 = vrot.lane.b32.xlu1 %v8812_v39, %s7234_s13  ;;  %6744 = vmatpush1.bf16.msra.mxu1 %v6743_v9 }
 0xc0a   : > { %2462 = vrot.lane.b32.xlu0 %v8800_v5, %s7231_s27 }
 0xc0b   : > { %2434 = vrot.lane.b32.xlu1 %v8803_v49, %s7234_s13 }
 0xc0e   : > { %2478 = vrot.lane.b32.xlu0 %v8800_v5, %s7230_s30 }
 0xc0f   : > { %2450 = vrot.lane.b32.xlu1 %v8803_v49, %s7232_s22 }
 0xc12   : > { %2444 = vrot.lane.b32.xlu0 %v8812_v39, %s7232_s22 }
 0xc13   : > { %2466 = vrot.lane.b32.xlu1 %v8803_v49, %s7231_s27 }
 0xc16   : > { %2460 = vrot.lane.b32.xlu0 %v8812_v39, %s7231_s27 }
 0xc17   : > { %2482 = vrot.lane.b32.xlu1 %v8803_v49, %s7230_s30 }
 0xc1a   : > { %2476 = vrot.lane.b32.xlu0 %v8812_v39, %s7230_s30 }
 0xc1b   : > { %2432 = vrot.lane.b32.xlu1 %v8823_v43, %s7234_s13 }
 0xc1e   : > { %2492 = vrot.lane.b32.xlu0 %v8812_v39, %s7233_s26 }
 0xc1f   : > { %2448 = vrot.lane.b32.xlu1 %v8823_v43, %s7232_s22 }
 0xc22   : > { %2508 = vrot.lane.b32.xlu0 %v8812_v39, %s7235_s2 }
 0xc23   : > { %2464 = vrot.lane.b32.xlu1 %v8823_v43, %s7231_s27 }
 0xc26   : > { %2496 = vrot.lane.b32.xlu0 %v8823_v43, %s7233_s26 }
 0xc27   : > { %2480 = vrot.lane.b32.xlu1 %v8823_v43, %s7230_s30 }
 0xc2a   : > { %2512 = vrot.lane.b32.xlu0 %v8823_v43, %s7235_s2 }
 0xc2b   : > { %2498 = vrot.lane.b32.xlu1 %v8803_v49, %s7233_s26 }
 0xc2e   : > { %2524 = vrot.lane.b32.xlu0 %v8812_v39, %s7237_s29 }
 0xc2f   : > { %2510 = vrot.lane.b32.xlu1 %v8800_v5, %s7235_s2 }
 0xc32   : > { %2528 = vrot.lane.b32.xlu0 %v8823_v43, %s7237_s29 }
 0xc33   : > { %2514 = vrot.lane.b32.xlu1 %v8803_v49, %s7235_s2 }
 0xc36   : > { %2540 = vrot.lane.b32.xlu0 %v8812_v39, %s7239_s21 }
 0xc37   : > { %2526 = vrot.lane.b32.xlu1 %v8800_v5, %s7237_s29 }
 0xc3a   : > { %2542 = vrot.lane.b32.xlu0 %v8800_v5, %s7239_s21 }
 0xc3b   : > { %2530 = vrot.lane.b32.xlu1 %v8803_v49, %s7237_s29 }
 0xc3e   : > { %2696 = vperm.xlu0 %7029, %v8900_v4  }
 0xc3f   : > { %2544 = vrot.lane.b32.xlu1 %v8823_v43, %s7239_s21 }
 0xc43   : > { %2546 = vrot.lane.b32.xlu1 %v8803_v49, %s7239_s21 }
 0xc47   : > { %2792 = vperm.xlu1 %7030, %v8427_v35  }
 0xc74   : > { %v8904_v50 = vpop.permute.xlu1 %2494  ;;  %v2431_v44 = vpop.permute.xlu0 %2430 }
 0xc78   : > { %v2447_v12 = vpop.permute.xlu0 %2446 }
 0xc79   : > { %v2429_v21 = vpop.permute.xlu1 %2428 }
 0xc7c   : > { %v2463_v1 = vpop.permute.xlu0 %2462 }
 0xc7d   : > { %v2435_v33 = vpop.permute.xlu1 %2434 }
 0xc7e   : > { %v2437_v35 = vsel %vm513_vm5, %v2431_v44, %v2435_v33  ;;  %v2439_v27 = vsel %vm513_vm5, %v2435_v33, %v2431_v44 }
 0xc80   : > { %v2479_v18 = vpop.permute.xlu0 %2478 }
 0xc81   : > { %v2451_v14 = vpop.permute.xlu1 %2450 }
 0xc82   : > { %v2455_v48 = vsel %vm530_vm1, %v2451_v14, %v2447_v12  ;;  %v2453_v4 = vsel %vm530_vm1, %v2447_v12, %v2451_v14  ;;  %v2442_v12 = vmul.f32 %v2439_v27, %v11156_v38  ;;  %v2443_v14 = vmul.f32 %v2437_v35, %v11157_v51 }
 0xc83   : > { %v2458_v49 = vmul.f32 %v2455_v48, %v7548_v25 }
 0xc84   : > { %v2445_v0 = vpop.permute.xlu0 %2444  ;;  %v2680_v8 = vsel %vm698_vm12, %v2442_v12, %v2560_v3 }
 0xc85   : > { %v2467_v9 = vpop.permute.xlu1 %2466 }
 0xc86   : > { %v2469_v28 = vsel %vm547_vm2, %v2463_v1, %v2467_v9  ;;  %v2471_v44 = vsel %vm547_vm2, %v2467_v9, %v2463_v1 }
 0xc88   : > { %v2461_v46 = vpop.permute.xlu0 %2460 }
 0xc89   : > { %v2483_v40 = vpop.permute.xlu1 %2482 }
 0xc8c   : > { %v8906_v45 = vpop.permute.xlu0 %2476 }
 0xc8d   : > { %v2433_v55 = vpop.permute.xlu1 %2432 }
 0xc8e   : > { %v2436_v42 = vsel %vm513_vm5, %v2429_v21, %v2433_v55  ;;  %v2438_v61 = vsel %vm513_vm5, %v2433_v55, %v2429_v21  ;;  %v2459_v21 = vmul.f32 %v2453_v4, %v7551_v26 }
 0xc8f   : > { %v2440_v33 = vmul.f32 %v2438_v61, %v11156_v38  ;;  %v2441_v5 = vmul.f32 %v2436_v42, %v11157_v51  ;;  %v2474_v42 = vmul.f32 %v2471_v44, %v7543_v23  ;;  %v8938_v61 = vmul.f32 %v2469_v28, %v7545_v24 }
 0xc90   : > { %v2493_v52 = vpop.permute.xlu0 %2492  ;;  %v2681_v44 = vsel %vm698_vm12, %v2443_v14, %v2561_v11  ;;  %v2568_v55 = vrot.slane %v2459_v21, 6 }
 0xc91   : > { %v6703_v56 = vpack.c.bf16 %v2440_v33, %v8654_v63  ;;  %v2449_v1 = vpop.permute.xlu1 %2448  ;;  %v6701_v9 = vpack.c.bf16 %v2441_v5, %v8657_v60  ;;  %v2566_v5 = vrot.slane %v2458_v49, 6  ;;  %v2487_v49 = vsel %vm564_vm0, %v2483_v40, %v2479_v18 }
 0xc92   : > { %v2452_v27 = vsel %vm530_vm1, %v2445_v0, %v2449_v1  ;;  %v2454_v48 = vsel %vm530_vm1, %v2449_v1, %v2445_v0  ;;  %v2485_v0 = vsel %vm564_vm0, %v2479_v18, %v2483_v40 }
 0xc93   : > { %v2456_v63 = vmul.f32 %v2454_v48, %v7548_v25  ;;  %v2457_v33 = vmul.f32 %v2452_v27, %v7551_v26  ;;  %6702 = vmatprep.subr.bf16.mxu0 %v6701_v9  ;;  %v2588_v48 = vrot.slane %v2474_v42, 4  ;;  %v2590_v27 = vrot.slane %v8938_v61, 4 }
 0xc94   : > { %6704 = vmatpush1.bf16.msra.mxu0 %v6703_v56  ;;  %v2509_v28 = vpop.permute.xlu0 %2508 }
 0xc95   : > { %v2562_v1 = vrot.slane %v2456_v63, 6  ;;  %v2564_v35 = vrot.slane %v2457_v33, 6  ;;  %v2465_v4 = vpop.permute.xlu1 %2464  ;;  %v2491_v63 = vmul.f32 %v2485_v0, %v7535_v20 }
 0xc96   : > { %v2468_v9 = vsel %vm547_vm2, %v2461_v46, %v2465_v4  ;;  %v2470_v56 = vsel %vm547_vm2, %v2465_v4, %v2461_v46 }
 0xc97   : > { %v2472_v12 = vmul.f32 %v2470_v56, %v7543_v23  ;;  %v2473_v14 = vmul.f32 %v2468_v9, %v7545_v24  ;;  %v2565_v21 = vsel %vm698_vm12, %v2561_v11, %v2564_v35  ;;  %v2567_v42 = vsel %vm698_vm12, %v2562_v1, %v2566_v5 }
 0xc98   : > { %v2497_v61 = vpop.permute.xlu0 %2496  ;;  %v6705_v33 = vpack.c.bf16 %v2565_v21, %v2681_v44  ;;  %v2563_v60 = vsel %vm698_vm12, %v2560_v3, %v2562_v1  ;;  %v2569_v1 = vsel %vm698_vm12, %v2564_v35, %v2568_v55  ;;  %v2490_v9 = vmul.f32 %v2487_v49, %v7533_v19 }
 0xc99   : > { %v2584_v51 = vrot.slane %v2472_v12, 4  ;;  %v2586_v38 = vrot.slane %v2473_v14, 4  ;;  %v2500_v46 = vsel %vm581_vm3, %v2493_v52, %v2497_v61  ;;  %v2502_v40 = vsel %vm581_vm3, %v2497_v61, %v2493_v52  ;;  %v2481_v18 = vpop.permute.xlu1 %2480 }
 0xc9a   : > { %v8971_v4 = vmul.f32 %v2500_v46, %v7554_v29  ;;  %v2505_v11 = vmul.f32 %v2502_v40, %v7556_v30  ;;  %v2484_v5 = vsel %vm564_vm0, %v8906_v45, %v2481_v18  ;;  %v2486_v3 = vsel %vm564_vm0, %v2481_v18, %v8906_v45  ;;  %6706 = vmatprep.subr.bf16.mxu0 %v6705_v33 }
 0xc9b   : > { %v2488_v44 = vmul.f32 %v2486_v3, %v7533_v19  ;;  %v2489_v0 = vmul.f32 %v2484_v5, %v7535_v20  ;;  %v6707_v52 = vpack.c.bf16 %v2563_v60, %v2680_v8  ;;  %v2610_v56 = vrot.slane %v2491_v63, 2 }
 0xc9c   : > { %v2513_v12 = vpop.permute.xlu0 %2512  ;;  %v11163_v14 = vrot.slane %v8671_v34, 4  ;;  %v11164_v61 = vrot.slane %v8668_v59, 4  ;;  %v2589_v33 = vsel %vm692_vm6, %v2584_v51, %v2588_v48  ;;  %v2624_v46 = vrot.slane %v8971_v4, 6 }
 0xc9d   : > { %v2626_v40 = vrot.slane %v2505_v11, 6  ;;  %v2606_v8 = vrot.slane %v2489_v0, 2  ;;  %6708 = vmatpush1.bf16.msra.mxu0 %v6707_v52  ;;  %v2499_v55 = vpop.permute.xlu1 %2498  ;;  %v2604_v35 = vrot.slane %v2488_v44, 2  ;;  %v2516_v3 = vsel %vm598_vm9, %v2509_v28, %v2513_v12 }
 0xc9e   : > { %v2587_v21 = vsel %vm692_vm6, %v11163_v14, %v2586_v38  ;;  %v2682_v45 = vsel %vm692_vm6, %v2567_v42, %v11164_v61  ;;  %v2501_v60 = vsel %vm581_vm3, %v8904_v50, %v2499_v55  ;;  %v2503_v49 = vsel %vm581_vm3, %v2499_v55, %v8904_v50 }
 0xc9f   : > { %v11165_v63 = vmov %v11163_v14  ;;  %v2506_v48 = vmul.f32 %v2501_v60, %v7554_v29  ;;  %v2507_v18 = vmul.f32 %v2503_v49, %v7556_v30  ;;  %v11166_v11 = vmov %v11164_v61 }
 0xca0   : > { %v2683_v42 = vsel %vm692_vm6, %v2569_v1, %v11165_v63  ;;  %v2585_v5 = vsel %vm692_vm6, %v11166_v11, %v2584_v51  ;;  %v2518_v44 = vsel %vm598_vm9, %v2513_v12, %v2509_v28  ;;  %v2525_v0 = vpop.permute.xlu0 %2524  ;;  %v2591_v34 = vsel %vm692_vm6, %v2586_v38, %v2590_v27 }
 0xca1   : > { %v6709_v4 = vpack.c.bf16 %v2587_v21, %v2683_v42  ;;  %v6711_v50 = vpack.c.bf16 %v2585_v5, %v2682_v45  ;;  %v2628_v52 = vrot.slane %v2506_v48, 6  ;;  %v2630_v1 = vrot.slane %v2507_v18, 6  ;;  %v2511_v14 = vpop.permute.xlu1 %2510 }
 0xca2   : > { %v11167_v21 = vrot.slane %v8699_v22, 2  ;;  %v11169_v28 = vrot.slane %v8696_v2, 2  ;;  %v2611_v45 = vsel %vm686_vm11, %v2606_v8, %v2610_v56  ;;  %v2645_v60 = vrot.slane %v8755_v13, 4 }
 0xca3   : > { %6710 = vmatprep.subr.bf16.mxu0 %v6709_v4  ;;  %v2608_v49 = vrot.slane %v2490_v9, 2  ;;  %v2629_v63 = vsel %vm698_vm12, %v2624_v46, %v2628_v52  ;;  %v2520_v42 = vmul.f32 %v2516_v3, %v7595_v57  ;;  %v2521_v48 = vmul.f32 %v2518_v44, %v7598_v58 }
 0xca4   : > { %v2607_v59 = vsel %vm686_vm11, %v11167_v21, %v2606_v8  ;;  %v11168_v51 = vmov %v11167_v21  ;;  %6712 = vmatpush1.bf16.msra.mxu0 %v6711_v50  ;;  %v2605_v12 = vsel %vm686_vm11, %v11169_v28, %v2604_v35  ;;  %v11170_v38 = vmov %v11169_v28  ;;  %v2529_v2 = vpop.permute.xlu0 %2528 }
 0xca5   : > { %v2685_v61 = vsel %vm686_vm11, %v2591_v34, %v11168_v51  ;;  %v2684_v27 = vsel %vm686_vm11, %v2589_v33, %v11170_v38  ;;  %v2631_v18 = vsel %vm698_vm12, %v2626_v40, %v2630_v1  ;;  %v6717_v4 = vpack.c.bf16 %v8578_v36, %v2611_v45  ;;  %v2515_v11 = vpop.permute.xlu1 %2514 }
 0xca6   : > { %v6713_v55 = vpack.c.bf16 %v2607_v59, %v2685_v61  ;;  %v6715_v22 = vpack.c.bf16 %v2605_v12, %v2684_v27  ;;  %v2609_v33 = vsel %vm686_vm11, %v2604_v35, %v2608_v49  ;;  %v2689_v56 = vsel %vm692_vm6, %v2631_v18, %v2645_v60 }
 0xca7   : > { %v11171_v13 = vrot.slane %v8752_v62, 4  ;;  %v2517_v8 = vsel %vm598_vm9, %v2511_v14, %v2515_v11  ;;  %v2519_v5 = vsel %vm598_vm9, %v2515_v11, %v2511_v14  ;;  %v11172_v3 = vrot.slane %v8718_v37, 6 }
 0xca8   : > { %6714 = vmatprep.subr.bf16.mxu0 %v6713_v55  ;;  %v11173_v44 = vrot.slane %v8715_v31, 6  ;;  %v2522_v50 = vmul.f32 %v2517_v8, %v7595_v57  ;;  %v2523_v34 = vmul.f32 %v2519_v5, %v7598_v58  ;;  %v2646_v21 = vrot.slane %v2520_v42, 4 }
 0xca9   : > { %v2688_v9 = vsel %vm692_vm6, %v2629_v63, %v11171_v13  ;;  %6716 = vmatpush1.bf16.msra.mxu0 %v6715_v22  ;;  %v2627_v36 = vsel %vm698_vm12, %v11172_v3, %v2626_v40  ;;  %v2648_v59 = vrot.slane %v2521_v48, 4  ;;  %v2534_v14 = vsel %vm615_vm10, %v2529_v2, %v2525_v0  ;;  %v2527_v61 = vpop.permute.xlu1 %2526 }
 0xcaa   : > { %v2625_v35 = vsel %vm698_vm12, %v11173_v44, %v2624_v46  ;;  %6718 = vmatprep.subr.bf16.mxu0 %v6717_v4  ;;  %v6725_v52 = vpack.c.bf16 %v2689_v56, %v2627_v36  ;;  %v6719_v37 = vpack.c.bf16 %v8565_v6, %v2609_v33  ;;  %v2650_v51 = vrot.slane %v2522_v50, 4 }
 0xcab   : > { %v6727_v1 = vpack.c.bf16 %v2688_v9, %v2625_v35  ;;  %v2652_v40 = vrot.slane %v2523_v34, 4  ;;  %v2664_v31 = vrot.slane %v8758_v32, 2  ;;  %v2665_v46 = vrot.slane %v8761_v10, 2 }
 0xcac   : > { %v2532_v55 = vsel %vm615_vm10, %v2525_v0, %v2529_v2  ;;  %v2537_v28 = vmul.f32 %v2534_v14, %v7619_v16  ;;  %v2651_v12 = vsel %vm692_vm6, %v2646_v21, %v2650_v51  ;;  %v11174_v38 = vpack.c.bf16 %v8829_v41, %v8823_v43  ;;  %v2541_v2 = vpop.permute.xlu0 %2540  ;;  %v2693_v51 = vld [vmem:[#allocation4 + $0x70] sm:$0x3f] }
 0xcad   : > { %6720 = vmatpush1.bf16.msra.mxu0 %v6719_v37  ;;  %v2653_v6 = vsel %vm692_vm6, %v2648_v59, %v2652_v40  ;;  %v2649_v27 = vsel %vm692_vm6, %v2645_v60, %v2648_v59  ;;  %v11175_v10 = vmov %v11171_v13  ;;  %v2690_v0 = vsel %vm686_vm11, %v2651_v12, %v2664_v31  ;;  %v2531_v63 = vpop.permute.xlu1 %2530 }
 0xcae   : > { %6722 = vmatprep.subr.bf16.mxu0 %v11174_v38  ;;  %v2691_v32 = vsel %vm686_vm11, %v2653_v6, %v2665_v46  ;;  %v2647_v45 = vsel %vm692_vm6, %v11175_v10, %v2646_v21  ;;  %v2536_v49 = vmul.f32 %v2532_v55, %v7616_v15  ;;  %v11176_v43 = vpack.c.bf16 %v8818_v47, %v8812_v39  ;;  %v11177_v21 = vld [vmem:[#allocation25_spill] sm:$0xff] }
 0xcaf   : > { %v6729_v22 = vpack.c.bf16 %v2691_v32, %v2649_v27  ;;  %v6731_v42 = vpack.c.bf16 %v2690_v0, %v2647_v45  ;;  %v2533_v41 = vsel %vm615_vm10, %v2527_v61, %v2531_v63  ;;  %v2535_v60 = vsel %vm615_vm10, %v2531_v63, %v2527_v61  ;;  %v11179_v32 = vld [vmem:[#allocation22_spill] sm:$0xff]  ;;  %v2790_v45 = vld [vmem:[#allocation7 + $0x8] sm:$0x3f] }
 0xcb0   : > { %v2668_v62 = vrot.slane %v2537_v28, 2  ;;  %v2538_v48 = vmul.f32 %v2533_v41, %v7616_v15  ;;  %v2539_v18 = vmul.f32 %v2535_v60, %v7619_v16  ;;  %v2666_v4 = vrot.slane %v2536_v49, 2  ;;  %v11180_v0 = vld [vmem:[#allocation21_spill] sm:$0xff]  ;;  %v11181_v60 = vld [vmem:[#allocation24_spill] sm:$0xff] }
 0xcb1   : > { %6724 = vmatpush1.bf16.msra.mxu0 %v11176_v43  ;;  %v2545_v56 = vpop.permute.xlu1 %2544  ;;  %v11178_v40 = vmov 0.0  }
 0xcb2   : > { %6726 = vmatprep.subr.bf16.mxu0 %v6725_v52  ;;  %v2670_v11 = vrot.slane %v2538_v48, 2  ;;  %v2672_v33 = vrot.slane %v2539_v18, 2  ;;  %v2550_v39 = vsel %vm632_vm13, %v2545_v56, %v2541_v2  ;;  %v2669_v13 = vsel %vm686_vm11, %v2665_v46, %v2668_v62  ;;  %v2543_v52 = vpop.permute.xlu0 %2542  ;;  %v11183_v48 = vld [vmem:[#allocation26_spill] sm:$0xff] }
 0xcb3   : > { %v2553_v47 = vmul.f32 %v2550_v39, %v7646_v54  ;;  %v2548_v3 = vsel %vm632_vm13, %v2541_v2, %v2545_v56  ;;  %v2667_v36 = vsel %vm686_vm11, %v2664_v31, %v2666_v4  ;;  %v11185_v2 = vld [vmem:[#allocation27_spill] sm:$0xff] }
 0xcb4   : > { %v2673_v9 = vsel %vm686_vm11, %v2668_v62, %v2672_v33  ;;  %v2671_v8 = vsel %vm686_vm11, %v2666_v4, %v2670_v11  ;;  %v2552_v34 = vmul.f32 %v2548_v3, %v7643_v53  ;;  %v7248_v4 = vmov 8  }
 0xcb5   : > { %6728 = vmatpush1.bf16.msra.mxu0 %v6727_v1  ;;  %v6733_v5 = vpack.c.bf16 %v2673_v9, %v2669_v13  ;;  %v6735_v44 = vpack.c.bf16 %v2671_v8, %v2667_v36  ;;  %v2547_v35 = vpop.permute.xlu1 %2546  ;;  %v6737_v50 = vpack.c.bf16 %v2553_v47, %v8789_v17  ;;  %7031 = vset.pattern.permute.xlu1 %v7248_v4  ;;  %v11186_v11 = vmov 2  }
 0xcb6   : > { %6730 = vmatprep.subr.bf16.mxu0 %v6729_v22  ;;  %v2551_v1 = vsel %vm632_vm13, %v2547_v35, %v2543_v52  ;;  %v6739_v59 = vpack.c.bf16 %v2552_v34, %v11177_v21  ;;  %v2549_v14 = vsel %vm632_vm13, %v2543_v52, %v2547_v35 }
 0xcb7   : > { %v2555_v37 = vmul.f32 %v2551_v1, %v7646_v54  ;;  %v2554_v17 = vmul.f32 %v2549_v14, %v7643_v53 }
 0xcb9   : > { %6732 = vmatpush1.bf16.msra.mxu0 %v6731_v42 }
 0xcba   : > { %6734 = vmatprep.subr.bf16.mxu0 %v6733_v5 }
 0xcbd   : > { %6736 = vmatpush1.bf16.msra.mxu0 %v6735_v44  ;;  %v2697_v61 = vpop.permute.xlu0 %2696 }
 0xcbe   : > { %6738 = vmatprep.subr.bf16.mxu0 %v6737_v50 }
 0xcc1   : > { %6740 = vmatpush1.bf16.msra.mxu0 %v6739_v59 }
 0xcc2   : > { %6497 = vmatprep.subr.msk.mxu0 %vm698_vm12, %v2555_v37 }
 0xcc5   : > { %6498 = vmatpush1.msk.msra.mxu0 %vm698_vm12, %v2554_v17  ;;  %v11187_v17 = vld [vmem:[#allocation15_spill] sm:$0xff] }
 0xcc6   : > { %2773 = vmatmul.mubr.f32.vlgmr.msra.gmra.mrb[6].mxu0 %v2693_v51  ;;  %v2793_v63 = vpop.permute.xlu1 %2792 }
 0xcc7   : > { %3350 = vmatprep.mubr.f32.mxu0 %v11178_v40 }
 0xd99   : > { %v2774_v31 = vpop.f32.mrb[6].mxu0 }
 0xd9a   : > { %v2775_v46 = vadd.f32 %v2774_v31, %v2697_v61  ;;  %v2776_v55 = vpop.f32.mrb[7].mxu0 }
 0xd9b   : > { %v2777_v28 = vadd.f32 %v2776_v55, %v2697_v61  ;;  %v11188_v61 = vld [vmem:[#allocation16_spill] sm:$0xff] }
 0xd9c   : > { %v2779_v12 = vmax.f32 %v2775_v46, 0.0 }
 0xd9d   : > { %v2780_v38 = vmax.f32 %v2777_v28, 0.0 }
 0xd9e   : > { %v2783_v6 = vrot.slane %v2779_v12, 6 }
 0xd9f   : > { %v2784_v27 = vrot.slane %v2780_v38, 6 }
 0xda0   : > { %v2787_v49 = vsel %vm698_vm12, %v11180_v0, %v2783_v6 }
 0xda1   : > { %v2788_v10 = vsel %vm698_vm12, %v11179_v32, %v2784_v27 }
 0xda2   : > { %2802 = vmatprep.subr.mxu1 %v2788_v10 }
 0xda3   : > { %2803 = vmatpush1.msra.mxu1 %v2787_v49 }
 0xda4   : > { %6500 = vmatmul.mubr.msk.f32.vlgmr.msra.gmra.mrb[10].mxu1 %vm1855_vm7, %v2790_v45 }
 0xda5   : > { %3062 = vmatprep.mubr.f32.mxu1 %v11178_v40 }
 0xe77   : > { %v2864_v22 = vpop.f32.mrb[10].mxu1 }
 0xe78   : > { %v2865_v42 = vadd.f32 %v2864_v22, %v2793_v63  ;;  %v2866_v43 = vpop.f32.mrb[11].mxu1 }
 0xe79   : > { %v2867_v41 = vadd.f32 %v2866_v43, %v2793_v63 }
 0xe7a   : > { %v9104_v62 = vadd.f32 %v2865_v42, %v11181_v60 }
 0xe7b   : > { %v9107_v18 = vadd.f32 %v2867_v41, %v11183_v48 }
 0xe7c   : > { %11182 = vst [vmem:[#allocation25_spill] sm:$0xff] %v9104_v62  ;;  %2879 = vrot.lane.b32.xlu1 %v9104_v62, %s7232_s22 }
 0xe7d   : > { %11184 = vst [vmem:[#allocation22_spill] sm:$0xff] %v9107_v18  ;;  %2881 = vrot.lane.b32.xlu0 %v9107_v18, %s7232_s22 }
 0xe80   : > { %2887 = vrot.lane.b32.xlu1 %v9104_v62, %s7231_s27 }
 0xe81   : > { %2889 = vrot.lane.b32.xlu0 %v9107_v18, %s7231_s27 }
 0xe84   : > { %2871 = vrot.lane.b32.xlu1 %v9104_v62, %s7234_s13 }
 0xe85   : > { %2873 = vrot.lane.b32.xlu0 %v9107_v18, %s7234_s13 }
 0xe88   : > { %2895 = vrot.lane.b32.xlu1 %v9104_v62, %s7230_s30 }
 0xe89   : > { %2897 = vrot.lane.b32.xlu0 %v9107_v18, %s7230_s30 }
 0xe8c   : > { %2903 = vrot.lane.b32.xlu1 %v9104_v62, %s7233_s26 }
 0xe8d   : > { %2905 = vrot.lane.b32.xlu0 %v9107_v18, %s7233_s26 }
 0xe90   : > { %2911 = vrot.lane.b32.xlu1 %v9104_v62, %s7235_s2 }
 0xe91   : > { %2913 = vrot.lane.b32.xlu0 %v9107_v18, %s7235_s2 }
 0xe94   : > { %2919 = vrot.lane.b32.xlu1 %v9104_v62, %s7237_s29 }
 0xe95   : > { %2921 = vrot.lane.b32.xlu0 %v9107_v18, %s7237_s29 }
 0xe98   : > { %2927 = vrot.lane.b32.xlu1 %v9104_v62, %s7239_s21 }
 0xe99   : > { %2929 = vrot.lane.b32.xlu0 %v9107_v18, %s7239_s21 }
 0xe9c   : > { %2986 = vperm.xlu1 %7031, %v11185_v2  }
 0xea0   : > { %7034 = vset.pattern.permute.xlu1 %v11186_v11 }
 0xeee   : > { %v2880_v33 = vpop.permute.xlu1 %2879 }
 0xeef   : > { %v2882_v56 = vpop.permute.xlu0 %2881 }
 0xef0   : > { %v2883_v39 = vsel %vm530_vm1, %v2880_v33, %v2882_v56  ;;  %v2884_v47 = vsel %vm530_vm1, %v2882_v56, %v2880_v33 }
 0xef1   : > { %v2885_v3 = vmul.f32 %v2884_v47, %v7548_v25  ;;  %v2886_v36 = vmul.f32 %v2883_v39, %v7551_v26 }
 0xef2   : > { %v2888_v13 = vpop.permute.xlu1 %2887 }
 0xef3   : > { %v2890_v9 = vpop.permute.xlu0 %2889  ;;  %v2937_v14 = vrot.slane %v2885_v3, 2  ;;  %v2938_v37 = vrot.slane %v2886_v36, 2 }
 0xef4   : > { %v2891_v8 = vsel %vm547_vm2, %v2888_v13, %v2890_v9  ;;  %v2892_v5 = vsel %vm547_vm2, %v2890_v9, %v2888_v13 }
 0xef5   : > { %v2893_v44 = vmul.f32 %v2892_v5, %v7543_v23  ;;  %v2894_v35 = vmul.f32 %v2891_v8, %v7545_v24 }
 0xef6   : > { %v2872_v50 = vpop.permute.xlu1 %2871 }
 0xef7   : > { %v2943_v34 = vrot.slane %v2893_v44, 4  ;;  %v2944_v52 = vrot.slane %v2894_v35, 4  ;;  %v2874_v1 = vpop.permute.xlu0 %2873 }
 0xef8   : > { %v2875_v21 = vsel %vm513_vm5, %v2872_v50, %v2874_v1  ;;  %v2876_v59 = vsel %vm513_vm5, %v2874_v1, %v2872_v50 }
 0xef9   : > { %v2877_v51 = vmul.f32 %v2876_v59, %v11187_v17  ;;  %v2878_v31 = vmul.f32 %v2875_v21, %v11188_v61  ;;  %v2974_v12 = vsel %vm692_vm6, %v2938_v37, %v2944_v52  ;;  %v2973_v6 = vsel %vm692_vm6, %v2937_v14, %v2943_v34 }
 0xefa   : > { %v2896_v46 = vpop.permute.xlu1 %2895 }
 0xefb   : > { %v2898_v55 = vpop.permute.xlu0 %2897  ;;  %v2972_v28 = vsel %vm686_vm11, %v2878_v31, %v2938_v37  ;;  %v2971_v38 = vsel %vm686_vm11, %v2877_v51, %v2937_v14 }
 0xefc   : > { %v2899_v27 = vsel %vm564_vm0, %v2896_v46, %v2898_v55  ;;  %v2900_v32 = vsel %vm564_vm0, %v2898_v55, %v2896_v46  ;;  %v6745_v10 = vpack.c.bf16 %v2974_v12, %v2972_v28  ;;  %v6747_v45 = vpack.c.bf16 %v2973_v6, %v2971_v38 }
 0xefd   : > { %v2901_v0 = vmul.f32 %v2900_v32, %v7533_v19  ;;  %v2902_v49 = vmul.f32 %v2899_v27, %v7535_v20 }
 0xefe   : > { %6746 = vmatprep.subr.bf16.mxu1 %v6745_v10  ;;  %v2904_v63 = vpop.permute.xlu1 %2903 }
 0xeff   : > { %v2906_v22 = vpop.permute.xlu0 %2905  ;;  %6748 = vmatpush1.bf16.msra.mxu1 %v6747_v45  ;;  %v2949_v42 = vrot.slane %v2901_v0, 6  ;;  %v2950_v43 = vrot.slane %v2902_v49, 6 }
 0xf00   : > { %v2907_v41 = vsel %vm581_vm3, %v2904_v63, %v2906_v22  ;;  %v2908_v4 = vsel %vm581_vm3, %v2906_v22, %v2904_v63 }
 0xf01   : > { %v2909_v33 = vmul.f32 %v2907_v41, %v7554_v29  ;;  %v2910_v56 = vmul.f32 %v2908_v4, %v7556_v30  ;;  %v2976_v3 = vsel %vm698_vm12, %v2944_v52, %v2950_v43  ;;  %v2975_v36 = vsel %vm698_vm12, %v2943_v34, %v2949_v42  ;;  %v2984_v41 = vld [vmem:[#allocation4 + $0x80] sm:$0x3f] }
 0xf02   : > { %v2912_v39 = vpop.permute.xlu1 %2911 }
 0xf03   : > { %v2955_v47 = vrot.slane %v2909_v33, 2  ;;  %v2956_v13 = vrot.slane %v2910_v56, 2  ;;  %v2914_v9 = vpop.permute.xlu0 %2913 }
 0xf04   : > { %v2915_v8 = vsel %vm598_vm9, %v2912_v39, %v2914_v9  ;;  %v2916_v5 = vsel %vm598_vm9, %v2914_v9, %v2912_v39 }
 0xf05   : > { %v2917_v44 = vmul.f32 %v2915_v8, %v7595_v57  ;;  %v2918_v35 = vmul.f32 %v2916_v5, %v7598_v58  ;;  %v2978_v50 = vsel %vm686_vm11, %v9107_v18, %v2956_v13  ;;  %v2977_v1 = vsel %vm686_vm11, %v9104_v62, %v2955_v47 }
 0xf06   : > { %v2920_v21 = vpop.permute.xlu1 %2919  ;;  %v6749_v59 = vpack.c.bf16 %v2978_v50, %v2976_v3  ;;  %v6751_v14 = vpack.c.bf16 %v2977_v1, %v2975_v36 }
 0xf07   : > { %v2922_v37 = vpop.permute.xlu0 %2921  ;;  %v2962_v51 = vrot.slane %v2918_v35, 4  ;;  %v2961_v31 = vrot.slane %v2917_v44, 4  ;;  %v7249_v44 = vmov 9  }
 0xf08   : > { %v2923_v52 = vsel %vm615_vm10, %v2920_v21, %v2922_v37  ;;  %v2924_v34 = vsel %vm615_vm10, %v2922_v37, %v2920_v21  ;;  %6750 = vmatprep.subr.bf16.mxu1 %v6749_v59  ;;  %7032 = vset.pattern.permute.xlu0 %v7249_v44 }
 0xf09   : > { %v2925_v46 = vmul.f32 %v2923_v52, %v7616_v15  ;;  %v2926_v55 = vmul.f32 %v2924_v34, %v7619_v16  ;;  %6752 = vmatpush1.bf16.msra.mxu1 %v6751_v14  ;;  %v2980_v27 = vsel %vm692_vm6, %v2956_v13, %v2962_v51  ;;  %v2979_v45 = vsel %vm692_vm6, %v2955_v47, %v2961_v31 }
 0xf0a   : > { %v2928_v28 = vpop.permute.xlu1 %2927 }
 0xf0b   : > { %v2967_v12 = vrot.slane %v2925_v46, 6  ;;  %v2968_v38 = vrot.slane %v2926_v55, 6  ;;  %v2930_v6 = vpop.permute.xlu0 %2929 }
 0xf0c   : > { %v2932_v32 = vsel %vm632_vm13, %v2930_v6, %v2928_v28  ;;  %v2931_v22 = vsel %vm632_vm13, %v2928_v28, %v2930_v6 }
 0xf0d   : > { %v2982_v10 = vsel %vm698_vm12, %v2962_v51, %v2968_v38  ;;  %v2981_v0 = vsel %vm698_vm12, %v2961_v31, %v2967_v12  ;;  %v2934_v42 = vmul.f32 %v2932_v32, %v7646_v54  ;;  %v2933_v43 = vmul.f32 %v2931_v22, %v7643_v53 }
 0xf0e   : > { %v6753_v49 = vpack.c.bf16 %v2982_v10, %v2980_v27  ;;  %v6755_v63 = vpack.c.bf16 %v2981_v0, %v2979_v45 }
 0xf10   : > { %6754 = vmatprep.subr.bf16.mxu1 %v6753_v49 }
 0xf11   : > { %6756 = vmatpush1.bf16.msra.mxu1 %v6755_v63 }
 0xf12   : > { %6501 = vmatprep.subr.msk.mxu1 %vm686_vm11, %v2934_v42 }
 0xf15   : > { %6502 = vmatpush1.msk.msra.mxu1 %vm686_vm11, %v2933_v43 }
 0xf16   : > { %6503 = vmatmul.mubr.msk.f32.vlgmr.msra.gmra.mrb[12].mxu1 %vm909_vm8, %v2984_v41 }
 0xf1b   : > { %v2987_v4 = vpop.permute.xlu1 %2986 }
 0xfe9   : > { %v3064_v33 = vpop.f32.mrb[12].mxu1 }
 0xfea   : > { %v3065_v56 = vadd.f32 %v3064_v33, %v2987_v4  ;;  %v3066_v39 = vpop.f32.mrb[13].mxu1 }
 0xfeb   : > { %v3067_v47 = vadd.f32 %v3066_v39, %v2987_v4 }
 0xfec   : > { %v3069_v13 = vmax.f32 %v3065_v56, 0.0 }
 0xfed   : > { %v3070_v8 = vmax.f32 %v3067_v47, 0.0 }
 0xfee   : > { %v9208_v9 = vrot.slane %v3069_v13, 2 }
 0xfef   : > { %v9214_v5 = vrot.slane %v3070_v8, 2 }
 0xff0   : > { %3129 = vrot.lane.b32.xlu1 %v9208_v9, %s7230_s30  ;;  %3081 = vrot.lane.b32.xlu0 %v9208_v9, %s7234_s13  ;;  %v9231_v3 = vsel %vm686_vm11, %v9104_v62, %v9208_v9 }
 0xff1   : > { %v9244_v36 = vsel %vm686_vm11, %v9107_v18, %v9214_v5 }
 0xff4   : > { %3085 = vrot.lane.b32.xlu1 %v9214_v5, %s7234_s13  ;;  %3097 = vrot.lane.b32.xlu0 %v9208_v9, %s7232_s22 }
 0xff8   : > { %3101 = vrot.lane.b32.xlu1 %v9214_v5, %s7232_s22  ;;  %3113 = vrot.lane.b32.xlu0 %v9208_v9, %s7231_s27 }
 0xffc   : > { %3133 = vrot.lane.b32.xlu1 %v9214_v5, %s7230_s30  ;;  %3145 = vrot.lane.b32.xlu0 %v9208_v9, %s7233_s26 }
0x1000   : > { %3117 = vrot.lane.b32.xlu1 %v9214_v5, %s7231_s27  ;;  %3095 = vrot.lane.b32.xlu0 %v9231_v3, %s7232_s22 }
0x1004   : > { %3149 = vrot.lane.b32.xlu1 %v9214_v5, %s7233_s26  ;;  %3079 = vrot.lane.b32.xlu0 %v9231_v3, %s7234_s13 }
0x1008   : > { %3099 = vrot.lane.b32.xlu1 %v9244_v36, %s7232_s22  ;;  %3111 = vrot.lane.b32.xlu0 %v9231_v3, %s7231_s27 }
0x100c   : > { %3083 = vrot.lane.b32.xlu1 %v9244_v36, %s7234_s13  ;;  %3127 = vrot.lane.b32.xlu0 %v9231_v3, %s7230_s30 }
0x1010   : > { %3115 = vrot.lane.b32.xlu1 %v9244_v36, %s7231_s27  ;;  %3143 = vrot.lane.b32.xlu0 %v9231_v3, %s7233_s26 }
0x1014   : > { %3177 = vrot.lane.b32.xlu1 %v9208_v9, %s7237_s29  ;;  %3159 = vrot.lane.b32.xlu0 %v9231_v3, %s7235_s2 }
0x1018   : > { %3181 = vrot.lane.b32.xlu1 %v9214_v5, %s7237_s29  ;;  %3131 = vrot.lane.b32.xlu0 %v9244_v36, %s7230_s30 }
0x101c   : > { %3147 = vrot.lane.b32.xlu1 %v9244_v36, %s7233_s26  ;;  %3175 = vrot.lane.b32.xlu0 %v9231_v3, %s7237_s29 }
0x1020   : > { %3165 = vrot.lane.b32.xlu1 %v9214_v5, %s7235_s2  ;;  %3161 = vrot.lane.b32.xlu0 %v9208_v9, %s7235_s2 }
0x1024   : > { %3163 = vrot.lane.b32.xlu1 %v9244_v36, %s7235_s2  ;;  %3179 = vrot.lane.b32.xlu0 %v9244_v36, %s7237_s29 }
0x1028   : > { %3193 = vrot.lane.b32.xlu1 %v9208_v9, %s7239_s21  ;;  %3191 = vrot.lane.b32.xlu0 %v9231_v3, %s7239_s21 }
0x102c   : > { %3197 = vrot.lane.b32.xlu1 %v9214_v5, %s7239_s21  ;;  %3195 = vrot.lane.b32.xlu0 %v9244_v36, %s7239_s21 }
0x1030   : > { %3274 = vperm.xlu0 %7032, %v11185_v2  }
0x1062   : > { %v3130_v35 = vpop.permute.xlu1 %3129  ;;  %v3082_v50 = vpop.permute.xlu0 %3081 }
0x1066   : > { %v3086_v1 = vpop.permute.xlu1 %3085  ;;  %v3098_v21 = vpop.permute.xlu0 %3097 }
0x1067   : > { %v3088_v12 = vsel %vm513_vm5, %v3082_v50, %v3086_v1  ;;  %v3090_v2 = vsel %vm513_vm5, %v3086_v1, %v3082_v50 }
0x1068   : > { %v3093_v0 = vmul.f32 %v3090_v2, %v11187_v17  ;;  %v3094_v49 = vmul.f32 %v3088_v12, %v11188_v61 }
0x106a   : > { %v3102_v59 = vpop.permute.xlu1 %3101  ;;  %v3114_v14 = vpop.permute.xlu0 %3113 }
0x106b   : > { %v3104_v27 = vsel %vm530_vm1, %v3098_v21, %v3102_v59  ;;  %v3106_v32 = vsel %vm530_vm1, %v3102_v59, %v3098_v21 }
0x106c   : > { %v3109_v41 = vmul.f32 %v3106_v32, %v7548_v25  ;;  %v3110_v4 = vmul.f32 %v3104_v27, %v7551_v26 }
0x106e   : > { %v3134_v37 = vpop.permute.xlu1 %3133  ;;  %v9287_v51 = vpop.permute.xlu0 %3145  ;;  %v3213_v59 = vrot.slane %v3109_v41, 4 }
0x106f   : > { %v3136_v27 = vsel %vm564_vm0, %v3130_v35, %v3134_v37  ;;  %v3138_v32 = vsel %vm564_vm0, %v3134_v37, %v3130_v35 }
0x1070   : > { %v3141_v41 = vmul.f32 %v3138_v32, %v7533_v19 }
0x1072   : > { %v3118_v52 = vpop.permute.xlu1 %3117  ;;  %v3096_v34 = vpop.permute.xlu0 %3095 }
0x1076   : > { %v9289_v31 = vpop.permute.xlu1 %3149  ;;  %v3080_v46 = vpop.permute.xlu0 %3079 }
0x107a   : > { %v3100_v55 = vpop.permute.xlu1 %3099  ;;  %v3112_v28 = vpop.permute.xlu0 %3111 }
0x107b   : > { %v3103_v38 = vsel %vm530_vm1, %v3096_v34, %v3100_v55  ;;  %v3105_v6 = vsel %vm530_vm1, %v3100_v55, %v3096_v34  ;;  %v3215_v34 = vrot.slane %v3110_v4, 4 }
0x107c   : > { %v9304_v10 = vmul.f32 %v3105_v6, %v7548_v25  ;;  %v9307_v45 = vmul.f32 %v3103_v38, %v7551_v26 }
0x107e   : > { %v3211_v63 = vrot.slane %v9304_v10, 4  ;;  %v3212_v22 = vrot.slane %v9307_v45, 4  ;;  %v3084_v42 = vpop.permute.xlu1 %3083  ;;  %v3128_v43 = vpop.permute.xlu0 %3127 }
0x107f   : > { %v3087_v33 = vsel %vm513_vm5, %v3080_v46, %v3084_v42  ;;  %v3089_v56 = vsel %vm513_vm5, %v3084_v42, %v3080_v46 }
0x1080   : > { %v9320_v39 = vmul.f32 %v3089_v56, %v11187_v17  ;;  %v9323_v47 = vmul.f32 %v3087_v33, %v11188_v61  ;;  %v3263_v13 = vsel %vm692_vm6, %v3093_v0, %v3211_v63  ;;  %v3264_v8 = vsel %vm692_vm6, %v3094_v49, %v3212_v22 }
0x1081   : > { %v3214_v38 = vsel %vm692_vm6, %v3211_v63, %v3213_v59  ;;  %v3216_v6 = vsel %vm692_vm6, %v3212_v22, %v3215_v34  ;;  %v3142_v63 = vmul.f32 %v3136_v27, %v7535_v20  ;;  %v3120_v33 = vsel %vm547_vm2, %v3114_v14, %v3118_v52 }
0x1082   : > { %v6759_v44 = vpack.c.bf16 %v3263_v13, %v9320_v39  ;;  %v3116_v50 = vpop.permute.xlu1 %3115  ;;  %v3144_v1 = vpop.permute.xlu0 %3143  ;;  %v6757_v21 = vpack.c.bf16 %v3264_v8, %v9323_v47  ;;  %v3122_v56 = vsel %vm547_vm2, %v3118_v52, %v3114_v14  ;;  %v3152_v13 = vsel %vm581_vm3, %v9287_v51, %v9289_v31 }
0x1083   : > { %v3119_v46 = vsel %vm547_vm2, %v3112_v28, %v3116_v50  ;;  %v3121_v55 = vsel %vm547_vm2, %v3116_v50, %v3112_v28  ;;  %v3227_v50 = vrot.slane %v3141_v41, 4  ;;  %v3126_v59 = vmul.f32 %v3120_v33, %v7545_v24 }
0x1084   : > { %v9334_v12 = vmul.f32 %v3121_v55, %v7543_v23  ;;  %v9337_v2 = vmul.f32 %v3119_v46, %v7545_v24  ;;  %6758 = vmatprep.subr.bf16.mxu0 %v6757_v21  ;;  %v3229_v21 = vrot.slane %v3142_v63, 4  ;;  %v3154_v14 = vsel %vm581_vm3, %v9289_v31, %v9287_v51 }
0x1085   : > { %6760 = vmatpush1.bf16.msra.mxu0 %v6759_v44  ;;  %v3125_v55 = vmul.f32 %v3122_v56, %v7543_v23 }
0x1086   : > { %v6763_v28 = vpack.c.bf16 %v9334_v12, %v3214_v38  ;;  %v3178_v0 = vpop.permute.xlu1 %3177  ;;  %v3160_v49 = vpop.permute.xlu0 %3159  ;;  %v6761_v42 = vpack.c.bf16 %v9337_v2, %v3216_v6  ;;  %v3157_v38 = vmul.f32 %v3152_v13, %v7554_v29 }
0x1088   : > { %6762 = vmatprep.subr.bf16.mxu0 %v6761_v42  ;;  %v3158_v42 = vmul.f32 %v3154_v14, %v7556_v30 }
0x1089   : > { %6764 = vmatpush1.bf16.msra.mxu0 %v6763_v28 }
0x108a   : > { %v3182_v4 = vpop.permute.xlu1 %3181  ;;  %v3132_v22 = vpop.permute.xlu0 %3131  ;;  %v3243_v14 = vrot.slane %v3158_v42, 4 }
0x108b   : > { %v3135_v35 = vsel %vm564_vm0, %v3128_v43, %v3132_v22  ;;  %v3137_v37 = vsel %vm564_vm0, %v3132_v22, %v3128_v43  ;;  %v3186_v13 = vsel %vm615_vm10, %v3182_v4, %v3178_v0 }
0x108c   : > { %v9362_v8 = vmul.f32 %v3137_v37, %v7533_v19  ;;  %v9365_v44 = vmul.f32 %v3135_v35, %v7535_v20 }
0x108e   : > { %v3225_v52 = vrot.slane %v9362_v8, 4  ;;  %v3226_v43 = vrot.slane %v9365_v44, 4  ;;  %v3148_v34 = vpop.permute.xlu1 %3147  ;;  %v3176_v46 = vpop.permute.xlu0 %3175 }
0x108f   : > { %v3151_v6 = vsel %vm581_vm3, %v3144_v1, %v3148_v34  ;;  %v3153_v27 = vsel %vm581_vm3, %v3148_v34, %v3144_v1  ;;  %v3184_v1 = vsel %vm615_vm10, %v3178_v0, %v3182_v4 }
0x1090   : > { %v9381_v32 = vmul.f32 %v3151_v6, %v7554_v29  ;;  %v9384_v51 = vmul.f32 %v3153_v27, %v7556_v30  ;;  %v3230_v31 = vsel %vm692_vm6, %v3226_v43, %v3229_v21  ;;  %v3266_v28 = vsel %vm692_vm6, %v3126_v59, %v3226_v43 }
0x1091   : > { %v6765_v41 = vpack.c.bf16 %v3230_v31, %v3266_v28  ;;  %v3228_v63 = vsel %vm692_vm6, %v3225_v52, %v3227_v50  ;;  %v3265_v22 = vsel %vm692_vm6, %v3125_v55, %v3225_v52  ;;  %v3241_v59 = vrot.slane %v3157_v38, 4 }
0x1092   : > { %v3239_v33 = vrot.slane %v9381_v32, 4  ;;  %v3240_v35 = vrot.slane %v9384_v51, 4  ;;  %v3166_v37 = vpop.permute.xlu1 %3165  ;;  %v3162_v56 = vpop.permute.xlu0 %3161  ;;  %v6767_v21 = vpack.c.bf16 %v3228_v63, %v3265_v22  ;;  %v3189_v52 = vmul.f32 %v3184_v1, %v7616_v15 }
0x1093   : > { %6766 = vmatprep.subr.bf16.mxu0 %v6765_v41  ;;  %v3190_v55 = vmul.f32 %v3186_v13, %v7619_v16  ;;  %v3168_v0 = vsel %vm598_vm9, %v3162_v56, %v3166_v37  ;;  %v3170_v4 = vsel %vm598_vm9, %v3166_v37, %v3162_v56 }
0x1094   : > { %v3268_v50 = vsel %vm692_vm6, %v9214_v5, %v3240_v35  ;;  %6768 = vmatpush1.bf16.msra.mxu0 %v6767_v21  ;;  %v3267_v34 = vsel %vm692_vm6, %v9208_v9, %v3239_v33  ;;  %v3242_v56 = vsel %vm692_vm6, %v3239_v33, %v3241_v59  ;;  %v3173_v13 = vmul.f32 %v3168_v0, %v7595_v57 }
0x1095   : > { %v6769_v43 = vpack.c.bf16 %v3268_v50, %v9244_v36  ;;  %v6771_v27 = vpack.c.bf16 %v3267_v34, %v9231_v3  ;;  %v3244_v34 = vsel %vm692_vm6, %v3240_v35, %v3243_v14 }
0x1096   : > { %v3164_v38 = vpop.permute.xlu1 %3163  ;;  %v3180_v6 = vpop.permute.xlu0 %3179 }
0x1097   : > { %v3167_v31 = vsel %vm598_vm9, %v3160_v49, %v3164_v38  ;;  %v3169_v28 = vsel %vm598_vm9, %v3164_v38, %v3160_v49  ;;  %v3183_v42 = vsel %vm615_vm10, %v3176_v46, %v3180_v6  ;;  %v3185_v41 = vsel %vm615_vm10, %v3180_v6, %v3176_v46  ;;  %6770 = vmatprep.subr.bf16.mxu0 %v6769_v43 }
0x1098   : > { %v9418_v63 = vmul.f32 %v3167_v31, %v7595_v57  ;;  %v9421_v22 = vmul.f32 %v3169_v28, %v7598_v58  ;;  %v9424_v1 = vmul.f32 %v3183_v42, %v7616_v15  ;;  %v9427_v37 = vmul.f32 %v3185_v41, %v7619_v16  ;;  %6772 = vmatpush1.bf16.msra.mxu0 %v6771_v27 }
0x1099   : > { %v3255_v49 = vrot.slane %v3189_v52, 4  ;;  %v3257_v38 = vrot.slane %v3190_v55, 4  ;;  %v3174_v6 = vmul.f32 %v3170_v4, %v7598_v58 }
0x109a   : > { %v6775_v46 = vpack.c.bf16 %v9418_v63, %v3242_v56  ;;  %v3253_v21 = vrot.slane %v9424_v1, 4  ;;  %v3194_v50 = vpop.permute.xlu1 %3193  ;;  %v3192_v43 = vpop.permute.xlu0 %3191  ;;  %v3254_v31 = vrot.slane %v9427_v37, 4  ;;  %v6773_v52 = vpack.c.bf16 %v9421_v22, %v3244_v34 }
0x109c   : > { %v3256_v33 = vsel %vm692_vm6, %v3253_v21, %v3255_v49  ;;  %v3269_v59 = vsel %vm692_vm6, %v3173_v13, %v3253_v21  ;;  %6774 = vmatprep.subr.bf16.mxu0 %v6773_v52  ;;  %v3258_v0 = vsel %vm692_vm6, %v3254_v31, %v3257_v38  ;;  %v3270_v27 = vsel %vm692_vm6, %v3174_v6, %v3254_v31 }
0x109d   : > { %6776 = vmatpush1.bf16.msra.mxu0 %v6775_v46  ;;  %v6777_v35 = vpack.c.bf16 %v3258_v0, %v3270_v27  ;;  %v6779_v14 = vpack.c.bf16 %v3256_v33, %v3269_v59  ;;  %v3500_v38 = vrot.slane %v9307_v45, 6 }
0x109e   : > { %v3198_v28 = vpop.permute.xlu1 %3197  ;;  %v3196_v42 = vpop.permute.xlu0 %3195 }
0x109f   : > { %v3200_v55 = vsel %vm632_vm13, %v3194_v50, %v3198_v28  ;;  %v3202_v4 = vsel %vm632_vm13, %v3198_v28, %v3194_v50  ;;  %v3199_v41 = vsel %vm632_vm13, %v3192_v43, %v3196_v42  ;;  %v3201_v49 = vsel %vm632_vm13, %v3196_v42, %v3192_v43  ;;  %6778 = vmatprep.subr.bf16.mxu0 %v6777_v35  ;;  %v3272_v43 = vld [vmem:[#allocation4 + $0x90] sm:$0x3f] }
0x10a0   : > { %v3205_v56 = vmul.f32 %v3200_v55, %v7643_v53  ;;  %v3206_v13 = vmul.f32 %v3202_v4, %v7646_v54  ;;  %v9452_v46 = vmul.f32 %v3199_v41, %v7643_v53  ;;  %v9455_v21 = vmul.f32 %v3201_v49, %v7646_v54 }
0x10a1   : > { %6780 = vmatpush1.bf16.msra.mxu0 %v6779_v14  ;;  %v11076_v28 = vrot.slane %v9381_v32, 6  ;;  %v11077_v35 = vrot.slane %v9384_v51, 6 }
0x10a2   : > { %11189 = vst [vmem:[#allocation21_spill] sm:$0xff] %v9452_v46  ;;  %v6781_v34 = vpack.c.bf16 %v3206_v13, %v9455_v21  ;;  %v6784_v50 = vpack.c.bf16 %v3205_v56, %v9452_v46 }
0x10a4   : > { %6783 = vmatprep.subr.msk.bf16.mxu0 %vm8123_vm14, %v6781_v34 }
0x10a5   : > { %6786 = vmatpush1.bf16.msk.msra.mxu0 %vm8123_vm14, %v6784_v50  ;;  %v7250_v50 = vmov 10  }
0x10a6   : > { %7033 = vset.pattern.permute.xlu0 %v7250_v50 }
0x10a8   : > { %6506 = vmatmul.mubr.msk.f32.vlgmr.msra.gmra.mrb[8].mxu0 %vm1396_vm15, %v3272_v43  ;;  %v9566_v43 = vld [vmem:[#allocation6] sm:$0x3f] }
0x10a9   : > { %3801 = vmatprep.mubr.f32.mxu0 %v11178_v40  ;;  %11193 = vst [vmem:[#allocation29_spill] sm:$0xff] %v9566_v43 }
0x10af   : > { %v3275_v6 = vpop.permute.xlu0 %3274 }
0x117b   : > { %v3352_v31 = vpop.f32.mrb[8].mxu0 }
0x117c   : > { %v3353_v52 = vadd.f32 %v3352_v31, %v3275_v6  ;;  %v3354_v33 = vpop.f32.mrb[9].mxu0 }
0x117d   : > { %v3355_v59 = vadd.f32 %v3354_v33, %v3275_v6  ;;  %v7054_v6 = vld [vmem:[#allocation9] sm:$0x3f] }
0x117e   : > { %v3357_v0 = vmax.f32 %v3353_v52, 0.0 }
0x117f   : > { %v3358_v27 = vmax.f32 %v3355_v59, 0.0 }
0x1180   : > { %v9466_v42 = vrot.slane %v3357_v0, 4 }
0x1181   : > { %v9469_v14 = vrot.slane %v3358_v27, 4 }
0x1182   : > { %11191 = vst [vmem:[#allocation27_spill] sm:$0xff] %v9466_v42  ;;  %3433 = vrot.lane.b32.xlu1 %v9466_v42, %s7233_s26  ;;  %3369 = vrot.lane.b32.xlu0 %v9466_v42, %s7234_s13  ;;  %v9478_v55 = vsel %vm692_vm6, %v9208_v9, %v9466_v42  ;;  %v9484_v4 = vsel %vm698_vm12, %v9466_v42, %v11076_v28 }
0x1183   : > { %11192 = vst [vmem:[#allocation28_spill] sm:$0xff] %v9469_v14  ;;  %v9489_v41 = vsel %vm692_vm6, %v9214_v5, %v9469_v14  ;;  %v9495_v49 = vsel %vm698_vm12, %v9469_v14, %v11077_v35  ;;  %v6829_v34 = vpack.c.bf16 %v9478_v55, %v9231_v3  ;;  %v3633_v5 = vld [vmem:[#allocation4 + $0xa8] sm:$0x3f]  ;;  %v3499_v35 = vrot.slane %v9304_v10, 6 }
0x1184   : > { %v6827_v56 = vpack.c.bf16 %v9489_v41, %v9244_v36  ;;  %6509 = vmatprep.mubr.msk.f32.mxu1 %vm1758_vm4, %v3633_v5 }
0x1186   : > { %6828 = vmatprep.subr.bf16.mxu0 %v6827_v56  ;;  %3385 = vrot.lane.b32.xlu0 %v9466_v42, %s7232_s22 }
0x1187   : > { %3367 = vrot.lane.b32.xlu1 %v9478_v55, %s7234_s13  ;;  %6830 = vmatpush1.bf16.msra.mxu0 %v6829_v34 }
0x118a   : > { %3401 = vrot.lane.b32.xlu0 %v9466_v42, %s7231_s27 }
0x118b   : > { %3373 = vrot.lane.b32.xlu1 %v9469_v14, %s7234_s13 }
0x118e   : > { %3417 = vrot.lane.b32.xlu0 %v9466_v42, %s7230_s30 }
0x118f   : > { %3389 = vrot.lane.b32.xlu1 %v9469_v14, %s7232_s22 }
0x1192   : > { %3383 = vrot.lane.b32.xlu0 %v9478_v55, %s7232_s22 }
0x1193   : > { %3405 = vrot.lane.b32.xlu1 %v9469_v14, %s7231_s27 }
0x1196   : > { %3399 = vrot.lane.b32.xlu0 %v9478_v55, %s7231_s27 }
0x1197   : > { %3421 = vrot.lane.b32.xlu1 %v9469_v14, %s7230_s30 }
0x119a   : > { %3415 = vrot.lane.b32.xlu0 %v9478_v55, %s7230_s30 }
0x119b   : > { %3371 = vrot.lane.b32.xlu1 %v9489_v41, %s7234_s13 }
0x119e   : > { %3431 = vrot.lane.b32.xlu0 %v9478_v55, %s7233_s26 }
0x119f   : > { %3387 = vrot.lane.b32.xlu1 %v9489_v41, %s7232_s22 }
0x11a2   : > { %3447 = vrot.lane.b32.xlu0 %v9478_v55, %s7235_s2 }
0x11a3   : > { %3403 = vrot.lane.b32.xlu1 %v9489_v41, %s7231_s27 }
0x11a6   : > { %3435 = vrot.lane.b32.xlu0 %v9489_v41, %s7233_s26 }
0x11a7   : > { %3419 = vrot.lane.b32.xlu1 %v9489_v41, %s7230_s30 }
0x11aa   : > { %3451 = vrot.lane.b32.xlu0 %v9489_v41, %s7235_s2 }
0x11ab   : > { %3437 = vrot.lane.b32.xlu1 %v9469_v14, %s7233_s26 }
0x11ae   : > { %3463 = vrot.lane.b32.xlu0 %v9478_v55, %s7237_s29 }
0x11af   : > { %3449 = vrot.lane.b32.xlu1 %v9466_v42, %s7235_s2 }
0x11b2   : > { %3467 = vrot.lane.b32.xlu0 %v9489_v41, %s7237_s29 }
0x11b3   : > { %3453 = vrot.lane.b32.xlu1 %v9469_v14, %s7235_s2 }
0x11b6   : > { %3479 = vrot.lane.b32.xlu0 %v9478_v55, %s7239_s21 }
0x11b7   : > { %3465 = vrot.lane.b32.xlu1 %v9466_v42, %s7237_s29 }
0x11ba   : > { %3481 = vrot.lane.b32.xlu0 %v9466_v42, %s7239_s21 }
0x11bb   : > { %3469 = vrot.lane.b32.xlu1 %v9469_v14, %s7237_s29 }
0x11be   : > { %3635 = vperm.xlu0 %7033, %v9566_v43  }
0x11bf   : > { %3483 = vrot.lane.b32.xlu1 %v9489_v41, %s7239_s21 }
0x11c3   : > { %3485 = vrot.lane.b32.xlu1 %v9469_v14, %s7239_s21 }
0x11c7   : > { %3731 = vperm.xlu1 %7034, %v7054_v6  }
0x11f4   : > { %v9569_v31 = vpop.permute.xlu1 %3433  ;;  %v3370_v52 = vpop.permute.xlu0 %3369 }
0x11f8   : > { %v3386_v33 = vpop.permute.xlu0 %3385 }
0x11f9   : > { %v3368_v59 = vpop.permute.xlu1 %3367 }
0x11fc   : > { %v3402_v0 = vpop.permute.xlu0 %3401 }
0x11fd   : > { %v3374_v27 = vpop.permute.xlu1 %3373 }
0x11fe   : > { %v3376_v6 = vsel %vm513_vm5, %v3370_v52, %v3374_v27  ;;  %v3378_v11 = vsel %vm513_vm5, %v3374_v27, %v3370_v52 }
0x1200   : > { %v3418_v56 = vpop.permute.xlu0 %3417 }
0x1201   : > { %v3390_v34 = vpop.permute.xlu1 %3389 }
0x1202   : > { %v3394_v60 = vsel %vm530_vm1, %v3390_v34, %v3386_v33  ;;  %v3392_v43 = vsel %vm530_vm1, %v3386_v33, %v3390_v34  ;;  %v3381_v33 = vmul.f32 %v3378_v11, %v11187_v17  ;;  %v3382_v34 = vmul.f32 %v3376_v6, %v11188_v61 }
0x1203   : > { %v3397_v14 = vmul.f32 %v3394_v60, %v7548_v25 }
0x1204   : > { %v3384_v9 = vpop.permute.xlu0 %3383  ;;  %v3619_v45 = vsel %vm698_vm12, %v3381_v33, %v3499_v35 }
0x1205   : > { %v3406_v13 = vpop.permute.xlu1 %3405 }
0x1206   : > { %v3408_v62 = vsel %vm547_vm2, %v3402_v0, %v3406_v13  ;;  %v3410_v52 = vsel %vm547_vm2, %v3406_v13, %v3402_v0 }
0x1208   : > { %v3400_v5 = vpop.permute.xlu0 %3399 }
0x1209   : > { %v3422_v28 = vpop.permute.xlu1 %3421 }
0x120c   : > { %v9571_v50 = vpop.permute.xlu0 %3415 }
0x120d   : > { %v3372_v48 = vpop.permute.xlu1 %3371 }
0x120e   : > { %v3375_v18 = vsel %vm513_vm5, %v3368_v59, %v3372_v48  ;;  %v3377_v10 = vsel %vm513_vm5, %v3372_v48, %v3368_v59  ;;  %v3398_v59 = vmul.f32 %v3392_v43, %v7551_v26 }
0x120f   : > { %v3379_v27 = vmul.f32 %v3377_v10, %v11187_v17  ;;  %v3380_v42 = vmul.f32 %v3375_v18, %v11188_v61  ;;  %v3413_v18 = vmul.f32 %v3410_v52, %v7543_v23  ;;  %v9603_v10 = vmul.f32 %v3408_v62, %v7545_v24 }
0x1210   : > { %v3432_v40 = vpop.permute.xlu0 %3431  ;;  %v3620_v52 = vsel %vm698_vm12, %v3382_v34, %v3500_v38  ;;  %v3507_v48 = vrot.slane %v3398_v59, 6 }
0x1211   : > { %v6789_v46 = vpack.c.bf16 %v3379_v27, %v9320_v39  ;;  %v3388_v13 = vpop.permute.xlu1 %3387  ;;  %v6787_v0 = vpack.c.bf16 %v3380_v42, %v9323_v47  ;;  %v3505_v42 = vrot.slane %v3397_v14, 6  ;;  %v3426_v14 = vsel %vm564_vm0, %v3422_v28, %v3418_v56 }
0x1212   : > { %v3391_v11 = vsel %vm530_vm1, %v3384_v9, %v3388_v13  ;;  %v3393_v60 = vsel %vm530_vm1, %v3388_v13, %v3384_v9  ;;  %v3424_v9 = vsel %vm564_vm0, %v3418_v56, %v3422_v28 }
0x1213   : > { %v3395_v39 = vmul.f32 %v3393_v60, %v7548_v25  ;;  %v3396_v27 = vmul.f32 %v3391_v11, %v7551_v26  ;;  %6788 = vmatprep.subr.bf16.mxu1 %v6787_v0  ;;  %v3527_v60 = vrot.slane %v3413_v18, 4  ;;  %v3529_v11 = vrot.slane %v9603_v10, 4 }
0x1214   : > { %6790 = vmatpush1.bf16.msra.mxu1 %v6789_v46  ;;  %v3448_v62 = vpop.permute.xlu0 %3447 }
0x1215   : > { %v3501_v13 = vrot.slane %v3395_v39, 6  ;;  %v3503_v6 = vrot.slane %v3396_v27, 6  ;;  %v3404_v43 = vpop.permute.xlu1 %3403  ;;  %v3430_v39 = vmul.f32 %v3424_v9, %v7535_v20 }
0x1216   : > { %v3407_v0 = vsel %vm547_vm2, %v3400_v5, %v3404_v43  ;;  %v3409_v46 = vsel %vm547_vm2, %v3404_v43, %v3400_v5 }
0x1217   : > { %v3411_v33 = vmul.f32 %v3409_v46, %v7543_v23  ;;  %v3412_v34 = vmul.f32 %v3407_v0, %v7545_v24  ;;  %v3504_v59 = vsel %vm698_vm12, %v3500_v38, %v3503_v6  ;;  %v3506_v18 = vsel %vm698_vm12, %v3501_v13, %v3505_v42 }
0x1218   : > { %v3436_v10 = vpop.permute.xlu0 %3435  ;;  %v6791_v27 = vpack.c.bf16 %v3504_v59, %v3620_v52  ;;  %v3502_v47 = vsel %vm698_vm12, %v3499_v35, %v3501_v13  ;;  %v3508_v13 = vsel %vm698_vm12, %v3503_v6, %v3507_v48  ;;  %v3429_v0 = vmul.f32 %v3426_v14, %v7533_v19 }
0x1219   : > { %v3523_v61 = vrot.slane %v3411_v33, 4  ;;  %v3525_v17 = vrot.slane %v3412_v34, 4  ;;  %v3439_v5 = vsel %vm581_vm3, %v3432_v40, %v3436_v10  ;;  %v3441_v28 = vsel %vm581_vm3, %v3436_v10, %v3432_v40  ;;  %v3420_v56 = vpop.permute.xlu1 %3419 }
0x121a   : > { %v9636_v43 = vmul.f32 %v3439_v5, %v7554_v29  ;;  %v3444_v38 = vmul.f32 %v3441_v28, %v7556_v30  ;;  %v3423_v42 = vsel %vm564_vm0, %v9571_v50, %v3420_v56  ;;  %v3425_v35 = vsel %vm564_vm0, %v3420_v56, %v9571_v50  ;;  %6792 = vmatprep.subr.bf16.mxu1 %v6791_v27 }
0x121b   : > { %v3427_v52 = vmul.f32 %v3425_v35, %v7533_v19  ;;  %v3428_v9 = vmul.f32 %v3423_v42, %v7535_v20  ;;  %v6793_v40 = vpack.c.bf16 %v3502_v47, %v3619_v45  ;;  %v3549_v46 = vrot.slane %v3430_v39, 2 }
0x121c   : > { %v3452_v33 = vpop.permute.xlu0 %3451  ;;  %v11194_v34 = vrot.slane %v9337_v2, 4  ;;  %v11195_v10 = vrot.slane %v9334_v12, 4  ;;  %v3528_v27 = vsel %vm692_vm6, %v3523_v61, %v3527_v60  ;;  %v3563_v5 = vrot.slane %v9636_v43, 6 }
0x121d   : > { %v3565_v28 = vrot.slane %v3444_v38, 6  ;;  %v3545_v45 = vrot.slane %v3428_v9, 2  ;;  %6794 = vmatpush1.bf16.msra.mxu1 %v6793_v40  ;;  %v3438_v48 = vpop.permute.xlu1 %3437  ;;  %v3543_v6 = vrot.slane %v3427_v52, 2  ;;  %v3455_v35 = vsel %vm598_vm9, %v3448_v62, %v3452_v33 }
0x121e   : > { %v3526_v59 = vsel %vm692_vm6, %v11194_v34, %v3525_v17  ;;  %v3621_v50 = vsel %vm692_vm6, %v3506_v18, %v11195_v10  ;;  %v3440_v47 = vsel %vm581_vm3, %v9569_v31, %v3438_v48  ;;  %v3442_v14 = vsel %vm581_vm3, %v3438_v48, %v9569_v31 }
0x121f   : > { %v11196_v39 = vmov %v11194_v34  ;;  %v3445_v60 = vmul.f32 %v3440_v47, %v7554_v29  ;;  %v3446_v56 = vmul.f32 %v3442_v14, %v7556_v30  ;;  %v11197_v38 = vmov %v11195_v10 }
0x1220   : > { %v3622_v18 = vsel %vm692_vm6, %v3508_v13, %v11196_v39  ;;  %v3524_v42 = vsel %vm692_vm6, %v11197_v38, %v3523_v61  ;;  %v3457_v52 = vsel %vm598_vm9, %v3452_v33, %v3448_v62  ;;  %v3464_v9 = vpop.permute.xlu0 %3463  ;;  %v3530_v2 = vsel %vm692_vm6, %v3525_v17, %v3529_v11 }
0x1221   : > { %v6795_v43 = vpack.c.bf16 %v3526_v59, %v3622_v18  ;;  %v6797_v31 = vpack.c.bf16 %v3524_v42, %v3621_v50  ;;  %v3567_v40 = vrot.slane %v3445_v60, 6  ;;  %v3569_v13 = vrot.slane %v3446_v56, 6  ;;  %v3450_v34 = vpop.permute.xlu1 %3449 }
0x1222   : > { %v11198_v59 = vrot.slane %v9365_v44, 2  ;;  %v11200_v62 = vrot.slane %v9362_v8, 2  ;;  %v3550_v50 = vsel %vm686_vm11, %v3545_v45, %v3549_v46  ;;  %v3584_v47 = vrot.slane %v9421_v22, 4 }
0x1223   : > { %6796 = vmatprep.subr.bf16.mxu1 %v6795_v43  ;;  %v3547_v14 = vrot.slane %v3429_v0, 2  ;;  %v3568_v39 = vsel %vm698_vm12, %v3563_v5, %v3567_v40  ;;  %v3459_v18 = vmul.f32 %v3455_v35, %v7595_v57  ;;  %v3460_v60 = vmul.f32 %v3457_v52, %v7598_v58 }
0x1224   : > { %v3546_v12 = vsel %vm686_vm11, %v11198_v59, %v3545_v45  ;;  %v11199_v61 = vmov %v11198_v59  ;;  %6798 = vmatpush1.bf16.msra.mxu1 %v6797_v31  ;;  %v3544_v33 = vsel %vm686_vm11, %v11200_v62, %v3543_v6  ;;  %v11201_v17 = vmov %v11200_v62  ;;  %v3468_v8 = vpop.permute.xlu0 %3467 }
0x1225   : > { %v3624_v10 = vsel %vm686_vm11, %v3530_v2, %v11199_v61  ;;  %v3623_v11 = vsel %vm686_vm11, %v3528_v27, %v11201_v17  ;;  %v3570_v56 = vsel %vm698_vm12, %v3565_v28, %v3569_v13  ;;  %v6803_v43 = vpack.c.bf16 %v9244_v36, %v3550_v50  ;;  %v3454_v38 = vpop.permute.xlu1 %3453 }
0x1226   : > { %v6799_v48 = vpack.c.bf16 %v3546_v12, %v3624_v10  ;;  %v6801_v44 = vpack.c.bf16 %v3544_v33, %v3623_v11  ;;  %v3548_v27 = vsel %vm686_vm11, %v3543_v6, %v3547_v14  ;;  %v3628_v46 = vsel %vm692_vm6, %v3570_v56, %v3584_v47 }
0x1227   : > { %v11202_v22 = vrot.slane %v9418_v63, 4  ;;  %v3456_v45 = vsel %vm598_vm9, %v3450_v34, %v3454_v38  ;;  %v3458_v42 = vsel %vm598_vm9, %v3454_v38, %v3450_v34  ;;  %v11203_v35 = vrot.slane %v9384_v51, 6 }
0x1228   : > { %6800 = vmatprep.subr.bf16.mxu1 %v6799_v48  ;;  %v11204_v52 = vrot.slane %v9381_v32, 6  ;;  %v3461_v31 = vmul.f32 %v3456_v45, %v7595_v57  ;;  %v3462_v2 = vmul.f32 %v3458_v42, %v7598_v58  ;;  %v3585_v59 = vrot.slane %v3459_v18, 4 }
0x1229   : > { %v3627_v0 = vsel %vm692_vm6, %v3568_v39, %v11202_v22  ;;  %6802 = vmatpush1.bf16.msra.mxu1 %v6801_v44  ;;  %v3566_v36 = vsel %vm698_vm12, %v11203_v35, %v3565_v28  ;;  %v3587_v12 = vrot.slane %v3460_v60, 4  ;;  %v3473_v34 = vsel %vm615_vm10, %v3468_v8, %v3464_v9  ;;  %v3466_v10 = vpop.permute.xlu1 %3465 }
0x122a   : > { %v3564_v6 = vsel %vm698_vm12, %v11204_v52, %v3563_v5  ;;  %6804 = vmatprep.subr.bf16.mxu1 %v6803_v43  ;;  %v6811_v40 = vpack.c.bf16 %v3628_v46, %v3566_v36  ;;  %v6805_v51 = vpack.c.bf16 %v9231_v3, %v3548_v27  ;;  %v3589_v61 = vrot.slane %v3461_v31, 4 }
0x122b   : > { %v6813_v13 = vpack.c.bf16 %v3627_v0, %v3564_v6  ;;  %v3591_v28 = vrot.slane %v3462_v2, 4  ;;  %v3603_v32 = vrot.slane %v9424_v1, 2  ;;  %v3604_v5 = vrot.slane %v9427_v37, 2 }
0x122c   : > { %v3471_v48 = vsel %vm615_vm10, %v3464_v9, %v3468_v8  ;;  %v3476_v62 = vmul.f32 %v3473_v34, %v7619_v16  ;;  %v3590_v33 = vsel %vm692_vm6, %v3585_v59, %v3589_v61  ;;  %v11205_v17 = vpack.c.bf16 %v9495_v49, %v9489_v41  ;;  %v3480_v8 = vpop.permute.xlu0 %3479  ;;  %v3632_v61 = vld [vmem:[#allocation4 + $0xa0] sm:$0x3f] }
0x122d   : > { %6806 = vmatpush1.bf16.msra.mxu1 %v6805_v51  ;;  %v3592_v3 = vsel %vm692_vm6, %v3587_v12, %v3591_v28  ;;  %v3588_v11 = vsel %vm692_vm6, %v3584_v47, %v3587_v12  ;;  %v11206_v37 = vmov %v11202_v22  ;;  %v3629_v9 = vsel %vm686_vm11, %v3590_v33, %v3603_v32  ;;  %v3470_v39 = vpop.permute.xlu1 %3469 }
0x122e   : > { %6808 = vmatprep.subr.bf16.mxu1 %v11205_v17  ;;  %v3630_v1 = vsel %vm686_vm11, %v3592_v3, %v3604_v5  ;;  %v3586_v50 = vsel %vm692_vm6, %v11206_v37, %v3585_v59  ;;  %v3475_v14 = vmul.f32 %v3471_v48, %v7616_v15  ;;  %v11207_v41 = vpack.c.bf16 %v9484_v4, %v9478_v55  ;;  %v11208_v59 = vld [vmem:[#allocation21_spill] sm:$0xff] }
0x122f   : > { %v6815_v44 = vpack.c.bf16 %v3630_v1, %v3588_v11  ;;  %v6817_v18 = vpack.c.bf16 %v3629_v9, %v3586_v50  ;;  %v3472_v49 = vsel %vm615_vm10, %v3466_v10, %v3470_v39  ;;  %v3474_v47 = vsel %vm615_vm10, %v3470_v39, %v3466_v10  ;;  %v11210_v1 = vld [vmem:[#allocation28_spill] sm:$0xff]  ;;  %v3729_v50 = vld [vmem:[#allocation7 + $0x10] sm:$0x3f]  ;;  %v11211_v9 = vld [vmem:[#allocation27_spill] sm:$0xff] }
0x1230   : > { %v3607_v63 = vrot.slane %v3476_v62, 2  ;;  %v3477_v60 = vmul.f32 %v3472_v49, %v7616_v15  ;;  %v3478_v56 = vmul.f32 %v3474_v47, %v7619_v16  ;;  %v3605_v43 = vrot.slane %v3475_v14, 2  ;;  %v11212_v47 = vld [vmem:[#allocation25_spill] sm:$0xff] }
0x1231   : > { %6810 = vmatpush1.bf16.msra.mxu1 %v11207_v41  ;;  %v3484_v46 = vpop.permute.xlu1 %3483  ;;  %v11209_v28 = vmov 0.0  }
0x1232   : > { %6812 = vmatprep.subr.bf16.mxu1 %v6811_v40  ;;  %v3609_v38 = vrot.slane %v3477_v60, 2  ;;  %v3611_v27 = vrot.slane %v3478_v56, 2  ;;  %v3489_v55 = vsel %vm632_vm13, %v3484_v46, %v3480_v8  ;;  %v3608_v22 = vsel %vm686_vm11, %v3604_v5, %v3607_v63  ;;  %v3482_v40 = vpop.permute.xlu0 %3481  ;;  %v11214_v60 = vld [vmem:[#allocation22_spill] sm:$0xff] }
0x1233   : > { %v3492_v4 = vmul.f32 %v3489_v55, %v7646_v54  ;;  %v3487_v35 = vsel %vm632_vm13, %v3480_v8, %v3484_v46  ;;  %v3606_v36 = vsel %vm686_vm11, %v3603_v32, %v3605_v43  ;;  %v11216_v8 = vld [vmem:[#allocation29_spill] sm:$0xff] }
0x1234   : > { %v3612_v0 = vsel %vm686_vm11, %v3607_v63, %v3611_v27  ;;  %v3610_v45 = vsel %vm686_vm11, %v3605_v43, %v3609_v38  ;;  %v3491_v2 = vmul.f32 %v3487_v35, %v7643_v53  ;;  %v7251_v43 = vmov 11  }
0x1235   : > { %6814 = vmatpush1.bf16.msra.mxu1 %v6813_v13  ;;  %v6819_v42 = vpack.c.bf16 %v3612_v0, %v3608_v22  ;;  %v6821_v52 = vpack.c.bf16 %v3610_v45, %v3606_v36  ;;  %v3486_v6 = vpop.permute.xlu1 %3485  ;;  %v6823_v31 = vpack.c.bf16 %v3492_v4, %v9455_v21  ;;  %7035 = vset.pattern.permute.xlu1 %v7251_v43  ;;  %v11217_v38 = vmov 3  }
0x1236   : > { %6816 = vmatprep.subr.bf16.mxu1 %v6815_v44  ;;  %v3490_v13 = vsel %vm632_vm13, %v3486_v6, %v3482_v40  ;;  %v6825_v12 = vpack.c.bf16 %v3491_v2, %v11208_v59  ;;  %v3488_v34 = vsel %vm632_vm13, %v3482_v40, %v3486_v6 }
0x1237   : > { %v3494_v51 = vmul.f32 %v3490_v13, %v7646_v54  ;;  %v3493_v21 = vmul.f32 %v3488_v34, %v7643_v53 }
0x1239   : > { %6818 = vmatpush1.bf16.msra.mxu1 %v6817_v18 }
0x123a   : > { %6820 = vmatprep.subr.bf16.mxu1 %v6819_v42 }
0x123d   : > { %6822 = vmatpush1.bf16.msra.mxu1 %v6821_v52  ;;  %v3636_v10 = vpop.permute.xlu0 %3635 }
0x123e   : > { %6824 = vmatprep.subr.bf16.mxu1 %v6823_v31 }
0x1241   : > { %6826 = vmatpush1.bf16.msra.mxu1 %v6825_v12 }
0x1242   : > { %6507 = vmatprep.subr.msk.mxu1 %vm698_vm12, %v3494_v51 }
0x1245   : > { %6508 = vmatpush1.msk.msra.mxu1 %vm698_vm12, %v3493_v21  ;;  %v11218_v21 = vld [vmem:[#allocation15_spill] sm:$0xff] }
0x1246   : > { %3712 = vmatmul.mubr.f32.vlgmr.msra.gmra.mrb[14].mxu1 %v3632_v61  ;;  %v3732_v39 = vpop.permute.xlu1 %3731 }
0x1247   : > { %4289 = vmatprep.mubr.f32.mxu1 %v11209_v28 }
0x1319   : > { %v3713_v32 = vpop.f32.mrb[14].mxu1 }
0x131a   : > { %v3714_v5 = vadd.f32 %v3713_v32, %v3636_v10  ;;  %v3715_v48 = vpop.f32.mrb[15].mxu1 }
0x131b   : > { %v3716_v62 = vadd.f32 %v3715_v48, %v3636_v10  ;;  %v11219_v10 = vld [vmem:[#allocation16_spill] sm:$0xff] }
0x131c   : > { %v3718_v33 = vmax.f32 %v3714_v5, 0.0 }
0x131d   : > { %v3719_v17 = vmax.f32 %v3716_v62, 0.0 }
0x131e   : > { %v3722_v3 = vrot.slane %v3718_v33, 6 }
0x131f   : > { %v3723_v11 = vrot.slane %v3719_v17, 6 }
0x1320   : > { %v3726_v14 = vsel %vm698_vm12, %v11211_v9, %v3722_v3 }
0x1321   : > { %v3727_v37 = vsel %vm698_vm12, %v11210_v1, %v3723_v11 }
0x1322   : > { %3741 = vmatprep.subr.mxu0 %v3727_v37 }
0x1323   : > { %3742 = vmatpush1.msra.mxu0 %v3726_v14 }
0x1324   : > { %6510 = vmatmul.mubr.msk.f32.vlgmr.msra.gmra.mrb[10].mxu0 %vm1855_vm7, %v3729_v50 }
0x1325   : > { %4001 = vmatprep.mubr.f32.mxu0 %v11209_v28 }
0x13f7   : > { %v3803_v44 = vpop.f32.mrb[10].mxu0 }
0x13f8   : > { %v3804_v18 = vadd.f32 %v3803_v44, %v3732_v39  ;;  %v3805_v41 = vpop.f32.mrb[11].mxu0 }
0x13f9   : > { %v3806_v49 = vadd.f32 %v3805_v41, %v3732_v39 }
0x13fa   : > { %v9769_v63 = vadd.f32 %v3804_v18, %v11212_v47 }
0x13fb   : > { %v9772_v56 = vadd.f32 %v3806_v49, %v11214_v60 }
0x13fc   : > { %11213 = vst [vmem:[#allocation21_spill] sm:$0xff] %v9769_v63  ;;  %3818 = vrot.lane.b32.xlu1 %v9769_v63, %s7232_s22 }
0x13fd   : > { %11215 = vst [vmem:[#allocation28_spill] sm:$0xff] %v9772_v56  ;;  %3820 = vrot.lane.b32.xlu0 %v9772_v56, %s7232_s22 }
0x1400   : > { %3826 = vrot.lane.b32.xlu1 %v9769_v63, %s7231_s27 }
0x1401   : > { %3828 = vrot.lane.b32.xlu0 %v9772_v56, %s7231_s27 }
0x1404   : > { %3810 = vrot.lane.b32.xlu1 %v9769_v63, %s7234_s13 }
0x1405   : > { %3812 = vrot.lane.b32.xlu0 %v9772_v56, %s7234_s13 }
0x1408   : > { %3834 = vrot.lane.b32.xlu1 %v9769_v63, %s7230_s30 }
0x1409   : > { %3836 = vrot.lane.b32.xlu0 %v9772_v56, %s7230_s30 }
0x140c   : > { %3842 = vrot.lane.b32.xlu1 %v9769_v63, %s7233_s26 }
0x140d   : > { %3844 = vrot.lane.b32.xlu0 %v9772_v56, %s7233_s26 }
0x1410   : > { %3850 = vrot.lane.b32.xlu1 %v9769_v63, %s7235_s2 }
0x1411   : > { %3852 = vrot.lane.b32.xlu0 %v9772_v56, %s7235_s2 }
0x1414   : > { %3858 = vrot.lane.b32.xlu1 %v9769_v63, %s7237_s29 }
0x1415   : > { %3860 = vrot.lane.b32.xlu0 %v9772_v56, %s7237_s29 }
0x1418   : > { %3866 = vrot.lane.b32.xlu1 %v9769_v63, %s7239_s21 }
0x1419   : > { %3868 = vrot.lane.b32.xlu0 %v9772_v56, %s7239_s21 }
0x141c   : > { %3925 = vperm.xlu1 %7035, %v11216_v8  }
0x1420   : > { %7038 = vset.pattern.permute.xlu1 %v11217_v38 }
0x146e   : > { %v3819_v27 = vpop.permute.xlu1 %3818 }
0x146f   : > { %v3821_v46 = vpop.permute.xlu0 %3820 }
0x1470   : > { %v3822_v55 = vsel %vm530_vm1, %v3819_v27, %v3821_v46  ;;  %v3823_v4 = vsel %vm530_vm1, %v3821_v46, %v3819_v27 }
0x1471   : > { %v3824_v35 = vmul.f32 %v3823_v4, %v7548_v25  ;;  %v3825_v36 = vmul.f32 %v3822_v55, %v7551_v26 }
0x1472   : > { %v3827_v22 = vpop.permute.xlu1 %3826 }
0x1473   : > { %v3829_v0 = vpop.permute.xlu0 %3828  ;;  %v3876_v34 = vrot.slane %v3824_v35, 2  ;;  %v3877_v51 = vrot.slane %v3825_v36, 2 }
0x1474   : > { %v3830_v45 = vsel %vm547_vm2, %v3827_v22, %v3829_v0  ;;  %v3831_v42 = vsel %vm547_vm2, %v3829_v0, %v3827_v22 }
0x1475   : > { %v3832_v52 = vmul.f32 %v3831_v42, %v7543_v23  ;;  %v3833_v6 = vmul.f32 %v3830_v45, %v7545_v24 }
0x1476   : > { %v3811_v31 = vpop.permute.xlu1 %3810 }
0x1477   : > { %v3882_v2 = vrot.slane %v3832_v52, 4  ;;  %v3883_v40 = vrot.slane %v3833_v6, 4  ;;  %v3813_v13 = vpop.permute.xlu0 %3812 }
0x1478   : > { %v3814_v59 = vsel %vm513_vm5, %v3811_v31, %v3813_v13  ;;  %v3815_v12 = vsel %vm513_vm5, %v3813_v13, %v3811_v31 }
0x1479   : > { %v3816_v61 = vmul.f32 %v3815_v12, %v11218_v21  ;;  %v3817_v32 = vmul.f32 %v3814_v59, %v11219_v10  ;;  %v3913_v33 = vsel %vm692_vm6, %v3877_v51, %v3883_v40  ;;  %v3912_v3 = vsel %vm692_vm6, %v3876_v34, %v3882_v2 }
0x147a   : > { %v3835_v5 = vpop.permute.xlu1 %3834 }
0x147b   : > { %v3837_v48 = vpop.permute.xlu0 %3836  ;;  %v3911_v62 = vsel %vm686_vm11, %v3817_v32, %v3877_v51  ;;  %v3910_v17 = vsel %vm686_vm11, %v3816_v61, %v3876_v34 }
0x147c   : > { %v3838_v11 = vsel %vm564_vm0, %v3835_v5, %v3837_v48  ;;  %v3839_v1 = vsel %vm564_vm0, %v3837_v48, %v3835_v5  ;;  %v6831_v37 = vpack.c.bf16 %v3913_v33, %v3911_v62  ;;  %v6833_v50 = vpack.c.bf16 %v3912_v3, %v3910_v17 }
0x147d   : > { %v3840_v9 = vmul.f32 %v3839_v1, %v7533_v19  ;;  %v3841_v14 = vmul.f32 %v3838_v11, %v7535_v20 }
0x147e   : > { %6832 = vmatprep.subr.bf16.mxu0 %v6831_v37  ;;  %v3843_v39 = vpop.permute.xlu1 %3842 }
0x147f   : > { %v3845_v44 = vpop.permute.xlu0 %3844  ;;  %6834 = vmatpush1.bf16.msra.mxu0 %v6833_v50  ;;  %v3888_v18 = vrot.slane %v3840_v9, 6  ;;  %v3889_v41 = vrot.slane %v3841_v14, 6 }
0x1480   : > { %v3846_v49 = vsel %vm581_vm3, %v3843_v39, %v3845_v44  ;;  %v3847_v43 = vsel %vm581_vm3, %v3845_v44, %v3843_v39 }
0x1481   : > { %v3848_v27 = vmul.f32 %v3846_v49, %v7554_v29  ;;  %v3849_v46 = vmul.f32 %v3847_v43, %v7556_v30  ;;  %v3915_v35 = vsel %vm698_vm12, %v3883_v40, %v3889_v41  ;;  %v3914_v36 = vsel %vm698_vm12, %v3882_v2, %v3888_v18  ;;  %v3923_v49 = vld [vmem:[#allocation4 + $0xb0] sm:$0x3f] }
0x1482   : > { %v3851_v55 = vpop.permute.xlu1 %3850 }
0x1483   : > { %v3894_v4 = vrot.slane %v3848_v27, 2  ;;  %v3895_v22 = vrot.slane %v3849_v46, 2  ;;  %v3853_v0 = vpop.permute.xlu0 %3852 }
0x1484   : > { %v3854_v45 = vsel %vm598_vm9, %v3851_v55, %v3853_v0  ;;  %v3855_v42 = vsel %vm598_vm9, %v3853_v0, %v3851_v55 }
0x1485   : > { %v3856_v52 = vmul.f32 %v3854_v45, %v7595_v57  ;;  %v3857_v6 = vmul.f32 %v3855_v42, %v7598_v58  ;;  %v3917_v31 = vsel %vm686_vm11, %v9772_v56, %v3895_v22  ;;  %v3916_v13 = vsel %vm686_vm11, %v9769_v63, %v3894_v4 }
0x1486   : > { %v3859_v59 = vpop.permute.xlu1 %3858  ;;  %v6835_v12 = vpack.c.bf16 %v3917_v31, %v3915_v35  ;;  %v6837_v34 = vpack.c.bf16 %v3916_v13, %v3914_v36 }
0x1487   : > { %v3861_v51 = vpop.permute.xlu0 %3860  ;;  %v3901_v61 = vrot.slane %v3857_v6, 4  ;;  %v3900_v32 = vrot.slane %v3856_v52, 4  ;;  %v7252_v52 = vmov 12  }
0x1488   : > { %v3862_v40 = vsel %vm615_vm10, %v3859_v59, %v3861_v51  ;;  %v3863_v2 = vsel %vm615_vm10, %v3861_v51, %v3859_v59  ;;  %6836 = vmatprep.subr.bf16.mxu0 %v6835_v12  ;;  %7036 = vset.pattern.permute.xlu0 %v7252_v52 }
0x1489   : > { %v3864_v5 = vmul.f32 %v3862_v40, %v7616_v15  ;;  %v3865_v48 = vmul.f32 %v3863_v2, %v7619_v16  ;;  %6838 = vmatpush1.bf16.msra.mxu0 %v6837_v34  ;;  %v3919_v11 = vsel %vm692_vm6, %v3895_v22, %v3901_v61  ;;  %v3918_v50 = vsel %vm692_vm6, %v3894_v4, %v3900_v32 }
0x148a   : > { %v3867_v62 = vpop.permute.xlu1 %3866 }
0x148b   : > { %v3906_v33 = vrot.slane %v3864_v5, 6  ;;  %v3907_v17 = vrot.slane %v3865_v48, 6  ;;  %v3869_v3 = vpop.permute.xlu0 %3868 }
0x148c   : > { %v3871_v1 = vsel %vm632_vm13, %v3869_v3, %v3867_v62  ;;  %v3870_v44 = vsel %vm632_vm13, %v3867_v62, %v3869_v3 }
0x148d   : > { %v3921_v37 = vsel %vm698_vm12, %v3901_v61, %v3907_v17  ;;  %v3920_v9 = vsel %vm698_vm12, %v3900_v32, %v3906_v33  ;;  %v3873_v18 = vmul.f32 %v3871_v1, %v7646_v54  ;;  %v3872_v41 = vmul.f32 %v3870_v44, %v7643_v53 }
0x148e   : > { %v6839_v14 = vpack.c.bf16 %v3921_v37, %v3919_v11  ;;  %v6841_v39 = vpack.c.bf16 %v3920_v9, %v3918_v50 }
0x1490   : > { %6840 = vmatprep.subr.bf16.mxu0 %v6839_v14 }
0x1491   : > { %6842 = vmatpush1.bf16.msra.mxu0 %v6841_v39 }
0x1492   : > { %6511 = vmatprep.subr.msk.mxu0 %vm686_vm11, %v3873_v18 }
0x1495   : > { %6512 = vmatpush1.msk.msra.mxu0 %vm686_vm11, %v3872_v41 }
0x1496   : > { %6513 = vmatmul.mubr.msk.f32.vlgmr.msra.gmra.mrb[12].mxu0 %vm909_vm8, %v3923_v49 }
0x149b   : > { %v3926_v43 = vpop.permute.xlu1 %3925 }
0x1569   : > { %v4003_v27 = vpop.f32.mrb[12].mxu0 }
0x156a   : > { %v4004_v46 = vadd.f32 %v4003_v27, %v3926_v43  ;;  %v4005_v55 = vpop.f32.mrb[13].mxu0 }
0x156b   : > { %v4006_v4 = vadd.f32 %v4005_v55, %v3926_v43 }
0x156c   : > { %v4008_v22 = vmax.f32 %v4004_v46, 0.0 }
0x156d   : > { %v4009_v45 = vmax.f32 %v4006_v4, 0.0 }
0x156e   : > { %v9873_v0 = vrot.slane %v4008_v22, 2 }
0x156f   : > { %v9879_v42 = vrot.slane %v4009_v45, 2 }
0x1570   : > { %4068 = vrot.lane.b32.xlu1 %v9873_v0, %s7230_s30  ;;  %4020 = vrot.lane.b32.xlu0 %v9873_v0, %s7234_s13  ;;  %v9896_v35 = vsel %vm686_vm11, %v9769_v63, %v9873_v0 }
0x1571   : > { %v9909_v36 = vsel %vm686_vm11, %v9772_v56, %v9879_v42 }
0x1574   : > { %4024 = vrot.lane.b32.xlu1 %v9879_v42, %s7234_s13  ;;  %4036 = vrot.lane.b32.xlu0 %v9873_v0, %s7232_s22 }
0x1578   : > { %4040 = vrot.lane.b32.xlu1 %v9879_v42, %s7232_s22  ;;  %4052 = vrot.lane.b32.xlu0 %v9873_v0, %s7231_s27 }
0x157c   : > { %4072 = vrot.lane.b32.xlu1 %v9879_v42, %s7230_s30  ;;  %4084 = vrot.lane.b32.xlu0 %v9873_v0, %s7233_s26 }
0x1580   : > { %4056 = vrot.lane.b32.xlu1 %v9879_v42, %s7231_s27  ;;  %4034 = vrot.lane.b32.xlu0 %v9896_v35, %s7232_s22 }
0x1584   : > { %4088 = vrot.lane.b32.xlu1 %v9879_v42, %s7233_s26  ;;  %4018 = vrot.lane.b32.xlu0 %v9896_v35, %s7234_s13 }
0x1588   : > { %4038 = vrot.lane.b32.xlu1 %v9909_v36, %s7232_s22  ;;  %4050 = vrot.lane.b32.xlu0 %v9896_v35, %s7231_s27 }
0x158c   : > { %4022 = vrot.lane.b32.xlu1 %v9909_v36, %s7234_s13  ;;  %4066 = vrot.lane.b32.xlu0 %v9896_v35, %s7230_s30 }
0x1590   : > { %4054 = vrot.lane.b32.xlu1 %v9909_v36, %s7231_s27  ;;  %4082 = vrot.lane.b32.xlu0 %v9896_v35, %s7233_s26 }
0x1594   : > { %4116 = vrot.lane.b32.xlu1 %v9873_v0, %s7237_s29  ;;  %4098 = vrot.lane.b32.xlu0 %v9896_v35, %s7235_s2 }
0x1598   : > { %4120 = vrot.lane.b32.xlu1 %v9879_v42, %s7237_s29  ;;  %4070 = vrot.lane.b32.xlu0 %v9909_v36, %s7230_s30 }
0x159c   : > { %4086 = vrot.lane.b32.xlu1 %v9909_v36, %s7233_s26  ;;  %4114 = vrot.lane.b32.xlu0 %v9896_v35, %s7237_s29 }
0x15a0   : > { %4104 = vrot.lane.b32.xlu1 %v9879_v42, %s7235_s2  ;;  %4100 = vrot.lane.b32.xlu0 %v9873_v0, %s7235_s2 }
0x15a4   : > { %4102 = vrot.lane.b32.xlu1 %v9909_v36, %s7235_s2  ;;  %4118 = vrot.lane.b32.xlu0 %v9909_v36, %s7237_s29 }
0x15a8   : > { %4132 = vrot.lane.b32.xlu1 %v9873_v0, %s7239_s21  ;;  %4130 = vrot.lane.b32.xlu0 %v9896_v35, %s7239_s21 }
0x15ac   : > { %4136 = vrot.lane.b32.xlu1 %v9879_v42, %s7239_s21  ;;  %4134 = vrot.lane.b32.xlu0 %v9909_v36, %s7239_s21 }
0x15b0   : > { %4213 = vperm.xlu0 %7036, %v11216_v8  }
0x15e2   : > { %v4069_v6 = vpop.permute.xlu1 %4068  ;;  %v4021_v31 = vpop.permute.xlu0 %4020 }
0x15e6   : > { %v4025_v13 = vpop.permute.xlu1 %4024  ;;  %v4037_v59 = vpop.permute.xlu0 %4036 }
0x15e7   : > { %v4027_v33 = vsel %vm513_vm5, %v4021_v31, %v4025_v13  ;;  %v4029_v8 = vsel %vm513_vm5, %v4025_v13, %v4021_v31 }
0x15e8   : > { %v4032_v9 = vmul.f32 %v4029_v8, %v11218_v21  ;;  %v4033_v14 = vmul.f32 %v4027_v33, %v11219_v10 }
0x15ea   : > { %v4041_v12 = vpop.permute.xlu1 %4040  ;;  %v4053_v34 = vpop.permute.xlu0 %4052 }
0x15eb   : > { %v4043_v11 = vsel %vm530_vm1, %v4037_v59, %v4041_v12  ;;  %v4045_v1 = vsel %vm530_vm1, %v4041_v12, %v4037_v59 }
0x15ec   : > { %v4048_v49 = vmul.f32 %v4045_v1, %v7548_v25  ;;  %v4049_v43 = vmul.f32 %v4043_v11, %v7551_v26 }
0x15ee   : > { %v4073_v51 = vpop.permute.xlu1 %4072  ;;  %v9952_v61 = vpop.permute.xlu0 %4084  ;;  %v4152_v12 = vrot.slane %v4048_v49, 4 }
0x15ef   : > { %v4075_v11 = vsel %vm564_vm0, %v4069_v6, %v4073_v51  ;;  %v4077_v1 = vsel %vm564_vm0, %v4073_v51, %v4069_v6 }
0x15f0   : > { %v4080_v49 = vmul.f32 %v4077_v1, %v7533_v19 }
0x15f2   : > { %v4057_v40 = vpop.permute.xlu1 %4056  ;;  %v4035_v2 = vpop.permute.xlu0 %4034 }
0x15f6   : > { %v9954_v32 = vpop.permute.xlu1 %4088  ;;  %v4019_v5 = vpop.permute.xlu0 %4018 }
0x15fa   : > { %v4039_v48 = vpop.permute.xlu1 %4038  ;;  %v4051_v62 = vpop.permute.xlu0 %4050 }
0x15fb   : > { %v4042_v17 = vsel %vm530_vm1, %v4035_v2, %v4039_v48  ;;  %v4044_v3 = vsel %vm530_vm1, %v4039_v48, %v4035_v2  ;;  %v4154_v2 = vrot.slane %v4049_v43, 4 }
0x15fc   : > { %v9969_v37 = vmul.f32 %v4044_v3, %v7548_v25  ;;  %v9972_v50 = vmul.f32 %v4042_v17, %v7551_v26 }
0x15fe   : > { %v4150_v39 = vrot.slane %v9969_v37, 4  ;;  %v4151_v44 = vrot.slane %v9972_v50, 4  ;;  %v4023_v18 = vpop.permute.xlu1 %4022  ;;  %v4067_v41 = vpop.permute.xlu0 %4066 }
0x15ff   : > { %v4026_v27 = vsel %vm513_vm5, %v4019_v5, %v4023_v18  ;;  %v4028_v46 = vsel %vm513_vm5, %v4023_v18, %v4019_v5 }
0x1600   : > { %v9985_v55 = vmul.f32 %v4028_v46, %v11218_v21  ;;  %v9988_v4 = vmul.f32 %v4026_v27, %v11219_v10  ;;  %v4202_v22 = vsel %vm692_vm6, %v4032_v9, %v4150_v39  ;;  %v4203_v45 = vsel %vm692_vm6, %v4033_v14, %v4151_v44 }
0x1601   : > { %v4153_v17 = vsel %vm692_vm6, %v4150_v39, %v4152_v12  ;;  %v4155_v3 = vsel %vm692_vm6, %v4151_v44, %v4154_v2  ;;  %v4081_v39 = vmul.f32 %v4075_v11, %v7535_v20  ;;  %v4059_v27 = vsel %vm547_vm2, %v4053_v34, %v4057_v40 }
0x1602   : > { %v6845_v52 = vpack.c.bf16 %v4202_v22, %v9985_v55  ;;  %v4055_v31 = vpop.permute.xlu1 %4054  ;;  %v4083_v13 = vpop.permute.xlu0 %4082  ;;  %v6843_v59 = vpack.c.bf16 %v4203_v45, %v9988_v4  ;;  %v4061_v46 = vsel %vm547_vm2, %v4057_v40, %v4053_v34  ;;  %v4091_v22 = vsel %vm581_vm3, %v9952_v61, %v9954_v32 }
0x1603   : > { %v4058_v5 = vsel %vm547_vm2, %v4051_v62, %v4055_v31  ;;  %v4060_v48 = vsel %vm547_vm2, %v4055_v31, %v4051_v62  ;;  %v4166_v31 = vrot.slane %v4080_v49, 4  ;;  %v4065_v12 = vmul.f32 %v4059_v27, %v7545_v24 }
0x1604   : > { %v9999_v33 = vmul.f32 %v4060_v48, %v7543_v23  ;;  %v10002_v8 = vmul.f32 %v4058_v5, %v7545_v24  ;;  %6844 = vmatprep.subr.bf16.mxu1 %v6843_v59  ;;  %v4168_v59 = vrot.slane %v4081_v39, 4  ;;  %v4093_v34 = vsel %vm581_vm3, %v9954_v32, %v9952_v61 }
0x1605   : > { %6846 = vmatpush1.bf16.msra.mxu1 %v6845_v52  ;;  %v4064_v48 = vmul.f32 %v4061_v46, %v7543_v23 }
0x1606   : > { %v6849_v62 = vpack.c.bf16 %v9999_v33, %v4153_v17  ;;  %v4117_v9 = vpop.permute.xlu1 %4116  ;;  %v4099_v14 = vpop.permute.xlu0 %4098  ;;  %v6847_v18 = vpack.c.bf16 %v10002_v8, %v4155_v3  ;;  %v4096_v17 = vmul.f32 %v4091_v22, %v7554_v29 }
0x1608   : > { %6848 = vmatprep.subr.bf16.mxu1 %v6847_v18  ;;  %v4097_v18 = vmul.f32 %v4093_v34, %v7556_v30 }
0x1609   : > { %6850 = vmatpush1.bf16.msra.mxu1 %v6849_v62 }
0x160a   : > { %v4121_v43 = vpop.permute.xlu1 %4120  ;;  %v4071_v44 = vpop.permute.xlu0 %4070  ;;  %v4182_v34 = vrot.slane %v4097_v18, 4 }
0x160b   : > { %v4074_v6 = vsel %vm564_vm0, %v4067_v41, %v4071_v44  ;;  %v4076_v51 = vsel %vm564_vm0, %v4071_v44, %v4067_v41  ;;  %v4125_v22 = vsel %vm615_vm10, %v4121_v43, %v4117_v9 }
0x160c   : > { %v10027_v45 = vmul.f32 %v4076_v51, %v7533_v19  ;;  %v10030_v52 = vmul.f32 %v4074_v6, %v7535_v20 }
0x160e   : > { %v4164_v40 = vrot.slane %v10027_v45, 4  ;;  %v4165_v41 = vrot.slane %v10030_v52, 4  ;;  %v4087_v2 = vpop.permute.xlu1 %4086  ;;  %v4115_v5 = vpop.permute.xlu0 %4114 }
0x160f   : > { %v4090_v3 = vsel %vm581_vm3, %v4083_v13, %v4087_v2  ;;  %v4092_v11 = vsel %vm581_vm3, %v4087_v2, %v4083_v13  ;;  %v4123_v13 = vsel %vm615_vm10, %v4117_v9, %v4121_v43 }
0x1610   : > { %v10046_v1 = vmul.f32 %v4090_v3, %v7554_v29  ;;  %v10049_v61 = vmul.f32 %v4092_v11, %v7556_v30  ;;  %v4169_v32 = vsel %vm692_vm6, %v4165_v41, %v4168_v59  ;;  %v4205_v62 = vsel %vm692_vm6, %v4065_v12, %v4165_v41 }
0x1611   : > { %v6851_v49 = vpack.c.bf16 %v4169_v32, %v4205_v62  ;;  %v4167_v39 = vsel %vm692_vm6, %v4164_v40, %v4166_v31  ;;  %v4204_v44 = vsel %vm692_vm6, %v4064_v48, %v4164_v40  ;;  %v4180_v12 = vrot.slane %v4096_v17, 4 }
0x1612   : > { %v4178_v27 = vrot.slane %v10046_v1, 4  ;;  %v4179_v6 = vrot.slane %v10049_v61, 4  ;;  %v4105_v51 = vpop.permute.xlu1 %4104  ;;  %v4101_v46 = vpop.permute.xlu0 %4100  ;;  %v6853_v59 = vpack.c.bf16 %v4167_v39, %v4204_v44  ;;  %v4128_v40 = vmul.f32 %v4123_v13, %v7616_v15 }
0x1613   : > { %6852 = vmatprep.subr.bf16.mxu1 %v6851_v49  ;;  %v4129_v48 = vmul.f32 %v4125_v22, %v7619_v16  ;;  %v4107_v9 = vsel %vm598_vm9, %v4101_v46, %v4105_v51  ;;  %v4109_v43 = vsel %vm598_vm9, %v4105_v51, %v4101_v46 }
0x1614   : > { %v4207_v31 = vsel %vm692_vm6, %v9879_v42, %v4179_v6  ;;  %6854 = vmatpush1.bf16.msra.mxu1 %v6853_v59  ;;  %v4206_v2 = vsel %vm692_vm6, %v9873_v0, %v4178_v27  ;;  %v4181_v46 = vsel %vm692_vm6, %v4178_v27, %v4180_v12  ;;  %v4112_v22 = vmul.f32 %v4107_v9, %v7595_v57 }
0x1615   : > { %v6855_v41 = vpack.c.bf16 %v4207_v31, %v9909_v36  ;;  %v6857_v11 = vpack.c.bf16 %v4206_v2, %v9896_v35  ;;  %v4183_v2 = vsel %vm692_vm6, %v4179_v6, %v4182_v34 }
0x1616   : > { %v4103_v17 = vpop.permute.xlu1 %4102  ;;  %v4119_v3 = vpop.permute.xlu0 %4118 }
0x1617   : > { %v4106_v32 = vsel %vm598_vm9, %v4099_v14, %v4103_v17  ;;  %v4108_v62 = vsel %vm598_vm9, %v4103_v17, %v4099_v14  ;;  %v4122_v18 = vsel %vm615_vm10, %v4115_v5, %v4119_v3  ;;  %v4124_v49 = vsel %vm615_vm10, %v4119_v3, %v4115_v5  ;;  %6856 = vmatprep.subr.bf16.mxu1 %v6855_v41 }
0x1618   : > { %v10083_v39 = vmul.f32 %v4106_v32, %v7595_v57  ;;  %v10086_v44 = vmul.f32 %v4108_v62, %v7598_v58  ;;  %v10089_v13 = vmul.f32 %v4122_v18, %v7616_v15  ;;  %v10092_v51 = vmul.f32 %v4124_v49, %v7619_v16  ;;  %6858 = vmatpush1.bf16.msra.mxu1 %v6857_v11 }
0x1619   : > { %v4194_v14 = vrot.slane %v4128_v40, 4  ;;  %v4196_v17 = vrot.slane %v4129_v48, 4  ;;  %v4113_v3 = vmul.f32 %v4109_v43, %v7598_v58 }
0x161a   : > { %v6861_v5 = vpack.c.bf16 %v10083_v39, %v4181_v46  ;;  %v4192_v59 = vrot.slane %v10089_v13, 4  ;;  %v4133_v31 = vpop.permute.xlu1 %4132  ;;  %v4131_v41 = vpop.permute.xlu0 %4130  ;;  %v4193_v32 = vrot.slane %v10092_v51, 4  ;;  %v6859_v40 = vpack.c.bf16 %v10086_v44, %v4183_v2 }
0x161c   : > { %v4195_v27 = vsel %vm692_vm6, %v4192_v59, %v4194_v14  ;;  %v4208_v12 = vsel %vm692_vm6, %v4112_v22, %v4192_v59  ;;  %6860 = vmatprep.subr.bf16.mxu1 %v6859_v40  ;;  %v4197_v9 = vsel %vm692_vm6, %v4193_v32, %v4196_v17  ;;  %v4209_v11 = vsel %vm692_vm6, %v4113_v3, %v4193_v32  ;;  %v10231_v17 = vld [vmem:[#allocation6] sm:$0x3f] }
0x161d   : > { %6862 = vmatpush1.bf16.msra.mxu1 %v6861_v5  ;;  %v6863_v6 = vpack.c.bf16 %v4197_v9, %v4209_v11  ;;  %v6865_v34 = vpack.c.bf16 %v4195_v27, %v4208_v12  ;;  %11224 = vst [vmem:[#allocation30_spill] sm:$0xff] %v10231_v17 }
0x161e   : > { %v4137_v62 = vpop.permute.xlu1 %4136  ;;  %v4135_v18 = vpop.permute.xlu0 %4134 }
0x161f   : > { %v4139_v48 = vsel %vm632_vm13, %v4133_v31, %v4137_v62  ;;  %v4141_v43 = vsel %vm632_vm13, %v4137_v62, %v4133_v31  ;;  %v4138_v49 = vsel %vm632_vm13, %v4131_v41, %v4135_v18  ;;  %v4140_v14 = vsel %vm632_vm13, %v4135_v18, %v4131_v41  ;;  %6864 = vmatprep.subr.bf16.mxu1 %v6863_v6  ;;  %v4211_v41 = vld [vmem:[#allocation4 + $0xc0] sm:$0x3f] }
0x1620   : > { %v4144_v46 = vmul.f32 %v4139_v48, %v7643_v53  ;;  %v4145_v22 = vmul.f32 %v4141_v43, %v7646_v54  ;;  %v10117_v5 = vmul.f32 %v4138_v49, %v7643_v53  ;;  %v10120_v59 = vmul.f32 %v4140_v14, %v7646_v54 }
0x1621   : > { %6866 = vmatpush1.bf16.msra.mxu1 %v6865_v34  ;;  %v11091_v62 = vrot.slane %v10046_v1, 6  ;;  %v11092_v6 = vrot.slane %v10049_v61, 6 }
0x1622   : > { %11220 = vst [vmem:[#allocation27_spill] sm:$0xff] %v10117_v5  ;;  %v6867_v2 = vpack.c.bf16 %v4145_v22, %v10120_v59  ;;  %v6870_v31 = vpack.c.bf16 %v4144_v46, %v10117_v5 }
0x1624   : > { %6869 = vmatprep.subr.msk.bf16.mxu1 %vm8123_vm14, %v6867_v2 }
0x1625   : > { %6872 = vmatpush1.bf16.msk.msra.mxu1 %vm8123_vm14, %v6870_v31  ;;  %v7253_v31 = vmov 13  }
0x1626   : > { %7037 = vset.pattern.permute.xlu0 %v7253_v31 }
0x1628   : > { %6516 = vmatmul.mubr.msk.f32.vlgmr.msra.gmra.mrb[16].mxu1 %vm1396_vm15, %v4211_v41  ;;  %v7056_v41 = vld [vmem:[#allocation9] sm:$0x3f] }
0x1629   : > { %4740 = vmatprep.mubr.f32.mxu1 %v11209_v28 }
0x162f   : > { %v4214_v3 = vpop.permute.xlu0 %4213 }
0x16fb   : > { %v4291_v32 = vpop.f32.mrb[16].mxu1 }
0x16fc   : > { %v4292_v40 = vadd.f32 %v4291_v32, %v4214_v3  ;;  %v4293_v27 = vpop.f32.mrb[17].mxu1  ;;  %v11226_v32 = vmov 0  }
0x16fd   : > { %v4294_v12 = vadd.f32 %v4293_v27, %v4214_v3  ;;  %v11225_v3 = vmov 4  }
0x16fe   : > { %v4296_v9 = vmax.f32 %v4292_v40, 0.0 }
0x16ff   : > { %v4297_v11 = vmax.f32 %v4294_v12, 0.0 }
0x1700   : > { %v10131_v18 = vrot.slane %v4296_v9, 4 }
0x1701   : > { %v10134_v34 = vrot.slane %v4297_v11, 4 }
0x1702   : > { %11222 = vst [vmem:[#allocation29_spill] sm:$0xff] %v10131_v18  ;;  %4372 = vrot.lane.b32.xlu1 %v10131_v18, %s7233_s26  ;;  %4308 = vrot.lane.b32.xlu0 %v10131_v18, %s7234_s13  ;;  %v10143_v48 = vsel %vm692_vm6, %v9873_v0, %v10131_v18  ;;  %v10149_v43 = vsel %vm698_vm12, %v10131_v18, %v11091_v62 }
0x1703   : > { %11223 = vst [vmem:[#allocation23_spill] sm:$0xff] %v10134_v34  ;;  %v10154_v49 = vsel %vm692_vm6, %v9879_v42, %v10134_v34  ;;  %v10160_v14 = vsel %vm698_vm12, %v10134_v34, %v11092_v6  ;;  %v6915_v2 = vpack.c.bf16 %v10143_v48, %v9896_v35  ;;  %v4572_v42 = vld [vmem:[#allocation4 + $0xd8] sm:$0x3f] }
0x1704   : > { %v6913_v46 = vpack.c.bf16 %v10154_v49, %v9909_v36  ;;  %6519 = vmatprep.mubr.msk.f32.mxu0 %vm1758_vm4, %v4572_v42 }
0x1706   : > { %6914 = vmatprep.subr.bf16.mxu1 %v6913_v46  ;;  %4324 = vrot.lane.b32.xlu0 %v10131_v18, %s7232_s22 }
0x1707   : > { %4306 = vrot.lane.b32.xlu1 %v10143_v48, %s7234_s13  ;;  %6916 = vmatpush1.bf16.msra.mxu1 %v6915_v2 }
0x170a   : > { %4340 = vrot.lane.b32.xlu0 %v10131_v18, %s7231_s27 }
0x170b   : > { %4312 = vrot.lane.b32.xlu1 %v10134_v34, %s7234_s13 }
0x170e   : > { %4356 = vrot.lane.b32.xlu0 %v10131_v18, %s7230_s30 }
0x170f   : > { %4328 = vrot.lane.b32.xlu1 %v10134_v34, %s7232_s22 }
0x1712   : > { %4322 = vrot.lane.b32.xlu0 %v10143_v48, %s7232_s22 }
0x1713   : > { %4344 = vrot.lane.b32.xlu1 %v10134_v34, %s7231_s27 }
0x1716   : > { %4338 = vrot.lane.b32.xlu0 %v10143_v48, %s7231_s27 }
0x1717   : > { %4360 = vrot.lane.b32.xlu1 %v10134_v34, %s7230_s30 }
0x171a   : > { %4354 = vrot.lane.b32.xlu0 %v10143_v48, %s7230_s30 }
0x171b   : > { %4310 = vrot.lane.b32.xlu1 %v10154_v49, %s7234_s13 }
0x171e   : > { %4370 = vrot.lane.b32.xlu0 %v10143_v48, %s7233_s26 }
0x171f   : > { %4326 = vrot.lane.b32.xlu1 %v10154_v49, %s7232_s22 }
0x1722   : > { %4386 = vrot.lane.b32.xlu0 %v10143_v48, %s7235_s2 }
0x1723   : > { %4342 = vrot.lane.b32.xlu1 %v10154_v49, %s7231_s27 }
0x1726   : > { %4374 = vrot.lane.b32.xlu0 %v10154_v49, %s7233_s26 }
0x1727   : > { %4358 = vrot.lane.b32.xlu1 %v10154_v49, %s7230_s30 }
0x172a   : > { %4390 = vrot.lane.b32.xlu0 %v10154_v49, %s7235_s2 }
0x172b   : > { %4376 = vrot.lane.b32.xlu1 %v10134_v34, %s7233_s26 }
0x172e   : > { %4402 = vrot.lane.b32.xlu0 %v10143_v48, %s7237_s29 }
0x172f   : > { %4388 = vrot.lane.b32.xlu1 %v10131_v18, %s7235_s2 }
0x1732   : > { %4406 = vrot.lane.b32.xlu0 %v10154_v49, %s7237_s29 }
0x1733   : > { %4392 = vrot.lane.b32.xlu1 %v10134_v34, %s7235_s2 }
0x1736   : > { %4418 = vrot.lane.b32.xlu0 %v10143_v48, %s7239_s21 }
0x1737   : > { %4404 = vrot.lane.b32.xlu1 %v10131_v18, %s7237_s29 }
0x173a   : > { %4420 = vrot.lane.b32.xlu0 %v10131_v18, %s7239_s21  ;;  %v4439_v18 = vrot.slane %v9972_v50, 6 }
0x173b   : > { %4408 = vrot.lane.b32.xlu1 %v10134_v34, %s7237_s29 }
0x173e   : > { %4574 = vperm.xlu0 %7037, %v10231_v17  }
0x173f   : > { %4422 = vrot.lane.b32.xlu1 %v10154_v49, %s7239_s21 }
0x1743   : > { %4424 = vrot.lane.b32.xlu1 %v10134_v34, %s7239_s21 }
0x1747   : > { %4670 = vperm.xlu1 %7038, %v7056_v41  }
0x174b   : > { %7039 = vset.pattern.permute.xlu1 %v11225_v3  ;;  %v4438_v3 = vrot.slane %v9969_v37, 6 }
0x174c   : > { %4776 = vperm.xlu1 %7039, %v7056_v41  }
0x1750   : > { %7045 = vset.pattern.permute.xlu1 %v11226_v32 }
0x1774   : > { %v10236_v40 = vpop.permute.xlu1 %4372  ;;  %v4309_v27 = vpop.permute.xlu0 %4308 }
0x1778   : > { %v4325_v12 = vpop.permute.xlu0 %4324 }
0x1779   : > { %v4307_v9 = vpop.permute.xlu1 %4306 }
0x177c   : > { %v4341_v11 = vpop.permute.xlu0 %4340 }
0x177d   : > { %v4313_v46 = vpop.permute.xlu1 %4312 }
0x177e   : > { %v4315_v41 = vsel %vm513_vm5, %v4309_v27, %v4313_v46  ;;  %v4317_v38 = vsel %vm513_vm5, %v4313_v46, %v4309_v27 }
0x1780   : > { %v4357_v2 = vpop.permute.xlu0 %4356 }
0x1781   : > { %v4329_v42 = vpop.permute.xlu1 %4328 }
0x1782   : > { %v4333_v32 = vsel %vm530_vm1, %v4329_v42, %v4325_v12  ;;  %v4331_v34 = vsel %vm530_vm1, %v4325_v12, %v4329_v42  ;;  %v4320_v12 = vmul.f32 %v4317_v38, %v11218_v21  ;;  %v4321_v42 = vmul.f32 %v4315_v41, %v11219_v10 }
0x1783   : > { %v4336_v56 = vmul.f32 %v4333_v32, %v7548_v25 }
0x1784   : > { %v4323_v31 = vpop.permute.xlu0 %4322  ;;  %v4558_v50 = vsel %vm698_vm12, %v4320_v12, %v4438_v3 }
0x1785   : > { %v4345_v0 = vpop.permute.xlu1 %4344 }
0x1786   : > { %v4347_v60 = vsel %vm547_vm2, %v4341_v11, %v4345_v0  ;;  %v4349_v27 = vsel %vm547_vm2, %v4345_v0, %v4341_v11 }
0x1788   : > { %v4339_v22 = vpop.permute.xlu0 %4338 }
0x1789   : > { %v4361_v62 = vpop.permute.xlu1 %4360 }
0x178c   : > { %v10238_v6 = vpop.permute.xlu0 %4354 }
0x178d   : > { %v4311_v17 = vpop.permute.xlu1 %4310 }
0x178e   : > { %v4314_v47 = vsel %vm513_vm5, %v4307_v9, %v4311_v17  ;;  %v4316_v37 = vsel %vm513_vm5, %v4311_v17, %v4307_v9  ;;  %v4337_v9 = vmul.f32 %v4331_v34, %v7551_v26 }
0x178f   : > { %v4318_v46 = vmul.f32 %v4316_v37, %v11218_v21  ;;  %v4319_v63 = vmul.f32 %v4314_v47, %v11219_v10  ;;  %v4352_v47 = vmul.f32 %v4349_v27, %v7543_v23  ;;  %v10270_v37 = vmul.f32 %v4347_v60, %v7545_v24 }
0x1790   : > { %v4371_v28 = vpop.permute.xlu0 %4370  ;;  %v4559_v27 = vsel %vm698_vm12, %v4321_v42, %v4439_v18  ;;  %v4446_v17 = vrot.slane %v4337_v9, 6 }
0x1791   : > { %v6875_v5 = vpack.c.bf16 %v4318_v46, %v9985_v55  ;;  %v4327_v0 = vpop.permute.xlu1 %4326  ;;  %v6873_v11 = vpack.c.bf16 %v4319_v63, %v9988_v4  ;;  %v4444_v4 = vrot.slane %v4336_v56, 6 }
0x1792   : > { %v4330_v38 = vsel %vm530_vm1, %v4323_v31, %v4327_v0  ;;  %v4332_v32 = vsel %vm530_vm1, %v4327_v0, %v4323_v31  ;;  %v4363_v31 = vsel %vm564_vm0, %v4357_v2, %v4361_v62 }
0x1793   : > { %v4334_v55 = vmul.f32 %v4332_v32, %v7548_v25  ;;  %v4335_v46 = vmul.f32 %v4330_v38, %v7551_v26  ;;  %6874 = vmatprep.subr.bf16.mxu0 %v6873_v11  ;;  %v4466_v32 = vrot.slane %v4352_v47, 4  ;;  %v4468_v38 = vrot.slane %v10270_v37, 4 }
0x1794   : > { %6876 = vmatpush1.bf16.msra.mxu0 %v6875_v5  ;;  %v4387_v60 = vpop.permute.xlu0 %4386  ;;  %v4365_v5 = vsel %vm564_vm0, %v4361_v62, %v4357_v2 }
0x1795   : > { %v4440_v0 = vrot.slane %v4334_v55, 6  ;;  %v4442_v41 = vrot.slane %v4335_v46, 6  ;;  %v4343_v34 = vpop.permute.xlu1 %4342  ;;  %v4369_v55 = vmul.f32 %v4363_v31, %v7535_v20 }
0x1796   : > { %v4346_v11 = vsel %vm547_vm2, %v4339_v22, %v4343_v34  ;;  %v4348_v56 = vsel %vm547_vm2, %v4343_v34, %v4339_v22 }
0x1797   : > { %v4350_v12 = vmul.f32 %v4348_v56, %v7543_v23  ;;  %v4351_v42 = vmul.f32 %v4346_v11, %v7545_v24  ;;  %v4443_v9 = vsel %vm698_vm12, %v4439_v18, %v4442_v41  ;;  %v4445_v47 = vsel %vm698_vm12, %v4440_v0, %v4444_v4 }
0x1798   : > { %v4375_v37 = vpop.permute.xlu0 %4374  ;;  %v6877_v46 = vpack.c.bf16 %v4443_v9, %v4559_v27  ;;  %v4441_v63 = vsel %vm698_vm12, %v4438_v3, %v4440_v0  ;;  %v4447_v0 = vsel %vm698_vm12, %v4442_v41, %v4446_v17  ;;  %v4368_v11 = vmul.f32 %v4365_v5, %v7533_v19 }
0x1799   : > { %v4462_v10 = vrot.slane %v4350_v12, 4  ;;  %v4464_v21 = vrot.slane %v4351_v42, 4  ;;  %v4378_v22 = vsel %vm581_vm3, %v4371_v28, %v4375_v37  ;;  %v4380_v62 = vsel %vm581_vm3, %v4375_v37, %v4371_v28  ;;  %v4359_v2 = vpop.permute.xlu1 %4358 }
0x179a   : > { %v10303_v34 = vmul.f32 %v4378_v22, %v7554_v29  ;;  %v4383_v18 = vmul.f32 %v4380_v62, %v7556_v30  ;;  %v4362_v4 = vsel %vm564_vm0, %v10238_v6, %v4359_v2  ;;  %v4364_v3 = vsel %vm564_vm0, %v4359_v2, %v10238_v6  ;;  %6878 = vmatprep.subr.bf16.mxu0 %v6877_v46 }
0x179b   : > { %v4366_v27 = vmul.f32 %v4364_v3, %v7533_v19  ;;  %v4367_v31 = vmul.f32 %v4362_v4, %v7535_v20  ;;  %v6879_v28 = vpack.c.bf16 %v4441_v63, %v4558_v50  ;;  %v4488_v56 = vrot.slane %v4369_v55, 2 }
0x179c   : > { %v4391_v12 = vpop.permute.xlu0 %4390  ;;  %v11227_v42 = vrot.slane %v10002_v8, 4  ;;  %v11228_v37 = vrot.slane %v9999_v33, 4  ;;  %v4467_v46 = vsel %vm692_vm6, %v4462_v10, %v4466_v32  ;;  %v4502_v22 = vrot.slane %v10303_v34, 6 }
0x179d   : > { %v4504_v62 = vrot.slane %v4383_v18, 6  ;;  %v4484_v50 = vrot.slane %v4367_v31, 2  ;;  %6880 = vmatpush1.bf16.msra.mxu0 %v6879_v28  ;;  %v4377_v17 = vpop.permute.xlu1 %4376  ;;  %v4482_v41 = vrot.slane %v4366_v27, 2  ;;  %v4394_v3 = vsel %vm598_vm9, %v4387_v60, %v4391_v12 }
0x179e   : > { %v4465_v9 = vsel %vm692_vm6, %v11227_v42, %v4464_v21  ;;  %v4560_v6 = vsel %vm692_vm6, %v4445_v47, %v11228_v37  ;;  %v4379_v63 = vsel %vm581_vm3, %v10236_v40, %v4377_v17  ;;  %v4381_v5 = vsel %vm581_vm3, %v4377_v17, %v10236_v40 }
0x179f   : > { %v11229_v55 = vmov %v11227_v42  ;;  %v4384_v32 = vmul.f32 %v4379_v63, %v7554_v29  ;;  %v4385_v2 = vmul.f32 %v4381_v5, %v7556_v30  ;;  %v11230_v18 = vmov %v11228_v37 }
0x17a0   : > { %v4561_v47 = vsel %vm692_vm6, %v4447_v0, %v11229_v55  ;;  %v4463_v4 = vsel %vm692_vm6, %v11230_v18, %v4462_v10  ;;  %v4396_v27 = vsel %vm598_vm9, %v4391_v12, %v4387_v60  ;;  %v4403_v31 = vpop.permute.xlu0 %4402  ;;  %v4469_v8 = vsel %vm692_vm6, %v4464_v21, %v4468_v38 }
0x17a1   : > { %v6881_v34 = vpack.c.bf16 %v4465_v9, %v4561_v47  ;;  %v6883_v40 = vpack.c.bf16 %v4463_v4, %v4560_v6  ;;  %v4506_v28 = vrot.slane %v4384_v32, 6  ;;  %v4508_v0 = vrot.slane %v4385_v2, 6  ;;  %v4389_v42 = vpop.permute.xlu1 %4388 }
0x17a2   : > { %v11231_v9 = vrot.slane %v10030_v52, 2  ;;  %v11233_v60 = vrot.slane %v10027_v45, 2  ;;  %v4489_v6 = vsel %vm686_vm11, %v4484_v50, %v4488_v56  ;;  %v4523_v63 = vrot.slane %v10086_v44, 4 }
0x17a3   : > { %6882 = vmatprep.subr.bf16.mxu0 %v6881_v34  ;;  %v4486_v5 = vrot.slane %v4368_v11, 2  ;;  %v4507_v55 = vsel %vm698_vm12, %v4502_v22, %v4506_v28  ;;  %v4398_v47 = vmul.f32 %v4394_v3, %v7595_v57  ;;  %v4399_v32 = vmul.f32 %v4396_v27, %v7598_v58 }
0x17a4   : > { %v4485_v33 = vsel %vm686_vm11, %v11231_v9, %v4484_v50  ;;  %v11232_v10 = vmov %v11231_v9  ;;  %6884 = vmatpush1.bf16.msra.mxu0 %v6883_v40  ;;  %v4483_v12 = vsel %vm686_vm11, %v11233_v60, %v4482_v41  ;;  %v11234_v21 = vmov %v11233_v60  ;;  %v4407_v45 = vpop.permute.xlu0 %4406 }
0x17a5   : > { %v4563_v37 = vsel %vm686_vm11, %v4469_v8, %v11232_v10  ;;  %v4562_v38 = vsel %vm686_vm11, %v4467_v46, %v11234_v21  ;;  %v4509_v2 = vsel %vm698_vm12, %v4504_v62, %v4508_v0  ;;  %v6889_v34 = vpack.c.bf16 %v9909_v36, %v4489_v6  ;;  %v4393_v18 = vpop.permute.xlu1 %4392 }
0x17a6   : > { %v6885_v17 = vpack.c.bf16 %v4485_v33, %v4563_v37  ;;  %v6887_v52 = vpack.c.bf16 %v4483_v12, %v4562_v38  ;;  %v4487_v46 = vsel %vm686_vm11, %v4482_v41, %v4486_v5  ;;  %v4567_v56 = vsel %vm692_vm6, %v4509_v2, %v4523_v63 }
0x17a7   : > { %v11235_v44 = vrot.slane %v10083_v39, 4  ;;  %v4395_v50 = vsel %vm598_vm9, %v4389_v42, %v4393_v18  ;;  %v4397_v4 = vsel %vm598_vm9, %v4393_v18, %v4389_v42  ;;  %v11236_v3 = vrot.slane %v10049_v61, 6 }
0x17a8   : > { %6886 = vmatprep.subr.bf16.mxu0 %v6885_v17  ;;  %v11237_v27 = vrot.slane %v10046_v1, 6  ;;  %v4400_v40 = vmul.f32 %v4395_v50, %v7595_v57  ;;  %v4401_v8 = vmul.f32 %v4397_v4, %v7598_v58  ;;  %v4524_v9 = vrot.slane %v4398_v47, 4 }
0x17a9   : > { %v4566_v11 = vsel %vm692_vm6, %v4507_v55, %v11235_v44  ;;  %6888 = vmatpush1.bf16.msra.mxu0 %v6887_v52  ;;  %v4505_v36 = vsel %vm698_vm12, %v11236_v3, %v4504_v62  ;;  %v4526_v33 = vrot.slane %v4399_v32, 4  ;;  %v4412_v42 = vsel %vm615_vm10, %v4407_v45, %v4403_v31  ;;  %v4405_v37 = vpop.permute.xlu1 %4404 }
0x17aa   : > { %v4503_v41 = vsel %vm698_vm12, %v11237_v27, %v4502_v22  ;;  %6890 = vmatprep.subr.bf16.mxu0 %v6889_v34  ;;  %v6897_v28 = vpack.c.bf16 %v4567_v56, %v4505_v36  ;;  %v6891_v61 = vpack.c.bf16 %v9896_v35, %v4487_v46  ;;  %v4528_v10 = vrot.slane %v4400_v40, 4 }
0x17ab   : > { %v6899_v0 = vpack.c.bf16 %v4566_v11, %v4503_v41  ;;  %v4530_v62 = vrot.slane %v4401_v8, 4  ;;  %v4542_v1 = vrot.slane %v10089_v13, 2  ;;  %v4543_v22 = vrot.slane %v10092_v51, 2 }
0x17ac   : > { %v4410_v17 = vsel %vm615_vm10, %v4403_v31, %v4407_v45  ;;  %v4415_v60 = vmul.f32 %v4412_v42, %v7619_v16  ;;  %v4529_v12 = vsel %vm692_vm6, %v4524_v9, %v4528_v10  ;;  %v11238_v21 = vpack.c.bf16 %v10160_v14, %v10154_v49  ;;  %v4419_v45 = vpop.permute.xlu0 %4418  ;;  %v4571_v10 = vld [vmem:[#allocation4 + $0xd0] sm:$0x3f] }
0x17ad   : > { %6892 = vmatpush1.bf16.msra.mxu0 %v6891_v61  ;;  %v4531_v35 = vsel %vm692_vm6, %v4526_v33, %v4530_v62  ;;  %v4527_v38 = vsel %vm692_vm6, %v4523_v63, %v4526_v33  ;;  %v11239_v51 = vmov %v11235_v44  ;;  %v4568_v31 = vsel %vm686_vm11, %v4529_v12, %v4542_v1  ;;  %v4409_v55 = vpop.permute.xlu1 %4408  ;;  %v11243_v12 = vld [vmem:[#allocation28_spill] sm:$0xff] }
0x17ae   : > { %6894 = vmatprep.subr.bf16.mxu0 %v11238_v21  ;;  %v4569_v13 = vsel %vm686_vm11, %v4531_v35, %v4543_v22  ;;  %v4525_v6 = vsel %vm692_vm6, %v11239_v51, %v4524_v9  ;;  %v4414_v5 = vmul.f32 %v4410_v17, %v7616_v15  ;;  %v11240_v49 = vpack.c.bf16 %v10149_v43, %v10143_v48  ;;  %v11241_v9 = vld [vmem:[#allocation27_spill] sm:$0xff] }
0x17af   : > { %v6901_v52 = vpack.c.bf16 %v4569_v13, %v4527_v38  ;;  %v6903_v47 = vpack.c.bf16 %v4568_v31, %v4525_v6  ;;  %v4411_v14 = vsel %vm615_vm10, %v4405_v37, %v4409_v55  ;;  %v4413_v63 = vsel %vm615_vm10, %v4409_v55, %v4405_v37  ;;  %v11244_v38 = vld [vmem:[#allocation21_spill] sm:$0xff]  ;;  %v11245_v6 = vld [vmem:[#allocation22_spill] sm:$0xff] }
0x17b0   : > { %v4546_v39 = vrot.slane %v4415_v60, 2  ;;  %v4416_v32 = vmul.f32 %v4411_v14, %v7616_v15  ;;  %v4417_v2 = vmul.f32 %v4413_v63, %v7619_v16  ;;  %v4544_v34 = vrot.slane %v4414_v5, 2  ;;  %v11246_v55 = vld [vmem:[#allocation25_spill] sm:$0xff]  ;;  %v11247_v63 = vld [vmem:[#allocation23_spill] sm:$0xff] }
0x17b1   : > { %6896 = vmatpush1.bf16.msra.mxu0 %v11240_v49  ;;  %v4423_v56 = vpop.permute.xlu1 %4422  ;;  %v11242_v62 = vmov 0.0   ;;  %v4758_v21 = vrot.slane %v11243_v12, 4  ;;  %v4757_v13 = vrot.slane %v11244_v38, 4  ;;  %v4752_v31 = vrot.slane %v11245_v6, 2 }
0x17b2   : > { %6898 = vmatprep.subr.bf16.mxu0 %v6897_v28  ;;  %v4548_v18 = vrot.slane %v4416_v32, 2  ;;  %v4550_v46 = vrot.slane %v4417_v2, 2  ;;  %v4428_v48 = vsel %vm632_vm13, %v4423_v56, %v4419_v45  ;;  %v4547_v44 = vsel %vm686_vm11, %v4543_v22, %v4546_v39  ;;  %v4421_v28 = vpop.permute.xlu0 %4420  ;;  %v4668_v32 = vld [vmem:[#allocation7 + $0x18] sm:$0x3f]  ;;  %v11248_v2 = vld [vmem:[#allocation26_spill] sm:$0xff] }
0x17b3   : > { %v4431_v43 = vmul.f32 %v4428_v48, %v7646_v54  ;;  %v4426_v3 = vsel %vm632_vm13, %v4419_v45, %v4423_v56  ;;  %v4545_v36 = vsel %vm686_vm11, %v4542_v1, %v4544_v34  ;;  %v4770_v49 = vsel %vm692_vm6, %v4752_v31, %v4758_v21  ;;  %v11249_v45 = vld [vmem:[#allocation29_spill] sm:$0xff]  ;;  %v11250_v56 = vld [vmem:[#allocation24_spill] sm:$0xff] }
0x17b4   : > { %v4551_v11 = vsel %vm686_vm11, %v4546_v39, %v4550_v46  ;;  %v4549_v50 = vsel %vm686_vm11, %v4544_v34, %v4548_v18  ;;  %v4430_v8 = vmul.f32 %v4426_v3, %v7643_v53  ;;  %v4768_v34 = vsel %vm686_vm11, %v11248_v2, %v4752_v31  ;;  %v11253_v2 = vld [vmem:[#allocation15_spill] sm:$0xff] }
0x17b5   : > { %6900 = vmatpush1.bf16.msra.mxu0 %v6899_v0  ;;  %v6905_v4 = vpack.c.bf16 %v4551_v11, %v4547_v44  ;;  %v6907_v27 = vpack.c.bf16 %v4549_v50, %v4545_v36  ;;  %v4425_v41 = vpop.permute.xlu1 %4424  ;;  %v6909_v40 = vpack.c.bf16 %v4431_v43, %v10120_v59  ;;  %v6917_v46 = vpack.c.bf16 %v4770_v49, %v4768_v34 }
0x17b6   : > { %6902 = vmatprep.subr.bf16.mxu0 %v6901_v52  ;;  %v4429_v0 = vsel %vm632_vm13, %v4425_v41, %v4421_v28  ;;  %v6911_v33 = vpack.c.bf16 %v4430_v8, %v11241_v9  ;;  %v4427_v42 = vsel %vm632_vm13, %v4421_v28, %v4425_v41  ;;  %v4751_v52 = vrot.slane %v11246_v55, 2  ;;  %v4774_v28 = vld [vmem:[#allocation7 + $0x20] sm:$0x3f] }
0x17b7   : > { %v4433_v61 = vmul.f32 %v4429_v0, %v7646_v54  ;;  %v4432_v59 = vmul.f32 %v4427_v42, %v7643_v53 }
0x17b8   : > { %v4769_v14 = vsel %vm692_vm6, %v4751_v52, %v4757_v13  ;;  %v4767_v48 = vsel %vm686_vm11, %v11250_v56, %v4751_v52 }
0x17b9   : > { %6904 = vmatpush1.bf16.msra.mxu0 %v6903_v47  ;;  %v6919_v43 = vpack.c.bf16 %v4769_v14, %v4767_v48 }
0x17ba   : > { %6906 = vmatprep.subr.bf16.mxu0 %v6905_v4 }
0x17bd   : > { %6908 = vmatpush1.bf16.msra.mxu0 %v6907_v27  ;;  %v4575_v37 = vpop.permute.xlu0 %4574 }
0x17be   : > { %6910 = vmatprep.subr.bf16.mxu0 %v6909_v40 }
0x17c1   : > { %6912 = vmatpush1.bf16.msra.mxu0 %v6911_v33 }
0x17c2   : > { %6517 = vmatprep.subr.msk.mxu0 %vm698_vm12, %v4433_v61 }
0x17c5   : > { %6518 = vmatpush1.msk.msra.mxu0 %vm698_vm12, %v4432_v59 }
0x17c6   : > { %4651 = vmatmul.mubr.f32.vlgmr.msra.gmra.mrb[14].mxu0 %v4571_v10  ;;  %v4671_v44 = vpop.permute.xlu1 %4670  ;;  %v7254_v10 = vmov 14  }
0x17c7   : > { %5225 = vmatprep.mubr.f32.mxu0 %v11242_v62  ;;  %7040 = vset.pattern.permute.xlu0 %v7254_v10 }
0x17cb   : > { %v4777_v9 = vpop.permute.xlu1 %4776 }
0x1899   : > { %v4652_v1 = vpop.f32.mrb[14].mxu0 }
0x189a   : > { %v4653_v22 = vadd.f32 %v4652_v1, %v4575_v37  ;;  %v4654_v17 = vpop.f32.mrb[15].mxu0  ;;  %v11252_v1 = vmov 0  }
0x189b   : > { %v4655_v60 = vadd.f32 %v4654_v17, %v4575_v37  ;;  %v11251_v37 = vld [vmem:[#allocation30_spill] sm:$0xff] }
0x189c   : > { %v4657_v35 = vmax.f32 %v4653_v22, 0.0 }
0x189d   : > { %v4658_v51 = vmax.f32 %v4655_v60, 0.0 }
0x189e   : > { %v4661_v5 = vrot.slane %v4657_v35, 6 }
0x189f   : > { %v4662_v47 = vrot.slane %v4658_v51, 6 }
0x18a0   : > { %v4665_v18 = vsel %vm698_vm12, %v11249_v45, %v4661_v5  ;;  %v11254_v45 = vld [vmem:[#allocation16_spill] sm:$0xff] }
0x18a1   : > { %v4666_v39 = vsel %vm698_vm12, %v11247_v63, %v4662_v47 }
0x18a2   : > { %4680 = vmatprep.subr.mxu1 %v4666_v39 }
0x18a3   : > { %4681 = vmatpush1.msra.mxu1 %v4665_v18 }
0x18a4   : > { %6520 = vmatmul.mubr.msk.f32.vlgmr.msra.gmra.mrb[18].mxu1 %vm1855_vm7, %v4668_v32  ;;  %6918 = vmatprep.subr.bf16.mxu1 %v6917_v46 }
0x18a5   : > { %6920 = vmatpush1.bf16.msra.mxu1 %v6919_v43  ;;  %4846 = vmatprep.mubr.f32.mxu1 %v11242_v62 }
0x1977   : > { %v4742_v11 = vpop.f32.mrb[18].mxu1 }
0x1978   : > { %v4743_v50 = vadd.f32 %v4742_v11, %v4671_v44  ;;  %v4744_v4 = vpop.f32.mrb[19].mxu1 }
0x1979   : > { %v4745_v3 = vadd.f32 %v4744_v4, %v4671_v44 }
0x197a   : > { %v4747_v36 = vadd.f32 %v4743_v50, %v11244_v38 }
0x197b   : > { %v4748_v27 = vadd.f32 %v4745_v3, %v11243_v12 }
0x197c   : > { %v4763_v41 = vrot.slane %v4747_v36, 6 }
0x197d   : > { %v4764_v40 = vrot.slane %v4748_v27, 6 }
0x197e   : > { %v4771_v0 = vsel %vm698_vm12, %v4757_v13, %v4763_v41 }
0x197f   : > { %v4772_v8 = vsel %vm698_vm12, %v4758_v21, %v4764_v40 }
0x1980   : > { %4786 = vmatprep.subr.mxu1 %v4772_v8 }
0x1981   : > { %4787 = vmatpush1.msra.mxu1 %v4771_v0 }
0x1982   : > { %6521 = vmatmul.mubr.msk.f32.vlgmr.msra.gmra.mrb[20].mxu1 %vm1855_vm7, %v4774_v28 }
0x1983   : > { %5044 = vmatprep.mubr.f32.mxu1 %v11242_v62 }
0x1a55   : > { %v4848_v33 = vpop.f32.mrb[20].mxu1 }
0x1a56   : > { %v10451_v42 = vadd.f32 %v4848_v33, %v4777_v9  ;;  %v4850_v61 = vpop.f32.mrb[21].mxu1 }
0x1a57   : > { %v10453_v59 = vadd.f32 %v4850_v61, %v4777_v9 }
0x1a58   : > { %4861 = vrot.lane.b32.xlu0 %v10451_v42, %s7232_s22 }
0x1a59   : > { %4863 = vrot.lane.b32.xlu1 %v10453_v59, %s7232_s22 }
0x1a5c   : > { %4869 = vrot.lane.b32.xlu0 %v10451_v42, %s7231_s27 }
0x1a5d   : > { %4871 = vrot.lane.b32.xlu1 %v10453_v59, %s7231_s27 }
0x1a60   : > { %4853 = vrot.lane.b32.xlu0 %v10451_v42, %s7234_s13 }
0x1a61   : > { %4855 = vrot.lane.b32.xlu1 %v10453_v59, %s7234_s13 }
0x1a64   : > { %4877 = vrot.lane.b32.xlu0 %v10451_v42, %s7230_s30 }
0x1a65   : > { %4879 = vrot.lane.b32.xlu1 %v10453_v59, %s7230_s30 }
0x1a68   : > { %4885 = vrot.lane.b32.xlu0 %v10451_v42, %s7233_s26 }
0x1a69   : > { %4887 = vrot.lane.b32.xlu1 %v10453_v59, %s7233_s26 }
0x1a6c   : > { %4893 = vrot.lane.b32.xlu0 %v10451_v42, %s7235_s2 }
0x1a6d   : > { %4895 = vrot.lane.b32.xlu1 %v10453_v59, %s7235_s2 }
0x1a70   : > { %4901 = vrot.lane.b32.xlu0 %v10451_v42, %s7237_s29 }
0x1a71   : > { %4903 = vrot.lane.b32.xlu1 %v10453_v59, %s7237_s29 }
0x1a74   : > { %4909 = vrot.lane.b32.xlu0 %v10451_v42, %s7239_s21 }
0x1a75   : > { %4911 = vrot.lane.b32.xlu1 %v10453_v59, %s7239_s21 }
0x1a78   : > { %4968 = vperm.xlu0 %7040, %v11251_v37  }
0x1a7c   : > { %7041 = vset.pattern.permute.xlu0 %v11252_v1 }
0x1aca   : > { %v4862_v22 = vpop.permute.xlu0 %4861 }
0x1acb   : > { %v4864_v17 = vpop.permute.xlu1 %4863 }
0x1acc   : > { %v4865_v60 = vsel %vm530_vm1, %v4862_v22, %v4864_v17  ;;  %v4866_v12 = vsel %vm530_vm1, %v4864_v17, %v4862_v22 }
0x1acd   : > { %v4867_v51 = vmul.f32 %v4866_v12, %v7548_v25  ;;  %v4868_v6 = vmul.f32 %v4865_v60, %v7551_v26 }
0x1ace   : > { %v4870_v21 = vpop.permute.xlu0 %4869 }
0x1acf   : > { %v4872_v35 = vpop.permute.xlu1 %4871  ;;  %v4919_v39 = vrot.slane %v4867_v51, 2  ;;  %v4920_v32 = vrot.slane %v4868_v6, 2 }
0x1ad0   : > { %v4873_v38 = vsel %vm547_vm2, %v4870_v21, %v4872_v35  ;;  %v4874_v13 = vsel %vm547_vm2, %v4872_v35, %v4870_v21 }
0x1ad1   : > { %v4875_v31 = vmul.f32 %v4874_v13, %v7543_v23  ;;  %v4876_v5 = vmul.f32 %v4873_v38, %v7545_v24 }
0x1ad2   : > { %v4854_v55 = vpop.permute.xlu0 %4853 }
0x1ad3   : > { %v4925_v52 = vrot.slane %v4875_v31, 4  ;;  %v4926_v47 = vrot.slane %v4876_v5, 4  ;;  %v4856_v49 = vpop.permute.xlu1 %4855 }
0x1ad4   : > { %v4857_v14 = vsel %vm513_vm5, %v4854_v55, %v4856_v49  ;;  %v4858_v63 = vsel %vm513_vm5, %v4856_v49, %v4854_v55 }
0x1ad5   : > { %v4859_v34 = vmul.f32 %v4858_v63, %v11253_v2  ;;  %v4860_v18 = vmul.f32 %v4857_v14, %v11254_v45  ;;  %v4956_v43 = vsel %vm692_vm6, %v4920_v32, %v4926_v47  ;;  %v4955_v11 = vsel %vm692_vm6, %v4919_v39, %v4925_v52 }
0x1ad6   : > { %v4878_v46 = vpop.permute.xlu0 %4877 }
0x1ad7   : > { %v4880_v56 = vpop.permute.xlu1 %4879  ;;  %v4954_v48 = vsel %vm686_vm11, %v4860_v18, %v4920_v32  ;;  %v4953_v44 = vsel %vm686_vm11, %v4859_v34, %v4919_v39 }
0x1ad8   : > { %v4881_v50 = vsel %vm564_vm0, %v4878_v46, %v4880_v56  ;;  %v4882_v4 = vsel %vm564_vm0, %v4880_v56, %v4878_v46  ;;  %v6921_v3 = vpack.c.bf16 %v4956_v43, %v4954_v48  ;;  %v6923_v36 = vpack.c.bf16 %v4955_v11, %v4953_v44 }
0x1ad9   : > { %v4883_v27 = vmul.f32 %v4882_v4, %v7533_v19  ;;  %v4884_v41 = vmul.f32 %v4881_v50, %v7535_v20 }
0x1ada   : > { %6922 = vmatprep.subr.bf16.mxu1 %v6921_v3  ;;  %v4886_v40 = vpop.permute.xlu0 %4885 }
0x1adb   : > { %v4888_v8 = vpop.permute.xlu1 %4887  ;;  %6924 = vmatpush1.bf16.msra.mxu1 %v6923_v36  ;;  %v4931_v28 = vrot.slane %v4883_v27, 6  ;;  %v4932_v0 = vrot.slane %v4884_v41, 6  ;;  %v4966_v41 = vld [vmem:[#allocation4 + $0xe0] sm:$0x3f] }
0x1adc   : > { %v4889_v9 = vsel %vm581_vm3, %v4886_v40, %v4888_v8  ;;  %v4890_v33 = vsel %vm581_vm3, %v4888_v8, %v4886_v40 }
0x1add   : > { %v4891_v61 = vmul.f32 %v4889_v9, %v7554_v29  ;;  %v4892_v10 = vmul.f32 %v4890_v33, %v7556_v30  ;;  %v4958_v35 = vsel %vm698_vm12, %v4926_v47, %v4932_v0  ;;  %v4957_v38 = vsel %vm698_vm12, %v4925_v52, %v4931_v28  ;;  %v11255_v33 = vld [vmem:[#allocation19_spill] sm:$0xff] }
0x1ade   : > { %v4894_v37 = vpop.permute.xlu0 %4893 }
0x1adf   : > { %v4937_v22 = vrot.slane %v4891_v61, 2  ;;  %v4938_v17 = vrot.slane %v4892_v10, 2  ;;  %v4896_v60 = vpop.permute.xlu1 %4895  ;;  %v11256_v10 = vld [vmem:[#allocation20_spill] sm:$0xff] }
0x1ae0   : > { %v4897_v12 = vsel %vm598_vm9, %v4894_v37, %v4896_v60  ;;  %v4898_v21 = vsel %vm598_vm9, %v4896_v60, %v4894_v37 }
0x1ae1   : > { %v4899_v13 = vmul.f32 %v4897_v12, %v7595_v57  ;;  %v4900_v51 = vmul.f32 %v4898_v21, %v7598_v58  ;;  %v4960_v6 = vsel %vm686_vm11, %v10453_v59, %v4938_v17  ;;  %v4959_v31 = vsel %vm686_vm11, %v10451_v42, %v4937_v22  ;;  %v10563_v21 = vld [vmem:[#allocation2 + $0x8] sm:$0xff] }
0x1ae2   : > { %v4902_v5 = vpop.permute.xlu0 %4901  ;;  %v6925_v55 = vpack.c.bf16 %v4960_v6, %v4958_v35  ;;  %v6927_v49 = vpack.c.bf16 %v4959_v31, %v4957_v38  ;;  %v10583_v38 = vld [vmem:[%s11015_s7] sm:$0xff] }
0x1ae3   : > { %v4904_v14 = vpop.permute.xlu1 %4903  ;;  %v4944_v63 = vrot.slane %v4900_v51, 4  ;;  %v4943_v39 = vrot.slane %v4899_v13, 4  ;;  %v11257_v13 = vmov 1  }
0x1ae4   : > { %v4905_v47 = vsel %vm615_vm10, %v4902_v5, %v4904_v14  ;;  %v4906_v52 = vsel %vm615_vm10, %v4904_v14, %v4902_v5  ;;  %6926 = vmatprep.subr.bf16.mxu1 %v6925_v55 }
0x1ae5   : > { %v4907_v32 = vmul.f32 %v4905_v47, %v7616_v15  ;;  %v4908_v59 = vmul.f32 %v4906_v52, %v7619_v16  ;;  %6928 = vmatpush1.bf16.msra.mxu1 %v6927_v49  ;;  %v4962_v56 = vsel %vm692_vm6, %v4938_v17, %v4944_v63  ;;  %v4961_v44 = vsel %vm692_vm6, %v4937_v22, %v4943_v39  ;;  %v10557_v17 = vld [vmem:[#allocation2] sm:$0xff] }
0x1ae6   : > { %v4910_v34 = vpop.permute.xlu0 %4909  ;;  %vm5157_vm6 = vcmask 64512  }
0x1ae7   : > { %v4949_v42 = vrot.slane %v4907_v32, 6  ;;  %v4950_v18 = vrot.slane %v4908_v59, 6  ;;  %v4912_v46 = vpop.permute.xlu1 %4911 }
0x1ae8   : > { %v4914_v48 = vsel %vm632_vm13, %v4912_v46, %v4910_v34  ;;  %v4913_v3 = vsel %vm632_vm13, %v4910_v34, %v4912_v46 }
0x1ae9   : > { %v4964_v43 = vsel %vm698_vm12, %v4944_v63, %v4950_v18  ;;  %v4963_v11 = vsel %vm698_vm12, %v4943_v39, %v4949_v42  ;;  %v4916_v36 = vmul.f32 %v4914_v48, %v7646_v54  ;;  %v4915_v27 = vmul.f32 %v4913_v3, %v7643_v53 }
0x1aea   : > { %v6929_v50 = vpack.c.bf16 %v4964_v43, %v4962_v56  ;;  %v6931_v4 = vpack.c.bf16 %v4963_v11, %v4961_v44 }
0x1aec   : > { %6930 = vmatprep.subr.bf16.mxu1 %v6929_v50 }
0x1aed   : > { %6932 = vmatpush1.bf16.msra.mxu1 %v6931_v4 }
0x1aee   : > { %6522 = vmatprep.subr.msk.mxu1 %vm686_vm11, %v4916_v36 }
0x1af1   : > { %6523 = vmatpush1.msk.msra.mxu1 %vm686_vm11, %v4915_v27 }
0x1af2   : > { %6524 = vmatmul.mubr.msk.f32.vlgmr.msra.gmra.mrb[22].mxu1 %vm909_vm8, %v4966_v41 }
0x1af3   : > { %5717 = vmatprep.mubr.f32.mxu1 %v11242_v62 }
0x1af7   : > { %v4969_v40 = vpop.permute.xlu0 %4968 }
0x1bc5   : > { %v5046_v8 = vpop.f32.mrb[22].mxu1 }
0x1bc6   : > { %v5047_v28 = vadd.f32 %v5046_v8, %v4969_v40  ;;  %v5048_v0 = vpop.f32.mrb[23].mxu1 }
0x1bc7   : > { %v5049_v9 = vadd.f32 %v5048_v0, %v4969_v40 }
0x1bc8   : > { %v5051_v61 = vadd.f32 %v5047_v28, %v11255_v33 }
0x1bc9   : > { %v5052_v37 = vadd.f32 %v5049_v9, %v11256_v10 }
0x1bca   : > { %v5055_v22 = vrot.slane %v5051_v61, 6 }
0x1bcb   : > { %v5056_v12 = vrot.slane %v5052_v37, 6 }
0x1bcc   : > { %v5059_v60 = vsel %vm698_vm12, %v10557_v17, %v5055_v22 }
0x1bcd   : > { %5071 = vrot.lane.b32.xlu0 %v5059_v60, %s7232_s22  ;;  %5061 = vrot.lane.b32.xlu1 %v5059_v60, %s7234_s13  ;;  %v5060_v35 = vsel %vm698_vm12, %v10563_v21, %v5056_v12 }
0x1bd1   : > { %5081 = vrot.lane.b32.xlu0 %v5059_v60, %s7231_s27  ;;  %5063 = vrot.lane.b32.xlu1 %v5060_v35, %s7234_s13 }
0x1bd5   : > { %5091 = vrot.lane.b32.xlu0 %v5059_v60, %s7230_s30  ;;  %5073 = vrot.lane.b32.xlu1 %v5060_v35, %s7232_s22 }
0x1bd9   : > { %5101 = vrot.lane.b32.xlu0 %v5059_v60, %s7233_s26  ;;  %5083 = vrot.lane.b32.xlu1 %v5060_v35, %s7231_s27 }
0x1bdd   : > { %5111 = vrot.lane.b32.xlu0 %v5059_v60, %s7235_s2  ;;  %5093 = vrot.lane.b32.xlu1 %v5060_v35, %s7230_s30 }
0x1be1   : > { %5121 = vrot.lane.b32.xlu0 %v5059_v60, %s7237_s29  ;;  %5103 = vrot.lane.b32.xlu1 %v5060_v35, %s7233_s26 }
0x1be5   : > { %5131 = vrot.lane.b32.xlu0 %v5059_v60, %s7239_s21  ;;  %5113 = vrot.lane.b32.xlu1 %v5060_v35, %s7235_s2 }
0x1be9   : > { %5123 = vrot.lane.b32.xlu1 %v5060_v35, %s7237_s29  ;;  %5154 = vperm.xlu0 %7041, %v10583_v38  }
0x1bed   : > { %5133 = vrot.lane.b32.xlu1 %v5060_v35, %s7239_s21  ;;  %7042 = vset.pattern.permute.xlu0 %v11257_v13 }
0x1c3f   : > { %v5072_v51 = vpop.permute.xlu0 %5071  ;;  %v5062_v6 = vpop.permute.xlu1 %5061 }
0x1c43   : > { %v5082_v31 = vpop.permute.xlu0 %5081  ;;  %v5064_v5 = vpop.permute.xlu1 %5063 }
0x1c44   : > { %v5065_v47 = vsel %vm513_vm5, %v5062_v6, %v5064_v5  ;;  %v5066_v52 = vsel %vm513_vm5, %v5064_v5, %v5062_v6 }
0x1c45   : > { %v5067_v34 = vmul.f32 %v5066_v52, %v11253_v2  ;;  %v5068_v42 = vmul.f32 %v5065_v47, %v11254_v45 }
0x1c47   : > { %v5092_v55 = vpop.permute.xlu0 %5091  ;;  %v5074_v49 = vpop.permute.xlu1 %5073  ;;  %v5069_v4 = vadd.f32 %v5067_v34, %v5059_v60  ;;  %v5070_v3 = vadd.f32 %v5068_v42, %v5060_v35  ;;  %v7059_v42 = vld [vmem:[#allocation2 + $0x10] sm:$0xf] }
0x1c48   : > { %v5075_v32 = vsel %vm530_vm1, %v5072_v51, %v5074_v49  ;;  %v5076_v59 = vsel %vm530_vm1, %v5074_v49, %v5072_v51 }
0x1c49   : > { %v5077_v56 = vmul.f32 %v5076_v59, %v7548_v25  ;;  %v5078_v48 = vmul.f32 %v5075_v32, %v7551_v26 }
0x1c4b   : > { %v5084_v14 = vpop.permute.xlu1 %5083  ;;  %v5102_v63 = vpop.permute.xlu0 %5101  ;;  %v5079_v8 = vadd.f32 %v5077_v56, %v5069_v4  ;;  %v5080_v28 = vadd.f32 %v5078_v48, %v5070_v3 }
0x1c4c   : > { %v5085_v18 = vsel %vm547_vm2, %v5082_v31, %v5084_v14  ;;  %v5086_v46 = vsel %vm547_vm2, %v5084_v14, %v5082_v31 }
0x1c4d   : > { %v5087_v36 = vmul.f32 %v5086_v46, %v7543_v23  ;;  %v5088_v27 = vmul.f32 %v5085_v18, %v7545_v24  ;;  %v11258_v18 = vld [vmem:[#allocation14_spill] sm:$0xff] }
0x1c4e   : > { %v10631_v46 = vrot.slane %v7059_v42, %v11258_v18 }
0x1c4f   : > { %v5094_v39 = vpop.permute.xlu1 %5093  ;;  %v5112_v43 = vpop.permute.xlu0 %5111  ;;  %v5089_v37 = vadd.f32 %v5087_v36, %v5079_v8  ;;  %v5090_v22 = vadd.f32 %v5088_v27, %v5080_v28  ;;  %v5151_v8 = vld [vmem:[%s11014_s6] sm:$0xff] }
0x1c50   : > { %v5095_v11 = vsel %vm564_vm0, %v5092_v55, %v5094_v39  ;;  %v5096_v50 = vsel %vm564_vm0, %v5094_v39, %v5092_v55 }
0x1c51   : > { %v5097_v0 = vmul.f32 %v5096_v50, %v7533_v19  ;;  %v5098_v9 = vmul.f32 %v5095_v11, %v7535_v20 }
0x1c53   : > { %v5104_v44 = vpop.permute.xlu1 %5103  ;;  %v5122_v60 = vpop.permute.xlu0 %5121  ;;  %v5099_v13 = vadd.f32 %v5097_v0, %v5089_v37  ;;  %v5100_v51 = vadd.f32 %v5098_v9, %v5090_v22  ;;  %v11259_v22 = vmov 2  }
0x1c54   : > { %v5105_v41 = vsel %vm581_vm3, %v5102_v63, %v5104_v44  ;;  %v5106_v40 = vsel %vm581_vm3, %v5104_v44, %v5102_v63 }
0x1c55   : > { %v5107_v12 = vmul.f32 %v5105_v41, %v7554_v29  ;;  %v5108_v35 = vmul.f32 %v5106_v40, %v7556_v30 }
0x1c57   : > { %v5114_v33 = vpop.permute.xlu1 %5113  ;;  %v5109_v14 = vadd.f32 %v5107_v12, %v5099_v13  ;;  %v5110_v63 = vadd.f32 %v5108_v35, %v5100_v51  ;;  %v5132_v39 = vpop.permute.xlu0 %5131 }
0x1c58   : > { %v5115_v61 = vsel %vm598_vm9, %v5112_v43, %v5114_v33  ;;  %v5116_v10 = vsel %vm598_vm9, %v5114_v33, %v5112_v43  ;;  %v7060_v43 = vld [vmem:[#allocation2 + $0x18] sm:$0xf] }
0x1c59   : > { %v5117_v6 = vmul.f32 %v5115_v61, %v7595_v57  ;;  %v5118_v31 = vmul.f32 %v5116_v10, %v7598_v58  ;;  %v10638_v44 = vrot.slane %v7060_v43, %v11258_v18 }
0x1c5b   : > { %v5124_v5 = vpop.permute.xlu1 %5123  ;;  %v5119_v32 = vadd.f32 %v5117_v6, %v5109_v14  ;;  %v5120_v59 = vadd.f32 %v5118_v31, %v5110_v63 }
0x1c5c   : > { %v5125_v55 = vsel %vm615_vm10, %v5122_v60, %v5124_v5  ;;  %v5126_v49 = vsel %vm615_vm10, %v5124_v5, %v5122_v60 }
0x1c5d   : > { %v5127_v47 = vmul.f32 %v5125_v55, %v7616_v15  ;;  %v5128_v52 = vmul.f32 %v5126_v49, %v7619_v16 }
0x1c5f   : > { %v5134_v34 = vpop.permute.xlu1 %5133  ;;  %v5129_v11 = vadd.f32 %v5127_v47, %v5119_v32  ;;  %v5130_v50 = vadd.f32 %v5128_v52, %v5120_v59 }
0x1c60   : > { %v5135_v56 = vsel %vm632_vm13, %v5132_v39, %v5134_v34  ;;  %v5136_v48 = vsel %vm632_vm13, %v5134_v34, %v5132_v39 }
0x1c61   : > { %v5137_v4 = vmul.f32 %v5135_v56, %v7643_v53  ;;  %v5138_v3 = vmul.f32 %v5136_v48, %v7646_v54 }
0x1c63   : > { %v5139_v36 = vadd.f32 %v5137_v4, %v5129_v11  ;;  %v5140_v27 = vadd.f32 %v5138_v3, %v5130_v50 }
0x1c65   : > { %v5149_v41 = vmul.f32 %v10631_v46, %v5139_v36  ;;  %v5150_v40 = vmul.f32 %v10638_v44, %v5140_v27 }
0x1c67   : > { %5161 = vmatprep.subr.mxu0 %v5150_v40 }
0x1c68   : > { %5162 = vmatpush1.msra.mxu0 %v5149_v41  ;;  %v5155_v28 = vpop.permute.xlu0 %5154 }
0x1c69   : > { %6525 = vmatmul.mubr.msk.f32.vlgmr.msra.gmra.mrb[16].mxu0 %vm5157_vm6, %v5151_v8 }
0x1c6a   : > { %5389 = vmatprep.mubr.f32.mxu0 %v11242_v62 }
0x1d3c   : > { %v5227_v0 = vpop.f32.mrb[16].mxu0 }
0x1d3d   : > { %v5228_v9 = vadd.f32 %v5227_v0, %v5155_v28  ;;  %v5229_v33 = vpop.f32.mrb[17].mxu0 }
0x1d3e   : > { %v5230_v10 = vadd.f32 %v5229_v33, %v5155_v28 }
0x1d3f   : > { %v5232_v61 = vmax.f32 %v5228_v9, 0.0 }
0x1d40   : > { %v5233_v37 = vmax.f32 %v5230_v10, 0.0 }
0x1d41   : > { %5244 = vrot.lane.b32.xlu0 %v5232_v61, %s7232_s22  ;;  %5234 = vrot.lane.b32.xlu1 %v5232_v61, %s7234_s13 }
0x1d45   : > { %5254 = vrot.lane.b32.xlu0 %v5232_v61, %s7231_s27  ;;  %5236 = vrot.lane.b32.xlu1 %v5233_v37, %s7234_s13 }
0x1d49   : > { %5264 = vrot.lane.b32.xlu0 %v5232_v61, %s7230_s30  ;;  %5246 = vrot.lane.b32.xlu1 %v5233_v37, %s7232_s22 }
0x1d4d   : > { %5274 = vrot.lane.b32.xlu0 %v5232_v61, %s7233_s26  ;;  %5256 = vrot.lane.b32.xlu1 %v5233_v37, %s7231_s27 }
0x1d51   : > { %5284 = vrot.lane.b32.xlu0 %v5232_v61, %s7235_s2  ;;  %5266 = vrot.lane.b32.xlu1 %v5233_v37, %s7230_s30 }
0x1d55   : > { %5294 = vrot.lane.b32.xlu0 %v5232_v61, %s7237_s29  ;;  %5276 = vrot.lane.b32.xlu1 %v5233_v37, %s7233_s26 }
0x1d59   : > { %5304 = vrot.lane.b32.xlu0 %v5232_v61, %s7239_s21  ;;  %5286 = vrot.lane.b32.xlu1 %v5233_v37, %s7235_s2 }
0x1d5d   : > { %5296 = vrot.lane.b32.xlu1 %v5233_v37, %s7237_s29  ;;  %5319 = vperm.xlu0 %7042, %v10583_v38  }
0x1d61   : > { %5306 = vrot.lane.b32.xlu1 %v5233_v37, %s7239_s21  ;;  %7043 = vset.pattern.permute.xlu0 %v11259_v22 }
0x1db3   : > { %v5245_v60 = vpop.permute.xlu0 %5244  ;;  %v5235_v12 = vpop.permute.xlu1 %5234 }
0x1db7   : > { %v5255_v35 = vpop.permute.xlu0 %5254  ;;  %v5237_v13 = vpop.permute.xlu1 %5236 }
0x1db8   : > { %v5238_v55 = vsel %vm513_vm5, %v5235_v12, %v5237_v13  ;;  %v5239_v49 = vsel %vm513_vm5, %v5237_v13, %v5235_v12 }
0x1db9   : > { %v5240_v52 = vmul.f32 %v5239_v49, %v11253_v2  ;;  %v5241_v39 = vmul.f32 %v5238_v55, %v11254_v45 }
0x1dbb   : > { %v5265_v51 = vpop.permute.xlu0 %5264  ;;  %v5247_v6 = vpop.permute.xlu1 %5246  ;;  %v5242_v11 = vadd.f32 %v5240_v52, %v5232_v61  ;;  %v5243_v50 = vadd.f32 %v5241_v39, %v5233_v37 }
0x1dbc   : > { %v5248_v63 = vsel %vm530_vm1, %v5245_v60, %v5247_v6  ;;  %v5249_v47 = vsel %vm530_vm1, %v5247_v6, %v5245_v60 }
0x1dbd   : > { %v5250_v34 = vmul.f32 %v5249_v47, %v7548_v25  ;;  %v5251_v42 = vmul.f32 %v5248_v63, %v7551_v26 }
0x1dbf   : > { %v5257_v31 = vpop.permute.xlu1 %5256  ;;  %v5275_v5 = vpop.permute.xlu0 %5274  ;;  %v5252_v41 = vadd.f32 %v5250_v34, %v5242_v11  ;;  %v5253_v40 = vadd.f32 %v5251_v42, %v5243_v50 }
0x1dc0   : > { %v5258_v32 = vsel %vm547_vm2, %v5255_v35, %v5257_v31  ;;  %v5259_v59 = vsel %vm547_vm2, %v5257_v31, %v5255_v35 }
0x1dc1   : > { %v5260_v4 = vmul.f32 %v5259_v59, %v7543_v23  ;;  %v5261_v3 = vmul.f32 %v5258_v32, %v7545_v24 }
0x1dc3   : > { %v5267_v14 = vpop.permute.xlu1 %5266  ;;  %v5285_v18 = vpop.permute.xlu0 %5284  ;;  %v5262_v61 = vadd.f32 %v5260_v4, %v5252_v41  ;;  %v5263_v10 = vadd.f32 %v5261_v3, %v5253_v40  ;;  %v6526_v3 = vld [vmem:[%s11014_s6 + $0x8] sm:$0xff] }
0x1dc4   : > { %v5268_v48 = vsel %vm564_vm0, %v5265_v51, %v5267_v14  ;;  %v5269_v43 = vsel %vm564_vm0, %v5267_v14, %v5265_v51 }
0x1dc5   : > { %v5270_v8 = vmul.f32 %v5269_v43, %v7533_v19  ;;  %v5271_v28 = vmul.f32 %v5268_v48, %v7535_v20 }
0x1dc7   : > { %v5277_v56 = vpop.permute.xlu1 %5276  ;;  %v5295_v37 = vpop.permute.xlu0 %5294  ;;  %v5272_v12 = vadd.f32 %v5270_v8, %v5262_v61  ;;  %v5273_v35 = vadd.f32 %v5271_v28, %v5263_v10 }
0x1dc8   : > { %v5278_v36 = vsel %vm581_vm3, %v5275_v5, %v5277_v56  ;;  %v5279_v27 = vsel %vm581_vm3, %v5277_v56, %v5275_v5 }
0x1dc9   : > { %v5280_v22 = vmul.f32 %v5278_v36, %v7554_v29  ;;  %v5281_v60 = vmul.f32 %v5279_v27, %v7556_v30 }
0x1dcb   : > { %v5287_v0 = vpop.permute.xlu1 %5286  ;;  %v5282_v55 = vadd.f32 %v5280_v22, %v5272_v12  ;;  %v5283_v49 = vadd.f32 %v5281_v60, %v5273_v35  ;;  %v5305_v47 = vpop.permute.xlu0 %5304 }
0x1dcc   : > { %v5288_v9 = vsel %vm598_vm9, %v5285_v18, %v5287_v0  ;;  %v5289_v33 = vsel %vm598_vm9, %v5287_v0, %v5285_v18 }
0x1dcd   : > { %v5290_v13 = vmul.f32 %v5288_v9, %v7595_v57  ;;  %v5291_v51 = vmul.f32 %v5289_v33, %v7598_v58  ;;  %v11260_v9 = vmov 3  }
0x1dcf   : > { %v5297_v6 = vpop.permute.xlu1 %5296  ;;  %v5292_v52 = vadd.f32 %v5290_v13, %v5282_v55  ;;  %v5293_v39 = vadd.f32 %v5291_v51, %v5283_v49 }
0x1dd0   : > { %v5298_v31 = vsel %vm615_vm10, %v5295_v37, %v5297_v6  ;;  %v5299_v5 = vsel %vm615_vm10, %v5297_v6, %v5295_v37 }
0x1dd1   : > { %v5300_v14 = vmul.f32 %v5298_v31, %v7616_v15  ;;  %v5301_v63 = vmul.f32 %v5299_v5, %v7619_v16 }
0x1dd3   : > { %v5307_v32 = vpop.permute.xlu1 %5306  ;;  %v5302_v42 = vadd.f32 %v5300_v14, %v5292_v52  ;;  %v5303_v18 = vadd.f32 %v5301_v63, %v5293_v39 }
0x1dd4   : > { %v5308_v59 = vsel %vm632_vm13, %v5305_v47, %v5307_v32  ;;  %v5309_v34 = vsel %vm632_vm13, %v5307_v32, %v5305_v47 }
0x1dd5   : > { %v5310_v56 = vmul.f32 %v5308_v59, %v7643_v53  ;;  %v5311_v48 = vmul.f32 %v5309_v34, %v7646_v54 }
0x1dd7   : > { %v5312_v43 = vadd.f32 %v5310_v56, %v5302_v42  ;;  %v5313_v11 = vadd.f32 %v5311_v48, %v5303_v18 }
0x1dd9   : > { %v5314_v50 = vmul.f32 %v5312_v43, %v10631_v46  ;;  %v5315_v4 = vmul.f32 %v5313_v11, %v10638_v44 }
0x1ddb   : > { %5325 = vmatprep.subr.mxu0 %v5315_v4 }
0x1ddc   : > { %5326 = vmatpush1.msra.mxu0 %v5314_v50  ;;  %v5320_v36 = vpop.permute.xlu0 %5319 }
0x1ddd   : > { %6527 = vmatmul.mubr.msk.f32.vlgmr.msra.gmra.mrb[18].mxu0 %vm5157_vm6, %v6526_v3 }
0x1dde   : > { %5553 = vmatprep.mubr.f32.mxu0 %v11242_v62 }
0x1eb0   : > { %v5391_v27 = vpop.f32.mrb[18].mxu0 }
0x1eb1   : > { %v5392_v41 = vadd.f32 %v5391_v27, %v5320_v36  ;;  %v5393_v40 = vpop.f32.mrb[19].mxu0 }
0x1eb2   : > { %v5394_v28 = vadd.f32 %v5393_v40, %v5320_v36 }
0x1eb3   : > { %v5396_v8 = vmax.f32 %v5392_v41, 0.0 }
0x1eb4   : > { %v5397_v0 = vmax.f32 %v5394_v28, 0.0 }
0x1eb5   : > { %5408 = vrot.lane.b32.xlu0 %v5396_v8, %s7232_s22  ;;  %5398 = vrot.lane.b32.xlu1 %v5396_v8, %s7234_s13 }
0x1eb9   : > { %5418 = vrot.lane.b32.xlu0 %v5396_v8, %s7231_s27  ;;  %5400 = vrot.lane.b32.xlu1 %v5397_v0, %s7234_s13 }
0x1ebd   : > { %5428 = vrot.lane.b32.xlu0 %v5396_v8, %s7230_s30  ;;  %5410 = vrot.lane.b32.xlu1 %v5397_v0, %s7232_s22 }
0x1ec1   : > { %5438 = vrot.lane.b32.xlu0 %v5396_v8, %s7233_s26  ;;  %5420 = vrot.lane.b32.xlu1 %v5397_v0, %s7231_s27 }
0x1ec5   : > { %5448 = vrot.lane.b32.xlu0 %v5396_v8, %s7235_s2  ;;  %5430 = vrot.lane.b32.xlu1 %v5397_v0, %s7230_s30 }
0x1ec9   : > { %5458 = vrot.lane.b32.xlu0 %v5396_v8, %s7237_s29  ;;  %5440 = vrot.lane.b32.xlu1 %v5397_v0, %s7233_s26 }
0x1ecd   : > { %5468 = vrot.lane.b32.xlu0 %v5396_v8, %s7239_s21  ;;  %5450 = vrot.lane.b32.xlu1 %v5397_v0, %s7235_s2 }
0x1ed1   : > { %5460 = vrot.lane.b32.xlu1 %v5397_v0, %s7237_s29  ;;  %5483 = vperm.xlu0 %7043, %v10583_v38  }
0x1ed5   : > { %5470 = vrot.lane.b32.xlu1 %v5397_v0, %s7239_s21  ;;  %7044 = vset.pattern.permute.xlu0 %v11260_v9 }
0x1f27   : > { %v5409_v33 = vpop.permute.xlu0 %5408  ;;  %v5399_v61 = vpop.permute.xlu1 %5398 }
0x1f2b   : > { %v5419_v10 = vpop.permute.xlu0 %5418  ;;  %v5401_v37 = vpop.permute.xlu1 %5400 }
0x1f2c   : > { %v5402_v13 = vsel %vm513_vm5, %v5399_v61, %v5401_v37  ;;  %v5403_v51 = vsel %vm513_vm5, %v5401_v37, %v5399_v61 }
0x1f2d   : > { %v5404_v55 = vmul.f32 %v5403_v51, %v11253_v2  ;;  %v5405_v49 = vmul.f32 %v5402_v13, %v11254_v45 }
0x1f2f   : > { %v5429_v22 = vpop.permute.xlu0 %5428  ;;  %v5411_v60 = vpop.permute.xlu1 %5410  ;;  %v5406_v42 = vadd.f32 %v5404_v55, %v5396_v8  ;;  %v5407_v18 = vadd.f32 %v5405_v49, %v5397_v0 }
0x1f30   : > { %v5412_v31 = vsel %vm530_vm1, %v5409_v33, %v5411_v60  ;;  %v5413_v5 = vsel %vm530_vm1, %v5411_v60, %v5409_v33 }
0x1f31   : > { %v5414_v47 = vmul.f32 %v5413_v5, %v7548_v25  ;;  %v5415_v52 = vmul.f32 %v5412_v31, %v7551_v26 }
0x1f33   : > { %v5421_v12 = vpop.permute.xlu1 %5420  ;;  %v5439_v35 = vpop.permute.xlu0 %5438  ;;  %v5416_v50 = vadd.f32 %v5414_v47, %v5406_v42  ;;  %v5417_v4 = vadd.f32 %v5415_v52, %v5407_v18 }
0x1f34   : > { %v5422_v14 = vsel %vm547_vm2, %v5419_v10, %v5421_v12  ;;  %v5423_v63 = vsel %vm547_vm2, %v5421_v12, %v5419_v10 }
0x1f35   : > { %v5424_v56 = vmul.f32 %v5423_v63, %v7543_v23  ;;  %v5425_v48 = vmul.f32 %v5422_v14, %v7545_v24 }
0x1f37   : > { %v5431_v6 = vpop.permute.xlu1 %5430  ;;  %v5449_v39 = vpop.permute.xlu0 %5448  ;;  %v5426_v8 = vadd.f32 %v5424_v56, %v5416_v50  ;;  %v5427_v28 = vadd.f32 %v5425_v48, %v5417_v4  ;;  %v6528_v48 = vld [vmem:[%s11014_s6 + $0x10] sm:$0xff] }
0x1f38   : > { %v5432_v59 = vsel %vm564_vm0, %v5429_v22, %v5431_v6  ;;  %v5433_v34 = vsel %vm564_vm0, %v5431_v6, %v5429_v22 }
0x1f39   : > { %v5434_v3 = vmul.f32 %v5433_v34, %v7533_v19  ;;  %v5435_v36 = vmul.f32 %v5432_v59, %v7535_v20 }
0x1f3b   : > { %v5441_v32 = vpop.permute.xlu1 %5440  ;;  %v5459_v0 = vpop.permute.xlu0 %5458  ;;  %v5436_v61 = vadd.f32 %v5434_v3, %v5426_v8  ;;  %v5437_v10 = vadd.f32 %v5435_v36, %v5427_v28 }
0x1f3c   : > { %v5442_v43 = vsel %vm581_vm3, %v5439_v35, %v5441_v32  ;;  %v5443_v11 = vsel %vm581_vm3, %v5441_v32, %v5439_v35 }
0x1f3d   : > { %v5444_v9 = vmul.f32 %v5442_v43, %v7554_v29  ;;  %v5445_v33 = vmul.f32 %v5443_v11, %v7556_v30 }
0x1f3f   : > { %v5451_v27 = vpop.permute.xlu1 %5450  ;;  %v5446_v13 = vadd.f32 %v5444_v9, %v5436_v61  ;;  %v5447_v51 = vadd.f32 %v5445_v33, %v5437_v10  ;;  %v5469_v5 = vpop.permute.xlu0 %5468 }
0x1f40   : > { %v5452_v41 = vsel %vm598_vm9, %v5449_v39, %v5451_v27  ;;  %v5453_v40 = vsel %vm598_vm9, %v5451_v27, %v5449_v39 }
0x1f41   : > { %v5454_v37 = vmul.f32 %v5452_v41, %v7595_v57  ;;  %v5455_v22 = vmul.f32 %v5453_v40, %v7598_v58 }
0x1f43   : > { %v5461_v60 = vpop.permute.xlu1 %5460  ;;  %v5456_v55 = vadd.f32 %v5454_v37, %v5446_v13  ;;  %v5457_v49 = vadd.f32 %v5455_v22, %v5447_v51 }
0x1f44   : > { %v5462_v12 = vsel %vm615_vm10, %v5459_v0, %v5461_v60  ;;  %v5463_v35 = vsel %vm615_vm10, %v5461_v60, %v5459_v0 }
0x1f45   : > { %v5464_v6 = vmul.f32 %v5462_v12, %v7616_v15  ;;  %v5465_v31 = vmul.f32 %v5463_v35, %v7619_v16 }
0x1f47   : > { %v5471_v14 = vpop.permute.xlu1 %5470  ;;  %v5466_v52 = vadd.f32 %v5464_v6, %v5456_v55  ;;  %v5467_v39 = vadd.f32 %v5465_v31, %v5457_v49 }
0x1f48   : > { %v5472_v63 = vsel %vm632_vm13, %v5469_v5, %v5471_v14  ;;  %v5473_v47 = vsel %vm632_vm13, %v5471_v14, %v5469_v5 }
0x1f49   : > { %v5474_v32 = vmul.f32 %v5472_v63, %v7643_v53  ;;  %v5475_v59 = vmul.f32 %v5473_v47, %v7646_v54 }
0x1f4b   : > { %v5476_v34 = vadd.f32 %v5474_v32, %v5466_v52  ;;  %v5477_v42 = vadd.f32 %v5475_v59, %v5467_v39 }
0x1f4d   : > { %v5478_v18 = vmul.f32 %v5476_v34, %v10631_v46  ;;  %v5479_v56 = vmul.f32 %v5477_v42, %v10638_v44 }
0x1f4f   : > { %5489 = vmatprep.subr.mxu0 %v5479_v56 }
0x1f50   : > { %5490 = vmatpush1.msra.mxu0 %v5478_v18  ;;  %v5484_v43 = vpop.permute.xlu0 %5483 }
0x1f51   : > { %6529 = vmatmul.mubr.msk.f32.vlgmr.msra.gmra.mrb[20].mxu0 %vm5157_vm6, %v6528_v48 }
0x1f52   : > { %5797 = vmatprep.mubr.f32.mxu0 %v11242_v62 }
0x2024   : > { %v5555_v11 = vpop.f32.mrb[20].mxu0 }
0x2025   : > { %v5556_v50 = vadd.f32 %v5555_v11, %v5484_v43  ;;  %v5557_v4 = vpop.f32.mrb[21].mxu0 }
0x2026   : > { %v5558_v36 = vadd.f32 %v5557_v4, %v5484_v43 }
0x2027   : > { %v5560_v3 = vmax.f32 %v5556_v50, 0.0 }
0x2028   : > { %v5561_v27 = vmax.f32 %v5558_v36, 0.0 }
0x2029   : > { %5572 = vrot.lane.b32.xlu0 %v5560_v3, %s7232_s22  ;;  %5562 = vrot.lane.b32.xlu1 %v5560_v3, %s7234_s13 }
0x202d   : > { %5582 = vrot.lane.b32.xlu0 %v5560_v3, %s7231_s27  ;;  %5564 = vrot.lane.b32.xlu1 %v5561_v27, %s7234_s13 }
0x2031   : > { %5592 = vrot.lane.b32.xlu0 %v5560_v3, %s7230_s30  ;;  %5574 = vrot.lane.b32.xlu1 %v5561_v27, %s7232_s22 }
0x2035   : > { %5602 = vrot.lane.b32.xlu0 %v5560_v3, %s7233_s26  ;;  %5584 = vrot.lane.b32.xlu1 %v5561_v27, %s7231_s27 }
0x2039   : > { %5612 = vrot.lane.b32.xlu0 %v5560_v3, %s7235_s2  ;;  %5594 = vrot.lane.b32.xlu1 %v5561_v27, %s7230_s30 }
0x203d   : > { %5622 = vrot.lane.b32.xlu0 %v5560_v3, %s7237_s29  ;;  %5604 = vrot.lane.b32.xlu1 %v5561_v27, %s7233_s26 }
0x2041   : > { %5632 = vrot.lane.b32.xlu0 %v5560_v3, %s7239_s21  ;;  %5614 = vrot.lane.b32.xlu1 %v5561_v27, %s7235_s2 }
0x2045   : > { %5624 = vrot.lane.b32.xlu1 %v5561_v27, %s7237_s29  ;;  %5647 = vperm.xlu0 %7044, %v10583_v38  }
0x2049   : > { %5634 = vrot.lane.b32.xlu1 %v5561_v27, %s7239_s21  ;;  %7046 = vset.pattern.permute.xlu0 %v11252_v1 }
0x209b   : > { %v5573_v41 = vpop.permute.xlu0 %5572  ;;  %v5563_v40 = vpop.permute.xlu1 %5562 }
0x209f   : > { %v5583_v8 = vpop.permute.xlu0 %5582  ;;  %v5565_v28 = vpop.permute.xlu1 %5564 }
0x20a0   : > { %v5566_v10 = vsel %vm513_vm5, %v5563_v40, %v5565_v28  ;;  %v5567_v37 = vsel %vm513_vm5, %v5565_v28, %v5563_v40 }
0x20a1   : > { %v5568_v35 = vmul.f32 %v5567_v37, %v11253_v2  ;;  %v5569_v13 = vmul.f32 %v5566_v10, %v11254_v45 }
0x20a3   : > { %v5593_v0 = vpop.permute.xlu0 %5592  ;;  %v5575_v9 = vpop.permute.xlu1 %5574  ;;  %v5570_v63 = vadd.f32 %v5568_v35, %v5560_v3  ;;  %v5571_v45 = vadd.f32 %v5569_v13, %v5561_v27 }
0x20a4   : > { %v5576_v60 = vsel %vm530_vm1, %v5573_v41, %v5575_v9  ;;  %v5577_v12 = vsel %vm530_vm1, %v5575_v9, %v5573_v41 }
0x20a5   : > { %v5578_v31 = vmul.f32 %v5577_v12, %v7548_v25  ;;  %v5579_v5 = vmul.f32 %v5576_v60, %v7551_v26  ;;  %v6530_v12 = vld [vmem:[%s11014_s6 + $0x18] sm:$0xff] }
0x20a7   : > { %v5585_v33 = vpop.permute.xlu1 %5584  ;;  %v5603_v61 = vpop.permute.xlu0 %5602  ;;  %v5580_v26 = vadd.f32 %v5578_v31, %v5570_v63  ;;  %v5581_v32 = vadd.f32 %v5579_v5, %v5571_v45  ;;  %v6532_v31 = vld [vmem:[%s11014_s6 + $0x20] sm:$0xff] }
0x20a8   : > { %v5586_v51 = vsel %vm547_vm2, %v5583_v8, %v5585_v33  ;;  %v5587_v6 = vsel %vm547_vm2, %v5585_v33, %v5583_v8 }
0x20a9   : > { %v5588_v47 = vmul.f32 %v5587_v6, %v7543_v23  ;;  %v5589_v52 = vmul.f32 %v5586_v51, %v7545_v24  ;;  %v10887_v51 = vld [vmem:[%s11016_s8 + $0x10] sm:$0xff]  ;;  %v10895_v6 = vld [vmem:[%s11016_s8 + $0x18] sm:$0xff] }
0x20ab   : > { %v5595_v22 = vpop.permute.xlu1 %5594  ;;  %v5613_v55 = vpop.permute.xlu0 %5612  ;;  %v5590_v24 = vadd.f32 %v5588_v47, %v5580_v26  ;;  %v5591_v56 = vadd.f32 %v5589_v52, %v5581_v32  ;;  %v10908_v32 = vld [vmem:[%s11017_s9] sm:$0xff] }
0x20ac   : > { %v5596_v14 = vsel %vm564_vm0, %v5593_v0, %v5595_v22  ;;  %v5597_v2 = vsel %vm564_vm0, %v5595_v22, %v5593_v0 }
0x20ad   : > { %v5598_v59 = vmul.f32 %v5597_v2, %v7533_v19  ;;  %v5599_v34 = vmul.f32 %v5596_v14, %v7535_v20 }
0x20af   : > { %v5605_v49 = vpop.permute.xlu1 %5604  ;;  %v5623_v48 = vpop.permute.xlu0 %5622  ;;  %v5600_v50 = vadd.f32 %v5598_v59, %v5590_v24  ;;  %v5601_v4 = vadd.f32 %v5599_v34, %v5591_v56 }
0x20b0   : > { %v5606_v39 = vsel %vm581_vm3, %v5603_v61, %v5605_v49  ;;  %v5607_v25 = vsel %vm581_vm3, %v5605_v49, %v5603_v61 }
0x20b1   : > { %v5608_v43 = vmul.f32 %v5606_v39, %v7554_v29  ;;  %v5609_v11 = vmul.f32 %v5607_v25, %v7556_v30 }
0x20b3   : > { %v5615_v42 = vpop.permute.xlu1 %5614  ;;  %v5610_v41 = vadd.f32 %v5608_v43, %v5600_v50  ;;  %v5611_v40 = vadd.f32 %v5609_v11, %v5601_v4  ;;  %v5633_v30 = vpop.permute.xlu0 %5632  ;;  %v10926_v4 = vld [vmem:[%s11017_s9 + $0x18] sm:$0xff] }
0x20b4   : > { %v5616_v18 = vsel %vm598_vm9, %v5613_v55, %v5615_v42  ;;  %v5617_v23 = vsel %vm598_vm9, %v5615_v42, %v5613_v55 }
0x20b5   : > { %v5618_v19 = vmul.f32 %v5616_v18, %v7595_v57  ;;  %v5619_v20 = vmul.f32 %v5617_v23, %v7598_v58  ;;  %v10914_v18 = vld [vmem:[%s11017_s9 + $0x8] sm:$0xff] }
0x20b7   : > { %v5625_v3 = vpop.permute.xlu1 %5624  ;;  %v5620_v28 = vadd.f32 %v5618_v19, %v5610_v41  ;;  %v5621_v0 = vadd.f32 %v5619_v20, %v5611_v40  ;;  %v11261_v41 = vmov 4   ;;  %v5808_v40 = vld [vmem:[%s11016_s8 + $0x20] sm:$0xff] }
0x20b8   : > { %v5626_v36 = vsel %vm615_vm10, %v5623_v48, %v5625_v3  ;;  %v5627_v27 = vsel %vm615_vm10, %v5625_v3, %v5623_v48  ;;  %v10920_v48 = vld [vmem:[%s11017_s9 + $0x10] sm:$0xff] }
0x20b9   : > { %v5628_v8 = vmul.f32 %v5626_v36, %v7616_v15  ;;  %v5629_v29 = vmul.f32 %v5627_v27, %v7619_v16 }
0x20bb   : > { %v5635_v9 = vpop.permute.xlu1 %5634  ;;  %v5630_v33 = vadd.f32 %v5628_v8, %v5620_v28  ;;  %v5631_v61 = vadd.f32 %v5629_v29, %v5621_v0  ;;  %v11262_v8 = vld [vmem:[#allocation17_spill] sm:$0xff]  ;;  %v11263_v28 = vld [vmem:[#allocation18_spill] sm:$0xff] }
0x20bc   : > { %v5636_v57 = vsel %vm632_vm13, %v5633_v30, %v5635_v9  ;;  %v5637_v58 = vsel %vm632_vm13, %v5635_v9, %v5633_v30  ;;  %v10939_v29 = vrot.slane %v10557_v17, %v11262_v8  ;;  %v10943_v30 = vrot.slane %v10563_v21, %v11262_v8 }
0x20bd   : > { %v5638_v10 = vmul.f32 %v5636_v57, %v7643_v53  ;;  %v5639_v37 = vmul.f32 %v5637_v58, %v7646_v54 }
0x20bf   : > { %v5640_v22 = vadd.f32 %v5638_v10, %v5630_v33  ;;  %v5641_v15 = vadd.f32 %v5639_v37, %v5631_v61 }
0x20c1   : > { %v5642_v16 = vmul.f32 %v5640_v22, %v10631_v46  ;;  %v5643_v60 = vmul.f32 %v5641_v15, %v10638_v44  ;;  %v10871_v46 = vld [vmem:[%s11016_s8] sm:$0xff]  ;;  %v10879_v44 = vld [vmem:[%s11016_s8 + $0x8] sm:$0xff] }
0x20c3   : > { %5653 = vmatprep.subr.mxu1 %v5643_v60  ;;  %5733 = vmatprep.subr.mxu0 %v5643_v60 }
0x20c4   : > { %5654 = vmatpush1.msra.mxu1 %v5642_v16  ;;  %5734 = vmatpush1.msra.mxu0 %v5642_v16  ;;  %v5648_v7 = vpop.permute.xlu0 %5647 }
0x20c5   : > { %6531 = vmatmul.mubr.msk.f32.vlgmr.msra.gmra.mrb[24].mxu1 %vm5157_vm6, %v6530_v12  ;;  %6533 = vmatmul.mubr.msk.f32.vlgmr.msra.gmra.mrb[22].mxu0 %vm5157_vm6, %v6532_v31 }
0x20c6   : > { %5894 = vmatprep.mubr.f32.mxu1 %v11242_v62  ;;  %6071 = vmatprep.mubr.f32.mxu0 %v11242_v62 }
0x2198   : > { %v5719_v53 = vpop.f32.mrb[24].mxu1  ;;  %v5799_v36 = vpop.f32.mrb[22].mxu0 }
0x2199   : > { %v5721_v54 = vpop.f32.mrb[25].mxu1  ;;  %v5720_v13 = vadd.f32 %v5719_v53, %v5648_v7  ;;  %v5801_v27 = vpop.f32.mrb[23].mxu0  ;;  %v10960_v53 = vld [vmem:[%s11018_s10] sm:$0x7] }
0x219a   : > { %v5722_v35 = vadd.f32 %v5721_v54, %v5648_v7 }
0x219c   : > { %5830 = vmatprep.subr.mxu1 %v5722_v35 }
0x219d   : > { %5831 = vmatpush1.msra.mxu1 %v5720_v13 }
0x219e   : > { %6534 = vmatmul.mubr.msk.f32.vlgmr.msra.gmra.mrb[26].mxu1 %vm5157_vm6, %v10871_v46 }
0x219f   : > { %5900 = vmatprep.mubr.f32.mxu1 %v11242_v62 }
0x21a2   : > { %6535 = vmatmul.mubr.msk.f32.gmra.mrb[28].mxu1 %vm5157_vm6, %v10879_v44 }
0x21a3   : > { %5906 = vmatprep.mubr.f32.mxu1 %v11242_v62 }
0x21a6   : > { %6536 = vmatmul.mubr.msk.f32.gmra.mrb[30].mxu1 %vm5157_vm6, %v10887_v51 }
0x21a7   : > { %5912 = vmatprep.mubr.f32.mxu1 %v11242_v62 }
0x21aa   : > { %6537 = vmatmul.mubr.msk.f32.gmra.mrb[32].mxu1 %vm5157_vm6, %v10895_v6 }
0x21ab   : > { %5918 = vmatprep.mubr.f32.mxu1 %v11242_v62 }
0x21ae   : > { %6538 = vmatmul.mubr.msk.f32.gmra.mrb[34].mxu1 %vm5157_vm6, %v5808_v40 }
0x21af   : > { %6304 = vmatprep.mubr.f32.mxu1 %v11242_v62 }
0x2271   : > { %v5896_v5 = vpop.f32.mrb[26].mxu1 }
0x2272   : > { %v5898_v55 = vpop.f32.mrb[27].mxu1 }
0x2273   : > { %v5925_v49 = vadd.f32 %v5898_v55, %v5896_v5 }
0x2275   : > { %5926 = vadd.xlane.f32.xlu1 %v5925_v49  ;;  %v5902_v14 = vpop.f32.mrb[28].mxu1 }
0x2276   : > { %v5904_v2 = vpop.f32.mrb[29].mxu1 }
0x2277   : > { %v5928_v63 = vadd.f32 %v5904_v2, %v5902_v14 }
0x2279   : > { %5929 = vadd.xlane.f32.xlu0 %v5928_v63  ;;  %v5908_v45 = vpop.f32.mrb[30].mxu1 }
0x227a   : > { %v5910_v47 = vpop.f32.mrb[31].mxu1 }
0x227b   : > { %v5931_v52 = vadd.f32 %v5910_v47, %v5908_v45 }
0x227d   : > { %5932 = vadd.xlane.f32.xlu1 %v5931_v52  ;;  %v5914_v39 = vpop.f32.mrb[32].mxu1 }
0x227e   : > { %v5916_v25 = vpop.f32.mrb[33].mxu1 }
0x227f   : > { %v5934_v26 = vadd.f32 %v5916_v25, %v5914_v39 }
0x2281   : > { %5935 = vadd.xlane.f32.xlu0 %v5934_v26  ;;  %v5920_v26 = vpop.f32.mrb[34].mxu1 }
0x2302   : > { %v5927_v59 = vpop.xlane.xlu1 %5926 }
0x2303   : > { %v5941_v34 = vmul.f32 0.00390625, %v5927_v59  ;;  %v5922_v59 = vpop.f32.mrb[35].mxu1 }
0x2305   : > { %v5946_v42 = vadd.f32 %v5941_v34, %v10908_v32  ;;  %v5937_v34 = vadd.f32 %v5922_v59, %v5920_v26 }
0x2306   : > { %v5930_v23 = vpop.xlane.xlu0 %5929 }
0x2307   : > { %v5942_v24 = vmul.f32 0.00390625, %v5930_v23  ;;  %5953 = vperm.xlu1 %7045, %v5946_v42  }
0x2309   : > { %v5947_v56 = vadd.f32 %v5942_v24, %v10914_v18 }
0x230a   : > { %v5933_v43 = vpop.xlane.xlu1 %5932 }
0x230b   : > { %v5943_v11 = vmul.f32 0.00390625, %v5933_v43  ;;  %5968 = vperm.xlu0 %7046, %v5947_v56  }
0x230d   : > { %v5948_v50 = vadd.f32 %v5943_v11, %v10920_v48 }
0x230e   : > { %v5936_v19 = vpop.xlane.xlu0 %5935 }
0x230f   : > { %v5944_v20 = vmul.f32 0.00390625, %v5936_v19  ;;  %5985 = vperm.xlu1 %7045, %v5948_v50  }
0x2311   : > { %v5949_v3 = vadd.f32 %v5944_v20, %v10926_v4 }
0x2313   : > { %5994 = vperm.xlu1 %7045, %v5949_v3  }
0x2317   : > { %7047 = vset.pattern.permute.xlu1 %v11261_v41 }
0x2318   : > { %5727 = vperm.xlu1 %7047, %v10583_v38   ;;  %v10947_v38 = vrot.slane %v10557_v17, %v11263_v28 }
0x231c   : > { %7048 = vset.pattern.permute.xlu1 %v11252_v1  ;;  %v10951_v1 = vrot.slane %v10563_v21, %v11263_v28 }
0x2386   : > { %v5954_v0 = vpop.permute.xlu1 %5953 }
0x2387   : > { %v5964_v57 = vmul.f32 %v10939_v29, %v5954_v0  ;;  %v5965_v58 = vmul.f32 %v10943_v30, %v5954_v0 }
0x238a   : > { %v5969_v9 = vpop.permute.xlu0 %5968 }
0x238b   : > { %v5979_v33 = vmul.f32 %v10947_v38, %v5969_v9  ;;  %v5980_v61 = vmul.f32 %v10951_v1, %v5969_v9 }
0x238d   : > { %v5981_v10 = vadd.f32 %v5979_v33, %v5964_v57  ;;  %v5982_v37 = vadd.f32 %v5980_v61, %v5965_v58 }
0x238e   : > { %v5986_v22 = vpop.permute.xlu1 %5985 }
0x238f   : > { %v5988_v15 = vadd.f32 %v5986_v22, %v5981_v10  ;;  %v5989_v17 = vadd.f32 %v5986_v22, %v5982_v37 }
0x2391   : > { %v5990_v16 = vmax.f32 %v5988_v15, 0.0  ;;  %v5991_v60 = vmax.f32 %v5989_v17, 0.0 }
0x2392   : > { %v5995_v12 = vpop.permute.xlu1 %5994 }
0x2393   : > { %v5997_v21 = vmul.f32 %v5995_v12, %v5990_v16  ;;  %v5998_v7 = vmul.f32 %v5995_v12, %v5991_v60 }
0x2395   : > { %6007 = vmatprep.subr.mxu0 %v5998_v7 }
0x2396   : > { %6008 = vmatpush1.msra.mxu0 %v5997_v21 }
0x2397   : > { %v5728_v54 = vpop.permute.xlu1 %5727  ;;  %6539 = vmatmul.mubr.msk.f32.vlgmr.msra.gmra.mrb[24].mxu0 %vm5157_vm6, %v10960_v53 }
0x2398   : > { %v5800_v35 = vadd.f32 %v5799_v36, %v5728_v54  ;;  %v5802_v13 = vadd.f32 %v5801_v27, %v5728_v54  ;;  %6147 = vmatprep.mubr.f32.mxu0 %v11242_v62 }
0x239a   : > { %6083 = vmatprep.subr.mxu0 %v5802_v13 }
0x239b   : > { %6084 = vmatpush1.msra.mxu0 %v5800_v35 }
0x239c   : > { %6540 = vmatmul.mubr.msk.f32.vlgmr.msra.gmra.mrb[26].mxu0 %vm5157_vm6, %v10871_v46 }
0x239d   : > { %6153 = vmatprep.mubr.f32.mxu0 %v11242_v62 }
0x23a0   : > { %6541 = vmatmul.mubr.msk.f32.gmra.mrb[28].mxu0 %vm5157_vm6, %v10879_v44 }
0x23a1   : > { %6159 = vmatprep.mubr.f32.mxu0 %v11242_v62 }
0x23a4   : > { %6542 = vmatmul.mubr.msk.f32.gmra.mrb[30].mxu0 %vm5157_vm6, %v10887_v51 }
0x23a5   : > { %6165 = vmatprep.mubr.f32.mxu0 %v11242_v62 }
0x23a8   : > { %6543 = vmatmul.mubr.msk.f32.gmra.mrb[32].mxu0 %vm5157_vm6, %v10895_v6 }
0x23a9   : > { %6171 = vmatprep.mubr.f32.mxu0 %v11242_v62 }
0x23ac   : > { %6544 = vmatmul.mubr.msk.f32.gmra.mrb[34].mxu0 %vm5157_vm6, %v5808_v40 }
0x246a   : > { %v10978_v46 = vpop.f32.mrb[24].mxu0 }
0x246b   : > { %v10980_v31 = vpop.f32.mrb[25].mxu0 }
0x246f   : > { %v6149_v5 = vpop.f32.mrb[26].mxu0 }
0x2470   : > { %v6151_v44 = vpop.f32.mrb[27].mxu0 }
0x2471   : > { %v6178_v55 = vadd.f32 %v6151_v44, %v6149_v5 }
0x2473   : > { %6179 = vadd.xlane.f32.xlu1 %v6178_v55  ;;  %v6155_v49 = vpop.f32.mrb[28].mxu0 }
0x2474   : > { %v6157_v14 = vpop.f32.mrb[29].mxu0 }
0x2475   : > { %v6181_v51 = vadd.f32 %v6157_v14, %v6155_v49 }
0x2477   : > { %6182 = vadd.xlane.f32.xlu0 %v6181_v51  ;;  %v6161_v2 = vpop.f32.mrb[30].mxu0 }
0x2478   : > { %v6163_v63 = vpop.f32.mrb[31].mxu0 }
0x2479   : > { %v6184_v45 = vadd.f32 %v6163_v63, %v6161_v2 }
0x247b   : > { %6185 = vadd.xlane.f32.xlu1 %v6184_v45  ;;  %v6167_v6 = vpop.f32.mrb[32].mxu0 }
0x247c   : > { %v6169_v62 = vpop.f32.mrb[33].mxu0 }
0x247d   : > { %v6187_v47 = vadd.f32 %v6169_v62, %v6167_v6 }
0x247f   : > { %6188 = vadd.xlane.f32.xlu1 %v6187_v47  ;;  %v6173_v52 = vpop.f32.mrb[34].mxu0 }
0x2480   : > { %v6175_v39 = vpop.f32.mrb[35].mxu0 }
0x2481   : > { %v6190_v25 = vadd.f32 %v6175_v39, %v6173_v52 }
0x2500   : > { %v6180_v42 = vpop.xlane.xlu1 %6179 }
0x2501   : > { %v6193_v23 = vmul.f32 0.00390625, %v6180_v42 }
0x2503   : > { %v6198_v24 = vadd.f32 %v6193_v23, %v10908_v32 }
0x2504   : > { %v6183_v56 = vpop.xlane.xlu0 %6182 }
0x2505   : > { %v6194_v43 = vmul.f32 0.00390625, %v6183_v56  ;;  %6205 = vperm.xlu1 %7048, %v6198_v24  }
0x2507   : > { %v6199_v11 = vadd.f32 %v6194_v43, %v10914_v18 }
0x2508   : > { %v6186_v50 = vpop.xlane.xlu1 %6185 }
0x2509   : > { %v6195_v19 = vmul.f32 0.00390625, %v6186_v50  ;;  %6212 = vperm.xlu0 %7046, %v6199_v11  }
0x250b   : > { %v6200_v20 = vadd.f32 %v6195_v19, %v10920_v48 }
0x250c   : > { %v6189_v3 = vpop.xlane.xlu1 %6188 }
0x250d   : > { %v6196_v36 = vmul.f32 0.00390625, %v6189_v3  ;;  %6221 = vperm.xlu1 %7048, %v6200_v20  }
0x250f   : > { %v6201_v27 = vadd.f32 %v6196_v36, %v10926_v4 }
0x2511   : > { %6230 = vperm.xlu1 %7048, %v6201_v27  }
0x2528   : > { %6191 = vadd.xlane.f32.xlu0 %v6190_v25 }
0x2535   : > { %5938 = vadd.xlane.f32.xlu1 %v5937_v34 }
0x2584   : > { %v6206_v41 = vpop.permute.xlu1 %6205 }
0x2585   : > { %v6208_v40 = vmul.f32 %v6206_v41, %v10939_v29  ;;  %v6209_v8 = vmul.f32 %v6206_v41, %v10943_v30  ;;  %v5813_v29 = vld [vmem:[%s11017_s9 + $0x20] sm:$0xff] }
0x2588   : > { %v6213_v32 = vpop.permute.xlu0 %6212 }
0x2589   : > { %v6215_v18 = vmul.f32 %v6213_v32, %v10947_v38  ;;  %v6216_v28 = vmul.f32 %v6213_v32, %v10951_v1 }
0x258b   : > { %v6217_v0 = vadd.f32 %v6215_v18, %v6208_v40  ;;  %v6218_v48 = vadd.f32 %v6216_v28, %v6209_v8 }
0x258c   : > { %v6222_v9 = vpop.permute.xlu1 %6221 }
0x258d   : > { %v6224_v57 = vadd.f32 %v6222_v9, %v6217_v0  ;;  %v6225_v58 = vadd.f32 %v6222_v9, %v6218_v48 }
0x258f   : > { %v6226_v33 = vmax.f32 %v6224_v57, 0.0  ;;  %v6227_v4 = vmax.f32 %v6225_v58, 0.0 }
0x2590   : > { %v6231_v61 = vpop.permute.xlu1 %6230 }
0x2591   : > { %v6233_v10 = vmul.f32 %v6231_v61, %v6226_v33  ;;  %v6234_v37 = vmul.f32 %v6231_v61, %v6227_v4 }
0x2593   : > { %6240 = vmatprep.subr.mxu1 %v6234_v37 }
0x2594   : > { %6241 = vmatpush1.msra.mxu1 %v6233_v10 }
0x2595   : > { %6545 = vmatmul.mubr.msk.f32.vlgmr.msra.gmra.mrb[36].mxu1 %vm5157_vm6, %v10960_v53 }
0x25b5   : > { %v6192_v30 = vpop.xlane.xlu0 %6191 }
0x25b6   : > { %v6197_v38 = vmul.f32 0.00390625, %v6192_v30 }
0x25b8   : > { %v6202_v1 = vadd.f32 %v6197_v38, %v5813_v29 }
0x25ba   : > { %6237 = vperm.xlu1 %7048, %v6202_v1  }
0x25c2   : > { %v5939_v22 = vpop.xlane.xlu1 %5938 }
0x25c3   : > { %v5945_v15 = vmul.f32 0.00390625, %v5939_v22 }
0x25c5   : > { %v5950_v17 = vadd.f32 %v5945_v15, %v5813_v29 }
0x25c7   : > { %6001 = vperm.xlu0 %7046, %v5950_v17  }
0x2639   : > { %v6238_v7 = vpop.permute.xlu1 %6237 }
0x2646   : > { %v6002_v16 = vpop.permute.xlu0 %6001 }
0x2647   : > { %v6074_v60 = vadd.f32 %v10978_v46, %v6002_v16  ;;  %v6076_v12 = vadd.f32 %v10980_v31, %v6002_v16 }
0x2649   : > { %v6080_v21 = vcombine.low %v6074_v60, %v6076_v12 }
0x264b   : > { %6082 = vst [vmem:[%s490_s14] sm:$0x77] %v6080_v21 }
0x2668   : > { %v6306_v53 = vpop.f32.mrb[36].mxu1 }
0x2669   : > { %v6307_v54 = vadd.f32 %v6306_v53, %v6238_v7  ;;  %v6308_v35 = vpop.f32.mrb[37].mxu1 }
0x266a   : > { %v6309_v13 = vadd.f32 %v6308_v35, %v6238_v7 }
0x266c   : > { %v6313_v5 = vcombine.low %v6307_v54, %v6309_v13 }
0x266e   : > { %6315 = vst [vmem:[%s495_s19] sm:$0x77] %v6313_v5 }
0x266f PF: > { %s11264_s17 = sld [smem:[#allocation13_spill]] }
0x2675   : > { %s26_s21 = sadd.s32 1, %s11264_s17  }
0x2676   : > { %p23_p1 = scmp.ge.s32.totalorder %s26_s21, 4  }
0x2678   :  { %25 = sbr.rel (!%p23_p1) target bundleno = 5 (0x5), region = 149 }
0x267f   :  { %6353 = vsyncpa [#allocation3], 1 }
0x2680   :  { %6355 = vsyncpa [#allocation3 + $0x1], 1 }
0x2681   :  { %6356 = vsyncpa [#allocation5], 1 }
0x2682   :  { %6357 = vsyncpa [#allocation8], 1 }

</bundles_post_ra>
